<compile_context>
chip_gen: v7x
topology: tpu7x:2x2x1
jax: 0.10.0
libtpu: 0.0.40
codegen_flags: <defaults>
</compile_context>

<pallas_src>
import functools

import jax
import jax.numpy as jnp
from jax.experimental import pallas as pl
from jax.experimental.pallas import tpu as pltpu

EPS = 1e-5                      # PyTorch BatchNorm2d default eps
LANE = 128                      # TPU lane width
VMEM_LIMIT = 64 * 1024 * 1024   # explicit scoped-VMEM budget (fits v5e/v6e/v7x)


def _round_up(x, m):
    return (x + m - 1) // m * m


def _swish(x):
    # sigmoid = 1 / (1 + exp(-x)); exp and the approximate reciprocal both run on the
    # EUP, keeping the VALU free for the BN/add epilogue.
    return x * pl.reciprocal(1.0 + jnp.exp(-x), approx=True)


def _swish_ref(x):
    return x * (1.0 / (1.0 + jnp.exp(-x)))


# ------------------------------ Pallas kernels ------------------------------ #

def _upconv_kernel(x_ref, w_ref, b_ref, o_ref):
    """ConvTranspose2d(k=2, s=2) as a row-tiled matmul: (T, Cin)bf16 @ (Cin, 4*Cout)bf16."""
    acc = jnp.dot(x_ref[...], w_ref[...], preferred_element_type=jnp.float32)
    o_ref[...] = (acc + b_ref[...]).astype(o_ref.dtype)


def _assemble_conv1_stats_kernel(x2_ref, x1u_ref, w_ref, mask_ref, y_ref, st_ref,
                                 xe_ref, *, H, W, H1, W1, WP, EXT, P, COP,
                                 C2, C1H, PY0, PX0):
    """Assemble (pad + concat + halo) in VMEM, conv1 (9 shifted-slice matmuls), stats.

    The concatenated / spatially padded / halo-extended conv1 input never exists in
    HBM: it is built per image in the xe scratch from the skip rows and the upsampled
    rows, then consumed directly by the tap matmuls.
    """
    n = pl.program_id(1)

    @pl.when(n == 0)
    def _():
        st_ref[...] = jnp.zeros_like(st_ref)
        xe_ref[...] = jnp.zeros_like(xe_ref)   # ring / halo / channel-pad zeros (once)

    # skip connection -> channels [0, C2)
    # TODO(synk): switch to pl.loop for very large H; unrolled is fine at these sizes.
    for y in range(H):
        dst = EXT + (1 + y) * WP + 1
        xe_ref[pl.ds(dst, W), 0:C2] = x2_ref[0, pl.ds(y * W, W), :].astype(jnp.float32)

    # upsampled branch -> channels [C2, C2+C1H), shifted by the F.pad offsets
    for r in range(2 * H1):
        dst = EXT + (PY0 + 1 + r) * WP + (PX0 + 1)
        xe_ref[pl.ds(dst, 2 * W1), C2:C2 + C1H] = (
            x1u_ref[0, pl.ds(r * 2 * W1, 2 * W1), :].astype(jnp.float32))

    # conv1: 9 shifted-slice matmuls, bf16 operands, f32 accumulation
    acc = jnp.zeros((P, COP), jnp.float32)
    for t in range(9):
        ky, kx = t // 3, t % 3
        shift = EXT + (ky - 1) * WP + (kx - 1)
        acc = acc + jnp.dot(xe_ref[pl.ds(shift, P), :].astype(jnp.bfloat16),
                            w_ref[t, :, :], preferred_element_type=jnp.float32)
    y_ref[0, :, :] = acc.astype(y_ref.dtype)          # bf16 HBM staging

    m = mask_ref[...]                                  # (P, 1) interior mask
    ym = acc * m                                       # stats from the f32 accumulator
    st_ref[0, pl.ds(0, 1), :] = st_ref[0, pl.ds(0, 1), :] + jnp.sum(ym, 0, keepdims=True)
    st_ref[0, pl.ds(1, 1), :] = st_ref[0, pl.ds(1, 1), :] + jnp.sum(acc * ym, 0, keepdims=True)


def _bn1_te_conv2_stats_kernel(y1_ref, s1_ref, g1_ref, b1_ref, temb_ref, wt_ref,
                               bt_ref, mask_ref, w_ref, y2_ref, st_ref, h1e_ref,
                               *, P, WP, EXT, COP, CNT):
    """BN1(batch stats) -> Swish -> +Swish(Linear(t_emb)) -> conv2 (+ stats).

    h1 never leaves VMEM: it is normalized, time-shifted, masked into the
    halo-extended scratch and consumed by the 9 conv2 tap matmuls here.
    """
    n = pl.program_id(1)

    @pl.when(n == 0)
    def _():
        st_ref[...] = jnp.zeros_like(st_ref)
        h1e_ref[...] = jnp.zeros_like(h1e_ref)         # zero halo extensions once

    inv_cnt = 1.0 / CNT
    mean = s1_ref[pl.ds(0, 1), :] * inv_cnt
    var = s1_ref[pl.ds(1, 1), :] * inv_cnt - mean * mean
    scale = jax.lax.rsqrt(var + EPS) * g1_ref[...]
    h = (y1_ref[0, :, :].astype(jnp.float32) - mean) * scale + b1_ref[...]
    h = _swish(h)

    # time embedding for this image: Swish(t_emb[n] @ Wt + bt), rows broadcast
    te = jnp.dot(temb_ref[0, :, :], wt_ref[...],
                 preferred_element_type=jnp.float32) + bt_ref[...]
    te = _swish(te)[0:1, :]                            # (1, COP)

    m = mask_ref[...]
    h = (h + te) * m                                   # ring rows -> 0 == conv2 padding
    h1e_ref[pl.ds(EXT, P), :] = h

    acc = jnp.zeros((P, COP), jnp.float32)
    for t in range(9):
        ky, kx = t // 3, t % 3
        shift = EXT + (ky - 1) * WP + (kx - 1)
        acc = acc + jnp.dot(h1e_ref[pl.ds(shift, P), :].astype(jnp.bfloat16),
                            w_ref[t, :, :], preferred_element_type=jnp.float32)
    y2_ref[0, :, :] = acc.astype(y2_ref.dtype)

    ym = acc * m
    st_ref[0, pl.ds(0, 1), :] = st_ref[0, pl.ds(0, 1), :] + jnp.sum(ym, 0, keepdims=True)
    st_ref[0, pl.ds(1, 1), :] = st_ref[0, pl.ds(1, 1), :] + jnp.sum(acc * ym, 0, keepdims=True)


def _bn2_swish_crop_kernel(y2_ref, s2_ref, g2_ref, b2_ref, o_ref, *, H, W, WP, CNT):
    """BN2 + Swish; writes only the H*W interior rows (drops the padded ring)."""
    inv_cnt = 1.0 / CNT
    mean = s2_ref[pl.ds(0, 1), :] * inv_cnt
    var = s2_ref[pl.ds(1, 1), :] * inv_cnt - mean * mean
    scale = jax.lax.rsqrt(var + EPS) * g2_ref[...]
    h = _swish((y2_ref[0, :, :].astype(jnp.float32) - mean) * scale + b2_ref[...])
    for y in range(H):
        src = (1 + y) * WP + 1
        o_ref[0, pl.ds(y * W, W), :] = h[src:src + W, :]


# --------------------------------- wrapper ---------------------------------- #

def up_forward(x1, x2, t_emb, params):
    f32, bf16 = jnp.float32, jnp.bfloat16
    N, C1, H1, W1 = x1.shape
    C1h = C1 // 2
    _, C2, H, W = x2.shape
    Cout, Cin = params["w1"].shape[0], params["w1"].shape[1]
    Ct = params["wt"].shape[1]

    # ---------------- ConvTranspose2d(C1 -> C1//2, k=2, s=2) -----------------
    R1 = N * H1 * W1
    KUP = 4 * C1h
    KUPp = _round_up(KUP, LANE)                    # lane-dense output columns
    xr = jnp.transpose(x1, (0, 2, 3, 1)).reshape(R1, C1).astype(bf16)
    w_up = jnp.transpose(params["wu"], (0, 2, 3, 1)).reshape(C1, KUP)
    w_up = jnp.pad(w_up, ((0, 0), (0, KUPp - KUP))).astype(bf16)
    b_up = jnp.pad(jnp.tile(params["bu"], 4),
                   (0, KUPp - KUP)).reshape(1, KUPp).astype(f32)

    row_t = min(1024, _round_up(R1, 8))
    R1p = _round_up(R1, row_t)
    xr = jnp.pad(xr, ((0, R1p - R1), (0, 0)))

    y_up = pl.pallas_call(
        _upconv_kernel,
        out_shape=jax.ShapeDtypeStruct((R1p, KUPp), bf16),
        grid=(R1p // row_t,),
        in_specs=[
            pl.BlockSpec((row_t, C1), lambda i: (i, 0)),
            pl.BlockSpec((C1, KUPp), lambda i: (0, 0)),
            pl.BlockSpec((1, KUPp), lambda i: (0, 0)),
        ],
        out_specs=pl.BlockSpec((row_t, KUPp), lambda i: (i, 0)),
        compiler_params=pltpu.CompilerParams(
            dimension_semantics=("parallel",), vmem_limit_bytes=VMEM_LIMIT),
    )(xr, w_up, b_up)

    # Remaining XLA layout glue (each touched exactly once, in bf16):
    #  - 2x2 de-interleave of the upconv output -> per-image NHWC rows (no padding)
    #  - NCHW -> NHWC of the skip connection
    x1u = (y_up[:R1, :KUP]
           .reshape(N, H1, W1, 2, 2, C1h)
           .transpose(0, 1, 3, 2, 4, 5)
           .reshape(N, 4 * H1 * W1, C1h))
    x2r = jnp.transpose(x2, (0, 2, 3, 1)).reshape(N, H * W, C2).astype(bf16)

    # ----------------- DoubleConvWithTimeEmbedding (fused) -------------------
    Hp, Wp = H + 2, W + 2
    P = Hp * Wp                                   # padded-grid positions per image
    EXT = Wp + 1                                  # halo so 3x3 taps are contiguous shifts
    E = _round_up(P + 2 * EXT, 8)
    CIP = _round_up(Cin, LANE)
    COP = _round_up(Cout, LANE)
    CNT = float(N * H * W)                        # BatchNorm population size
    diffY, diffX = H - 2 * H1, W - 2 * W1
    PY0, PX0 = diffY // 2, diffX // 2

    NSPLIT = 2 if (N % 2 == 0 and N >= 2) else 1  # v7x: shard image groups over 2 TCs
    NPC = N // NSPLIT
    img = lambda p, n: (p * NPC + n, 0, 0)

    # interior mask on the padded grid (excludes ring rows from BN stats)
    jj = jax.lax.broadcasted_iota(jnp.int32, (Hp, Wp), 0)
    ii = jax.lax.broadcasted_iota(jnp.int32, (Hp, Wp), 1)
    mask = (((jj >= 1) & (jj <= H) & (ii >= 1) & (ii <= W))
            .astype(f32).reshape(P, 1))

    # per-tap conv weights (t = ky*3 + kx), lane-padded, bf16 for the MXU
    w1 = jnp.pad(jnp.transpose(params["w1"], (2, 3, 1, 0)).reshape(9, Cin, Cout),
                 ((0, 0), (0, CIP - Cin), (0, COP - Cout))).astype(bf16)
    w2 = jnp.pad(jnp.transpose(params["w2"], (2, 3, 1, 0)).reshape(9, Cout, Cout),
                 ((0, 0), (0, COP - Cout), (0, COP - Cout))).astype(bf16)
    g1 = jnp.pad(params["g1"], (0, COP - Cout)).reshape(1, COP).astype(f32)
    b1 = jnp.pad(params["b1"], (0, COP - Cout)).reshape(1, COP).astype(f32)
    g2 = jnp.pad(params["g2"], (0, COP - Cout)).reshape(1, COP).astype(f32)
    b2 = jnp.pad(params["b2"], (0, COP - Cout)).reshape(1, COP).astype(f32)
    wt = jnp.pad(params["wt"].T, ((0, 0), (0, COP - Cout))).astype(f32)   # (Ct, COP)
    bt = jnp.pad(params["bt"], (0, COP - Cout)).reshape(1, COP).astype(f32)
    temb_b = jnp.broadcast_to(t_emb.astype(f32)[:, None, :], (N, 8, Ct))

    acc_params = pltpu.CompilerParams(
        dimension_semantics=("parallel", "arbitrary"),   # images: per-TC groups x seq
        vmem_limit_bytes=VMEM_LIMIT)

    # --- pass 1: assemble + conv1 + privatized batch-stat accumulation -------
    y1, st1p = pl.pallas_call(
        functools.partial(_assemble_conv1_stats_kernel, H=H, W=W, H1=H1, W1=W1,
                          WP=Wp, EXT=EXT, P=P, COP=COP, C2=C2, C1H=C1h,
                          PY0=PY0, PX0=PX0),
        out_shape=(jax.ShapeDtypeStruct((N, P, COP), bf16),
                   jax.ShapeDtypeStruct((NSPLIT, 8, COP), f32)),
        grid=(NSPLIT, NPC),
        in_specs=[
            pl.BlockSpec((1, H * W, C2), img),               # skip rows (bf16)
            pl.BlockSpec((1, 4 * H1 * W1, C1h), img),        # upsampled rows (bf16)
            pl.BlockSpec((9, CIP, COP), lambda p, n: (0, 0, 0)),
            pl.BlockSpec((P, 1), lambda p, n: (0, 0)),
        ],
        out_specs=(pl.BlockSpec((1, P, COP), img),
                   pl.BlockSpec((1, 8, COP), lambda p, n: (p, 0, 0))),
        scratch_shapes=[pltpu.VMEM((E, CIP), f32)],
        compiler_params=acc_params,
    )(x2r, x1u, w1, mask)
    stats1 = jnp.sum(st1p, axis=0)                           # reduce per-TC partials

    # --- pass 2: BN1 + Swish + time-emb + conv2 + stat accumulation ----------
    y2, st2p = pl.pallas_call(
        functools.partial(_bn1_te_conv2_stats_kernel, P=P, WP=Wp, EXT=EXT,
                          COP=COP, CNT=CNT),
        out_shape=(jax.ShapeDtypeStruct((N, P, COP), bf16),
                   jax.ShapeDtypeStruct((NSPLIT, 8, COP), f32)),
        grid=(NSPLIT, NPC),
        in_specs=[
            pl.BlockSpec((1, P, COP), img),                  # y1 (bf16 staging)
            pl.BlockSpec((8, COP), lambda p, n: (0, 0)),     # stats1 (reduced)
            pl.BlockSpec((1, COP), lambda p, n: (0, 0)),     # gamma1
            pl.BlockSpec((1, COP), lambda p, n: (0, 0)),     # beta1
            pl.BlockSpec((1, 8, Ct), img),                   # t_emb[n]
            pl.BlockSpec((Ct, COP), lambda p, n: (0, 0)),    # Wt
            pl.BlockSpec((1, COP), lambda p, n: (0, 0)),     # bt
            pl.BlockSpec((P, 1), lambda p, n: (0, 0)),       # interior mask
            pl.BlockSpec((9, COP, COP), lambda p, n: (0, 0, 0)),  # conv2 taps
        ],
        out_specs=(pl.BlockSpec((1, P, COP), img),
                   pl.BlockSpec((1, 8, COP), lambda p, n: (p, 0, 0))),
        scratch_shapes=[pltpu.VMEM((E, COP), f32)],
        compiler_params=acc_params,
    )(y1, stats1, g1, b1, temb_b, wt, bt, mask, w2)
    stats2 = jnp.sum(st2p, axis=0)

    # --- pass 3: BN2 + Swish, interior rows only ------------------------------
    y3 = pl.pallas_call(
        functools.partial(_bn2_swish_crop_kernel, H=H, W=W, WP=Wp, CNT=CNT),
        out_shape=jax.ShapeDtypeStruct((N, H * W, COP), f32),
        grid=(N,),
        in_specs=[
            pl.BlockSpec((1, P, COP), lambda n: (n, 0, 0)),
            pl.BlockSpec((8, COP), lambda n: (0, 0)),
            pl.BlockSpec((1, COP), lambda n: (0, 0)),
            pl.BlockSpec((1, COP), lambda n: (0, 0)),
        ],
        out_specs=pl.BlockSpec((1, H * W, COP), lambda n: (n, 0, 0)),
        compiler_params=pltpu.CompilerParams(
            dimension_semantics=("parallel",), vmem_limit_bytes=VMEM_LIMIT),
    )(y2, stats2, g2, b2)

    out = y3.reshape(N, H, W, COP)[:, :, :, :Cout]
    return jnp.transpose(out, (0, 3, 1, 2))       # back to NCHW


# ----------------------------- pure-JAX reference --------------------------- #

def reference(x1, x2, t_emb, p):
    # ConvTranspose2d(k=2, s=2) == input-dilated conv with flipped/transposed kernel
    w_conv = jnp.transpose(jnp.flip(p["wu"], (2, 3)), (1, 0, 2, 3))
    x1u = jax.lax.conv_general_dilated(
        x1, w_conv, window_strides=(1, 1), padding=((1, 1), (1, 1)),
        lhs_dilation=(2, 2), dimension_numbers=("NCHW", "OIHW", "NCHW"))
    x1u = x1u + p["bu"][None, :, None, None]

    diffY = x2.shape[2] - x1u.shape[2]
    diffX = x2.shape[3] - x1u.shape[3]
    x1u = jnp.pad(x1u, ((0, 0), (0, 0),
                        (diffY // 2, diffY - diffY // 2),
                        (diffX // 2, diffX - diffX // 2)))
    x = jnp.concatenate([x2, x1u], axis=1)

    def conv(v, w):
        return jax.lax.conv_general_dilated(
            v, w, window_strides=(1, 1), padding=((1, 1), (1, 1)),
            dimension_numbers=("NCHW", "OIHW", "NCHW"))

    def bn(v, g, b):
        mean = jnp.mean(v, axis=(0, 2, 3), keepdims=True)
        var = jnp.mean(jnp.square(v - mean), axis=(0, 2, 3), keepdims=True)
        return ((v - mean) * jax.lax.rsqrt(var + EPS)
                * g.reshape(1, -1, 1, 1) + b.reshape(1, -1, 1, 1))

    h = _swish_ref(bn(conv(x, p["w1"]), p["g1"], p["b1"]))
    te = _swish_ref(t_emb @ p["wt"].T + p["bt"])
    h = h + te[:, :, None, None]
    return _swish_ref(bn(conv(h, p["w2"]), p["g2"], p["b2"]))


# ------------------------------------ main ----------------------------------- #

if __name__ == "__main__":
    N = 2
    C_up_in = 8                 # channels_in of Up (== DoubleConv channels_in)
    C_up_out = C_up_in // 2
    C_skip = C_up_in - C_up_out
    Cout = 8
    Ct = 8
    H1 = W1 = 8                 # low-resolution input spatial size
    H = W = 16                  # skip-connection / output spatial size

    key = jax.random.PRNGKey(0)
    ks = jax.random.split(key, 13)
    params = {
        "wu": 0.1 * jax.random.normal(ks[0], (C_up_in, C_up_out, 2, 2), jnp.float32),
        "bu": 0.1 * jax.random.normal(ks[1], (C_up_out,), jnp.float32),
        "w1": 0.1 * jax.random.normal(ks[2], (Cout, C_up_in, 3, 3), jnp.float32),
        "g1": 1.0 + 0.1 * jax.random.normal(ks[3], (Cout,), jnp.float32),
        "b1": 0.1 * jax.random.normal(ks[4], (Cout,), jnp.float32),
        "wt": 0.1 * jax.random.normal(ks[5], (Cout, Ct), jnp.float32),
        "bt": 0.1 * jax.random.normal(ks[6], (Cout,), jnp.float32),
        "w2": 0.1 * jax.random.normal(ks[7], (Cout, Cout, 3, 3), jnp.float32),
        "g2": 1.0 + 0.1 * jax.random.normal(ks[8], (Cout,), jnp.float32),
        "b2": 0.1 * jax.random.normal(ks[9], (Cout,), jnp.float32),
    }
    x1 = jax.random.normal(ks[10], (N, C_up_in, H1, W1), jnp.float32)
    x2 = jax.random.normal(ks[11], (N, C_skip, H, W), jnp.float32)
    t_emb = jax.random.normal(ks[12], (N, Ct), jnp.float32)

    out = jax.block_until_ready(jax.jit(up_forward)(x1, x2, t_emb, params))
    ref = jax.block_until_ready(reference(x1, x2, t_emb, params))

    assert out.shape == (N, Cout, H, W), out.shape
    # bf16 MXU operands + bf16 y1/y2 staging: tolerance loosened vs f32 reference.
    err = float(jnp.max(jnp.abs(out - ref)))
    assert jnp.allclose(out, ref, atol=5e-2, rtol=5e-2), f"max abs diff = {err}"
    print("KERNEL_OK")
</pallas_src>

<mosaic_0001>
module attributes {stable_mosaic.version = 11 : i64} {
  func.func @_upconv_kernel(%arg0: i32, %arg1: memref<128x8xbf16, #tpu.memory_space<vmem>>, %arg2: memref<8x128xbf16, #tpu.memory_space<vmem>>, %arg3: memref<1x128xf32, #tpu.memory_space<vmem>>, %arg4: memref<128x128xbf16, #tpu.memory_space<vmem>>) attributes {dimension_semantics = [#tpu.dimension_semantics<parallel>], iteration_bounds = array<i64: 1>, scalar_prefetch = 0 : i64, scratch_operands = 0 : i64, tpu.core_type = #tpu.core_type<tc>, window_params = [{transform_indices = @transform_0, window_bounds = array<i64: 128, 8>}, {pipeline_mode = #tpu.pipeline_mode<synchronous>, transform_indices = @transform_1, window_bounds = array<i64: 8, 128>}, {pipeline_mode = #tpu.pipeline_mode<synchronous>, transform_indices = @transform_2, window_bounds = array<i64: 1, 128>}, {transform_indices = @transform_3, window_bounds = array<i64: 128, 128>}]} {
    %c0 = arith.constant 0 : index
    %c0_0 = arith.constant 0 : index
    %0 = vector.load %arg1[%c0, %c0_0] : memref<128x8xbf16, #tpu.memory_space<vmem>>, vector<128x8xbf16>
    %c0_1 = arith.constant 0 : index
    %c0_2 = arith.constant 0 : index
    %1 = vector.load %arg2[%c0_1, %c0_2] : memref<8x128xbf16, #tpu.memory_space<vmem>>, vector<8x128xbf16>
    %cst = arith.constant dense<0.000000e+00> : vector<128x128xf32>
    %2 = tpu.matmul %0, %1, %cst {dimension_numbers = #tpu.dot_dimension_numbers<[1], [0], [0], [1], [0, 0, 1, 1], [], []>} : vector<128x8xbf16>, vector<8x128xbf16>, vector<128x128xf32> -> vector<128x128xf32>
    %c0_3 = arith.constant 0 : index
    %c0_4 = arith.constant 0 : index
    %3 = vector.load %arg3[%c0_3, %c0_4] : memref<1x128xf32, #tpu.memory_space<vmem>>, vector<1x128xf32>
    %4 = vector.broadcast %3 : vector<1x128xf32> to vector<128x128xf32>
    %5 = arith.addf %2, %4 : vector<128x128xf32>
    %6 = arith.truncf %5 : vector<128x128xf32> to vector<128x128xbf16>
    %c0_5 = arith.constant 0 : index
    %c0_6 = arith.constant 0 : index
    %7 = vector.load %arg4[%c0_5, %c0_6] : memref<128x128xbf16, #tpu.memory_space<vmem>>, vector<128x128xbf16>
    tpu.vector_store %arg4[%c0_5, %c0_6], %6 {strides = array<i32>} : memref<128x128xbf16, #tpu.memory_space<vmem>>, vector<128x128xbf16>,
    return
  }
  func.func @transform_0(%arg0: i32) -> (i32, i32) {
    %c0_i32 = arith.constant 0 : i32
    %c0_i32_0 = arith.constant 0 : i32
    return %arg0, %c0_i32 : i32, i32
  }
  func.func @transform_1(%arg0: i32) -> (i32, i32) {
    %c0_i32 = arith.constant 0 : i32
    %c0_i32_0 = arith.constant 0 : i32
    %c0_i32_1 = arith.constant 0 : i32
    return %c0_i32, %c0_i32_0 : i32, i32
  }
  func.func @transform_2(%arg0: i32) -> (i32, i32) {
    %c0_i32 = arith.constant 0 : i32
    %c0_i32_0 = arith.constant 0 : i32
    %c0_i32_1 = arith.constant 0 : i32
    return %c0_i32, %c0_i32_0 : i32, i32
  }
  func.func @transform_3(%arg0: i32) -> (i32, i32) {
    %c0_i32 = arith.constant 0 : i32
    %c0_i32_0 = arith.constant 0 : i32
    return %arg0, %c0_i32 : i32, i32
  }
}

module attributes {stable_mosaic.version = 11 : i64} {
  func.func @_assemble_conv1_stats_kernel(%arg0: i32, %arg1: i32, %arg2: memref<1x256x4xbf16, #tpu.memory_space<vmem>>, %arg3: memref<1x256x4xbf16, #tpu.memory_space<vmem>>, %arg4: memref<9x128x128xbf16, #tpu.memory_space<vmem>>, %arg5: memref<324x1xf32, #tpu.memory_space<vmem>>, %arg6: memref<1x324x128xbf16, #tpu.memory_space<vmem>>, %arg7: memref<1x8x128xf32, #tpu.memory_space<vmem>>, %arg8: memref<368x128xf32, #tpu.memory_space<vmem>>) attributes {dimension_semantics = [#tpu.dimension_semantics<parallel>, #tpu.dimension_semantics<arbitrary>], iteration_bounds = array<i64: 2, 1>, scalar_prefetch = 0 : i64, scratch_operands = 1 : i64, tpu.core_type = #tpu.core_type<tc>, window_params = [{transform_indices = @transform_0, window_bounds = array<i64: 1, 256, 4>}, {transform_indices = @transform_1, window_bounds = array<i64: 1, 256, 4>}, {pipeline_mode = #tpu.pipeline_mode<synchronous>, transform_indices = @transform_2, window_bounds = array<i64: 9, 128, 128>}, {pipeline_mode = #tpu.pipeline_mode<synchronous>, transform_indices = @transform_3, window_bounds = array<i64: 324, 1>}, {transform_indices = @transform_4, window_bounds = array<i64: 1, 324, 128>}, {transform_indices = @transform_5, window_bounds = array<i64: 1, 8, 128>}]} {
    %c0_i32 = arith.constant 0 : i32
    %0 = arith.cmpi eq, %arg1, %c0_i32 : i32
    %1 = arith.extui %0 : i1 to i32
    %c0_i32_0 = arith.constant 0 : i32
    %2 = arith.cmpi ne, %1, %c0_i32_0 : i32
    scf.if %2 {
      %cst_190 = arith.constant 0.000000e+00 : f32
      %210 = vector.broadcast %cst_190 : f32 to vector<1x8x128xf32>
      %c0_191 = arith.constant 0 : index
      %c0_192 = arith.constant 0 : index
      %c0_193 = arith.constant 0 : index
      %211 = vector.load %arg7[%c0_191, %c0_192, %c0_193] : memref<1x8x128xf32, #tpu.memory_space<vmem>>, vector<1x8x128xf32>
      tpu.vector_store %arg7[%c0_191, %c0_192, %c0_193], %210 {strides = array<i32>} : memref<1x8x128xf32, #tpu.memory_space<vmem>>, vector<1x8x128xf32>,
      %cst_194 = arith.constant 0.000000e+00 : f32
      %212 = vector.broadcast %cst_194 : f32 to vector<368x128xf32>
      %c0_195 = arith.constant 0 : index
      %c0_196 = arith.constant 0 : index
      %213 = vector.load %arg8[%c0_195, %c0_196] : memref<368x128xf32, #tpu.memory_space<vmem>>, vector<368x128xf32>
      tpu.vector_store %arg8[%c0_195, %c0_196], %212 {strides = array<i32>} : memref<368x128xf32, #tpu.memory_space<vmem>>, vector<368x128xf32>,
    } else {
    }
    %c0 = arith.constant 0 : index
    %c0_1 = arith.constant 0 : index
    %c0_2 = arith.constant 0 : index
    %3 = vector.load %arg2[%c0, %c0_1, %c0_2] : memref<1x256x4xbf16, #tpu.memory_space<vmem>>, vector<1x16x4xbf16>
    %4 = vector.shape_cast %3 : vector<1x16x4xbf16> to vector<16x4xbf16>
    %5 = arith.extf %4 : vector<16x4xbf16> to vector<16x4xf32>
    %c38 = arith.constant 38 : index
    %c0_3 = arith.constant 0 : index
    %6 = vector.load %arg8[%c38, %c0_3] : memref<368x128xf32, #tpu.memory_space<vmem>>, vector<16x4xf32>
    tpu.vector_store %arg8[%c38, %c0_3], %5 {strides = array<i32>} : memref<368x128xf32, #tpu.memory_space<vmem>>, vector<16x4xf32>,
    %c0_4 = arith.constant 0 : index
    %c16 = arith.constant 16 : index
    %c0_5 = arith.constant 0 : index
    %7 = vector.load %arg2[%c0_4, %c16, %c0_5] : memref<1x256x4xbf16, #tpu.memory_space<vmem>>, vector<1x16x4xbf16>
    %8 = vector.shape_cast %7 : vector<1x16x4xbf16> to vector<16x4xbf16>
    %9 = arith.extf %8 : vector<16x4xbf16> to vector<16x4xf32>
    %c56 = arith.constant 56 : index
    %c0_6 = arith.constant 0 : index
    %10 = vector.load %arg8[%c56, %c0_6] : memref<368x128xf32, #tpu.memory_space<vmem>>, vector<16x4xf32>
    tpu.vector_store %arg8[%c56, %c0_6], %9 {strides = array<i32>} : memref<368x128xf32, #tpu.memory_space<vmem>>, vector<16x4xf32>,
    %c0_7 = arith.constant 0 : index
    %c32 = arith.constant 32 : index
    %c0_8 = arith.constant 0 : index
    %11 = vector.load %arg2[%c0_7, %c32, %c0_8] : memref<1x256x4xbf16, #tpu.memory_space<vmem>>, vector<1x16x4xbf16>
    %12 = vector.shape_cast %11 : vector<1x16x4xbf16> to vector<16x4xbf16>
    %13 = arith.extf %12 : vector<16x4xbf16> to vector<16x4xf32>
    %c74 = arith.constant 74 : index
    %c0_9 = arith.constant 0 : index
    %14 = vector.load %arg8[%c74, %c0_9] : memref<368x128xf32, #tpu.memory_space<vmem>>, vector<16x4xf32>
    tpu.vector_store %arg8[%c74, %c0_9], %13 {strides = array<i32>} : memref<368x128xf32, #tpu.memory_space<vmem>>, vector<16x4xf32>,
    %c0_10 = arith.constant 0 : index
    %c48 = arith.constant 48 : index
    %c0_11 = arith.constant 0 : index
    %15 = vector.load %arg2[%c0_10, %c48, %c0_11] : memref<1x256x4xbf16, #tpu.memory_space<vmem>>, vector<1x16x4xbf16>
    %16 = vector.shape_cast %15 : vector<1x16x4xbf16> to vector<16x4xbf16>
    %17 = arith.extf %16 : vector<16x4xbf16> to vector<16x4xf32>
    %c92 = arith.constant 92 : index
    %c0_12 = arith.constant 0 : index
    %18 = vector.load %arg8[%c92, %c0_12] : memref<368x128xf32, #tpu.memory_space<vmem>>, vector<16x4xf32>
    tpu.vector_store %arg8[%c92, %c0_12], %17 {strides = array<i32>} : memref<368x128xf32, #tpu.memory_space<vmem>>, vector<16x4xf32>,
    %c0_13 = arith.constant 0 : index
    %c64 = arith.constant 64 : index
    %c0_14 = arith.constant 0 : index
    %19 = vector.load %arg2[%c0_13, %c64, %c0_14] : memref<1x256x4xbf16, #tpu.memory_space<vmem>>, vector<1x16x4xbf16>
    %20 = vector.shape_cast %19 : vector<1x16x4xbf16> to vector<16x4xbf16>
    %21 = arith.extf %20 : vector<16x4xbf16> to vector<16x4xf32>
    %c110 = arith.constant 110 : index
    %c0_15 = arith.constant 0 : index
    %22 = vector.load %arg8[%c110, %c0_15] : memref<368x128xf32, #tpu.memory_space<vmem>>, vector<16x4xf32>
    tpu.vector_store %arg8[%c110, %c0_15], %21 {strides = array<i32>} : memref<368x128xf32, #tpu.memory_space<vmem>>, vector<16x4xf32>,
    %c0_16 = arith.constant 0 : index
    %c80 = arith.constant 80 : index
    %c0_17 = arith.constant 0 : index
    %23 = vector.load %arg2[%c0_16, %c80, %c0_17] : memref<1x256x4xbf16, #tpu.memory_space<vmem>>, vector<1x16x4xbf16>
    %24 = vector.shape_cast %23 : vector<1x16x4xbf16> to vector<16x4xbf16>
    %25 = arith.extf %24 : vector<16x4xbf16> to vector<16x4xf32>
    %c128 = arith.constant 128 : index
    %c0_18 = arith.constant 0 : index
    %26 = vector.load %arg8[%c128, %c0_18] : memref<368x128xf32, #tpu.memory_space<vmem>>, vector<16x4xf32>
    tpu.vector_store %arg8[%c128, %c0_18], %25 {strides = array<i32>} : memref<368x128xf32, #tpu.memory_space<vmem>>, vector<16x4xf32>,
    %c0_19 = arith.constant 0 : index
    %c96 = arith.constant 96 : index
    %c0_20 = arith.constant 0 : index
    %27 = vector.load %arg2[%c0_19, %c96, %c0_20] : memref<1x256x4xbf16, #tpu.memory_space<vmem>>, vector<1x16x4xbf16>
    %28 = vector.shape_cast %27 : vector<1x16x4xbf16> to vector<16x4xbf16>
    %29 = arith.extf %28 : vector<16x4xbf16> to vector<16x4xf32>
    %c146 = arith.constant 146 : index
    %c0_21 = arith.constant 0 : index
    %30 = vector.load %arg8[%c146, %c0_21] : memref<368x128xf32, #tpu.memory_space<vmem>>, vector<16x4xf32>
    tpu.vector_store %arg8[%c146, %c0_21], %29 {strides = array<i32>} : memref<368x128xf32, #tpu.memory_space<vmem>>, vector<16x4xf32>,
    %c0_22 = arith.constant 0 : index
    %c112 = arith.constant 112 : index
    %c0_23 = arith.constant 0 : index
    %31 = vector.load %arg2[%c0_22, %c112, %c0_23] : memref<1x256x4xbf16, #tpu.memory_space<vmem>>, vector<1x16x4xbf16>
    %32 = vector.shape_cast %31 : vector<1x16x4xbf16> to vector<16x4xbf16>
    %33 = arith.extf %32 : vector<16x4xbf16> to vector<16x4xf32>
    %c164 = arith.constant 164 : index
    %c0_24 = arith.constant 0 : index
    %34 = vector.load %arg8[%c164, %c0_24] : memref<368x128xf32, #tpu.memory_space<vmem>>, vector<16x4xf32>
    tpu.vector_store %arg8[%c164, %c0_24], %33 {strides = array<i32>} : memref<368x128xf32, #tpu.memory_space<vmem>>, vector<16x4xf32>,
    %c0_25 = arith.constant 0 : index
    %c128_26 = arith.constant 128 : index
    %c0_27 = arith.constant 0 : index
    %35 = vector.load %arg2[%c0_25, %c128_26, %c0_27] : memref<1x256x4xbf16, #tpu.memory_space<vmem>>, vector<1x16x4xbf16>
    %36 = vector.shape_cast %35 : vector<1x16x4xbf16> to vector<16x4xbf16>
    %37 = arith.extf %36 : vector<16x4xbf16> to vector<16x4xf32>
    %c182 = arith.constant 182 : index
    %c0_28 = arith.constant 0 : index
    %38 = vector.load %arg8[%c182, %c0_28] : memref<368x128xf32, #tpu.memory_space<vmem>>, vector<16x4xf32>
    tpu.vector_store %arg8[%c182, %c0_28], %37 {strides = array<i32>} : memref<368x128xf32, #tpu.memory_space<vmem>>, vector<16x4xf32>,
    %c0_29 = arith.constant 0 : index
    %c144 = arith.constant 144 : index
    %c0_30 = arith.constant 0 : index
    %39 = vector.load %arg2[%c0_29, %c144, %c0_30] : memref<1x256x4xbf16, #tpu.memory_space<vmem>>, vector<1x16x4xbf16>
    %40 = vector.shape_cast %39 : vector<1x16x4xbf16> to vector<16x4xbf16>
    %41 = arith.extf %40 : vector<16x4xbf16> to vector<16x4xf32>
    %c200 = arith.constant 200 : index
    %c0_31 = arith.constant 0 : index
    %42 = vector.load %arg8[%c200, %c0_31] : memref<368x128xf32, #tpu.memory_space<vmem>>, vector<16x4xf32>
    tpu.vector_store %arg8[%c200, %c0_31], %41 {strides = array<i32>} : memref<368x128xf32, #tpu.memory_space<vmem>>, vector<16x4xf32>,
    %c0_32 = arith.constant 0 : index
    %c160 = arith.constant 160 : index
    %c0_33 = arith.constant 0 : index
    %43 = vector.load %arg2[%c0_32, %c160, %c0_33] : memref<1x256x4xbf16, #tpu.memory_space<vmem>>, vector<1x16x4xbf16>
    %44 = vector.shape_cast %43 : vector<1x16x4xbf16> to vector<16x4xbf16>
    %45 = arith.extf %44 : vector<16x4xbf16> to vector<16x4xf32>
    %c218 = arith.constant 218 : index
    %c0_34 = arith.constant 0 : index
    %46 = vector.load %arg8[%c218, %c0_34] : memref<368x128xf32, #tpu.memory_space<vmem>>, vector<16x4xf32>
    tpu.vector_store %arg8[%c218, %c0_34], %45 {strides = array<i32>} : memref<368x128xf32, #tpu.memory_space<vmem>>, vector<16x4xf32>,
    %c0_35 = arith.constant 0 : index
    %c176 = arith.constant 176 : index
    %c0_36 = arith.constant 0 : index
    %47 = vector.load %arg2[%c0_35, %c176, %c0_36] : memref<1x256x4xbf16, #tpu.memory_space<vmem>>, vector<1x16x4xbf16>
    %48 = vector.shape_cast %47 : vector<1x16x4xbf16> to vector<16x4xbf16>
    %49 = arith.extf %48 : vector<16x4xbf16> to vector<16x4xf32>
    %c236 = arith.constant 236 : index
    %c0_37 = arith.constant 0 : index
    %50 = vector.load %arg8[%c236, %c0_37] : memref<368x128xf32, #tpu.memory_space<vmem>>, vector<16x4xf32>
    tpu.vector_store %arg8[%c236, %c0_37], %49 {strides = array<i32>} : memref<368x128xf32, #tpu.memory_space<vmem>>, vector<16x4xf32>,
    %c0_38 = arith.constant 0 : index
    %c192 = arith.constant 192 : index
    %c0_39 = arith.constant 0 : index
    %51 = vector.load %arg2[%c0_38, %c192, %c0_39] : memref<1x256x4xbf16, #tpu.memory_space<vmem>>, vector<1x16x4xbf16>
    %52 = vector.shape_cast %51 : vector<1x16x4xbf16> to vector<16x4xbf16>
    %53 = arith.extf %52 : vector<16x4xbf16> to vector<16x4xf32>
    %c254 = arith.constant 254 : index
    %c0_40 = arith.constant 0 : index
    %54 = vector.load %arg8[%c254, %c0_40] : memref<368x128xf32, #tpu.memory_space<vmem>>, vector<16x4xf32>
    tpu.vector_store %arg8[%c254, %c0_40], %53 {strides = array<i32>} : memref<368x128xf32, #tpu.memory_space<vmem>>, vector<16x4xf32>,
    %c0_41 = arith.constant 0 : index
    %c208 = arith.constant 208 : index
    %c0_42 = arith.constant 0 : index
    %55 = vector.load %arg2[%c0_41, %c208, %c0_42] : memref<1x256x4xbf16, #tpu.memory_space<vmem>>, vector<1x16x4xbf16>
    %56 = vector.shape_cast %55 : vector<1x16x4xbf16> to vector<16x4xbf16>
    %57 = arith.extf %56 : vector<16x4xbf16> to vector<16x4xf32>
    %c272 = arith.constant 272 : index
    %c0_43 = arith.constant 0 : index
    %58 = vector.load %arg8[%c272, %c0_43] : memref<368x128xf32, #tpu.memory_space<vmem>>, vector<16x4xf32>
    tpu.vector_store %arg8[%c272, %c0_43], %57 {strides = array<i32>} : memref<368x128xf32, #tpu.memory_space<vmem>>, vector<16x4xf32>,
    %c0_44 = arith.constant 0 : index
    %c224 = arith.constant 224 : index
    %c0_45 = arith.constant 0 : index
    %59 = vector.load %arg2[%c0_44, %c224, %c0_45] : memref<1x256x4xbf16, #tpu.memory_space<vmem>>, vector<1x16x4xbf16>
    %60 = vector.shape_cast %59 : vector<1x16x4xbf16> to vector<16x4xbf16>
    %61 = arith.extf %60 : vector<16x4xbf16> to vector<16x4xf32>
    %c290 = arith.constant 290 : index
    %c0_46 = arith.constant 0 : index
    %62 = vector.load %arg8[%c290, %c0_46] : memref<368x128xf32, #tpu.memory_space<vmem>>, vector<16x4xf32>
    tpu.vector_store %arg8[%c290, %c0_46], %61 {strides = array<i32>} : memref<368x128xf32, #tpu.memory_space<vmem>>, vector<16x4xf32>,
    %c0_47 = arith.constant 0 : index
    %c240 = arith.constant 240 : index
    %c0_48 = arith.constant 0 : index
    %63 = vector.load %arg2[%c0_47, %c240, %c0_48] : memref<1x256x4xbf16, #tpu.memory_space<vmem>>, vector<1x16x4xbf16>
    %64 = vector.shape_cast %63 : vector<1x16x4xbf16> to vector<16x4xbf16>
    %65 = arith.extf %64 : vector<16x4xbf16> to vector<16x4xf32>
    %c308 = arith.constant 308 : index
    %c0_49 = arith.constant 0 : index
    %66 = vector.load %arg8[%c308, %c0_49] : memref<368x128xf32, #tpu.memory_space<vmem>>, vector<16x4xf32>
    tpu.vector_store %arg8[%c308, %c0_49], %65 {strides = array<i32>} : memref<368x128xf32, #tpu.memory_space<vmem>>, vector<16x4xf32>,
    %c0_50 = arith.constant 0 : index
    %c0_51 = arith.constant 0 : index
    %c0_52 = arith.constant 0 : index
    %67 = vector.load %arg3[%c0_50, %c0_51, %c0_52] : memref<1x256x4xbf16, #tpu.memory_space<vmem>>, vector<1x16x4xbf16>
    %68 = vector.shape_cast %67 : vector<1x16x4xbf16> to vector<16x4xbf16>
    %69 = arith.extf %68 : vector<16x4xbf16> to vector<16x4xf32>
    %c38_53 = arith.constant 38 : index
    %c4 = arith.constant 4 : index
    %70 = vector.load %arg8[%c38_53, %c4] : memref<368x128xf32, #tpu.memory_space<vmem>>, vector<16x4xf32>
    tpu.vector_store %arg8[%c38_53, %c4], %69 {strides = array<i32>} : memref<368x128xf32, #tpu.memory_space<vmem>>, vector<16x4xf32>,
    %c0_54 = arith.constant 0 : index
    %c16_55 = arith.constant 16 : index
    %c0_56 = arith.constant 0 : index
    %71 = vector.load %arg3[%c0_54, %c16_55, %c0_56] : memref<1x256x4xbf16, #tpu.memory_space<vmem>>, vector<1x16x4xbf16>
    %72 = vector.shape_cast %71 : vector<1x16x4xbf16> to vector<16x4xbf16>
    %73 = arith.extf %72 : vector<16x4xbf16> to vector<16x4xf32>
    %c56_57 = arith.constant 56 : index
    %c4_58 = arith.constant 4 : index
    %74 = vector.load %arg8[%c56_57, %c4_58] : memref<368x128xf32, #tpu.memory_space<vmem>>, vector<16x4xf32>
    tpu.vector_store %arg8[%c56_57, %c4_58], %73 {strides = array<i32>} : memref<368x128xf32, #tpu.memory_space<vmem>>, vector<16x4xf32>,
    %c0_59 = arith.constant 0 : index
    %c32_60 = arith.constant 32 : index
    %c0_61 = arith.constant 0 : index
    %75 = vector.load %arg3[%c0_59, %c32_60, %c0_61] : memref<1x256x4xbf16, #tpu.memory_space<vmem>>, vector<1x16x4xbf16>
    %76 = vector.shape_cast %75 : vector<1x16x4xbf16> to vector<16x4xbf16>
    %77 = arith.extf %76 : vector<16x4xbf16> to vector<16x4xf32>
    %c74_62 = arith.constant 74 : index
    %c4_63 = arith.constant 4 : index
    %78 = vector.load %arg8[%c74_62, %c4_63] : memref<368x128xf32, #tpu.memory_space<vmem>>, vector<16x4xf32>
    tpu.vector_store %arg8[%c74_62, %c4_63], %77 {strides = array<i32>} : memref<368x128xf32, #tpu.memory_space<vmem>>, vector<16x4xf32>,
    %c0_64 = arith.constant 0 : index
    %c48_65 = arith.constant 48 : index
    %c0_66 = arith.constant 0 : index
    %79 = vector.load %arg3[%c0_64, %c48_65, %c0_66] : memref<1x256x4xbf16, #tpu.memory_space<vmem>>, vector<1x16x4xbf16>
    %80 = vector.shape_cast %79 : vector<1x16x4xbf16> to vector<16x4xbf16>
    %81 = arith.extf %80 : vector<16x4xbf16> to vector<16x4xf32>
    %c92_67 = arith.constant 92 : index
    %c4_68 = arith.constant 4 : index
    %82 = vector.load %arg8[%c92_67, %c4_68] : memref<368x128xf32, #tpu.memory_space<vmem>>, vector<16x4xf32>
    tpu.vector_store %arg8[%c92_67, %c4_68], %81 {strides = array<i32>} : memref<368x128xf32, #tpu.memory_space<vmem>>, vector<16x4xf32>,
    %c0_69 = arith.constant 0 : index
    %c64_70 = arith.constant 64 : index
    %c0_71 = arith.constant 0 : index
    %83 = vector.load %arg3[%c0_69, %c64_70, %c0_71] : memref<1x256x4xbf16, #tpu.memory_space<vmem>>, vector<1x16x4xbf16>
    %84 = vector.shape_cast %83 : vector<1x16x4xbf16> to vector<16x4xbf16>
    %85 = arith.extf %84 : vector<16x4xbf16> to vector<16x4xf32>
    %c110_72 = arith.constant 110 : index
    %c4_73 = arith.constant 4 : index
    %86 = vector.load %arg8[%c110_72, %c4_73] : memref<368x128xf32, #tpu.memory_space<vmem>>, vector<16x4xf32>
    tpu.vector_store %arg8[%c110_72, %c4_73], %85 {strides = array<i32>} : memref<368x128xf32, #tpu.memory_space<vmem>>, vector<16x4xf32>,
    %c0_74 = arith.constant 0 : index
    %c80_75 = arith.constant 80 : index
    %c0_76 = arith.constant 0 : index
    %87 = vector.load %arg3[%c0_74, %c80_75, %c0_76] : memref<1x256x4xbf16, #tpu.memory_space<vmem>>, vector<1x16x4xbf16>
    %88 = vector.shape_cast %87 : vector<1x16x4xbf16> to vector<16x4xbf16>
    %89 = arith.extf %88 : vector<16x4xbf16> to vector<16x4xf32>
    %c128_77 = arith.constant 128 : index
    %c4_78 = arith.constant 4 : index
    %90 = vector.load %arg8[%c128_77, %c4_78] : memref<368x128xf32, #tpu.memory_space<vmem>>, vector<16x4xf32>
    tpu.vector_store %arg8[%c128_77, %c4_78], %89 {strides = array<i32>} : memref<368x128xf32, #tpu.memory_space<vmem>>, vector<16x4xf32>,
    %c0_79 = arith.constant 0 : index
    %c96_80 = arith.constant 96 : index
    %c0_81 = arith.constant 0 : index
    %91 = vector.load %arg3[%c0_79, %c96_80, %c0_81] : memref<1x256x4xbf16, #tpu.memory_space<vmem>>, vector<1x16x4xbf16>
    %92 = vector.shape_cast %91 : vector<1x16x4xbf16> to vector<16x4xbf16>
    %93 = arith.extf %92 : vector<16x4xbf16> to vector<16x4xf32>
    %c146_82 = arith.constant 146 : index
    %c4_83 = arith.constant 4 : index
    %94 = vector.load %arg8[%c146_82, %c4_83] : memref<368x128xf32, #tpu.memory_space<vmem>>, vector<16x4xf32>
    tpu.vector_store %arg8[%c146_82, %c4_83], %93 {strides = array<i32>} : memref<368x128xf32, #tpu.memory_space<vmem>>, vector<16x4xf32>,
    %c0_84 = arith.constant 0 : index
    %c112_85 = arith.constant 112 : index
    %c0_86 = arith.constant 0 : index
    %95 = vector.load %arg3[%c0_84, %c112_85, %c0_86] : memref<1x256x4xbf16, #tpu.memory_space<vmem>>, vector<1x16x4xbf16>
    %96 = vector.shape_cast %95 : vector<1x16x4xbf16> to vector<16x4xbf16>
    %97 = arith.extf %96 : vector<16x4xbf16> to vector<16x4xf32>
    %c164_87 = arith.constant 164 : index
    %c4_88 = arith.constant 4 : index
    %98 = vector.load %arg8[%c164_87, %c4_88] : memref<368x128xf32, #tpu.memory_space<vmem>>, vector<16x4xf32>
    tpu.vector_store %arg8[%c164_87, %c4_88], %97 {strides = array<i32>} : memref<368x128xf32, #tpu.memory_space<vmem>>, vector<16x4xf32>,
    %c0_89 = arith.constant 0 : index
    %c128_90 = arith.constant 128 : index
    %c0_91 = arith.constant 0 : index
    %99 = vector.load %arg3[%c0_89, %c128_90, %c0_91] : memref<1x256x4xbf16, #tpu.memory_space<vmem>>, vector<1x16x4xbf16>
    %100 = vector.shape_cast %99 : vector<1x16x4xbf16> to vector<16x4xbf16>
    %101 = arith.extf %100 : vector<16x4xbf16> to vector<16x4xf32>
    %c182_92 = arith.constant 182 : index
    %c4_93 = arith.constant 4 : index
    %102 = vector.load %arg8[%c182_92, %c4_93] : memref<368x128xf32, #tpu.memory_space<vmem>>, vector<16x4xf32>
    tpu.vector_store %arg8[%c182_92, %c4_93], %101 {strides = array<i32>} : memref<368x128xf32, #tpu.memory_space<vmem>>, vector<16x4xf32>,
    %c0_94 = arith.constant 0 : index
    %c144_95 = arith.constant 144 : index
    %c0_96 = arith.constant 0 : index
    %103 = vector.load %arg3[%c0_94, %c144_95, %c0_96] : memref<1x256x4xbf16, #tpu.memory_space<vmem>>, vector<1x16x4xbf16>
    %104 = vector.shape_cast %103 : vector<1x16x4xbf16> to vector<16x4xbf16>
    %105 = arith.extf %104 : vector<16x4xbf16> to vector<16x4xf32>
    %c200_97 = arith.constant 200 : index
    %c4_98 = arith.constant 4 : index
    %106 = vector.load %arg8[%c200_97, %c4_98] : memref<368x128xf32, #tpu.memory_space<vmem>>, vector<16x4xf32>
    tpu.vector_store %arg8[%c200_97, %c4_98], %105 {strides = array<i32>} : memref<368x128xf32, #tpu.memory_space<vmem>>, vector<16x4xf32>,
    %c0_99 = arith.constant 0 : index
    %c160_100 = arith.constant 160 : index
    %c0_101 = arith.constant 0 : index
    %107 = vector.load %arg3[%c0_99, %c160_100, %c0_101] : memref<1x256x4xbf16, #tpu.memory_space<vmem>>, vector<1x16x4xbf16>
    %108 = vector.shape_cast %107 : vector<1x16x4xbf16> to vector<16x4xbf16>
    %109 = arith.extf %108 : vector<16x4xbf16> to vector<16x4xf32>
    %c218_102 = arith.constant 218 : index
    %c4_103 = arith.constant 4 : index
    %110 = vector.load %arg8[%c218_102, %c4_103] : memref<368x128xf32, #tpu.memory_space<vmem>>, vector<16x4xf32>
    tpu.vector_store %arg8[%c218_102, %c4_103], %109 {strides = array<i32>} : memref<368x128xf32, #tpu.memory_space<vmem>>, vector<16x4xf32>,
    %c0_104 = arith.constant 0 : index
    %c176_105 = arith.constant 176 : index
    %c0_106 = arith.constant 0 : index
    %111 = vector.load %arg3[%c0_104, %c176_105, %c0_106] : memref<1x256x4xbf16, #tpu.memory_space<vmem>>, vector<1x16x4xbf16>
    %112 = vector.shape_cast %111 : vector<1x16x4xbf16> to vector<16x4xbf16>
    %113 = arith.extf %112 : vector<16x4xbf16> to vector<16x4xf32>
    %c236_107 = arith.constant 236 : index
    %c4_108 = arith.constant 4 : index
    %114 = vector.load %arg8[%c236_107, %c4_108] : memref<368x128xf32, #tpu.memory_space<vmem>>, vector<16x4xf32>
    tpu.vector_store %arg8[%c236_107, %c4_108], %113 {strides = array<i32>} : memref<368x128xf32, #tpu.memory_space<vmem>>, vector<16x4xf32>,
    %c0_109 = arith.constant 0 : index
    %c192_110 = arith.constant 192 : index
    %c0_111 = arith.constant 0 : index
    %115 = vector.load %arg3[%c0_109, %c192_110, %c0_111] : memref<1x256x4xbf16, #tpu.memory_space<vmem>>, vector<1x16x4xbf16>
    %116 = vector.shape_cast %115 : vector<1x16x4xbf16> to vector<16x4xbf16>
    %117 = arith.extf %116 : vector<16x4xbf16> to vector<16x4xf32>
    %c254_112 = arith.constant 254 : index
    %c4_113 = arith.constant 4 : index
    %118 = vector.load %arg8[%c254_112, %c4_113] : memref<368x128xf32, #tpu.memory_space<vmem>>, vector<16x4xf32>
    tpu.vector_store %arg8[%c254_112, %c4_113], %117 {strides = array<i32>} : memref<368x128xf32, #tpu.memory_space<vmem>>, vector<16x4xf32>,
    %c0_114 = arith.constant 0 : index
    %c208_115 = arith.constant 208 : index
    %c0_116 = arith.constant 0 : index
    %119 = vector.load %arg3[%c0_114, %c208_115, %c0_116] : memref<1x256x4xbf16, #tpu.memory_space<vmem>>, vector<1x16x4xbf16>
    %120 = vector.shape_cast %119 : vector<1x16x4xbf16> to vector<16x4xbf16>
    %121 = arith.extf %120 : vector<16x4xbf16> to vector<16x4xf32>
    %c272_117 = arith.constant 272 : index
    %c4_118 = arith.constant 4 : index
    %122 = vector.load %arg8[%c272_117, %c4_118] : memref<368x128xf32, #tpu.memory_space<vmem>>, vector<16x4xf32>
    tpu.vector_store %arg8[%c272_117, %c4_118], %121 {strides = array<i32>} : memref<368x128xf32, #tpu.memory_space<vmem>>, vector<16x4xf32>,
    %c0_119 = arith.constant 0 : index
    %c224_120 = arith.constant 224 : index
    %c0_121 = arith.constant 0 : index
    %123 = vector.load %arg3[%c0_119, %c224_120, %c0_121] : memref<1x256x4xbf16, #tpu.memory_space<vmem>>, vector<1x16x4xbf16>
    %124 = vector.shape_cast %123 : vector<1x16x4xbf16> to vector<16x4xbf16>
    %125 = arith.extf %124 : vector<16x4xbf16> to vector<16x4xf32>
    %c290_122 = arith.constant 290 : index
    %c4_123 = arith.constant 4 : index
    %126 = vector.load %arg8[%c290_122, %c4_123] : memref<368x128xf32, #tpu.memory_space<vmem>>, vector<16x4xf32>
    tpu.vector_store %arg8[%c290_122, %c4_123], %125 {strides = array<i32>} : memref<368x128xf32, #tpu.memory_space<vmem>>, vector<16x4xf32>,
    %c0_124 = arith.constant 0 : index
    %c240_125 = arith.constant 240 : index
    %c0_126 = arith.constant 0 : index
    %127 = vector.load %arg3[%c0_124, %c240_125, %c0_126] : memref<1x256x4xbf16, #tpu.memory_space<vmem>>, vector<1x16x4xbf16>
    %128 = vector.shape_cast %127 : vector<1x16x4xbf16> to vector<16x4xbf16>
    %129 = arith.extf %128 : vector<16x4xbf16> to vector<16x4xf32>
    %c308_127 = arith.constant 308 : index
    %c4_128 = arith.constant 4 : index
    %130 = vector.load %arg8[%c308_127, %c4_128] : memref<368x128xf32, #tpu.memory_space<vmem>>, vector<16x4xf32>
    tpu.vector_store %arg8[%c308_127, %c4_128], %129 {strides = array<i32>} : memref<368x128xf32, #tpu.memory_space<vmem>>, vector<16x4xf32>,
    %cst = arith.constant 0.000000e+00 : f32
    %131 = vector.broadcast %cst : f32 to vector<324x128xf32>
    %c0_129 = arith.constant 0 : index
    %c0_130 = arith.constant 0 : index
    %132 = vector.load %arg8[%c0_129, %c0_130] : memref<368x128xf32, #tpu.memory_space<vmem>>, vector<324x128xf32>
    %133 = arith.truncf %132 : vector<324x128xf32> to vector<324x128xbf16>
    %c0_131 = arith.constant 0 : index
    %c0_132 = arith.constant 0 : index
    %c0_133 = arith.constant 0 : index
    %134 = vector.load %arg4[%c0_131, %c0_132, %c0_133] : memref<9x128x128xbf16, #tpu.memory_space<vmem>>, vector<1x128x128xbf16>
    %135 = vector.shape_cast %134 : vector<1x128x128xbf16> to vector<128x128xbf16>
    %cst_134 = arith.constant dense<0.000000e+00> : vector<324x128xf32>
    %136 = tpu.matmul %133, %135, %cst_134 {dimension_numbers = #tpu.dot_dimension_numbers<[1], [0], [0], [1], [0, 0, 1, 1], [], []>} : vector<324x128xbf16>, vector<128x128xbf16>, vector<324x128xf32> -> vector<324x128xf32>
    %137 = arith.addf %131, %136 : vector<324x128xf32>
    %c1 = arith.constant 1 : index
    %c0_135 = arith.constant 0 : index
    %138 = vector.load %arg8[%c1, %c0_135] : memref<368x128xf32, #tpu.memory_space<vmem>>, vector<324x128xf32>
    %139 = arith.truncf %138 : vector<324x128xf32> to vector<324x128xbf16>
    %c1_136 = arith.constant 1 : index
    %c0_137 = arith.constant 0 : index
    %c0_138 = arith.constant 0 : index
    %140 = vector.load %arg4[%c1_136, %c0_137, %c0_138] : memref<9x128x128xbf16, #tpu.memory_space<vmem>>, vector<1x128x128xbf16>
    %141 = vector.shape_cast %140 : vector<1x128x128xbf16> to vector<128x128xbf16>
    %cst_139 = arith.constant dense<0.000000e+00> : vector<324x128xf32>
    %142 = tpu.matmul %139, %141, %cst_139 {dimension_numbers = #tpu.dot_dimension_numbers<[1], [0], [0], [1], [0, 0, 1, 1], [], []>} : vector<324x128xbf16>, vector<128x128xbf16>, vector<324x128xf32> -> vector<324x128xf32>
    %143 = arith.addf %137, %142 : vector<324x128xf32>
    %c2 = arith.constant 2 : index
    %c0_140 = arith.constant 0 : index
    %144 = vector.load %arg8[%c2, %c0_140] : memref<368x128xf32, #tpu.memory_space<vmem>>, vector<324x128xf32>
    %145 = arith.truncf %144 : vector<324x128xf32> to vector<324x128xbf16>
    %c2_141 = arith.constant 2 : index
    %c0_142 = arith.constant 0 : index
    %c0_143 = arith.constant 0 : index
    %146 = vector.load %arg4[%c2_141, %c0_142, %c0_143] : memref<9x128x128xbf16, #tpu.memory_space<vmem>>, vector<1x128x128xbf16>
    %147 = vector.shape_cast %146 : vector<1x128x128xbf16> to vector<128x128xbf16>
    %cst_144 = arith.constant dense<0.000000e+00> : vector<324x128xf32>
    %148 = tpu.matmul %145, %147, %cst_144 {dimension_numbers = #tpu.dot_dimension_numbers<[1], [0], [0], [1], [0, 0, 1, 1], [], []>} : vector<324x128xbf16>, vector<128x128xbf16>, vector<324x128xf32> -> vector<324x128xf32>
    %149 = arith.addf %143, %148 : vector<324x128xf32>
    %c18 = arith.constant 18 : index
    %c0_145 = arith.constant 0 : index
    %150 = vector.load %arg8[%c18, %c0_145] : memref<368x128xf32, #tpu.memory_space<vmem>>, vector<324x128xf32>
    %151 = arith.truncf %150 : vector<324x128xf32> to vector<324x128xbf16>
    %c3 = arith.constant 3 : index
    %c0_146 = arith.constant 0 : index
    %c0_147 = arith.constant 0 : index
    %152 = vector.load %arg4[%c3, %c0_146, %c0_147] : memref<9x128x128xbf16, #tpu.memory_space<vmem>>, vector<1x128x128xbf16>
    %153 = vector.shape_cast %152 : vector<1x128x128xbf16> to vector<128x128xbf16>
    %cst_148 = arith.constant dense<0.000000e+00> : vector<324x128xf32>
    %154 = tpu.matmul %151, %153, %cst_148 {dimension_numbers = #tpu.dot_dimension_numbers<[1], [0], [0], [1], [0, 0, 1, 1], [], []>} : vector<324x128xbf16>, vector<128x128xbf16>, vector<324x128xf32> -> vector<324x128xf32>
    %155 = arith.addf %149, %154 : vector<324x128xf32>
    %c19 = arith.constant 19 : index
    %c0_149 = arith.constant 0 : index
    %156 = vector.load %arg8[%c19, %c0_149] : memref<368x128xf32, #tpu.memory_space<vmem>>, vector<324x128xf32>
    %157 = arith.truncf %156 : vector<324x128xf32> to vector<324x128xbf16>
    %c4_150 = arith.constant 4 : index
    %c0_151 = arith.constant 0 : index
    %c0_152 = arith.constant 0 : index
    %158 = vector.load %arg4[%c4_150, %c0_151, %c0_152] : memref<9x128x128xbf16, #tpu.memory_space<vmem>>, vector<1x128x128xbf16>
    %159 = vector.shape_cast %158 : vector<1x128x128xbf16> to vector<128x128xbf16>
    %cst_153 = arith.constant dense<0.000000e+00> : vector<324x128xf32>
    %160 = tpu.matmul %157, %159, %cst_153 {dimension_numbers = #tpu.dot_dimension_numbers<[1], [0], [0], [1], [0, 0, 1, 1], [], []>} : vector<324x128xbf16>, vector<128x128xbf16>, vector<324x128xf32> -> vector<324x128xf32>
    %161 = arith.addf %155, %160 : vector<324x128xf32>
    %c20 = arith.constant 20 : index
    %c0_154 = arith.constant 0 : index
    %162 = vector.load %arg8[%c20, %c0_154] : memref<368x128xf32, #tpu.memory_space<vmem>>, vector<324x128xf32>
    %163 = arith.truncf %162 : vector<324x128xf32> to vector<324x128xbf16>
    %c5 = arith.constant 5 : index
    %c0_155 = arith.constant 0 : index
    %c0_156 = arith.constant 0 : index
    %164 = vector.load %arg4[%c5, %c0_155, %c0_156] : memref<9x128x128xbf16, #tpu.memory_space<vmem>>, vector<1x128x128xbf16>
    %165 = vector.shape_cast %164 : vector<1x128x128xbf16> to vector<128x128xbf16>
    %cst_157 = arith.constant dense<0.000000e+00> : vector<324x128xf32>
    %166 = tpu.matmul %163, %165, %cst_157 {dimension_numbers = #tpu.dot_dimension_numbers<[1], [0], [0], [1], [0, 0, 1, 1], [], []>} : vector<324x128xbf16>, vector<128x128xbf16>, vector<324x128xf32> -> vector<324x128xf32>
    %167 = arith.addf %161, %166 : vector<324x128xf32>
    %c36 = arith.constant 36 : index
    %c0_158 = arith.constant 0 : index
    %168 = vector.load %arg8[%c36, %c0_158] : memref<368x128xf32, #tpu.memory_space<vmem>>, vector<324x128xf32>
    %169 = arith.truncf %168 : vector<324x128xf32> to vector<324x128xbf16>
    %c6 = arith.constant 6 : index
    %c0_159 = arith.constant 0 : index
    %c0_160 = arith.constant 0 : index
    %170 = vector.load %arg4[%c6, %c0_159, %c0_160] : memref<9x128x128xbf16, #tpu.memory_space<vmem>>, vector<1x128x128xbf16>
    %171 = vector.shape_cast %170 : vector<1x128x128xbf16> to vector<128x128xbf16>
    %cst_161 = arith.constant dense<0.000000e+00> : vector<324x128xf32>
    %172 = tpu.matmul %169, %171, %cst_161 {dimension_numbers = #tpu.dot_dimension_numbers<[1], [0], [0], [1], [0, 0, 1, 1], [], []>} : vector<324x128xbf16>, vector<128x128xbf16>, vector<324x128xf32> -> vector<324x128xf32>
    %173 = arith.addf %167, %172 : vector<324x128xf32>
    %c37 = arith.constant 37 : index
    %c0_162 = arith.constant 0 : index
    %174 = vector.load %arg8[%c37, %c0_162] : memref<368x128xf32, #tpu.memory_space<vmem>>, vector<324x128xf32>
    %175 = arith.truncf %174 : vector<324x128xf32> to vector<324x128xbf16>
    %c7 = arith.constant 7 : index
    %c0_163 = arith.constant 0 : index
    %c0_164 = arith.constant 0 : index
    %176 = vector.load %arg4[%c7, %c0_163, %c0_164] : memref<9x128x128xbf16, #tpu.memory_space<vmem>>, vector<1x128x128xbf16>
    %177 = vector.shape_cast %176 : vector<1x128x128xbf16> to vector<128x128xbf16>
    %cst_165 = arith.constant dense<0.000000e+00> : vector<324x128xf32>
    %178 = tpu.matmul %175, %177, %cst_165 {dimension_numbers = #tpu.dot_dimension_numbers<[1], [0], [0], [1], [0, 0, 1, 1], [], []>} : vector<324x128xbf16>, vector<128x128xbf16>, vector<324x128xf32> -> vector<324x128xf32>
    %179 = arith.addf %173, %178 : vector<324x128xf32>
    %c38_166 = arith.constant 38 : index
    %c0_167 = arith.constant 0 : index
    %180 = vector.load %arg8[%c38_166, %c0_167] : memref<368x128xf32, #tpu.memory_space<vmem>>, vector<324x128xf32>
    %181 = arith.truncf %180 : vector<324x128xf32> to vector<324x128xbf16>
    %c8 = arith.constant 8 : index
    %c0_168 = arith.constant 0 : index
    %c0_169 = arith.constant 0 : index
    %182 = vector.load %arg4[%c8, %c0_168, %c0_169] : memref<9x128x128xbf16, #tpu.memory_space<vmem>>, vector<1x128x128xbf16>
    %183 = vector.shape_cast %182 : vector<1x128x128xbf16> to vector<128x128xbf16>
    %cst_170 = arith.constant dense<0.000000e+00> : vector<324x128xf32>
    %184 = tpu.matmul %181, %183, %cst_170 {dimension_numbers = #tpu.dot_dimension_numbers<[1], [0], [0], [1], [0, 0, 1, 1], [], []>} : vector<324x128xbf16>, vector<128x128xbf16>, vector<324x128xf32> -> vector<324x128xf32>
    %185 = arith.addf %179, %184 : vector<324x128xf32>
    %186 = arith.truncf %185 : vector<324x128xf32> to vector<324x128xbf16>
    %c0_171 = arith.constant 0 : index
    %c0_172 = arith.constant 0 : index
    %c0_173 = arith.constant 0 : index
    %187 = vector.load %arg6[%c0_171, %c0_172, %c0_173] : memref<1x324x128xbf16, #tpu.memory_space<vmem>>, vector<1x324x128xbf16>
    %188 = vector.shape_cast %187 : vector<1x324x128xbf16> to vector<324x128xbf16>
    %189 = vector.shape_cast %186 : vector<324x128xbf16> to vector<1x324x128xbf16>
    tpu.vector_store %arg6[%c0_171, %c0_172, %c0_173], %189 {strides = array<i32>} : memref<1x324x128xbf16, #tpu.memory_space<vmem>>, vector<1x324x128xbf16>,
    %c0_174 = arith.constant 0 : index
    %c0_175 = arith.constant 0 : index
    %190 = vector.load %arg5[%c0_174, %c0_175] : memref<324x1xf32, #tpu.memory_space<vmem>>, vector<324x1xf32>
    %191 = vector.broadcast %190 : vector<324x1xf32> to vector<324x128xf32>
    %192 = arith.mulf %185, %191 : vector<324x128xf32>
    %c0_176 = arith.constant 0 : index
    %c0_177 = arith.constant 0 : index
    %c0_178 = arith.constant 0 : index
    %193 = vector.load %arg7[%c0_176, %c0_177, %c0_178] : memref<1x8x128xf32, #tpu.memory_space<vmem>>, vector<1x1x128xf32>
    %194 = vector.shape_cast %193 : vector<1x1x128xf32> to vector<1x128xf32>
    %cst_179 = arith.constant dense<0.000000e+00> : vector<128xf32>
    %195 = vector.multi_reduction <add>, %192, %cst_179 [0] : vector<324x128xf32> to vector<128xf32>
    %196 = vector.shape_cast %195 : vector<128xf32> to vector<1x128xf32>
    %197 = arith.addf %194, %196 : vector<1x128xf32>
    %c0_180 = arith.constant 0 : index
    %c0_181 = arith.constant 0 : index
    %c0_182 = arith.constant 0 : index
    %198 = vector.load %arg7[%c0_180, %c0_181, %c0_182] : memref<1x8x128xf32, #tpu.memory_space<vmem>>, vector<1x1x128xf32>
    %199 = vector.shape_cast %198 : vector<1x1x128xf32> to vector<1x128xf32>
    %200 = vector.shape_cast %197 : vector<1x128xf32> to vector<1x1x128xf32>
    tpu.vector_store %arg7[%c0_180, %c0_181, %c0_182], %200 {strides = array<i32>} : memref<1x8x128xf32, #tpu.memory_space<vmem>>, vector<1x1x128xf32>,
    %c0_183 = arith.constant 0 : index
    %c1_184 = arith.constant 1 : index
    %c0_185 = arith.constant 0 : index
    %201 = vector.load %arg7[%c0_183, %c1_184, %c0_185] : memref<1x8x128xf32, #tpu.memory_space<vmem>>, vector<1x1x128xf32>
    %202 = vector.shape_cast %201 : vector<1x1x128xf32> to vector<1x128xf32>
    %203 = arith.mulf %185, %192 : vector<324x128xf32>
    %cst_186 = arith.constant dense<0.000000e+00> : vector<128xf32>
    %204 = vector.multi_reduction <add>, %203, %cst_186 [0] : vector<324x128xf32> to vector<128xf32>
    %205 = vector.shape_cast %204 : vector<128xf32> to vector<1x128xf32>
    %206 = arith.addf %202, %205 : vector<1x128xf32>
    %c0_187 = arith.constant 0 : index
    %c1_188 = arith.constant 1 : index
    %c0_189 = arith.constant 0 : index
    %207 = vector.load %arg7[%c0_187, %c1_188, %c0_189] : memref<1x8x128xf32, #tpu.memory_space<vmem>>, vector<1x1x128xf32>
    %208 = vector.shape_cast %207 : vector<1x1x128xf32> to vector<1x128xf32>
    %209 = vector.shape_cast %206 : vector<1x128xf32> to vector<1x1x128xf32>
    tpu.vector_store %arg7[%c0_187, %c1_188, %c0_189], %209 {strides = array<i32>} : memref<1x8x128xf32, #tpu.memory_space<vmem>>, vector<1x1x128xf32>,
    return
  }
  func.func @transform_0(%arg0: i32, %arg1: i32) -> (i32, i32, i32) {
    %c1_i32 = arith.constant 1 : i32
    %0 = arith.muli %arg0, %c1_i32 : i32
    %1 = arith.addi %0, %arg1 : i32
    %c0_i32 = arith.constant 0 : i32
    %c0_i32_0 = arith.constant 0 : i32
    %c0_i32_1 = arith.constant 0 : i32
    return %1, %c0_i32, %c0_i32_0 : i32, i32, i32
  }
  func.func @transform_1(%arg0: i32, %arg1: i32) -> (i32, i32, i32) {
    %c1_i32 = arith.constant 1 : i32
    %0 = arith.muli %arg0, %c1_i32 : i32
    %1 = arith.addi %0, %arg1 : i32
    %c0_i32 = arith.constant 0 : i32
    %c0_i32_0 = arith.constant 0 : i32
    %c0_i32_1 = arith.constant 0 : i32
    return %1, %c0_i32, %c0_i32_0 : i32, i32, i32
  }
  func.func @transform_2(%arg0: i32, %arg1: i32) -> (i32, i32, i32) {
    %c0_i32 = arith.constant 0 : i32
    %c0_i32_0 = arith.constant 0 : i32
    %c0_i32_1 = arith.constant 0 : i32
    %c0_i32_2 = arith.constant 0 : i32
    return %c0_i32, %c0_i32_0, %c0_i32_1 : i32, i32, i32
  }
  func.func @transform_3(%arg0: i32, %arg1: i32) -> (i32, i32) {
    %c0_i32 = arith.constant 0 : i32
    %c0_i32_0 = arith.constant 0 : i32
    %c0_i32_1 = arith.constant 0 : i32
    return %c0_i32, %c0_i32_0 : i32, i32
  }
  func.func @transform_4(%arg0: i32, %arg1: i32) -> (i32, i32, i32) {
    %c1_i32 = arith.constant 1 : i32
    %0 = arith.muli %arg0, %c1_i32 : i32
    %1 = arith.addi %0, %arg1 : i32
    %c0_i32 = arith.constant 0 : i32
    %c0_i32_0 = arith.constant 0 : i32
    %c0_i32_1 = arith.constant 0 : i32
    return %1, %c0_i32, %c0_i32_0 : i32, i32, i32
  }
  func.func @transform_5(%arg0: i32, %arg1: i32) -> (i32, i32, i32) {
    %c0_i32 = arith.constant 0 : i32
    %c0_i32_0 = arith.constant 0 : i32
    %c0_i32_1 = arith.constant 0 : i32
    return %arg0, %c0_i32, %c0_i32_0 : i32, i32, i32
  }
}

module attributes {stable_mosaic.version = 11 : i64} {
  func.func @_bn2_swish_crop_kernel(%arg0: i32, %arg1: memref<1x324x128xbf16, #tpu.memory_space<vmem>>, %arg2: memref<8x128xf32, #tpu.memory_space<vmem>>, %arg3: memref<1x128xf32, #tpu.memory_space<vmem>>, %arg4: memref<1x128xf32, #tpu.memory_space<vmem>>, %arg5: memref<1x256x128xf32, #tpu.memory_space<vmem>>) attributes {dimension_semantics = [#tpu.dimension_semantics<parallel>], iteration_bounds = array<i64: 2>, scalar_prefetch = 0 : i64, scratch_operands = 0 : i64, tpu.core_type = #tpu.core_type<tc>, window_params = [{transform_indices = @transform_0, window_bounds = array<i64: 1, 324, 128>}, {pipeline_mode = #tpu.pipeline_mode<synchronous>, transform_indices = @transform_1, window_bounds = array<i64: 8, 128>}, {pipeline_mode = #tpu.pipeline_mode<synchronous>, transform_indices = @transform_2, window_bounds = array<i64: 1, 128>}, {pipeline_mode = #tpu.pipeline_mode<synchronous>, transform_indices = @transform_3, window_bounds = array<i64: 1, 128>}, {transform_indices = @transform_4, window_bounds = array<i64: 1, 256, 128>}]} {
    %c0 = arith.constant 0 : index
    %c0_0 = arith.constant 0 : index
    %0 = vector.load %arg2[%c0, %c0_0] : memref<8x128xf32, #tpu.memory_space<vmem>>, vector<1x128xf32>
    %cst = arith.constant 0.001953125 : f32
    %1 = vector.broadcast %cst : f32 to vector<1x128xf32>
    %2 = arith.mulf %0, %1 : vector<1x128xf32>
    %c1 = arith.constant 1 : index
    %c0_1 = arith.constant 0 : index
    %3 = vector.load %arg2[%c1, %c0_1] : memref<8x128xf32, #tpu.memory_space<vmem>>, vector<1x128xf32>
    %cst_2 = arith.constant 0.001953125 : f32
    %4 = vector.broadcast %cst_2 : f32 to vector<1x128xf32>
    %5 = arith.mulf %3, %4 : vector<1x128xf32>
    %6 = arith.mulf %2, %2 : vector<1x128xf32>
    %7 = arith.subf %5, %6 : vector<1x128xf32>
    %cst_3 = arith.constant 9.99999974E-6 : f32
    %8 = vector.broadcast %cst_3 : f32 to vector<1x128xf32>
    %9 = arith.addf %7, %8 : vector<1x128xf32>
    %10 = math.rsqrt %9 : vector<1x128xf32>
    %c0_4 = arith.constant 0 : index
    %c0_5 = arith.constant 0 : index
    %11 = vector.load %arg3[%c0_4, %c0_5] : memref<1x128xf32, #tpu.memory_space<vmem>>, vector<1x128xf32>
    %12 = arith.mulf %10, %11 : vector<1x128xf32>
    %c0_6 = arith.constant 0 : index
    %c0_7 = arith.constant 0 : index
    %c0_8 = arith.constant 0 : index
    %13 = vector.load %arg1[%c0_6, %c0_7, %c0_8] : memref<1x324x128xbf16, #tpu.memory_space<vmem>>, vector<1x324x128xbf16>
    %14 = vector.shape_cast %13 : vector<1x324x128xbf16> to vector<324x128xbf16>
    %15 = arith.extf %14 : vector<324x128xbf16> to vector<324x128xf32>
    %16 = vector.broadcast %2 : vector<1x128xf32> to vector<324x128xf32>
    %17 = arith.subf %15, %16 : vector<324x128xf32>
    %18 = vector.broadcast %12 : vector<1x128xf32> to vector<324x128xf32>
    %19 = arith.mulf %17, %18 : vector<324x128xf32>
    %c0_9 = arith.constant 0 : index
    %c0_10 = arith.constant 0 : index
    %20 = vector.load %arg4[%c0_9, %c0_10] : memref<1x128xf32, #tpu.memory_space<vmem>>, vector<1x128xf32>
    %21 = vector.broadcast %20 : vector<1x128xf32> to vector<324x128xf32>
    %22 = arith.addf %19, %21 : vector<324x128xf32>
    %cst_11 = arith.constant 0.000000e+00 : f32
    %23 = vector.broadcast %cst_11 : f32 to vector<324x128xf32>
    %24 = arith.subf %23, %22 : vector<324x128xf32>
    %25 = math.exp %24 : vector<324x128xf32>
    %cst_12 = arith.constant 1.000000e+00 : f32
    %26 = vector.broadcast %cst_12 : f32 to vector<324x128xf32>
    %27 = arith.addf %26, %25 : vector<324x128xf32>
    %28 = tpu.reciprocal %27 {approx = true} : vector<324x128xf32> -> vector<324x128xf32>
    %29 = arith.mulf %22, %28 : vector<324x128xf32>
    %30 = vector.extract_strided_slice %29 {offsets = [19, 0], sizes = [16, 128], strides = [1, 1]} : vector<324x128xf32> to vector<16x128xf32>
    %c0_13 = arith.constant 0 : index
    %c0_14 = arith.constant 0 : index
    %c0_15 = arith.constant 0 : index
    %31 = vector.load %arg5[%c0_13, %c0_14, %c0_15] : memref<1x256x128xf32, #tpu.memory_space<vmem>>, vector<1x16x128xf32>
    %32 = vector.shape_cast %31 : vector<1x16x128xf32> to vector<16x128xf32>
    %33 = vector.shape_cast %30 : vector<16x128xf32> to vector<1x16x128xf32>
    tpu.vector_store %arg5[%c0_13, %c0_14, %c0_15], %33 {strides = array<i32>} : memref<1x256x128xf32, #tpu.memory_space<vmem>>, vector<1x16x128xf32>,
    %34 = vector.extract_strided_slice %29 {offsets = [37, 0], sizes = [16, 128], strides = [1, 1]} : vector<324x128xf32> to vector<16x128xf32>
    %c0_16 = arith.constant 0 : index
    %c16 = arith.constant 16 : index
    %c0_17 = arith.constant 0 : index
    %35 = vector.load %arg5[%c0_16, %c16, %c0_17] : memref<1x256x128xf32, #tpu.memory_space<vmem>>, vector<1x16x128xf32>
    %36 = vector.shape_cast %35 : vector<1x16x128xf32> to vector<16x128xf32>
    %37 = vector.shape_cast %34 : vector<16x128xf32> to vector<1x16x128xf32>
    tpu.vector_store %arg5[%c0_16, %c16, %c0_17], %37 {strides = array<i32>} : memref<1x256x128xf32, #tpu.memory_space<vmem>>, vector<1x16x128xf32>,
    %38 = vector.extract_strided_slice %29 {offsets = [55, 0], sizes = [16, 128], strides = [1, 1]} : vector<324x128xf32> to vector<16x128xf32>
    %c0_18 = arith.constant 0 : index
    %c32 = arith.constant 32 : index
    %c0_19 = arith.constant 0 : index
    %39 = vector.load %arg5[%c0_18, %c32, %c0_19] : memref<1x256x128xf32, #tpu.memory_space<vmem>>, vector<1x16x128xf32>
    %40 = vector.shape_cast %39 : vector<1x16x128xf32> to vector<16x128xf32>
    %41 = vector.shape_cast %38 : vector<16x128xf32> to vector<1x16x128xf32>
    tpu.vector_store %arg5[%c0_18, %c32, %c0_19], %41 {strides = array<i32>} : memref<1x256x128xf32, #tpu.memory_space<vmem>>, vector<1x16x128xf32>,
    %42 = vector.extract_strided_slice %29 {offsets = [73, 0], sizes = [16, 128], strides = [1, 1]} : vector<324x128xf32> to vector<16x128xf32>
    %c0_20 = arith.constant 0 : index
    %c48 = arith.constant 48 : index
    %c0_21 = arith.constant 0 : index
    %43 = vector.load %arg5[%c0_20, %c48, %c0_21] : memref<1x256x128xf32, #tpu.memory_space<vmem>>, vector<1x16x128xf32>
    %44 = vector.shape_cast %43 : vector<1x16x128xf32> to vector<16x128xf32>
    %45 = vector.shape_cast %42 : vector<16x128xf32> to vector<1x16x128xf32>
    tpu.vector_store %arg5[%c0_20, %c48, %c0_21], %45 {strides = array<i32>} : memref<1x256x128xf32, #tpu.memory_space<vmem>>, vector<1x16x128xf32>,
    %46 = vector.extract_strided_slice %29 {offsets = [91, 0], sizes = [16, 128], strides = [1, 1]} : vector<324x128xf32> to vector<16x128xf32>
    %c0_22 = arith.constant 0 : index
    %c64 = arith.constant 64 : index
    %c0_23 = arith.constant 0 : index
    %47 = vector.load %arg5[%c0_22, %c64, %c0_23] : memref<1x256x128xf32, #tpu.memory_space<vmem>>, vector<1x16x128xf32>
    %48 = vector.shape_cast %47 : vector<1x16x128xf32> to vector<16x128xf32>
    %49 = vector.shape_cast %46 : vector<16x128xf32> to vector<1x16x128xf32>
    tpu.vector_store %arg5[%c0_22, %c64, %c0_23], %49 {strides = array<i32>} : memref<1x256x128xf32, #tpu.memory_space<vmem>>, vector<1x16x128xf32>,
    %50 = vector.extract_strided_slice %29 {offsets = [109, 0], sizes = [16, 128], strides = [1, 1]} : vector<324x128xf32> to vector<16x128xf32>
    %c0_24 = arith.constant 0 : index
    %c80 = arith.constant 80 : index
    %c0_25 = arith.constant 0 : index
    %51 = vector.load %arg5[%c0_24, %c80, %c0_25] : memref<1x256x128xf32, #tpu.memory_space<vmem>>, vector<1x16x128xf32>
    %52 = vector.shape_cast %51 : vector<1x16x128xf32> to vector<16x128xf32>
    %53 = vector.shape_cast %50 : vector<16x128xf32> to vector<1x16x128xf32>
    tpu.vector_store %arg5[%c0_24, %c80, %c0_25], %53 {strides = array<i32>} : memref<1x256x128xf32, #tpu.memory_space<vmem>>, vector<1x16x128xf32>,
    %54 = vector.extract_strided_slice %29 {offsets = [127, 0], sizes = [16, 128], strides = [1, 1]} : vector<324x128xf32> to vector<16x128xf32>
    %c0_26 = arith.constant 0 : index
    %c96 = arith.constant 96 : index
    %c0_27 = arith.constant 0 : index
    %55 = vector.load %arg5[%c0_26, %c96, %c0_27] : memref<1x256x128xf32, #tpu.memory_space<vmem>>, vector<1x16x128xf32>
    %56 = vector.shape_cast %55 : vector<1x16x128xf32> to vector<16x128xf32>
    %57 = vector.shape_cast %54 : vector<16x128xf32> to vector<1x16x128xf32>
    tpu.vector_store %arg5[%c0_26, %c96, %c0_27], %57 {strides = array<i32>} : memref<1x256x128xf32, #tpu.memory_space<vmem>>, vector<1x16x128xf32>,
    %58 = vector.extract_strided_slice %29 {offsets = [145, 0], sizes = [16, 128], strides = [1, 1]} : vector<324x128xf32> to vector<16x128xf32>
    %c0_28 = arith.constant 0 : index
    %c112 = arith.constant 112 : index
    %c0_29 = arith.constant 0 : index
    %59 = vector.load %arg5[%c0_28, %c112, %c0_29] : memref<1x256x128xf32, #tpu.memory_space<vmem>>, vector<1x16x128xf32>
    %60 = vector.shape_cast %59 : vector<1x16x128xf32> to vector<16x128xf32>
    %61 = vector.shape_cast %58 : vector<16x128xf32> to vector<1x16x128xf32>
    tpu.vector_store %arg5[%c0_28, %c112, %c0_29], %61 {strides = array<i32>} : memref<1x256x128xf32, #tpu.memory_space<vmem>>, vector<1x16x128xf32>,
    %62 = vector.extract_strided_slice %29 {offsets = [163, 0], sizes = [16, 128], strides = [1, 1]} : vector<324x128xf32> to vector<16x128xf32>
    %c0_30 = arith.constant 0 : index
    %c128 = arith.constant 128 : index
    %c0_31 = arith.constant 0 : index
    %63 = vector.load %arg5[%c0_30, %c128, %c0_31] : memref<1x256x128xf32, #tpu.memory_space<vmem>>, vector<1x16x128xf32>
    %64 = vector.shape_cast %63 : vector<1x16x128xf32> to vector<16x128xf32>
    %65 = vector.shape_cast %62 : vector<16x128xf32> to vector<1x16x128xf32>
    tpu.vector_store %arg5[%c0_30, %c128, %c0_31], %65 {strides = array<i32>} : memref<1x256x128xf32, #tpu.memory_space<vmem>>, vector<1x16x128xf32>,
    %66 = vector.extract_strided_slice %29 {offsets = [181, 0], sizes = [16, 128], strides = [1, 1]} : vector<324x128xf32> to vector<16x128xf32>
    %c0_32 = arith.constant 0 : index
    %c144 = arith.constant 144 : index
    %c0_33 = arith.constant 0 : index
    %67 = vector.load %arg5[%c0_32, %c144, %c0_33] : memref<1x256x128xf32, #tpu.memory_space<vmem>>, vector<1x16x128xf32>
    %68 = vector.shape_cast %67 : vector<1x16x128xf32> to vector<16x128xf32>
    %69 = vector.shape_cast %66 : vector<16x128xf32> to vector<1x16x128xf32>
    tpu.vector_store %arg5[%c0_32, %c144, %c0_33], %69 {strides = array<i32>} : memref<1x256x128xf32, #tpu.memory_space<vmem>>, vector<1x16x128xf32>,
    %70 = vector.extract_strided_slice %29 {offsets = [199, 0], sizes = [16, 128], strides = [1, 1]} : vector<324x128xf32> to vector<16x128xf32>
    %c0_34 = arith.constant 0 : index
    %c160 = arith.constant 160 : index
    %c0_35 = arith.constant 0 : index
    %71 = vector.load %arg5[%c0_34, %c160, %c0_35] : memref<1x256x128xf32, #tpu.memory_space<vmem>>, vector<1x16x128xf32>
    %72 = vector.shape_cast %71 : vector<1x16x128xf32> to vector<16x128xf32>
    %73 = vector.shape_cast %70 : vector<16x128xf32> to vector<1x16x128xf32>
    tpu.vector_store %arg5[%c0_34, %c160, %c0_35], %73 {strides = array<i32>} : memref<1x256x128xf32, #tpu.memory_space<vmem>>, vector<1x16x128xf32>,
    %74 = vector.extract_strided_slice %29 {offsets = [217, 0], sizes = [16, 128], strides = [1, 1]} : vector<324x128xf32> to vector<16x128xf32>
    %c0_36 = arith.constant 0 : index
    %c176 = arith.constant 176 : index
    %c0_37 = arith.constant 0 : index
    %75 = vector.load %arg5[%c0_36, %c176, %c0_37] : memref<1x256x128xf32, #tpu.memory_space<vmem>>, vector<1x16x128xf32>
    %76 = vector.shape_cast %75 : vector<1x16x128xf32> to vector<16x128xf32>
    %77 = vector.shape_cast %74 : vector<16x128xf32> to vector<1x16x128xf32>
    tpu.vector_store %arg5[%c0_36, %c176, %c0_37], %77 {strides = array<i32>} : memref<1x256x128xf32, #tpu.memory_space<vmem>>, vector<1x16x128xf32>,
    %78 = vector.extract_strided_slice %29 {offsets = [235, 0], sizes = [16, 128], strides = [1, 1]} : vector<324x128xf32> to vector<16x128xf32>
    %c0_38 = arith.constant 0 : index
    %c192 = arith.constant 192 : index
    %c0_39 = arith.constant 0 : index
    %79 = vector.load %arg5[%c0_38, %c192, %c0_39] : memref<1x256x128xf32, #tpu.memory_space<vmem>>, vector<1x16x128xf32>
    %80 = vector.shape_cast %79 : vector<1x16x128xf32> to vector<16x128xf32>
    %81 = vector.shape_cast %78 : vector<16x128xf32> to vector<1x16x128xf32>
    tpu.vector_store %arg5[%c0_38, %c192, %c0_39], %81 {strides = array<i32>} : memref<1x256x128xf32, #tpu.memory_space<vmem>>, vector<1x16x128xf32>,
    %82 = vector.extract_strided_slice %29 {offsets = [253, 0], sizes = [16, 128], strides = [1, 1]} : vector<324x128xf32> to vector<16x128xf32>
    %c0_40 = arith.constant 0 : index
    %c208 = arith.constant 208 : index
    %c0_41 = arith.constant 0 : index
    %83 = vector.load %arg5[%c0_40, %c208, %c0_41] : memref<1x256x128xf32, #tpu.memory_space<vmem>>, vector<1x16x128xf32>
    %84 = vector.shape_cast %83 : vector<1x16x128xf32> to vector<16x128xf32>
    %85 = vector.shape_cast %82 : vector<16x128xf32> to vector<1x16x128xf32>
    tpu.vector_store %arg5[%c0_40, %c208, %c0_41], %85 {strides = array<i32>} : memref<1x256x128xf32, #tpu.memory_space<vmem>>, vector<1x16x128xf32>,
    %86 = vector.extract_strided_slice %29 {offsets = [271, 0], sizes = [16, 128], strides = [1, 1]} : vector<324x128xf32> to vector<16x128xf32>
    %c0_42 = arith.constant 0 : index
    %c224 = arith.constant 224 : index
    %c0_43 = arith.constant 0 : index
    %87 = vector.load %arg5[%c0_42, %c224, %c0_43] : memref<1x256x128xf32, #tpu.memory_space<vmem>>, vector<1x16x128xf32>
    %88 = vector.shape_cast %87 : vector<1x16x128xf32> to vector<16x128xf32>
    %89 = vector.shape_cast %86 : vector<16x128xf32> to vector<1x16x128xf32>
    tpu.vector_store %arg5[%c0_42, %c224, %c0_43], %89 {strides = array<i32>} : memref<1x256x128xf32, #tpu.memory_space<vmem>>, vector<1x16x128xf32>,
    %90 = vector.extract_strided_slice %29 {offsets = [289, 0], sizes = [16, 128], strides = [1, 1]} : vector<324x128xf32> to vector<16x128xf32>
    %c0_44 = arith.constant 0 : index
    %c240 = arith.constant 240 : index
    %c0_45 = arith.constant 0 : index
    %91 = vector.load %arg5[%c0_44, %c240, %c0_45] : memref<1x256x128xf32, #tpu.memory_space<vmem>>, vector<1x16x128xf32>
    %92 = vector.shape_cast %91 : vector<1x16x128xf32> to vector<16x128xf32>
    %93 = vector.shape_cast %90 : vector<16x128xf32> to vector<1x16x128xf32>
    tpu.vector_store %arg5[%c0_44, %c240, %c0_45], %93 {strides = array<i32>} : memref<1x256x128xf32, #tpu.memory_space<vmem>>, vector<1x16x128xf32>,
    return
  }
  func.func @transform_0(%arg0: i32) -> (i32, i32, i32) {
    %c0_i32 = arith.constant 0 : i32
    %c0_i32_0 = arith.constant 0 : i32
    %c0_i32_1 = arith.constant 0 : i32
    return %arg0, %c0_i32, %c0_i32_0 : i32, i32, i32
  }
  func.func @transform_1(%arg0: i32) -> (i32, i32) {
    %c0_i32 = arith.constant 0 : i32
    %c0_i32_0 = arith.constant 0 : i32
    %c0_i32_1 = arith.constant 0 : i32
    return %c0_i32, %c0_i32_0 : i32, i32
  }
  func.func @transform_2(%arg0: i32) -> (i32, i32) {
    %c0_i32 = arith.constant 0 : i32
    %c0_i32_0 = arith.constant 0 : i32
    %c0_i32_1 = arith.constant 0 : i32
    return %c0_i32, %c0_i32_0 : i32, i32
  }
  func.func @transform_3(%arg0: i32) -> (i32, i32) {
    %c0_i32 = arith.constant 0 : i32
    %c0_i32_0 = arith.constant 0 : i32
    %c0_i32_1 = arith.constant 0 : i32
    return %c0_i32, %c0_i32_0 : i32, i32
  }
  func.func @transform_4(%arg0: i32) -> (i32, i32, i32) {
    %c0_i32 = arith.constant 0 : i32
    %c0_i32_0 = arith.constant 0 : i32
    %c0_i32_1 = arith.constant 0 : i32
    return %arg0, %c0_i32, %c0_i32_0 : i32, i32, i32
  }
}

module attributes {stable_mosaic.version = 11 : i64} {
  func.func @_bn1_te_conv2_stats_kernel(%arg0: i32, %arg1: i32, %arg2: memref<1x324x128xbf16, #tpu.memory_space<vmem>>, %arg3: memref<8x128xf32, #tpu.memory_space<vmem>>, %arg4: memref<1x128xf32, #tpu.memory_space<vmem>>, %arg5: memref<1x128xf32, #tpu.memory_space<vmem>>, %arg6: memref<1x8x8xf32, #tpu.memory_space<vmem>>, %arg7: memref<8x128xf32, #tpu.memory_space<vmem>>, %arg8: memref<1x128xf32, #tpu.memory_space<vmem>>, %arg9: memref<324x1xf32, #tpu.memory_space<vmem>>, %arg10: memref<9x128x128xbf16, #tpu.memory_space<vmem>>, %arg11: memref<1x324x128xbf16, #tpu.memory_space<vmem>>, %arg12: memref<1x8x128xf32, #tpu.memory_space<vmem>>, %arg13: memref<368x128xf32, #tpu.memory_space<vmem>>) attributes {dimension_semantics = [#tpu.dimension_semantics<parallel>, #tpu.dimension_semantics<arbitrary>], iteration_bounds = array<i64: 2, 1>, scalar_prefetch = 0 : i64, scratch_operands = 1 : i64, tpu.core_type = #tpu.core_type<tc>, window_params = [{transform_indices = @transform_0, window_bounds = array<i64: 1, 324, 128>}, {pipeline_mode = #tpu.pipeline_mode<synchronous>, transform_indices = @transform_1, window_bounds = array<i64: 8, 128>}, {pipeline_mode = #tpu.pipeline_mode<synchronous>, transform_indices = @transform_2, window_bounds = array<i64: 1, 128>}, {pipeline_mode = #tpu.pipeline_mode<synchronous>, transform_indices = @transform_3, window_bounds = array<i64: 1, 128>}, {transform_indices = @transform_4, window_bounds = array<i64: 1, 8, 8>}, {pipeline_mode = #tpu.pipeline_mode<synchronous>, transform_indices = @transform_5, window_bounds = array<i64: 8, 128>}, {pipeline_mode = #tpu.pipeline_mode<synchronous>, transform_indices = @transform_6, window_bounds = array<i64: 1, 128>}, {pipeline_mode = #tpu.pipeline_mode<synchronous>, transform_indices = @transform_7, window_bounds = array<i64: 324, 1>}, {pipeline_mode = #tpu.pipeline_mode<synchronous>, transform_indices = @transform_8, window_bounds = array<i64: 9, 128, 128>}, {transform_indices = @transform_9, window_bounds = array<i64: 1, 324, 128>}, {transform_indices = @transform_10, window_bounds = array<i64: 1, 8, 128>}]} {
    %c0_i32 = arith.constant 0 : i32
    %0 = arith.cmpi eq, %arg1, %c0_i32 : i32
    %1 = arith.extui %0 : i1 to i32
    %c0_i32_0 = arith.constant 0 : i32
    %2 = arith.cmpi ne, %1, %c0_i32_0 : i32
    scf.if %2 {
      %cst_87 = arith.constant 0.000000e+00 : f32
      %132 = vector.broadcast %cst_87 : f32 to vector<1x8x128xf32>
      %c0_88 = arith.constant 0 : index
      %c0_89 = arith.constant 0 : index
      %c0_90 = arith.constant 0 : index
      %133 = vector.load %arg12[%c0_88, %c0_89, %c0_90] : memref<1x8x128xf32, #tpu.memory_space<vmem>>, vector<1x8x128xf32>
      tpu.vector_store %arg12[%c0_88, %c0_89, %c0_90], %132 {strides = array<i32>} : memref<1x8x128xf32, #tpu.memory_space<vmem>>, vector<1x8x128xf32>,
      %cst_91 = arith.constant 0.000000e+00 : f32
      %134 = vector.broadcast %cst_91 : f32 to vector<368x128xf32>
      %c0_92 = arith.constant 0 : index
      %c0_93 = arith.constant 0 : index
      %135 = vector.load %arg13[%c0_92, %c0_93] : memref<368x128xf32, #tpu.memory_space<vmem>>, vector<368x128xf32>
      tpu.vector_store %arg13[%c0_92, %c0_93], %134 {strides = array<i32>} : memref<368x128xf32, #tpu.memory_space<vmem>>, vector<368x128xf32>,
    } else {
    }
    %c0 = arith.constant 0 : index
    %c0_1 = arith.constant 0 : index
    %3 = vector.load %arg3[%c0, %c0_1] : memref<8x128xf32, #tpu.memory_space<vmem>>, vector<1x128xf32>
    %cst = arith.constant 0.001953125 : f32
    %4 = vector.broadcast %cst : f32 to vector<1x128xf32>
    %5 = arith.mulf %3, %4 : vector<1x128xf32>
    %c1 = arith.constant 1 : index
    %c0_2 = arith.constant 0 : index
    %6 = vector.load %arg3[%c1, %c0_2] : memref<8x128xf32, #tpu.memory_space<vmem>>, vector<1x128xf32>
    %cst_3 = arith.constant 0.001953125 : f32
    %7 = vector.broadcast %cst_3 : f32 to vector<1x128xf32>
    %8 = arith.mulf %6, %7 : vector<1x128xf32>
    %9 = arith.mulf %5, %5 : vector<1x128xf32>
    %10 = arith.subf %8, %9 : vector<1x128xf32>
    %cst_4 = arith.constant 9.99999974E-6 : f32
    %11 = vector.broadcast %cst_4 : f32 to vector<1x128xf32>
    %12 = arith.addf %10, %11 : vector<1x128xf32>
    %13 = math.rsqrt %12 : vector<1x128xf32>
    %c0_5 = arith.constant 0 : index
    %c0_6 = arith.constant 0 : index
    %14 = vector.load %arg4[%c0_5, %c0_6] : memref<1x128xf32, #tpu.memory_space<vmem>>, vector<1x128xf32>
    %15 = arith.mulf %13, %14 : vector<1x128xf32>
    %c0_7 = arith.constant 0 : index
    %c0_8 = arith.constant 0 : index
    %c0_9 = arith.constant 0 : index
    %16 = vector.load %arg2[%c0_7, %c0_8, %c0_9] : memref<1x324x128xbf16, #tpu.memory_space<vmem>>, vector<1x324x128xbf16>
    %17 = vector.shape_cast %16 : vector<1x324x128xbf16> to vector<324x128xbf16>
    %18 = arith.extf %17 : vector<324x128xbf16> to vector<324x128xf32>
    %19 = vector.broadcast %5 : vector<1x128xf32> to vector<324x128xf32>
    %20 = arith.subf %18, %19 : vector<324x128xf32>
    %21 = vector.broadcast %15 : vector<1x128xf32> to vector<324x128xf32>
    %22 = arith.mulf %20, %21 : vector<324x128xf32>
    %c0_10 = arith.constant 0 : index
    %c0_11 = arith.constant 0 : index
    %23 = vector.load %arg5[%c0_10, %c0_11] : memref<1x128xf32, #tpu.memory_space<vmem>>, vector<1x128xf32>
    %24 = vector.broadcast %23 : vector<1x128xf32> to vector<324x128xf32>
    %25 = arith.addf %22, %24 : vector<324x128xf32>
    %cst_12 = arith.constant 0.000000e+00 : f32
    %26 = vector.broadcast %cst_12 : f32 to vector<324x128xf32>
    %27 = arith.subf %26, %25 : vector<324x128xf32>
    %28 = math.exp %27 : vector<324x128xf32>
    %cst_13 = arith.constant 1.000000e+00 : f32
    %29 = vector.broadcast %cst_13 : f32 to vector<324x128xf32>
    %30 = arith.addf %29, %28 : vector<324x128xf32>
    %31 = tpu.reciprocal %30 {approx = true} : vector<324x128xf32> -> vector<324x128xf32>
    %32 = arith.mulf %25, %31 : vector<324x128xf32>
    %c0_14 = arith.constant 0 : index
    %c0_15 = arith.constant 0 : index
    %c0_16 = arith.constant 0 : index
    %33 = vector.load %arg6[%c0_14, %c0_15, %c0_16] : memref<1x8x8xf32, #tpu.memory_space<vmem>>, vector<1x8x8xf32>
    %34 = vector.shape_cast %33 : vector<1x8x8xf32> to vector<8x8xf32>
    %c0_17 = arith.constant 0 : index
    %c0_18 = arith.constant 0 : index
    %35 = vector.load %arg7[%c0_17, %c0_18] : memref<8x128xf32, #tpu.memory_space<vmem>>, vector<8x128xf32>
    %cst_19 = arith.constant dense<0.000000e+00> : vector<8x128xf32>
    %36 = tpu.matmul %34, %35, %cst_19 {dimension_numbers = #tpu.dot_dimension_numbers<[1], [0], [0], [1], [0, 0, 1, 1], [], []>} : vector<8x8xf32>, vector<8x128xf32>, vector<8x128xf32> -> vector<8x128xf32>
    %c0_20 = arith.constant 0 : index
    %c0_21 = arith.constant 0 : index
    %37 = vector.load %arg8[%c0_20, %c0_21] : memref<1x128xf32, #tpu.memory_space<vmem>>, vector<1x128xf32>
    %38 = vector.broadcast %37 : vector<1x128xf32> to vector<8x128xf32>
    %39 = arith.addf %36, %38 : vector<8x128xf32>
    %cst_22 = arith.constant 0.000000e+00 : f32
    %40 = vector.broadcast %cst_22 : f32 to vector<8x128xf32>
    %41 = arith.subf %40, %39 : vector<8x128xf32>
    %42 = math.exp %41 : vector<8x128xf32>
    %cst_23 = arith.constant 1.000000e+00 : f32
    %43 = vector.broadcast %cst_23 : f32 to vector<8x128xf32>
    %44 = arith.addf %43, %42 : vector<8x128xf32>
    %45 = tpu.reciprocal %44 {approx = true} : vector<8x128xf32> -> vector<8x128xf32>
    %46 = arith.mulf %39, %45 : vector<8x128xf32>
    %47 = vector.extract_strided_slice %46 {offsets = [0, 0], sizes = [1, 128], strides = [1, 1]} : vector<8x128xf32> to vector<1x128xf32>
    %c0_24 = arith.constant 0 : index
    %c0_25 = arith.constant 0 : index
    %48 = vector.load %arg9[%c0_24, %c0_25] : memref<324x1xf32, #tpu.memory_space<vmem>>, vector<324x1xf32>
    %49 = vector.broadcast %47 : vector<1x128xf32> to vector<324x128xf32>
    %50 = arith.addf %32, %49 : vector<324x128xf32>
    %51 = vector.broadcast %48 : vector<324x1xf32> to vector<324x128xf32>
    %52 = arith.mulf %50, %51 : vector<324x128xf32>
    %c19 = arith.constant 19 : index
    %c0_26 = arith.constant 0 : index
    %53 = vector.load %arg13[%c19, %c0_26] : memref<368x128xf32, #tpu.memory_space<vmem>>, vector<324x128xf32>
    tpu.vector_store %arg13[%c19, %c0_26], %52 {strides = array<i32>} : memref<368x128xf32, #tpu.memory_space<vmem>>, vector<324x128xf32>,
    %cst_27 = arith.constant 0.000000e+00 : f32
    %54 = vector.broadcast %cst_27 : f32 to vector<324x128xf32>
    %c0_28 = arith.constant 0 : index
    %c0_29 = arith.constant 0 : index
    %55 = vector.load %arg13[%c0_28, %c0_29] : memref<368x128xf32, #tpu.memory_space<vmem>>, vector<324x128xf32>
    %56 = arith.truncf %55 : vector<324x128xf32> to vector<324x128xbf16>
    %c0_30 = arith.constant 0 : index
    %c0_31 = arith.constant 0 : index
    %c0_32 = arith.constant 0 : index
    %57 = vector.load %arg10[%c0_30, %c0_31, %c0_32] : memref<9x128x128xbf16, #tpu.memory_space<vmem>>, vector<1x128x128xbf16>
    %58 = vector.shape_cast %57 : vector<1x128x128xbf16> to vector<128x128xbf16>
    %cst_33 = arith.constant dense<0.000000e+00> : vector<324x128xf32>
    %59 = tpu.matmul %56, %58, %cst_33 {dimension_numbers = #tpu.dot_dimension_numbers<[1], [0], [0], [1], [0, 0, 1, 1], [], []>} : vector<324x128xbf16>, vector<128x128xbf16>, vector<324x128xf32> -> vector<324x128xf32>
    %60 = arith.addf %54, %59 : vector<324x128xf32>
    %c1_34 = arith.constant 1 : index
    %c0_35 = arith.constant 0 : index
    %61 = vector.load %arg13[%c1_34, %c0_35] : memref<368x128xf32, #tpu.memory_space<vmem>>, vector<324x128xf32>
    %62 = arith.truncf %61 : vector<324x128xf32> to vector<324x128xbf16>
    %c1_36 = arith.constant 1 : index
    %c0_37 = arith.constant 0 : index
    %c0_38 = arith.constant 0 : index
    %63 = vector.load %arg10[%c1_36, %c0_37, %c0_38] : memref<9x128x128xbf16, #tpu.memory_space<vmem>>, vector<1x128x128xbf16>
    %64 = vector.shape_cast %63 : vector<1x128x128xbf16> to vector<128x128xbf16>
    %cst_39 = arith.constant dense<0.000000e+00> : vector<324x128xf32>
    %65 = tpu.matmul %62, %64, %cst_39 {dimension_numbers = #tpu.dot_dimension_numbers<[1], [0], [0], [1], [0, 0, 1, 1], [], []>} : vector<324x128xbf16>, vector<128x128xbf16>, vector<324x128xf32> -> vector<324x128xf32>
    %66 = arith.addf %60, %65 : vector<324x128xf32>
    %c2 = arith.constant 2 : index
    %c0_40 = arith.constant 0 : index
    %67 = vector.load %arg13[%c2, %c0_40] : memref<368x128xf32, #tpu.memory_space<vmem>>, vector<324x128xf32>
    %68 = arith.truncf %67 : vector<324x128xf32> to vector<324x128xbf16>
    %c2_41 = arith.constant 2 : index
    %c0_42 = arith.constant 0 : index
    %c0_43 = arith.constant 0 : index
    %69 = vector.load %arg10[%c2_41, %c0_42, %c0_43] : memref<9x128x128xbf16, #tpu.memory_space<vmem>>, vector<1x128x128xbf16>
    %70 = vector.shape_cast %69 : vector<1x128x128xbf16> to vector<128x128xbf16>
    %cst_44 = arith.constant dense<0.000000e+00> : vector<324x128xf32>
    %71 = tpu.matmul %68, %70, %cst_44 {dimension_numbers = #tpu.dot_dimension_numbers<[1], [0], [0], [1], [0, 0, 1, 1], [], []>} : vector<324x128xbf16>, vector<128x128xbf16>, vector<324x128xf32> -> vector<324x128xf32>
    %72 = arith.addf %66, %71 : vector<324x128xf32>
    %c18 = arith.constant 18 : index
    %c0_45 = arith.constant 0 : index
    %73 = vector.load %arg13[%c18, %c0_45] : memref<368x128xf32, #tpu.memory_space<vmem>>, vector<324x128xf32>
    %74 = arith.truncf %73 : vector<324x128xf32> to vector<324x128xbf16>
    %c3 = arith.constant 3 : index
    %c0_46 = arith.constant 0 : index
    %c0_47 = arith.constant 0 : index
    %75 = vector.load %arg10[%c3, %c0_46, %c0_47] : memref<9x128x128xbf16, #tpu.memory_space<vmem>>, vector<1x128x128xbf16>
    %76 = vector.shape_cast %75 : vector<1x128x128xbf16> to vector<128x128xbf16>
    %cst_48 = arith.constant dense<0.000000e+00> : vector<324x128xf32>
    %77 = tpu.matmul %74, %76, %cst_48 {dimension_numbers = #tpu.dot_dimension_numbers<[1], [0], [0], [1], [0, 0, 1, 1], [], []>} : vector<324x128xbf16>, vector<128x128xbf16>, vector<324x128xf32> -> vector<324x128xf32>
    %78 = arith.addf %72, %77 : vector<324x128xf32>
    %c19_49 = arith.constant 19 : index
    %c0_50 = arith.constant 0 : index
    %79 = vector.load %arg13[%c19_49, %c0_50] : memref<368x128xf32, #tpu.memory_space<vmem>>, vector<324x128xf32>
    %80 = arith.truncf %79 : vector<324x128xf32> to vector<324x128xbf16>
    %c4 = arith.constant 4 : index
    %c0_51 = arith.constant 0 : index
    %c0_52 = arith.constant 0 : index
    %81 = vector.load %arg10[%c4, %c0_51, %c0_52] : memref<9x128x128xbf16, #tpu.memory_space<vmem>>, vector<1x128x128xbf16>
    %82 = vector.shape_cast %81 : vector<1x128x128xbf16> to vector<128x128xbf16>
    %cst_53 = arith.constant dense<0.000000e+00> : vector<324x128xf32>
    %83 = tpu.matmul %80, %82, %cst_53 {dimension_numbers = #tpu.dot_dimension_numbers<[1], [0], [0], [1], [0, 0, 1, 1], [], []>} : vector<324x128xbf16>, vector<128x128xbf16>, vector<324x128xf32> -> vector<324x128xf32>
    %84 = arith.addf %78, %83 : vector<324x128xf32>
    %c20 = arith.constant 20 : index
    %c0_54 = arith.constant 0 : index
    %85 = vector.load %arg13[%c20, %c0_54] : memref<368x128xf32, #tpu.memory_space<vmem>>, vector<324x128xf32>
    %86 = arith.truncf %85 : vector<324x128xf32> to vector<324x128xbf16>
    %c5 = arith.constant 5 : index
    %c0_55 = arith.constant 0 : index
    %c0_56 = arith.constant 0 : index
    %87 = vector.load %arg10[%c5, %c0_55, %c0_56] : memref<9x128x128xbf16, #tpu.memory_space<vmem>>, vector<1x128x128xbf16>
    %88 = vector.shape_cast %87 : vector<1x128x128xbf16> to vector<128x128xbf16>
    %cst_57 = arith.constant dense<0.000000e+00> : vector<324x128xf32>
    %89 = tpu.matmul %86, %88, %cst_57 {dimension_numbers = #tpu.dot_dimension_numbers<[1], [0], [0], [1], [0, 0, 1, 1], [], []>} : vector<324x128xbf16>, vector<128x128xbf16>, vector<324x128xf32> -> vector<324x128xf32>
    %90 = arith.addf %84, %89 : vector<324x128xf32>
    %c36 = arith.constant 36 : index
    %c0_58 = arith.constant 0 : index
    %91 = vector.load %arg13[%c36, %c0_58] : memref<368x128xf32, #tpu.memory_space<vmem>>, vector<324x128xf32>
    %92 = arith.truncf %91 : vector<324x128xf32> to vector<324x128xbf16>
    %c6 = arith.constant 6 : index
    %c0_59 = arith.constant 0 : index
    %c0_60 = arith.constant 0 : index
    %93 = vector.load %arg10[%c6, %c0_59, %c0_60] : memref<9x128x128xbf16, #tpu.memory_space<vmem>>, vector<1x128x128xbf16>
    %94 = vector.shape_cast %93 : vector<1x128x128xbf16> to vector<128x128xbf16>
    %cst_61 = arith.constant dense<0.000000e+00> : vector<324x128xf32>
    %95 = tpu.matmul %92, %94, %cst_61 {dimension_numbers = #tpu.dot_dimension_numbers<[1], [0], [0], [1], [0, 0, 1, 1], [], []>} : vector<324x128xbf16>, vector<128x128xbf16>, vector<324x128xf32> -> vector<324x128xf32>
    %96 = arith.addf %90, %95 : vector<324x128xf32>
    %c37 = arith.constant 37 : index
    %c0_62 = arith.constant 0 : index
    %97 = vector.load %arg13[%c37, %c0_62] : memref<368x128xf32, #tpu.memory_space<vmem>>, vector<324x128xf32>
    %98 = arith.truncf %97 : vector<324x128xf32> to vector<324x128xbf16>
    %c7 = arith.constant 7 : index
    %c0_63 = arith.constant 0 : index
    %c0_64 = arith.constant 0 : index
    %99 = vector.load %arg10[%c7, %c0_63, %c0_64] : memref<9x128x128xbf16, #tpu.memory_space<vmem>>, vector<1x128x128xbf16>
    %100 = vector.shape_cast %99 : vector<1x128x128xbf16> to vector<128x128xbf16>
    %cst_65 = arith.constant dense<0.000000e+00> : vector<324x128xf32>
    %101 = tpu.matmul %98, %100, %cst_65 {dimension_numbers = #tpu.dot_dimension_numbers<[1], [0], [0], [1], [0, 0, 1, 1], [], []>} : vector<324x128xbf16>, vector<128x128xbf16>, vector<324x128xf32> -> vector<324x128xf32>
    %102 = arith.addf %96, %101 : vector<324x128xf32>
    %c38 = arith.constant 38 : index
    %c0_66 = arith.constant 0 : index
    %103 = vector.load %arg13[%c38, %c0_66] : memref<368x128xf32, #tpu.memory_space<vmem>>, vector<324x128xf32>
    %104 = arith.truncf %103 : vector<324x128xf32> to vector<324x128xbf16>
    %c8 = arith.constant 8 : index
    %c0_67 = arith.constant 0 : index
    %c0_68 = arith.constant 0 : index
    %105 = vector.load %arg10[%c8, %c0_67, %c0_68] : memref<9x128x128xbf16, #tpu.memory_space<vmem>>, vector<1x128x128xbf16>
    %106 = vector.shape_cast %105 : vector<1x128x128xbf16> to vector<128x128xbf16>
    %cst_69 = arith.constant dense<0.000000e+00> : vector<324x128xf32>
    %107 = tpu.matmul %104, %106, %cst_69 {dimension_numbers = #tpu.dot_dimension_numbers<[1], [0], [0], [1], [0, 0, 1, 1], [], []>} : vector<324x128xbf16>, vector<128x128xbf16>, vector<324x128xf32> -> vector<324x128xf32>
    %108 = arith.addf %102, %107 : vector<324x128xf32>
    %109 = arith.truncf %108 : vector<324x128xf32> to vector<324x128xbf16>
    %c0_70 = arith.constant 0 : index
    %c0_71 = arith.constant 0 : index
    %c0_72 = arith.constant 0 : index
    %110 = vector.load %arg11[%c0_70, %c0_71, %c0_72] : memref<1x324x128xbf16, #tpu.memory_space<vmem>>, vector<1x324x128xbf16>
    %111 = vector.shape_cast %110 : vector<1x324x128xbf16> to vector<324x128xbf16>
    %112 = vector.shape_cast %109 : vector<324x128xbf16> to vector<1x324x128xbf16>
    tpu.vector_store %arg11[%c0_70, %c0_71, %c0_72], %112 {strides = array<i32>} : memref<1x324x128xbf16, #tpu.memory_space<vmem>>, vector<1x324x128xbf16>,
    %113 = vector.broadcast %48 : vector<324x1xf32> to vector<324x128xf32>
    %114 = arith.mulf %108, %113 : vector<324x128xf32>
    %c0_73 = arith.constant 0 : index
    %c0_74 = arith.constant 0 : index
    %c0_75 = arith.constant 0 : index
    %115 = vector.load %arg12[%c0_73, %c0_74, %c0_75] : memref<1x8x128xf32, #tpu.memory_space<vmem>>, vector<1x1x128xf32>
    %116 = vector.shape_cast %115 : vector<1x1x128xf32> to vector<1x128xf32>
    %cst_76 = arith.constant dense<0.000000e+00> : vector<128xf32>
    %117 = vector.multi_reduction <add>, %114, %cst_76 [0] : vector<324x128xf32> to vector<128xf32>
    %118 = vector.shape_cast %117 : vector<128xf32> to vector<1x128xf32>
    %119 = arith.addf %116, %118 : vector<1x128xf32>
    %c0_77 = arith.constant 0 : index
    %c0_78 = arith.constant 0 : index
    %c0_79 = arith.constant 0 : index
    %120 = vector.load %arg12[%c0_77, %c0_78, %c0_79] : memref<1x8x128xf32, #tpu.memory_space<vmem>>, vector<1x1x128xf32>
    %121 = vector.shape_cast %120 : vector<1x1x128xf32> to vector<1x128xf32>
    %122 = vector.shape_cast %119 : vector<1x128xf32> to vector<1x1x128xf32>
    tpu.vector_store %arg12[%c0_77, %c0_78, %c0_79], %122 {strides = array<i32>} : memref<1x8x128xf32, #tpu.memory_space<vmem>>, vector<1x1x128xf32>,
    %c0_80 = arith.constant 0 : index
    %c1_81 = arith.constant 1 : index
    %c0_82 = arith.constant 0 : index
    %123 = vector.load %arg12[%c0_80, %c1_81, %c0_82] : memref<1x8x128xf32, #tpu.memory_space<vmem>>, vector<1x1x128xf32>
    %124 = vector.shape_cast %123 : vector<1x1x128xf32> to vector<1x128xf32>
    %125 = arith.mulf %108, %114 : vector<324x128xf32>
    %cst_83 = arith.constant dense<0.000000e+00> : vector<128xf32>
    %126 = vector.multi_reduction <add>, %125, %cst_83 [0] : vector<324x128xf32> to vector<128xf32>
    %127 = vector.shape_cast %126 : vector<128xf32> to vector<1x128xf32>
    %128 = arith.addf %124, %127 : vector<1x128xf32>
    %c0_84 = arith.constant 0 : index
    %c1_85 = arith.constant 1 : index
    %c0_86 = arith.constant 0 : index
    %129 = vector.load %arg12[%c0_84, %c1_85, %c0_86] : memref<1x8x128xf32, #tpu.memory_space<vmem>>, vector<1x1x128xf32>
    %130 = vector.shape_cast %129 : vector<1x1x128xf32> to vector<1x128xf32>
    %131 = vector.shape_cast %128 : vector<1x128xf32> to vector<1x1x128xf32>
    tpu.vector_store %arg12[%c0_84, %c1_85, %c0_86], %131 {strides = array<i32>} : memref<1x8x128xf32, #tpu.memory_space<vmem>>, vector<1x1x128xf32>,
    return
  }
  func.func @transform_0(%arg0: i32, %arg1: i32) -> (i32, i32, i32) {
    %c1_i32 = arith.constant 1 : i32
    %0 = arith.muli %arg0, %c1_i32 : i32
    %1 = arith.addi %0, %arg1 : i32
    %c0_i32 = arith.constant 0 : i32
    %c0_i32_0 = arith.constant 0 : i32
    %c0_i32_1 = arith.constant 0 : i32
    return %1, %c0_i32, %c0_i32_0 : i32, i32, i32
  }
  func.func @transform_1(%arg0: i32, %arg1: i32) -> (i32, i32) {
    %c0_i32 = arith.constant 0 : i32
    %c0_i32_0 = arith.constant 0 : i32
    %c0_i32_1 = arith.constant 0 : i32
    return %c0_i32, %c0_i32_0 : i32, i32
  }
  func.func @transform_2(%arg0: i32, %arg1: i32) -> (i32, i32) {
    %c0_i32 = arith.constant 0 : i32
    %c0_i32_0 = arith.constant 0 : i32
    %c0_i32_1 = arith.constant 0 : i32
    return %c0_i32, %c0_i32_0 : i32, i32
  }
  func.func @transform_3(%arg0: i32, %arg1: i32) -> (i32, i32) {
    %c0_i32 = arith.constant 0 : i32
    %c0_i32_0 = arith.constant 0 : i32
    %c0_i32_1 = arith.constant 0 : i32
    return %c0_i32, %c0_i32_0 : i32, i32
  }
  func.func @transform_4(%arg0: i32, %arg1: i32) -> (i32, i32, i32) {
    %c1_i32 = arith.constant 1 : i32
    %0 = arith.muli %arg0, %c1_i32 : i32
    %1 = arith.addi %0, %arg1 : i32
    %c0_i32 = arith.constant 0 : i32
    %c0_i32_0 = arith.constant 0 : i32
    %c0_i32_1 = arith.constant 0 : i32
    return %1, %c0_i32, %c0_i32_0 : i32, i32, i32
  }
  func.func @transform_5(%arg0: i32, %arg1: i32) -> (i32, i32) {
    %c0_i32 = arith.constant 0 : i32
    %c0_i32_0 = arith.constant 0 : i32
    %c0_i32_1 = arith.constant 0 : i32
    return %c0_i32, %c0_i32_0 : i32, i32
  }
  func.func @transform_6(%arg0: i32, %arg1: i32) -> (i32, i32) {
    %c0_i32 = arith.constant 0 : i32
    %c0_i32_0 = arith.constant 0 : i32
    %c0_i32_1 = arith.constant 0 : i32
    return %c0_i32, %c0_i32_0 : i32, i32
  }
  func.func @transform_7(%arg0: i32, %arg1: i32) -> (i32, i32) {
    %c0_i32 = arith.constant 0 : i32
    %c0_i32_0 = arith.constant 0 : i32
    %c0_i32_1 = arith.constant 0 : i32
    return %c0_i32, %c0_i32_0 : i32, i32
  }
  func.func @transform_8(%arg0: i32, %arg1: i32) -> (i32, i32, i32) {
    %c0_i32 = arith.constant 0 : i32
    %c0_i32_0 = arith.constant 0 : i32
    %c0_i32_1 = arith.constant 0 : i32
    %c0_i32_2 = arith.constant 0 : i32
    return %c0_i32, %c0_i32_0, %c0_i32_1 : i32, i32, i32
  }
  func.func @transform_9(%arg0: i32, %arg1: i32) -> (i32, i32, i32) {
    %c1_i32 = arith.constant 1 : i32
    %0 = arith.muli %arg0, %c1_i32 : i32
    %1 = arith.addi %0, %arg1 : i32
    %c0_i32 = arith.constant 0 : i32
    %c0_i32_0 = arith.constant 0 : i32
    %c0_i32_1 = arith.constant 0 : i32
    return %1, %c0_i32, %c0_i32_0 : i32, i32, i32
  }
  func.func @transform_10(%arg0: i32, %arg1: i32) -> (i32, i32, i32) {
    %c0_i32 = arith.constant 0 : i32
    %c0_i32_0 = arith.constant 0 : i32
    %c0_i32_1 = arith.constant 0 : i32
    return %arg0, %c0_i32, %c0_i32_0 : i32, i32, i32
  }
}

</mosaic_0001>

<bundles_post_ra>
// kernel: tile.8
= control target key start
LH: loop header
LB: loop body
LE: loop exit
PB: predicated region body
PF: predicated region fallthrough
CT: control target
= control target key end

     0   :  { %s22_s0 = inlined_call_operand.vmem [shape: f32[4], index: 0, kind: input, shape index: {}]   ;;  %s23_s1 = inlined_call_operand.vmem [shape: f32[4,4], index: 1, kind: output, shape index: {}]  }
   0x1   :  { %v4_v0 = vld [vmem:[%s22_s0] ss:$0 sm:$0xff] }
   0x2   :  { %5 = vst [vmem:[%s23_s1] sm:$0xf] %v4_v0 }

// kernel: tile.9
= control target key start
LH: loop header
LB: loop body
LE: loop exit
PB: predicated region body
PF: predicated region fallthrough
CT: control target
= control target key end

     0   :  { %vm7_vm0 = vcmask 31744   ;;  %s37_s8 = smov 4   ;;  %s38_s9 = smov 8   ;;  %vm13_vm1 = vcmask 130144   ;;  %vm19_vm2 = vcmask 97344   ;;  %vm25_vm3 = vcmask 64544   ;;  %s55_s0 = inlined_call_operand.vmem [shape: f32[4,4], index: 0, kind: input, shape index: {}]   ;;  %s56_s1 = inlined_call_operand.vmem [shape: f32[16], index: 1, kind: output, shape index: {}]  }
   0x1   :  { %v4_v0 = vld [vmem:[%s55_s0] sm:$0xf]  ;;  %s36_s0 = smov 12  }
   0x2   :  { %5 = vst [vmem:[#allocation1] sm:$0xf] %v4_v0 }
   0x9   :  { %v10_v1 = vld [vmem:[#allocation1 + $0x3] sm:$0x1]   ;;  %v22_v2 = vld [vmem:[#allocation1 + $0x1] sm:$0x1]   ;;  %v6_v3 = vld [vmem:[#allocation1] sm:$0x1]  }
   0xa   :  { %11 = vrot.lane.b32.xlu0 %v10_v1, %s36_s0  ;;  %23 = vrot.lane.b32.xlu1 %v22_v2, %s37_s8  ;;  %v16_v4 = vld [vmem:[#allocation1 + $0x2] sm:$0x1]   ;;  %8 = vst.msk [vmem:[#allocation0] sm:$0x1] %vm7_vm0, %v6_v3  }
   0xe   :  { %17 = vrot.lane.b32.xlu0 %v16_v4, %s38_s9 }
  0x7c   :  { %v12_v5 = vpop.permute.xlu0 %11   ;;  %v24_v6 = vpop.permute.xlu1 %23  }
  0x7d   :  { %14 = vst.msk [vmem:[#allocation0] sm:$0x1] %vm13_vm1, %v12_v5  }
  0x80   :  { %v18_v7 = vpop.permute.xlu0 %17  }
  0x81   :  { %20 = vst.msk [vmem:[#allocation0] sm:$0x1] %vm19_vm2, %v18_v7  }
  0x82   :  { %26 = vst.msk [vmem:[#allocation0] sm:$0x1] %vm25_vm3, %v24_v6  }
  0x89   :  { %v30_v8 = vld [vmem:[#allocation0] sm:$0x1] }
  0x8a   :  { %32 = vst [vmem:[%s56_s1] sm:$0x1] %v30_v8 }

// kernel: up_forward.4
= control target key start
LH: loop header
LB: loop body
LE: loop exit
PB: predicated region body
PF: predicated region fallthrough
CT: control target
= control target key end

     0   :  { %8 = vsyncpa [#allocation3], 0  ;;  %s671_s0 = inlined_call_operand.hbm [shape: bf16[128,8], index: 0, kind: input, shape index: {}]   ;;  %s672_s1 = inlined_call_operand.hbm [shape: bf16[8,128], index: 1, kind: input, shape index: {}]   ;;  %s673_s2 = inlined_call_operand.hbm [shape: f32[1,128], index: 2, kind: input, shape index: {}]   ;;  %s674_s3 = inlined_call_operand.hbm [shape: bf16[128,128], index: 3, kind: output, shape index: {}]  }
   0x1   :  { %9 = vsyncpa [#allocation6], 0 }
   0x2   :  { %10 = vsyncpa [#allocation4], 0  ;;  %s576_s12 = smov [#allocation5]   ;;  %s577_s14 = smov [#allocation2]  }
   0x3   :  { %s29_s13 = sshll.u32 %s576_s12, 4  ;;  %s16_s15 = sshll.u32 %s577_s14, 4  ;;  %s30_s13 = int_to_ptr.vmem [resolvable:$true] %s29_s13  ;;  %s602_s15 = int_to_ptr.vmem [resolvable:$true] %s16_s15 }
   0x4   :  { %s482_s18 = scalar_lea.hbm %s672_s1, 64 }
   0x5   :  { %p483_p0 = scmp.ne.s32.totalorder %s672_s1, %s482_s18  ;;  %p486_p1 = scmp.lt.u32.totalorder %s482_s18, %s672_s1 }
   0x7   :  { %p488_p2 = pnand %p486_p1, %p483_p0 }
   0x9   :  { %491 = shalt.err (!%p488_p2)
}
   0xa   :  { %s492_s23 = scalar_lea.vmem %s30_s13, 64  ;;  %p497_p4 = scmp.lt.s32.totalorder %s30_s13, %s30_s13 }
   0xb   :  { %p493_p3 = scmp.ne.s32.totalorder %s30_s13, %s492_s23  ;;  %p498_p5 = scmp.lt.s32.totalorder %s492_s23, %s492_s23 }
   0xd   :  { %p499_p6 = por %p498_p5, %p497_p4 }
   0xf   :  { %p500_p7 = pnand %p499_p6, %p493_p3 }
  0x11   :  { %503 = shalt.err (!%p500_p7)
}
  0x12   :  { %32 = dma.hbm_to_vmem [thread:$0]  %s672_s1, 64, %s30_s13, [#allocation6]  }
  0x13   :  { %s504_s28 = scalar_lea.hbm %s671_s0, 1024 }
  0x14   :  { %p505_p8 = scmp.ne.s32.totalorder %s671_s0, %s504_s28  ;;  %p508_p9 = scmp.lt.u32.totalorder %s504_s28, %s671_s0 }
  0x16   :  { %p510_p10 = pnand %p508_p9, %p505_p8 }
  0x18   :  { %513 = shalt.err (!%p510_p10)
}
  0x19   :  { %s514_s6 = scalar_lea.vmem %s602_s15, 1024  ;;  %p519_p12 = scmp.lt.s32.totalorder %s602_s15, %s602_s15 }
  0x1a   :  { %p515_p11 = scmp.ne.s32.totalorder %s602_s15, %s514_s6  ;;  %p520_p13 = scmp.lt.s32.totalorder %s514_s6, %s514_s6 }
  0x1c   :  { %p521_p0 = por %p520_p13, %p519_p12 }
  0x1e   :  { %p522_p1 = pnand %p521_p0, %p515_p11 }
  0x20   :  { %525 = shalt.err (!%p522_p1)
}
  0x21   :  { %s578_s1 = smov 64   ;;  %s579_s7 = smov 4  }
  0x22   :  { %22 = dma.hbm_to_vmem [thread:$0]  %s671_s0, 1024, %s602_s15, [#allocation3], %s578_s1, %s578_s1, %s579_s7  }
  0x23   :  { %s580_s10 = smov [#allocation7]   ;;  %s526_s14 = scalar_lea.hbm %s673_s2, 16 }
  0x24   :  { %s39_s11 = sshll.u32 %s580_s10, 4  ;;  %p527_p2 = scmp.ne.s32.totalorder %s673_s2, %s526_s14  ;;  %s40_s11 = int_to_ptr.vmem [resolvable:$true] %s39_s11 }
  0x25   :  { %p530_p3 = scmp.lt.u32.totalorder %s526_s14, %s673_s2 }
  0x27   :  { %p532_p4 = pnand %p530_p3, %p527_p2 }
  0x29   :  { %535 = shalt.err (!%p532_p4)
}
  0x2a   :  { %s536_s20 = scalar_lea.vmem %s40_s11, 16  ;;  %s540_s0 = scalar_lea.vmem %s40_s11, 32 }
  0x2b   :  { %p537_p5 = scmp.ne.s32.totalorder %s40_s11, %s536_s20  ;;  %p541_p6 = scmp.lt.s32.totalorder %s40_s11, %s40_s11 }
  0x2c   :  { %p542_p7 = scmp.lt.s32.totalorder %s540_s0, %s536_s20 }
  0x2e   :  { %p543_p8 = por %p542_p7, %p541_p6 }
  0x30   :  { %p544_p9 = pnand %p543_p8, %p537_p5 }
  0x32   :  { %547 = shalt.err (!%p544_p9)
}
  0x33   :  { %42 = dma.hbm_to_vmem [thread:$0]  %s673_s2, 16, %s40_s11, [#allocation6]  }
  0x34   :  { %570 = dma.done.wait [#allocation3], 1024  }
  0x35   :  { %571 = vsyncadd [#allocation3], 4294966272 }
  0x36   :  { %572 = dma.done.wait [#allocation6], 80  }
  0x37   :  { %573 = vsyncadd [#allocation6], 4294967216  ;;  %vm142_vm0 = vcmask 1043456   ;;  %vm117_vm1 = vcmask 64512   ;;  %v69_v0 = vld [vmem:[#allocation5] sm:$0xf] }
  0x38   :  { %466 = vmatprep.subr.msk.bf16.mxu0 %vm142_vm0, %v69_v0  ;;  %467 = vmatprep.subr.msk.bf16.mxu1 %vm142_vm0, %v69_v0  ;;  %v144_v1 = vsel %vm142_vm0, %v69_v0, 0  ;;  %v474_v2 = vld [vmem:[#allocation2] sm:$0xff]   ;;  %v476_v4 = vld [vmem:[#allocation2 + $0x8] sm:$0xff]   ;;  %v478_v6 = vld [vmem:[#allocation2 + $0x10] sm:$0xff]   ;;  %s581_s2 = smov [#allocation8]  }
  0x39   :  { %447 = vmatpush3.bf16.msra.mxu0 %v144_v1  ;;  %465 = vmatpush3.bf16.msra.mxu1 %v144_v1  ;;  %v475_v3 = vld [vmem:[#allocation2 + $0x20] sm:$0xff]   ;;  %v477_v5 = vld [vmem:[#allocation2 + $0x28] sm:$0xff]   ;;  %v479_v7 = vld [vmem:[#allocation2 + $0x30] sm:$0xff]   ;;  %s328_s22 = sshll.u32 %s581_s2, 4  ;;  %s329_s22 = int_to_ptr.vmem [resolvable:$true] %s328_s22 }
  0x3a   :  { %448 = vmatprep.mubr.msk.bf16.mxu0 %vm117_vm1, %v474_v2  ;;  %456 = vmatprep.mubr.msk.bf16.mxu1 %vm117_vm1, %v475_v3  ;;  %v480_v8 = vld [vmem:[#allocation2 + $0x18] sm:$0xff]   ;;  %v341_v11 = vld [vmem:[#allocation7] ss:$0 sm:$0xff]  ;;  %s548_s23 = scalar_lea.vmem %s329_s22, 1024  ;;  %p553_p11 = scmp.lt.s32.totalorder %s329_s22, %s329_s22 }
  0x3b   :  { %v481_v9 = vld [vmem:[#allocation2 + $0x38] sm:$0xff]   ;;  %p549_p10 = scmp.ne.s32.totalorder %s329_s22, %s548_s23  ;;  %p554_p12 = scmp.lt.s32.totalorder %s548_s23, %s548_s23 }
  0x3c   :  { %449 = vmatmul.mubr.msk.bf16.vlgmr.msra.gmra.mrb[0].mxu0 %vm117_vm1, %v476_v4  ;;  %457 = vmatmul.mubr.msk.bf16.vlgmr.msra.gmra.mrb[0].mxu1 %vm117_vm1, %v477_v5 }
  0x3d   :  { %452 = vmatprep.mubr.msk.bf16.mxu0 %vm117_vm1, %v478_v6  ;;  %460 = vmatprep.mubr.msk.bf16.mxu1 %vm117_vm1, %v479_v7  ;;  %p555_p13 = por %p554_p12, %p553_p11 }
  0x3f   :  { %p556_p0 = pnand %p555_p13, %p549_p10 }
  0x44   :  { %453 = vmatmul.mubr.msk.bf16.gmra.mrb[4].mxu0 %vm117_vm1, %v480_v8  ;;  %461 = vmatmul.mubr.msk.bf16.gmra.mrb[4].mxu1 %vm117_vm1, %v481_v9 }
 0x10f   :  { %v450_v10 = vpop.f32.mrb[0].mxu0  ;;  %v458_v12 = vpop.f32.mrb[0].mxu1 }
 0x110   :  { %v180_v13 = vpop.f32.mrb[1].mxu0  ;;  %v212_v14 = vpop.f32.mrb[1].mxu1  ;;  %v189_v16 = vadd.f32 %v450_v10, %v341_v11  ;;  %v221_v20 = vadd.f32 %v458_v12, %v341_v11 }
 0x111   :  { %v451_v15 = vpop.f32.mrb[2].mxu0  ;;  %v459_v18 = vpop.f32.mrb[2].mxu1  ;;  %v181_v21 = vadd.f32 %v341_v11, %v180_v13  ;;  %v213_v25 = vadd.f32 %v341_v11, %v212_v14 }
 0x112   :  { %v192_v17 = vadd.f32 %v451_v15, %v341_v11  ;;  %v183_v19 = vpop.f32.mrb[3].mxu0  ;;  %v224_v22 = vadd.f32 %v459_v18, %v341_v11  ;;  %v215_v24 = vpop.f32.mrb[3].mxu1 }
 0x113   :  { %v184_v23 = vadd.f32 %v341_v11, %v183_v19  ;;  %v216_v27 = vadd.f32 %v341_v11, %v215_v24 }
 0x114   :  { %v398_v26 = vpack.c.bf16 %v192_v17, %v189_v16  ;;  %v418_v28 = vpack.c.bf16 %v224_v22, %v221_v20 }
 0x115   :  { %v393_v29 = vpack.c.bf16 %v184_v23, %v181_v21  ;;  %v413_v30 = vpack.c.bf16 %v216_v27, %v213_v25 }
 0x116   :  { %430 = vst [vmem:[#allocation8 + $0x8] sm:$0xff] %v398_v26   ;;  %434 = vst [vmem:[#allocation8 + $0x28] sm:$0xff] %v418_v28  }
 0x117   :  { %394 = vst [vmem:[#allocation8] sm:$0xff] %v393_v29   ;;  %v454_v31 = vpop.f32.mrb[4].mxu0  ;;  %433 = vst [vmem:[#allocation8 + $0x20] sm:$0xff] %v413_v30   ;;  %v462_v32 = vpop.f32.mrb[4].mxu1 }
 0x118   :  { %v196_v33 = vpop.f32.mrb[5].mxu0  ;;  %v228_v34 = vpop.f32.mrb[5].mxu1  ;;  %v205_v36 = vadd.f32 %v454_v31, %v341_v11  ;;  %v237_v40 = vadd.f32 %v462_v32, %v341_v11 }
 0x119   :  { %v455_v35 = vpop.f32.mrb[6].mxu0  ;;  %v463_v38 = vpop.f32.mrb[6].mxu1  ;;  %v197_v41 = vadd.f32 %v341_v11, %v196_v33  ;;  %v229_v45 = vadd.f32 %v341_v11, %v228_v34 }
 0x11a   :  { %v208_v37 = vadd.f32 %v455_v35, %v341_v11  ;;  %v199_v39 = vpop.f32.mrb[7].mxu0  ;;  %v240_v42 = vadd.f32 %v463_v38, %v341_v11  ;;  %v231_v44 = vpop.f32.mrb[7].mxu1 }
 0x11b   :  { %v200_v43 = vadd.f32 %v341_v11, %v199_v39  ;;  %v232_v47 = vadd.f32 %v341_v11, %v231_v44 }
 0x11c   :  { %v408_v46 = vpack.c.bf16 %v208_v37, %v205_v36  ;;  %v428_v48 = vpack.c.bf16 %v240_v42, %v237_v40 }
 0x11d   :  { %v403_v49 = vpack.c.bf16 %v200_v43, %v197_v41  ;;  %v423_v50 = vpack.c.bf16 %v232_v47, %v229_v45 }
 0x11e   :  { %432 = vst [vmem:[#allocation8 + $0x18] sm:$0xff] %v408_v46   ;;  %436 = vst [vmem:[#allocation8 + $0x38] sm:$0xff] %v428_v48  }
 0x11f   :  { %431 = vst [vmem:[#allocation8 + $0x10] sm:$0xff] %v403_v49   ;;  %435 = vst [vmem:[#allocation8 + $0x30] sm:$0xff] %v423_v50  }
 0x120   :  { %559 = shalt.err (!%p556_p0)
}
 0x121   :  { %s560_s26 = scalar_lea.hbm %s674_s3, 1024 }
 0x122   :  { %p561_p1 = scmp.ne.s32.totalorder %s674_s3, %s560_s26  ;;  %p564_p2 = scmp.lt.u32.totalorder %s560_s26, %s674_s3 }
 0x124   :  { %p566_p3 = pnand %p564_p2, %p561_p1 }
 0x126   :  { %569 = shalt.err (!%p566_p3)
}
 0x127   :  { %334 = dma.vmem_to_hbm [thread:$0]  %s329_s22, 1024, %s674_s3, [#allocation4], %s578_s1, %s578_s1, %s579_s7  }
 0x128   :  { %574 = dma.done.wait [#allocation4], 1024  }
 0x129   :  { %575 = vsyncadd [#allocation4], 4294966272 }
 0x12a   :  { %338 = vsyncpa [#allocation3], 1 }
 0x12b   :  { %339 = vsyncpa [#allocation6], 1 }
 0x12c   :  { %340 = vsyncpa [#allocation4], 1 }

// kernel: up_forward.7
= control target key start
LH: loop header
LB: loop body
LE: loop exit
PB: predicated region body
PF: predicated region fallthrough
CT: control target
= control target key end

     0   :  { %9 = vsyncpa [#allocation3], 0  ;;  %s2127_s0 = inlined_call_operand.hbm [shape: bf16[2,324,128], index: 0, kind: input, shape index: {}]   ;;  %s2128_s1 = inlined_call_operand.hbm [shape: f32[8,128], index: 1, kind: input, shape index: {}]   ;;  %s2129_s2 = inlined_call_operand.hbm [shape: f32[1,128], index: 2, kind: input, shape index: {}]   ;;  %s2130_s3 = inlined_call_operand.hbm [shape: f32[1,128], index: 3, kind: input, shape index: {}]   ;;  %s2131_s4 = inlined_call_operand.hbm [shape: f32[2,256,128], index: 4, kind: output, shape index: {}]  }
   0x1   :  { %11 = vsyncpa [#allocation3 + $0x1], 0 }
   0x2   :  { %12 = vsyncpa [#allocation6], 0 }
   0x3   :  { %13 = vsyncpa [#allocation9], 0 }
   0x4   :  { %14 = vsyncpa [#allocation4], 0 }
   0x5   :  { %16 = vsyncpa [#allocation4 + $0x1], 0  ;;  %s1417_s15 = smov 0   ;;  %s1419_s16 = smov 0  }
   0x6   :  { %s1421_s17 = smov 0   ;;  %s1423_s18 = smov 0  }
   0x7 LB: > { %s1438_s19 = sadd.s32 4294967295, %s1381_s18   ;;  %s850_s20 = sadd.s32 4294967294, %s1381_s18   ;;  %s1381_s18 = sphi %s1423_s18, %s2154_s18   ;;  %s1377_s17 = sphi %s1421_s17, %s2153_s17   ;;  %s1373_s16 = sphi %s1419_s16, %s2152_s16   ;;  %s1369_s15 = sphi %s1417_s15, %s2151_s15  }
   0x8   : > { %p42_p0 = scmp.ne.s32.totalorder %s1373_s16, %s1369_s15  ;;  %p2132_p1 = scmp.eq.s32.totalorder %s1438_s19, 0 }
   0x9   : > { %p135_p3 = scmp.eq.s32.totalorder %s850_s20, 1  ;;  %p851_p5 = scmp.ge.s32.totalorder %s1381_s18, 1 }
   0xa   : > { %p1447_p4 = por %p2132_p1, %p42_p0  ;;  %p142_p7 = scmp.lt.s32.totalorder %s1381_s18, 3 }
   0xb   : > { %p1452_p6 = por %p135_p3, %p42_p0  ;;  %s1383_s24 = smov [#allocation5]  }
   0xc   : > { %s2135_s21 = scalar_select %p1447_p4, 1, 0 }
   0xd   : > { %s2136_s22 = scalar_select %p1452_p6, 1, 0 }
   0xe   : > { %p1457_p8 = pnand %p851_p5, %p142_p7  ;;  %s155_s25 = sshll.u32 %s1383_s24, 4  ;;  %s156_s25 = int_to_ptr.vmem [resolvable:$true] %s155_s25 }
   0xf   : > { %s1384_s26 = smov [#allocation7]   ;;  %s1385_s29 = smov [#allocation8]  }
  0x10   : > { %s2137_s23 = scalar_select %p1457_p8, 1, 0 }
  0x11   : > { %p978_p10 = pneg %p1457_p8  ;;  %s166_s27 = sshll.u32 %s1384_s26, 4  ;;  %s1470_s27 = int_to_ptr.vmem [resolvable:$true] %s166_s27 }
  0x12   : > { %s177_s30 = sshll.u32 %s1385_s29, 4  ;;  %s1193_s7 = scalar_lea.hbm %s2128_s1, 128  ;;  %s1472_s30 = int_to_ptr.vmem [resolvable:$true] %s177_s30 }
  0x13   : > { %p1466_p11 = pnand %p978_p10, %p2132_p1  ;;  %p1194_p12 = scmp.ne.s32.totalorder %s2128_s1, %s1193_s7 }
  0x14   : > { %p1200_p5 = scmp.lt.u32.totalorder %s1193_s7, %s2128_s1 }
  0x15   : > { %p1482_p13 = pneg %p1466_p11 }
  0x17   : > { %p1196_p0 = pnand %p1482_p13, %p1194_p12 }
  0x19   : > { %p1197_p3 = pneg %p1196_p0 }
  0x1b   : > { %p1202_p7 = pnand %p1200_p5, %p1197_p3 }
  0x1d   : > { %1205 = shalt.err (!%p1202_p7)
}
  0x1e   : > { %s1206_s13 = scalar_lea.vmem %s156_s25, 128  ;;  %p1214_p2 = scmp.lt.s32.totalorder %s156_s25, %s156_s25 }
  0x1f   : > { %p1207_p10 = scmp.ne.s32.totalorder %s156_s25, %s1206_s13  ;;  %p1215_p6 = scmp.lt.s32.totalorder %s1206_s13, %s1206_s13 }
  0x21   : > { %p1209_p9 = pnand %p1207_p10, %p1482_p13  ;;  %p1216_p4 = por %p1215_p6, %p1214_p2 }
  0x23   : > { %p1210_p1 = pneg %p1209_p9 }
  0x25   : > { %p1217_p8 = pnand %p1216_p4, %p1210_p1 }
  0x27   : > { %1220 = shalt.err (!%p1217_p8)
}
  0x28   : > { %981 = dma.hbm_to_vmem [thread:$0]  (!%p1466_p11), %s2128_s1, 128, %s156_s25, [#allocation6]  }
  0x29   : > { %s1221_s29 = scalar_lea.hbm %s2129_s2, 16 }
  0x2a   : > { %p1222_p9 = scmp.ne.s32.totalorder %s2129_s2, %s1221_s29  ;;  %p1228_p1 = scmp.lt.u32.totalorder %s1221_s29, %s2129_s2 }
  0x2c   : > { %p1224_p12 = pnand %p1222_p9, %p1482_p13 }
  0x2e   : > { %p1225_p2 = pneg %p1224_p12 }
  0x30   : > { %p1230_p4 = pnand %p1228_p1, %p1225_p2 }
  0x32   : > { %1233 = shalt.err (!%p1230_p4)
}
  0x33   : > { %s1234_s25 = scalar_lea.vmem %s1470_s27, 16  ;;  %s1241_s9 = scalar_lea.vmem %s1470_s27, 32 }
  0x34   : > { %p1235_p6 = scmp.ne.s32.totalorder %s1470_s27, %s1234_s25  ;;  %p1242_p3 = scmp.lt.s32.totalorder %s1470_s27, %s1470_s27 }
  0x35   : > { %p1243_p5 = scmp.lt.s32.totalorder %s1241_s9, %s1234_s25 }
  0x36   : > { %p1237_p8 = pnand %p1235_p6, %p1482_p13 }
  0x37   : > { %p1244_p7 = por %p1243_p5, %p1242_p3 }
  0x38   : > { %p1238_p0 = pneg %p1237_p8 }
  0x3a   : > { %p1245_p10 = pnand %p1244_p7, %p1238_p0 }
  0x3c   : > { %1248 = shalt.err (!%p1245_p10)
}
  0x3d   : > { %984 = dma.hbm_to_vmem [thread:$0]  (!%p1466_p11), %s2129_s2, 16, %s1470_s27, [#allocation6]  }
  0x3e   : > { %s1249_s20 = scalar_lea.hbm %s2130_s3, 16 }
  0x3f   : > { %p1250_p9 = scmp.ne.s32.totalorder %s2130_s3, %s1249_s20  ;;  %p1256_p1 = scmp.lt.u32.totalorder %s1249_s20, %s2130_s3 }
  0x41   : > { %p1252_p12 = pnand %p1250_p9, %p1482_p13 }
  0x43   : > { %p1253_p2 = pneg %p1252_p12 }
  0x45   : > { %p1258_p4 = pnand %p1256_p1, %p1253_p2 }
  0x47   : > { %1261 = shalt.err (!%p1258_p4)
}
  0x48   : > { %s1262_s27 = scalar_lea.vmem %s1472_s30, 16  ;;  %s1269_s6 = scalar_lea.vmem %s1472_s30, 32 }
  0x49   : > { %p1263_p6 = scmp.ne.s32.totalorder %s1472_s30, %s1262_s27  ;;  %p1270_p3 = scmp.lt.s32.totalorder %s1472_s30, %s1472_s30 }
  0x4a   : > { %p1271_p5 = scmp.lt.s32.totalorder %s1269_s6, %s1262_s27 }
  0x4b   : > { %p1265_p8 = pnand %p1263_p6, %p1482_p13 }
  0x4c   : > { %p1272_p7 = por %p1271_p5, %p1270_p3 }
  0x4d   : > { %p1266_p0 = pneg %p1265_p8 }
  0x4f   : > { %p1273_p10 = pnand %p1272_p7, %p1266_p0 }
  0x51   : > { %1276 = shalt.err (!%p1273_p10)
}
  0x52   : > { %987 = dma.hbm_to_vmem [thread:$0]  (!%p1466_p11), %s2130_s3, 16, %s1472_s30, [#allocation9]  }
  0x53   : > { %s1547_s10 = sadd.s32 1, %s1381_s18   ;;  %s29_s25 = sadd.s32 1, %s1377_s17 }
  0x54   : > { %s26_s28 = ssub.s32 %s1381_s18, %s1547_s10  ;;  %p36_p9 = scmp.ne.s32.totalorder %s1377_s17, %s1373_s16 }
  0x55   : > { %p27_p13 = scmp.eq.s32.totalorder %s26_s28, 0  ;;  %p37_p12 = scmp.eq.s32.totalorder %s1381_s18, 0 }
  0x56   : > { %p999_p2 = scmp.lt.s32.totalorder %s1381_s18, 2  ;;  %p2140_p4 = scmp.eq.s32.totalorder %s1438_s19, 1 }
  0x57   : > { %s1557_s9 = scalar_select %p27_p13, %s1377_s17, %s29_s25  }
  0x58   : > { %p38_p1 = por %p37_p12, %p36_p9  ;;  %p1561_p6 = por %p2140_p4, %p36_p9 }
  0x59   : > { %s188_s12 = sand.u32 1, %s1377_s17   ;;  %s960_s13 = smul.u32 2624, %s1381_s18 }
  0x5a   : > { %s959_s30 = smul.u32 164, %s188_s12  ;;  %p1572_p11 = pnand %p999_p2, %p38_p1 }
  0x5b   : > { %s1570_s24 = scalar_lea.hbm %s2127_s0, %s960_s13  ;;  %s1578_s27 = scalar_lea.sflag [#allocation3], %s188_s12 }
  0x5c   : > { %s192_s29 = scalar_lea.vmem [#allocation2], %s959_s30  ;;  %s1277_s6 = scalar_lea.hbm %s1570_s24, 2624 }
  0x5d   : > { %s199_s5 = sshll.u32 %s192_s29, 4  ;;  %p1278_p8 = scmp.ne.s32.totalorder %s1570_s24, %s1277_s6  ;;  %s1576_s5 = int_to_ptr.vmem [resolvable:$true] %s199_s5 }
  0x5e   : > { %p1279_p0 = pneg %p1572_p11  ;;  %s1282_s28 = scalar_lea.hbm %s2127_s0, 5248 }
  0x5f   : > { %p1283_p7 = scmp.lt.u32.totalorder %s1570_s24, %s2127_s0  ;;  %p1284_p10 = scmp.lt.u32.totalorder %s1282_s28, %s1277_s6 }
  0x60   : > { %p1280_p3 = pnand %p1279_p0, %p1278_p8  ;;  %p1286_p9 = scmp.lt.u32.totalorder %s1277_s6, %s1570_s24 }
  0x61   : > { %p1285_p13 = por %p1284_p10, %p1283_p7 }
  0x62   : > { %p1281_p5 = pneg %p1280_p3 }
  0x63   : > { %p1287_p12 = por %p1286_p9, %p1285_p13 }
  0x65   : > { %p1288_p2 = pnand %p1287_p12, %p1281_p5 }
  0x67   : > { %1291 = shalt.err (!%p1288_p2)
}
  0x68   : > { %s1292_s12 = scalar_lea.vmem %s1576_s5, 2624  ;;  %s1386_s30 = smov [#allocation2]  }
  0x69   : > { %p1293_p1 = scmp.ne.s32.totalorder %s1576_s5, %s1292_s12  ;;  %s1297_s14 = sshll.u32 %s1386_s30, 4  ;;  %s1298_s14 = int_to_ptr.vmem [resolvable:$false] %s1297_s14 }
  0x6a   : > { %s1299_s20 = scalar_lea.vmem %s1298_s14, 5248  ;;  %p1300_p3 = scmp.lt.s32.totalorder %s1576_s5, %s1298_s14 }
  0x6b   : > { %p1295_p4 = pnand %p1293_p1, %p1279_p0  ;;  %p1301_p7 = scmp.lt.s32.totalorder %s1299_s20, %s1292_s12 }
  0x6d   : > { %p1296_p8 = pneg %p1295_p4  ;;  %p1302_p10 = por %p1301_p7, %p1300_p3 }
  0x6f   : > { %p1303_p13 = pnand %p1302_p10, %p1296_p8 }
  0x71   : > { %1306 = shalt.err (!%p1303_p13)
}
  0x72   : > { %s1387_s29 = smov 64   ;;  %s1388_s6 = smov 4  }
  0x73   : > { %991 = dma.hbm_to_vmem [thread:$0]  (!%p1572_p11), %s1570_s24, 2624, %s1576_s5, %s1578_s27, %s1387_s29, %s1387_s29, %s1388_s6  }
  0x74   : > { %p2143_p0 = scmp.ne.s32.totalorder %s2137_s23, 0 }
  0x75   : > { %s1609_s7 = sand.u32 (!%p2143_p0), 1, %s1373_s16   ;;  %p2144_p5 = scmp.ne.s32.totalorder (!%p2143_p0), %s2135_s21, 0 }
  0x76   : > { %211 = sbr.rel (%p2143_p0) target bundleno = 268 (0x10c), region = 36  ;;  %s214_s28 = scalar_lea.sflag (!%p2143_p0), [#allocation3], %s1609_s7 }
  0x77   : > { %s961_s8 = smul.u32 (!%p2143_p0), 164, %s1609_s7 }
  0x79   : > { %s1613_s25 = scalar_lea.vmem (!%p2143_p0), [#allocation2], %s961_s8 }
  0x7d   : > { %1352 = dma.done.wait (%p2144_p5), %s214_s28, 2624  }
  0x7e   : > { %1354 = vsyncadd (%p2144_p5), %s214_s28, 4294964672  ;;  %p2145_p11 = scmp.eq.s32.totalorder %s1438_s19, 0 }
  0x80   : > { %1356 = dma.done.wait (%p2145_p11), [#allocation6], 144   ;;  %p2146_p9 = pmov %p2145_p11 }
  0x82   : > { %1358 = vsyncadd (%p2146_p9), [#allocation6], 4294967152  ;;  %p2147_p12 = pmov %p2146_p9 }
  0x83   : > { %p2148_p2 = pmov %p2146_p9 }
  0x84   : > { %1360 = dma.done.wait (%p2147_p12), [#allocation9], 16  }
  0x85   : > { %1362 = vsyncadd (%p2148_p2), [#allocation9], 4294967280  ;;  %v338_v0 = vlaneseq  ;;  %v254_v2 = vld [vmem:[#allocation5] sm:$0x1]  ;;  %v256_v3 = vld [vmem:[#allocation5 + $0x1] sm:$0x1] }
  0x86   : > { %v255_v4 = vmul.f32 0.001953125, %v254_v2  ;;  %v257_v5 = vmul.f32 0.001953125, %v256_v3  ;;  %v941_v7 = vld [vmem:[%s1613_s25 + $0x8] sm:$0xff]   ;;  %v942_v9 = vld [vmem:[%s1613_s25 + $0x10] sm:$0xff]   ;;  %v943_v13 = vld [vmem:[%s1613_s25 + $0x18] sm:$0xff]   ;;  %s861_s21 = sshll.u32 %s1609_s7, 8 }
  0x87   : > { %v1627_v1 = vshrl.u32 %v338_v0, 7  ;;  %v871_v11 = vunpack.c.l.bf16 %v941_v7  ;;  %v944_v14 = vld [vmem:[%s1613_s25 + $0x20] sm:$0xff]   ;;  %v872_v15 = vunpack.c.h.bf16 %v941_v7  ;;  %v875_v16 = vunpack.c.l.bf16 %v942_v9  ;;  %v945_v17 = vld [vmem:[%s1613_s25 + $0x28] sm:$0xff]   ;;  %v946_v20 = vld [vmem:[%s1613_s25 + $0x30] sm:$0xff]   ;;  %s1904_s23 = scalar_lea.vmem [#allocation10], %s861_s21  ;;  %s868_s24 = sshll.u32 %s1438_s19, 12 }
  0x88   : > { %v258_v8 = vmul.f32 %v255_v4, %v255_v4  ;;  %v876_v19 = vunpack.c.h.bf16 %v942_v9  ;;  %v879_v21 = vunpack.c.l.bf16 %v943_v13  ;;  %v880_v22 = vunpack.c.h.bf16 %v943_v13  ;;  %v947_v25 = vld [vmem:[%s1613_s25 + $0x38] sm:$0xff]   ;;  %v948_v26 = vld [vmem:[%s1613_s25 + $0x40] sm:$0xff]   ;;  %v949_v30 = vld [vmem:[%s1613_s25 + $0x48] sm:$0xff]   ;;  %s748_s26 = sshll.u32 %s1904_s23, 4  ;;  %s2077_s27 = scalar_lea.hbm %s2131_s4, %s868_s24  ;;  %s2079_s26 = int_to_ptr.vmem [resolvable:$true] %s748_s26 }
  0x89   : > { %v340_v6 = vsub.s32 0, %v1627_v1  ;;  %v883_v23 = vunpack.c.l.bf16 %v944_v14  ;;  %v884_v24 = vunpack.c.h.bf16 %v944_v14  ;;  %v887_v28 = vunpack.c.l.bf16 %v945_v17  ;;  %v950_v39 = vld [vmem:[%s1613_s25 + $0x50] sm:$0xff]   ;;  %v951_v48 = vld [vmem:[%s1613_s25 + $0x58] sm:$0xff]   ;;  %v952_v53 = vld [vmem:[%s1613_s25 + $0x60] sm:$0xff]   ;;  %s735_s13 = scalar_lea.sflag [#allocation4], %s1609_s7  ;;  %s1307_s12 = scalar_lea.vmem %s2079_s26, 4096 }
  0x8a   : > { %v259_v10 = vsub.f32 %v257_v5, %v258_v8  ;;  %v888_v29 = vunpack.c.h.bf16 %v945_v17  ;;  %v891_v33 = vunpack.c.l.bf16 %v946_v20  ;;  %v892_v34 = vunpack.c.h.bf16 %v946_v20  ;;  %v953_v54 = vld [vmem:[%s1613_s25 + $0x68] sm:$0xff]   ;;  %v954_v59 = vld [vmem:[%s1613_s25 + $0x70] sm:$0xff]   ;;  %v955_v0 = vld [vmem:[%s1613_s25 + $0x78] sm:$0xff]   ;;  %p1308_p1 = scmp.ne.s32.totalorder %s2079_s26, %s1307_s12  ;;  %s1389_s30 = smov [#allocation10]  }
  0x8b   : > { %v1634_v12 = vrot.slane %v255_v4, %v340_v6  ;;  %v895_v35 = vunpack.c.l.bf16 %v947_v25  ;;  %v896_v36 = vunpack.c.h.bf16 %v947_v25  ;;  %v899_v37 = vunpack.c.l.bf16 %v948_v26  ;;  %v956_v2 = vld [vmem:[%s1613_s25 + $0x80] sm:$0xff]   ;;  %v262_v3 = vld [vmem:[#allocation7] sm:$0x1]  ;;  %s1311_s14 = sshll.u32 %s1389_s30, 4  ;;  %s1312_s14 = int_to_ptr.vmem [resolvable:$false] %s1311_s14 }
  0x8c   : > { %v260_v18 = vadd.f32 1e-05, %v259_v10  ;;  %v900_v38 = vunpack.c.h.bf16 %v948_v26  ;;  %v903_v43 = vunpack.c.l.bf16 %v949_v30  ;;  %v904_v51 = vunpack.c.h.bf16 %v949_v30  ;;  %p1309_p4 = pnand %p1308_p1, %p1561_p6  ;;  %s1313_s20 = scalar_lea.vmem %s1312_s14, 8192 }
  0x8d   : > { %v1643_v27 = vsub.f32 %v871_v11, %v1634_v12  ;;  %v1647_v31 = vsub.f32 %v872_v15, %v1634_v12  ;;  %v1650_v32 = vsub.f32 %v875_v16, %v1634_v12  ;;  %v345_v40 = vsub.f32 %v876_v19, %v1634_v12  ;;  %v1698_v19 = vld [vmem:[%s1613_s25 + $0x88] sm:$0xff]   ;;  %p1314_p3 = scmp.lt.s32.totalorder %s2079_s26, %s1312_s14  ;;  %p1315_p7 = scmp.lt.s32.totalorder %s1313_s20, %s1307_s12 }
  0x8e   : > { %1043 = vrsqrt.f32 %v260_v18  ;;  %v346_v41 = vsub.f32 %v879_v21, %v1634_v12  ;;  %v347_v42 = vsub.f32 %v880_v22, %v1634_v12  ;;  %v348_v44 = vsub.f32 %v883_v23, %v1634_v12  ;;  %p1310_p8 = pneg %p1309_p4 }
  0x8f   : > { %v349_v45 = vsub.f32 %v884_v24, %v1634_v12  ;;  %v1659_v46 = vsub.f32 %v887_v28, %v1634_v12  ;;  %v1662_v47 = vsub.f32 %v888_v29, %v1634_v12  ;;  %v1666_v49 = vsub.f32 %v891_v33, %v1634_v12  ;;  %p1316_p10 = por %p1315_p7, %p1314_p3 }
  0x90   : > { %v1669_v50 = vsub.f32 %v892_v34, %v1634_v12  ;;  %v907_v52 = vunpack.c.l.bf16 %v950_v39  ;;  %v1674_v55 = vsub.f32 %v895_v35, %v1634_v12  ;;  %v1677_v56 = vsub.f32 %v896_v36, %v1634_v12  ;;  %v1732_v35 = vld [vmem:[#allocation8] ss:$0 sm:$0xff] }
  0x91   : > { %v1680_v57 = vsub.f32 %v899_v37, %v1634_v12  ;;  %v1683_v58 = vsub.f32 %v900_v38, %v1634_v12  ;;  %v1687_v60 = vsub.f32 %v903_v43, %v1634_v12  ;;  %v908_v61 = vunpack.c.h.bf16 %v950_v39  ;;  %p1317_p13 = pnand %p1316_p10, %p1310_p8 }
  0x92   : > { %v911_v62 = vunpack.c.l.bf16 %v951_v48  ;;  %v912_v63 = vunpack.c.h.bf16 %v951_v48  ;;  %v915_v4 = vunpack.c.l.bf16 %v952_v53  ;;  %v916_v5 = vunpack.c.h.bf16 %v952_v53 }
  0x93   : > { %v919_v7 = vunpack.c.l.bf16 %v953_v54  ;;  %v920_v8 = vunpack.c.h.bf16 %v953_v54  ;;  %v1692_v9 = vsub.f32 %v904_v51, %v1634_v12  ;;  %v1695_v10 = vsub.f32 %v907_v52, %v1634_v12 }
  0x94   : > { %v923_v11 = vunpack.c.l.bf16 %v954_v59  ;;  %v924_v13 = vunpack.c.h.bf16 %v954_v59  ;;  %v927_v15 = vunpack.c.l.bf16 %v955_v0  ;;  %v928_v16 = vunpack.c.h.bf16 %v955_v0 }
  0x95   : > { %v931_v17 = vunpack.c.l.bf16 %v956_v2  ;;  %v932_v18 = vunpack.c.h.bf16 %v956_v2  ;;  %v1701_v21 = vsub.f32 %v908_v61, %v1634_v12  ;;  %v1704_v22 = vsub.f32 %v911_v62, %v1634_v12 }
  0x96   : > { %v1707_v23 = vsub.f32 %v912_v63, %v1634_v12  ;;  %v1710_v24 = vsub.f32 %v915_v4, %v1634_v12  ;;  %v1713_v25 = vsub.f32 %v916_v5, %v1634_v12  ;;  %v1716_v26 = vsub.f32 %v919_v7, %v1634_v12 }
  0x97   : > { %v1719_v28 = vsub.f32 %v920_v8, %v1634_v12  ;;  %v1726_v30 = vsub.f32 %v923_v11, %v1634_v12  ;;  %v1729_v33 = vsub.f32 %v924_v13, %v1634_v12  ;;  %v935_v34 = vunpack.c.l.bf16 %v1698_v19 }
  0x98   : > { %v1044_v14 = vpop.eup %1043  ;;  %v1735_v36 = vsub.f32 %v927_v15, %v1634_v12  ;;  %v1738_v37 = vsub.f32 %v928_v16, %v1634_v12  ;;  %v1741_v1 = vsub.f32 %v931_v17, %v1634_v12 }
  0x99   : > { %v263_v20 = vmul.f32 %v1044_v14, %v262_v3 }
  0x9b   : > { %v1723_v29 = vrot.slane %v263_v20, %v340_v6  ;;  %v1744_v6 = vsub.f32 %v932_v18, %v1634_v12 }
  0x9d   : > { %v383_v38 = vmul.f32 %v1723_v29, %v1643_v27  ;;  %v384_v39 = vmul.f32 %v1723_v29, %v1647_v31  ;;  %v385_v43 = vmul.f32 %v1723_v29, %v1650_v32  ;;  %v386_v48 = vmul.f32 %v1723_v29, %v345_v40 }
  0x9e   : > { %v387_v51 = vmul.f32 %v1723_v29, %v346_v41  ;;  %v388_v52 = vmul.f32 %v1723_v29, %v347_v42  ;;  %v389_v53 = vmul.f32 %v1723_v29, %v348_v44  ;;  %v390_v54 = vmul.f32 %v1723_v29, %v349_v45 }
  0x9f   : > { %v1758_v59 = vadd.f32 %v1732_v35, %v383_v38  ;;  %v1761_v27 = vadd.f32 %v1732_v35, %v384_v39  ;;  %v1764_v31 = vadd.f32 %v1732_v35, %v385_v43  ;;  %v1767_v32 = vadd.f32 %v1732_v35, %v386_v48 }
  0xa0   : > { %v1770_v40 = vadd.f32 %v1732_v35, %v387_v51  ;;  %v1773_v41 = vadd.f32 %v1732_v35, %v388_v52  ;;  %v1776_v42 = vadd.f32 %v1732_v35, %v389_v53  ;;  %v1779_v44 = vadd.f32 %v1732_v35, %v390_v54 }
  0xa1   : > { %v464_v45 = vsub.f32 0.0, %v1758_v59  ;;  %v465_v61 = vsub.f32 0.0, %v1761_v27  ;;  %v466_v62 = vsub.f32 0.0, %v1764_v31  ;;  %v467_v63 = vsub.f32 0.0, %v1767_v32 }
  0xa2   : > { %v468_v0 = vsub.f32 0.0, %v1770_v40  ;;  %v469_v2 = vsub.f32 0.0, %v1773_v41  ;;  %v470_v3 = vsub.f32 0.0, %v1776_v42  ;;  %v471_v4 = vsub.f32 0.0, %v1779_v44 }
  0xa3   : > { %v501_v5 = vmul.f32 1.442695, %v464_v45  ;;  %v503_v7 = vmul.f32 1.442695, %v465_v61  ;;  %v505_v8 = vmul.f32 1.442695, %v466_v62  ;;  %v391_v11 = vmul.f32 %v1723_v29, %v1659_v46 }
  0xa4   : > { %v507_v13 = vmul.f32 1.442695, %v467_v63  ;;  %v509_v14 = vmul.f32 1.442695, %v468_v0  ;;  %v511_v15 = vmul.f32 1.442695, %v469_v2  ;;  %v392_v16 = vmul.f32 %v1723_v29, %v1662_v47 }
  0xa5   : > { %1045 = vpow2.f32 %v501_v5  ;;  %v513_v17 = vmul.f32 1.442695, %v470_v3  ;;  %v515_v18 = vmul.f32 1.442695, %v471_v4  ;;  %v1794_v20 = vadd.f32 %v1732_v35, %v391_v11 }
  0xa6   : > { %1047 = vpow2.f32 %v503_v7  ;;  %v1797_v38 = vadd.f32 %v1732_v35, %v392_v16  ;;  %v393_v39 = vmul.f32 %v1723_v29, %v1666_v49  ;;  %v394_v46 = vmul.f32 %v1723_v29, %v1669_v50 }
  0xa7   : > { %1049 = vpow2.f32 %v505_v8  ;;  %v472_v43 = vsub.f32 0.0, %v1794_v20  ;;  %v395_v47 = vmul.f32 %v1723_v29, %v1674_v55  ;;  %v396_v48 = vmul.f32 %v1723_v29, %v1677_v56 }
  0xa8   : > { %1051 = vpow2.f32 %v507_v13  ;;  %v473_v51 = vsub.f32 0.0, %v1797_v38  ;;  %v1810_v52 = vadd.f32 %v1732_v35, %v393_v39  ;;  %v1813_v49 = vadd.f32 %v1732_v35, %v394_v46 }
  0xa9   : > { %1053 = vpow2.f32 %v509_v14  ;;  %v517_v50 = vmul.f32 1.442695, %v472_v43  ;;  %v1816_v53 = vadd.f32 %v1732_v35, %v395_v47  ;;  %v1819_v54 = vsub.f32 %v935_v34, %v1634_v12 }
  0xaa   : > { %1055 = vpow2.f32 %v511_v15  ;;  %v519_v55 = vmul.f32 1.442695, %v473_v51  ;;  %v474_v56 = vsub.f32 0.0, %v1810_v52  ;;  %v475_v45 = vsub.f32 0.0, %v1813_v49  ;;  %v1847_v15 = vld [vmem:[%s1613_s25 + $0x90] sm:$0xff]  }
  0xab   : > { %1057 = vpow2.f32 %v513_v17  ;;  %v476_v61 = vsub.f32 0.0, %v1816_v53  ;;  %v1825_v62 = vadd.f32 %v1732_v35, %v396_v48  ;;  %v397_v63 = vmul.f32 %v1723_v29, %v1680_v57 }
  0xac   : > { %1059 = vpow2.f32 %v515_v18  ;;  %v521_v0 = vmul.f32 1.442695, %v474_v56  ;;  %v523_v34 = vmul.f32 1.442695, %v475_v45  ;;  %v398_v2 = vmul.f32 %v1723_v29, %v1683_v58 }
  0xad   : > { %1061 = vpow2.f32 %v517_v50  ;;  %v525_v3 = vmul.f32 1.442695, %v476_v61  ;;  %v1832_v4 = vadd.f32 %v1732_v35, %v397_v63  ;;  %v936_v5 = vunpack.c.h.bf16 %v1698_v19 }
  0xae   : > { %1063 = vpow2.f32 %v519_v55  ;;  %v1836_v7 = vadd.f32 %v1732_v35, %v398_v2  ;;  %v399_v57 = vmul.f32 %v1723_v29, %v1687_v60  ;;  %v400_v8 = vmul.f32 %v1723_v29, %v1692_v9 }
  0xaf   : > { %v1046_v11 = vpop.eup %1045  ;;  %1065 = vpow2.f32 %v521_v0  ;;  %v477_v58 = vsub.f32 0.0, %v1825_v62  ;;  %v478_v13 = vsub.f32 0.0, %v1832_v4  ;;  %v401_v14 = vmul.f32 %v1723_v29, %v1695_v10 }
  0xb0   : > { %v1048_v16 = vpop.eup %1047  ;;  %v575_v17 = vadd.f32 1.0, %v1046_v11  ;;  %1067 = vpow2.f32 %v523_v34  ;;  %v1850_v18 = vadd.f32 %v1732_v35, %v399_v57  ;;  %v402_v60 = vmul.f32 %v1723_v29, %v1701_v21 }
  0xb1   : > { %v1050_v9 = vpop.eup %1049  ;;  %v576_v39 = vadd.f32 1.0, %v1048_v16  ;;  %1069 = vpow2.f32 %v525_v3  ;;  %v479_v46 = vsub.f32 0.0, %v1836_v7  ;;  %v1856_v43 = vadd.f32 %v1732_v35, %v400_v8 }
  0xb2   : > { %v1052_v10 = vpop.eup %1051  ;;  %1071 = vrcp.f32 %v575_v17  ;;  %v577_v47 = vadd.f32 1.0, %v1050_v9  ;;  %v480_v48 = vsub.f32 0.0, %v1850_v18  ;;  %v939_v51 = vunpack.c.l.bf16 %v1847_v15 }
  0xb3   : > { %v1054_v50 = vpop.eup %1053  ;;  %1073 = vrcp.f32 %v576_v39  ;;  %v578_v55 = vadd.f32 1.0, %v1052_v10  ;;  %v527_v56 = vmul.f32 1.442695, %v477_v58  ;;  %v1861_v21 = vadd.f32 %v1732_v35, %v401_v14 }
  0xb4   : > { %v1056_v45 = vpop.eup %1055  ;;  %1075 = vrcp.f32 %v577_v47  ;;  %v579_v61 = vadd.f32 1.0, %v1054_v50  ;;  %v1863_v63 = vmul.f32 1.442695, %v478_v13  ;;  %v1866_v0 = vadd.f32 %v1732_v35, %v402_v60 }
  0xb5   : > { %v1058_v34 = vpop.eup %1057  ;;  %1077 = vrcp.f32 %v578_v55  ;;  %v580_v2 = vadd.f32 1.0, %v1056_v45  ;;  %v1868_v3 = vmul.f32 1.442695, %v479_v46  ;;  %v481_v57 = vsub.f32 0.0, %v1856_v43 }
  0xb6   : > { %v1060_v8 = vpop.eup %1059  ;;  %1079 = vrcp.f32 %v579_v61  ;;  %v581_v11 = vadd.f32 1.0, %v1058_v34  ;;  %v1871_v58 = vmul.f32 1.442695, %v480_v48  ;;  %v403_v13 = vmul.f32 %v1723_v29, %v1704_v22 }
  0xb7   : > { %v1062_v14 = vpop.eup %1061  ;;  %1081 = vrcp.f32 %v580_v2  ;;  %v582_v16 = vadd.f32 1.0, %v1060_v8  ;;  %v482_v17 = vsub.f32 0.0, %v1861_v21  ;;  %v404_v60 = vmul.f32 %v1723_v29, %v1707_v23 }
  0xb8   : > { %v1064_v9 = vpop.eup %1063  ;;  %1083 = vrcp.f32 %v581_v11  ;;  %v583_v39 = vadd.f32 1.0, %v1062_v14  ;;  %v483_v46 = vsub.f32 0.0, %v1866_v0  ;;  %v1880_v10 = vadd.f32 %v1732_v35, %v403_v13 }
  0xb9   : > { %v1066_v47 = vpop.eup %1065  ;;  %1085 = vrcp.f32 %v582_v16  ;;  %v584_v22 = vadd.f32 1.0, %v1064_v9  ;;  %v1884_v48 = vadd.f32 %v1732_v35, %v404_v60  ;;  %v405_v50 = vmul.f32 %v1723_v29, %v1710_v24 }
  0xba   : > { %v1068_v55 = vpop.eup %1067  ;;  %1087 = vrcp.f32 %v583_v39  ;;  %v585_v23 = vadd.f32 1.0, %v1066_v47  ;;  %v484_v45 = vsub.f32 0.0, %v1880_v10  ;;  %v406_v61 = vmul.f32 %v1723_v29, %v1713_v25 }
  0xbb   : > { %v1070_v34 = vpop.eup %1069  ;;  %1089 = vrcp.f32 %v584_v22  ;;  %v586_v2 = vadd.f32 1.0, %v1068_v55  ;;  %v535_v8 = vmul.f32 1.442695, %v481_v57  ;;  %v1892_v11 = vadd.f32 %v1732_v35, %v405_v50 }
  0xbc   : > { %v1072_v13 = vpop.eup %1071  ;;  %1091 = vrcp.f32 %v585_v23  ;;  %v587_v14 = vadd.f32 1.0, %v1070_v34  ;;  %v537_v24 = vmul.f32 1.442695, %v482_v17  ;;  %v1895_v16 = vadd.f32 %v1732_v35, %v406_v61 }
  0xbd   : > { %v1074_v60 = vpop.eup %1073  ;;  %v649_v9 = vmul.f32 %v1072_v13, %v1758_v59  ;;  %1093 = vrcp.f32 %v586_v2  ;;  %v539_v25 = vmul.f32 1.442695, %v483_v46  ;;  %v485_v39 = vsub.f32 0.0, %v1884_v48 }
  0xbe   : > { %v1076_v47 = vpop.eup %1075  ;;  %v650_v57 = vmul.f32 %v1074_v60, %v1761_v27  ;;  %1095 = vrcp.f32 %v587_v14  ;;  %v541_v22 = vmul.f32 1.442695, %v484_v45  ;;  %v407_v50 = vmul.f32 %v1723_v29, %v1716_v26 }
  0xbf   : > { %v1078_v55 = vpop.eup %1077  ;;  %686 = vst [vmem:[%s1904_s23 - $0x3] sm:$0xf8] %v649_v9  ;;  %v651_v59 = vmul.f32 %v1076_v47, %v1764_v31  ;;  %1097 = vpow2.f32 %v527_v56  ;;  %v486_v17 = vsub.f32 0.0, %v1892_v11  ;;  %v408_v27 = vmul.f32 %v1723_v29, %v1719_v28 }
  0xc0   : > { %v1080_v46 = vpop.eup %1079  ;;  %687 = vst [vmem:[%s1904_s23 + $0x5] sm:$0xff] %v650_v57  ;;  %v652_v26 = vmul.f32 %v1078_v55, %v1767_v32  ;;  %1099 = vpow2.f32 %v1863_v63  ;;  %v487_v23 = vsub.f32 0.0, %v1895_v16  ;;  %v1916_v45 = vadd.f32 %v1732_v35, %v407_v50 }
  0xc1   : > { %v1082_v31 = vpop.eup %1081  ;;  %688 = vst [vmem:[%s1904_s23 + $0xd] sm:$0x7] %v651_v59  ;;  %689 = vst [vmem:[%s1904_s23 + $0xb] sm:$0xe0] %v651_v59  ;;  %v653_v56 = vmul.f32 %v1080_v46, %v1770_v40  ;;  %1101 = vpow2.f32 %v1868_v3  ;;  %v1923_v28 = vadd.f32 %v1732_v35, %v408_v27  ;;  %v409_v32 = vmul.f32 %v1723_v29, %v1726_v30 }
  0xc2   : > { %v1084_v63 = vpop.eup %1083  ;;  %690 = vst [vmem:[%s1904_s23 + $0x13] sm:$0xff] %v652_v26  ;;  %v654_v61 = vmul.f32 %v1082_v31, %v1773_v41  ;;  %1103 = vpow2.f32 %v1871_v58  ;;  %v488_v34 = vsub.f32 0.0, %v1916_v45  ;;  %v410_v40 = vmul.f32 %v1723_v29, %v1729_v33 }
  0xc3   : > { %v1086_v3 = vpop.eup %1085  ;;  %691 = vst [vmem:[%s1904_s23 + $0x1b] sm:$0x1f] %v653_v56  ;;  %692 = vst [vmem:[%s1904_s23 + $0x19] sm:$0x80] %v653_v56  ;;  %v655_v2 = vmul.f32 %v1084_v63, %v1776_v42  ;;  %1105 = vpow2.f32 %v535_v8  ;;  %v543_v30 = vmul.f32 1.442695, %v485_v39  ;;  %v940_v33 = vunpack.c.h.bf16 %v1847_v15 }
  0xc4   : > { %v489_v13 = vsub.f32 0.0, %v1923_v28  ;;  %v1088_v41 = vpop.eup %1087  ;;  %693 = vst [vmem:[%s1904_s23 + $0x21] sm:$0xff] %v654_v61  ;;  %v656_v58 = vmul.f32 %v1086_v3, %v1779_v44  ;;  %1107 = vpow2.f32 %v537_v24  ;;  %v545_v14 = vmul.f32 1.442695, %v486_v17  ;;  %v300_v39 = vld [vmem:[%s1613_s25 + $0x98] sm:$0xf] }
  0xc5   : > { %v1090_v60 = vpop.eup %1089  ;;  %694 = vst [vmem:[%s1904_s23 + $0x29] sm:$0x7f] %v655_v2  ;;  %v657_v9 = vmul.f32 %v1088_v41, %v1794_v20  ;;  %1109 = vpow2.f32 %v539_v25  ;;  %v547_v42 = vmul.f32 1.442695, %v487_v23  ;;  %v1943_v8 = vadd.f32 %v1732_v35, %v409_v32 }
  0xc6   : > { %v1092_v47 = vpop.eup %1091  ;;  %695 = vst [vmem:[%s1904_s23 + $0x2f] sm:$0xfe] %v656_v58  ;;  %v658_v44 = vmul.f32 %v1090_v60, %v1797_v38  ;;  %1111 = vpow2.f32 %v541_v22  ;;  %v549_v24 = vmul.f32 1.442695, %v488_v34  ;;  %v1949_v57 = vadd.f32 %v1732_v35, %v410_v40 }
  0xc7   : > { %v1094_v50 = vpop.eup %1093  ;;  %696 = vst [vmem:[%s1904_s23 + $0x37] sm:$0xff] %v657_v9  ;;  %v659_v20 = vmul.f32 %v1092_v47, %v1810_v52  ;;  %1113 = vpow2.f32 %v543_v30  ;;  %v551_v25 = vmul.f32 1.442695, %v489_v13  ;;  %v411_v55 = vmul.f32 %v1723_v29, %v1735_v36 }
  0xc8   : > { %v1096_v59 = vpop.eup %1095  ;;  %697 = vst [vmem:[%s1904_s23 + $0x3f] sm:$0x1] %v658_v44  ;;  %698 = vst [vmem:[%s1904_s23 + $0x3d] sm:$0xf8] %v658_v44  ;;  %v660_v38 = vmul.f32 %v1094_v50, %v1813_v49  ;;  %1115 = vpow2.f32 %v545_v14  ;;  %v375_v22 = vsub.f32 %v936_v5, %v1634_v12  ;;  %v337_v17 = vunpack.c.l.bf16 %v300_v39 }
  0xc9   : > { %v1098_v52 = vpop.eup %1097  ;;  %699 = vst [vmem:[%s1904_s23 + $0x45] sm:$0xff] %v659_v20  ;;  %v661_v27 = vmul.f32 %v1096_v59, %v1816_v53  ;;  %1117 = vpow2.f32 %v547_v42  ;;  %v490_v36 = vsub.f32 0.0, %v1943_v8  ;;  %v376_v46 = vsub.f32 %v939_v51, %v1634_v12 }
  0xca   : > { %v1100_v26 = vpop.eup %1099  ;;  %700 = vst [vmem:[%s1904_s23 + $0x4d] sm:$0x7] %v660_v38  ;;  %701 = vst [vmem:[%s1904_s23 + $0x4b] sm:$0xe0] %v660_v38  ;;  %v588_v49 = vadd.f32 1.0, %v1098_v52  ;;  %1119 = vpow2.f32 %v549_v24  ;;  %v491_v19 = vsub.f32 0.0, %v1949_v57  ;;  %v412_v5 = vmul.f32 %v1723_v29, %v1738_v37 }
  0xcb   : > { %v1102_v23 = vpop.eup %1101  ;;  %702 = vst [vmem:[%s1904_s23 + $0x53] sm:$0xff] %v661_v27  ;;  %v589_v53 = vadd.f32 1.0, %v1100_v26  ;;  %1121 = vpow2.f32 %v551_v25  ;;  %v1974_v31 = vadd.f32 %v1732_v35, %v411_v55  ;;  %v377_v15 = vsub.f32 %v940_v33, %v1634_v12 }
  0xcc   : > { %v1104_v51 = vpop.eup %1103  ;;  %1123 = vrcp.f32 %v588_v49  ;;  %v590_v56 = vadd.f32 1.0, %v1102_v23  ;;  %v413_v32 = vmul.f32 %v1723_v29, %v1741_v1  ;;  %v378_v63 = vsub.f32 %v337_v17, %v1634_v12 }
  0xcd   : > { %v1106_v61 = vpop.eup %1105  ;;  %1125 = vrcp.f32 %v589_v53  ;;  %v591_v37 = vadd.f32 1.0, %v1104_v51  ;;  %v553_v34 = vmul.f32 1.442695, %v490_v36  ;;  %v414_v40 = vmul.f32 %v1723_v29, %v1744_v6 }
  0xce   : > { %v1108_v3 = vpop.eup %1107  ;;  %1127 = vrcp.f32 %v590_v56  ;;  %v592_v2 = vadd.f32 1.0, %v1106_v61  ;;  %v555_v30 = vmul.f32 1.442695, %v491_v19  ;;  %v1983_v13 = vadd.f32 %v1732_v35, %v412_v5 }
  0xcf   : > { %v1110_v41 = vpop.eup %1109  ;;  %1129 = vrcp.f32 %v591_v37  ;;  %v593_v58 = vadd.f32 1.0, %v1108_v3  ;;  %v492_v1 = vsub.f32 0.0, %v1974_v31  ;;  %v415_v12 = vmul.f32 %v1723_v29, %v1819_v54 }
  0xd0   : > { %v1112_v14 = vpop.eup %1111  ;;  %1131 = vrcp.f32 %v592_v2  ;;  %v594_v33 = vadd.f32 1.0, %v1110_v41  ;;  %v1989_v6 = vadd.f32 %v1732_v35, %v413_v32  ;;  %v416_v60 = vmul.f32 %v1723_v29, %v375_v22 }
  0xd1   : > { %v1114_v9 = vpop.eup %1113  ;;  %1133 = vrcp.f32 %v593_v58  ;;  %v595_v42 = vadd.f32 1.0, %v1112_v14  ;;  %v1993_v39 = vadd.f32 %v1732_v35, %v414_v40  ;;  %v417_v47 = vmul.f32 %v1723_v29, %v376_v46 }
  0xd2   : > { %v1116_v44 = vpop.eup %1115  ;;  %1135 = vrcp.f32 %v594_v33  ;;  %v596_v24 = vadd.f32 1.0, %v1114_v9  ;;  %v493_v54 = vsub.f32 0.0, %v1983_v13  ;;  %v418_v50 = vmul.f32 %v1723_v29, %v377_v15 }
  0xd3   : > { %v1118_v20 = vpop.eup %1117  ;;  %1137 = vrcp.f32 %v595_v42  ;;  %v597_v25 = vadd.f32 1.0, %v1116_v44  ;;  %v557_v55 = vmul.f32 1.442695, %v492_v1  ;;  %v1999_v59 = vadd.f32 %v1732_v35, %v415_v12 }
  0xd4   : > { %v1120_v38 = vpop.eup %1119  ;;  %1139 = vrcp.f32 %v596_v24  ;;  %v598_v22 = vadd.f32 1.0, %v1118_v20  ;;  %v494_v17 = vsub.f32 0.0, %v1989_v6  ;;  %v2003_v52 = vadd.f32 %v1732_v35, %v416_v60 }
  0xd5   : > { %v1122_v27 = vpop.eup %1121  ;;  %1141 = vrcp.f32 %v597_v25  ;;  %v599_v36 = vadd.f32 1.0, %v1120_v38  ;;  %v495_v46 = vsub.f32 0.0, %v1993_v39  ;;  %v2007_v26 = vadd.f32 %v1732_v35, %v417_v47 }
  0xd6   : > { %v1124_v49 = vpop.eup %1123  ;;  %1143 = vrcp.f32 %v598_v22  ;;  %v600_v19 = vadd.f32 1.0, %v1122_v27  ;;  %v2010_v5 = vadd.f32 %v1732_v35, %v418_v50  ;;  %v419_v23 = vmul.f32 %v1723_v29, %v378_v63 }
  0xd7   : > { %v1126_v53 = vpop.eup %1125  ;;  %v662_v15 = vmul.f32 %v1124_v49, %v1825_v62  ;;  %1145 = vrcp.f32 %v599_v36  ;;  %v559_v51 = vmul.f32 1.442695, %v493_v54  ;;  %v496_v56 = vsub.f32 0.0, %v1999_v59 }
  0xd8   : > { %v1128_v32 = vpop.eup %1127  ;;  %v663_v61 = vmul.f32 %v1126_v53, %v1832_v4  ;;  %1147 = vrcp.f32 %v600_v19  ;;  %v497_v37 = vsub.f32 0.0, %v2003_v52  ;;  %v2018_v40 = vadd.f32 %v1732_v35, %v419_v23 }
  0xd9   : > { %v1130_v3 = vpop.eup %1129  ;;  %703 = vst [vmem:[%s1904_s23 + $0x5b] sm:$0x1f] %v662_v15  ;;  %704 = vst [vmem:[%s1904_s23 + $0x59] sm:$0x80] %v662_v15  ;;  %v664_v29 = vmul.f32 %v1128_v32, %v1836_v7  ;;  %1149 = vpow2.f32 %v553_v34  ;;  %v561_v62 = vmul.f32 1.442695, %v494_v17 }
  0xda   : > { %v498_v63 = vsub.f32 0.0, %v2007_v26  ;;  %v1132_v2 = vpop.eup %1131  ;;  %705 = vst [vmem:[%s1904_s23 + $0x61] sm:$0xff] %v663_v61  ;;  %v665_v4 = vmul.f32 %v1130_v3, %v1850_v18  ;;  %1151 = vpow2.f32 %v555_v30  ;;  %v563_v41 = vmul.f32 1.442695, %v495_v46 }
  0xdb   : > { %v499_v35 = vsub.f32 0.0, %v2010_v5  ;;  %v1134_v58 = vpop.eup %1133  ;;  %706 = vst [vmem:[%s1904_s23 + $0x69] sm:$0x7f] %v664_v29  ;;  %v666_v1 = vmul.f32 %v1132_v2, %v1856_v43  ;;  %1153 = vpow2.f32 %v557_v55  ;;  %v565_v7 = vmul.f32 1.442695, %v496_v56 }
  0xdc   : > { %v500_v34 = vsub.f32 0.0, %v2018_v40  ;;  %v1136_v12 = vpop.eup %1135  ;;  %707 = vst [vmem:[%s1904_s23 + $0x6f] sm:$0xfe] %v665_v4  ;;  %v667_v18 = vmul.f32 %v1134_v58, %v1861_v21  ;;  %1155 = vpow2.f32 %v559_v51  ;;  %v567_v30 = vmul.f32 1.442695, %v497_v37 }
  0xdd   : > { %v1138_v14 = vpop.eup %1137  ;;  %708 = vst [vmem:[%s1904_s23 + $0x77] sm:$0xff] %v666_v1  ;;  %v668_v33 = vmul.f32 %v1136_v12, %v1866_v0  ;;  %1157 = vpow2.f32 %v561_v62  ;;  %v569_v43 = vmul.f32 1.442695, %v498_v63  ;;  %v571_v42 = vmul.f32 1.442695, %v499_v35 }
  0xde   : > { %v1140_v60 = vpop.eup %1139  ;;  %709 = vst [vmem:[%s1904_s23 + $0x7f] sm:$0x1] %v667_v18  ;;  %710 = vst [vmem:[%s1904_s23 + $0x7d] sm:$0xf8] %v667_v18  ;;  %v669_v9 = vmul.f32 %v1138_v14, %v1880_v10  ;;  %1159 = vpow2.f32 %v563_v41  ;;  %v573_v44 = vmul.f32 1.442695, %v500_v34 }
  0xdf   : > { %v1142_v21 = vpop.eup %1141  ;;  %711 = vst [vmem:[%s1904_s23 + $0x85] sm:$0xff] %v668_v33  ;;  %v670_v47 = vmul.f32 %v1140_v60, %v1884_v48  ;;  %1161 = vpow2.f32 %v565_v7 }
  0xe0   : > { %v1144_v0 = vpop.eup %1143  ;;  %712 = vst [vmem:[%s1904_s23 + $0x8d] sm:$0x7] %v669_v9  ;;  %713 = vst [vmem:[%s1904_s23 + $0x8b] sm:$0xe0] %v669_v9  ;;  %v671_v24 = vmul.f32 %v1142_v21, %v1892_v11  ;;  %1163 = vpow2.f32 %v567_v30 }
  0xe1   : > { %v1146_v54 = vpop.eup %1145  ;;  %714 = vst [vmem:[%s1904_s23 + $0x93] sm:$0xff] %v670_v47  ;;  %v672_v10 = vmul.f32 %v1144_v0, %v1895_v16  ;;  %1165 = vpow2.f32 %v569_v43 }
  0xe2   : > { %v1148_v50 = vpop.eup %1147  ;;  %715 = vst [vmem:[%s1904_s23 + $0x9b] sm:$0x1f] %v671_v24  ;;  %716 = vst [vmem:[%s1904_s23 + $0x99] sm:$0x80] %v671_v24  ;;  %v673_v48 = vmul.f32 %v1146_v54, %v1916_v45  ;;  %1167 = vpow2.f32 %v571_v42 }
  0xe3   : > { %v1150_v20 = vpop.eup %1149  ;;  %717 = vst [vmem:[%s1904_s23 + $0xa1] sm:$0xff] %v672_v10  ;;  %v674_v25 = vmul.f32 %v1148_v50, %v1923_v28  ;;  %1169 = vpow2.f32 %v573_v44 }
  0xe4   : > { %v1152_v11 = vpop.eup %1151  ;;  %718 = vst [vmem:[%s1904_s23 + $0xa9] sm:$0x7f] %v673_v48  ;;  %v601_v55 = vadd.f32 1.0, %v1150_v20 }
  0xe5   : > { %v1154_v38 = vpop.eup %1153  ;;  %719 = vst [vmem:[%s1904_s23 + $0xaf] sm:$0xfe] %v674_v25  ;;  %v602_v22 = vadd.f32 1.0, %v1152_v11 }
  0xe6   : > { %v1156_v17 = vpop.eup %1155  ;;  %1171 = vrcp.f32 %v601_v55  ;;  %v603_v16 = vadd.f32 1.0, %v1154_v38 }
  0xe7   : > { %v1158_v27 = vpop.eup %1157  ;;  %1173 = vrcp.f32 %v602_v22  ;;  %v604_v36 = vadd.f32 1.0, %v1156_v17 }
  0xe8   : > { %v1160_v46 = vpop.eup %1159  ;;  %1175 = vrcp.f32 %v603_v16  ;;  %v605_v45 = vadd.f32 1.0, %v1158_v27 }
  0xe9   : > { %v1162_v49 = vpop.eup %1161  ;;  %1177 = vrcp.f32 %v604_v36  ;;  %v606_v19 = vadd.f32 1.0, %v1160_v46 }
  0xea   : > { %v1164_v28 = vpop.eup %1163  ;;  %1179 = vrcp.f32 %v605_v45  ;;  %v607_v23 = vadd.f32 1.0, %v1162_v49 }
  0xeb   : > { %v1166_v53 = vpop.eup %1165  ;;  %1181 = vrcp.f32 %v606_v19  ;;  %v608_v15 = vadd.f32 1.0, %v1164_v28 }
  0xec   : > { %v1168_v51 = vpop.eup %1167  ;;  %1183 = vrcp.f32 %v607_v23  ;;  %v609_v56 = vadd.f32 1.0, %v1166_v53 }
  0xed   : > { %v1170_v32 = vpop.eup %1169  ;;  %1185 = vrcp.f32 %v608_v15  ;;  %v610_v61 = vadd.f32 1.0, %v1168_v51 }
  0xee   : > { %1187 = vrcp.f32 %v609_v56  ;;  %v611_v37 = vadd.f32 1.0, %v1170_v32 }
  0xef   : > { %1189 = vrcp.f32 %v610_v61 }
  0xf0   : > { %v1172_v3 = vpop.eup %1171  ;;  %1191 = vrcp.f32 %v611_v37 }
  0xf1   : > { %v1174_v29 = vpop.eup %1173  ;;  %v675_v62 = vmul.f32 %v1172_v3, %v1943_v8 }
  0xf2   : > { %v1176_v63 = vpop.eup %1175  ;;  %v676_v2 = vmul.f32 %v1174_v29, %v1949_v57 }
  0xf3   : > { %v1178_v4 = vpop.eup %1177  ;;  %720 = vst [vmem:[%s1904_s23 + $0xb7] sm:$0xff] %v675_v62  ;;  %v677_v41 = vmul.f32 %v1176_v63, %v1974_v31 }
  0xf4   : > { %v1180_v35 = vpop.eup %1179  ;;  %721 = vst [vmem:[%s1904_s23 + $0xbf] sm:$0x1] %v676_v2  ;;  %722 = vst [vmem:[%s1904_s23 + $0xbd] sm:$0xf8] %v676_v2  ;;  %v678_v58 = vmul.f32 %v1178_v4, %v1983_v13 }
  0xf5   : > { %v1182_v1 = vpop.eup %1181  ;;  %723 = vst [vmem:[%s1904_s23 + $0xc5] sm:$0xff] %v677_v41  ;;  %v679_v8 = vmul.f32 %v1180_v35, %v1989_v6 }
  0xf6   : > { %v1184_v57 = vpop.eup %1183  ;;  %724 = vst [vmem:[%s1904_s23 + $0xcd] sm:$0x7] %v678_v58  ;;  %725 = vst [vmem:[%s1904_s23 + $0xcb] sm:$0xe0] %v678_v58  ;;  %v680_v7 = vmul.f32 %v1182_v1, %v1993_v39 }
  0xf7   : > { %v1186_v31 = vpop.eup %1185  ;;  %726 = vst [vmem:[%s1904_s23 + $0xd3] sm:$0xff] %v679_v8  ;;  %v681_v34 = vmul.f32 %v1184_v57, %v1999_v59 }
  0xf8   : > { %v1188_v13 = vpop.eup %1187  ;;  %727 = vst [vmem:[%s1904_s23 + $0xdb] sm:$0x1f] %v680_v7  ;;  %728 = vst [vmem:[%s1904_s23 + $0xd9] sm:$0x80] %v680_v7  ;;  %v682_v6 = vmul.f32 %v1186_v31, %v2003_v52 }
  0xf9   : > { %v1190_v12 = vpop.eup %1189  ;;  %729 = vst [vmem:[%s1904_s23 + $0xe1] sm:$0xff] %v681_v34  ;;  %v683_v39 = vmul.f32 %v1188_v13, %v2007_v26 }
  0xfa   : > { %v1192_v18 = vpop.eup %1191  ;;  %730 = vst [vmem:[%s1904_s23 + $0xe9] sm:$0x7f] %v682_v6  ;;  %v684_v30 = vmul.f32 %v1190_v12, %v2010_v5 }
  0xfb   : > { %731 = vst [vmem:[%s1904_s23 + $0xef] sm:$0xfe] %v683_v39  ;;  %v685_v59 = vmul.f32 %v1192_v18, %v2018_v40 }
  0xfc   : > { %732 = vst [vmem:[%s1904_s23 + $0xf7] sm:$0xff] %v684_v30 }
  0xfd   : > { %733 = vst [vmem:[%s1904_s23 + $0xff] sm:$0x1] %v685_v59 }
  0xfe   : > { %1320 = shalt.err (!%p1317_p13)
}
  0xff   : > { %s1321_s29 = scalar_lea.hbm %s2077_s27, 4096  ;;  %s1325_s28 = scalar_lea.hbm %s2131_s4, 8192 }
 0x100   : > { %p1322_p0 = scmp.ne.s32.totalorder %s2077_s27, %s1321_s29  ;;  %p1326_p9 = scmp.lt.u32.totalorder %s2077_s27, %s2131_s4 }
 0x101   : > { %p1327_p12 = scmp.lt.u32.totalorder %s1325_s28, %s1321_s29  ;;  %p1329_p1 = scmp.lt.u32.totalorder %s1321_s29, %s2077_s27 }
 0x102   : > { %p1323_p5 = pnand %p1322_p0, %p1561_p6 }
 0x103   : > { %p1328_p2 = por %p1327_p12, %p1326_p9 }
 0x104   : > { %p1324_p11 = pneg %p1323_p5 }
 0x105   : > { %p1330_p4 = por %p1329_p1, %p1328_p2 }
 0x107   : > { %p1331_p8 = pnand %p1330_p4, %p1324_p11 }
 0x109   : > { %1334 = shalt.err (!%p1331_p8)
}
 0x10a   : > { %s1390_s23 = smov 128   ;;  %s1391_s24 = smov 8  }
 0x10b   : > { %976 = dma.vmem_to_hbm [thread:$0]  (%p1561_p6), %s2079_s26, 4096, %s2077_s27, %s735_s13, %s1390_s23, %s1390_s23, %s1391_s24  }
 0x10c PF: > { %s763_s5 = sand.u32 1, %s1369_s15   ;;  %p2149_p3 = scmp.ne.s32.totalorder %s2136_s22, 0 }
 0x10d   : > { %p2150_p7 = scmp.ge.s32.totalorder %s1381_s18, 2  ;;  %s764_s19 = scalar_lea.sflag [#allocation4], %s763_s5 }
 0x10f   : > { %p993_p10 = pnand %p2150_p7, %p2149_p3 }
 0x111   : > { %1364 = dma.done.wait (!%p993_p10), %s764_s19, 4096  }
 0x112   : > { %1366 = vsyncadd (!%p993_p10), %s764_s19, 4294963200  ;;  %p19_p13 = scmp.ge.s32.totalorder %s1547_s10, 4   ;;  %s2151_s15 = smov %s1373_s16 }
 0x113   : > { %s2152_s16 = smov %s1377_s17  ;;  %s2153_s17 = smov %s1557_s9 }
 0x114   : > { %s2154_s18 = smov %s1547_s10  ;;  %21 = sbr.rel (!%p19_p13) target bundleno = 7 (0x7), region = 93 }
 0x11b   :  { %769 = vsyncpa [#allocation3], 1 }
 0x11c   :  { %771 = vsyncpa [#allocation3 + $0x1], 1 }
 0x11d   :  { %772 = vsyncpa [#allocation6], 1 }
 0x11e   :  { %773 = vsyncpa [#allocation9], 1 }
 0x11f   :  { %774 = vsyncpa [#allocation4], 1 }
 0x120   :  { %776 = vsyncpa [#allocation4 + $0x1], 1 }

// kernel: up_forward.5
= control target key start
LH: loop header
LB: loop body
LE: loop exit
PB: predicated region body
PF: predicated region fallthrough
CT: control target
= control target key end

     0   :  { %s8812_s0 = inlined_call_operand.hbm [shape: bf16[2,256,4], index: 0, kind: input, shape index: {}]   ;;  %s8813_s1 = inlined_call_operand.hbm [shape: bf16[2,256,4], index: 1, kind: input, shape index: {}]   ;;  %s8814_s2 = inlined_call_operand.hbm [shape: bf16[9,128,128], index: 2, kind: input, shape index: {}]   ;;  %s8815_s3 = inlined_call_operand.hbm [shape: f32[324,1], index: 3, kind: input, shape index: {}]   ;;  %s8816_s4 = inlined_call_operand.hbm [shape: bf16[2,324,128], index: 4, kind: output, shape index: {0}]   ;;  %s8817_s5 = inlined_call_operand.hbm [shape: f32[2,8,128], index: 5, kind: output, shape index: {1}]  }
   0x1   :  { %8827 = sst [smem:[#allocation23_spill]] %s8812_s0 }
   0x2   :  { %8828 = sst [smem:[#allocation24_spill]] %s8814_s2 }
   0x3   :  { %8829 = sst [smem:[#allocation25_spill]] %s8815_s3 }
   0x4   :  { %11 = vsyncpa [#allocation4], 0 }
   0x5   :  { %13 = vsyncpa [#allocation4 + $0x1], 0 }
   0x6   :  { %14 = vsyncpa [#allocation7], 0 }
   0x7   :  { %16 = vsyncpa [#allocation7 + $0x1], 0 }
   0x8   :  { %17 = vsyncpa [#allocation10], 0 }
   0x9   :  { %18 = vsyncpa [#allocation5], 0 }
   0xa   :  { %20 = vsyncpa [#allocation5 + $0x1], 0 }
   0xb   :  { %21 = vsyncpa [#allocation13], 0 }
   0xc   :  { %23 = vsyncpa [#allocation13 + $0x1], 0  ;;  %s7585_s18 = smov 0   ;;  %s7587_s19 = smov 0  }
   0xd   :  { %s7589_s20 = smov 0   ;;  %s7591_s21 = smov 0  }
   0xe   :  { %s7593_s22 = smov 0   ;;  %s7595_s23 = smov 0  }
   0xf LB: > { %8830 = sst [smem:[#allocation20_spill]] %s7534_s22  ;;  %s7616_s24 = sadd.s32 4294967295, %s7538_s23   ;;  %s7538_s23 = sphi %s7595_s23, %s29_s23   ;;  %s7534_s22 = sphi %s7593_s22, %s8855_s22   ;;  %s7530_s21 = sphi %s7591_s21, %s8854_s21   ;;  %s7526_s20 = sphi %s7589_s20, %s8858_s20   ;;  %s7522_s19 = sphi %s7587_s19, %s8857_s19   ;;  %s7518_s18 = sphi %s7585_s18, %s8856_s18  }
  0x10   : > { %s4776_s25 = sadd.s32 4294967294, %s7538_s23   ;;  %p63_p0 = scmp.ne.s32.totalorder %s7522_s19, %s7518_s18 }
  0x11   : > { %p8818_p1 = scmp.eq.s32.totalorder %s7616_s24, 0  ;;  %p165_p3 = scmp.eq.s32.totalorder %s4776_s25, 1 }
  0x12   : > { %p4777_p5 = scmp.ge.s32.totalorder %s7538_s23, 1  ;;  %p198_p7 = scmp.lt.s32.totalorder %s7538_s23, 3 }
  0x13   : > { %p7625_p4 = por %p8818_p1, %p63_p0  ;;  %p7630_p6 = por %p165_p3, %p63_p0 }
  0x14   : > { %p7635_p8 = pnand %p4777_p5, %p198_p7  ;;  %s7540_s29 = smov [#allocation8]  }
  0x15   : > { %s8831_s26 = scalar_select %p7625_p4, 1, 0 }
  0x16   : > { %s8832_s27 = scalar_select %p7630_p6, 1, 0 }
  0x17   : > { %s210_s30 = sshll.u32 %s7540_s29, 4  ;;  %p7055_p9 = pneg %p7635_p8  ;;  %s7639_s30 = int_to_ptr.vmem [resolvable:$true] %s210_s30 }
  0x18   : > { %s7541_s7 = smov [#allocation9]   ;;  %s8835_s2 = sld [smem:[#allocation24_spill]] }
  0x19   : > { %p7646_p11 = pnand %p7055_p9, %p8818_p1  ;;  %s223_s8 = sshll.u32 %s7541_s7, 4  ;;  %s7650_s8 = int_to_ptr.vmem [resolvable:$true] %s223_s8 }
  0x1b   : > { %p7298_p13 = pneg %p7646_p11 }
  0x1e   : > { %s7296_s11 = scalar_lea.hbm %s8835_s2, 9216 }
  0x1f   : > { %p7297_p12 = scmp.ne.s32.totalorder %s8835_s2, %s7296_s11  ;;  %p7303_p5 = scmp.lt.u32.totalorder %s7296_s11, %s8835_s2 }
  0x21   : > { %p7299_p0 = pnand %p7298_p13, %p7297_p12 }
  0x23   : > { %p7300_p3 = pneg %p7299_p0 }
  0x25   : > { %p7305_p7 = pnand %p7303_p5, %p7300_p3 }
  0x27   : > { %7308 = shalt.err (!%p7305_p7)
}
  0x28   : > { %s7309_s16 = scalar_lea.vmem %s7639_s30, 9216  ;;  %p7317_p2 = scmp.lt.s32.totalorder %s7639_s30, %s7639_s30 }
  0x29   : > { %p7310_p9 = scmp.ne.s32.totalorder %s7639_s30, %s7309_s16  ;;  %p7318_p12 = scmp.lt.s32.totalorder %s7309_s16, %s7309_s16 }
  0x2b   : > { %p7312_p10 = pnand %p7310_p9, %p7298_p13  ;;  %p7319_p0 = por %p7318_p12, %p7317_p2 }
  0x2d   : > { %p7313_p1 = pneg %p7312_p10 }
  0x2f   : > { %p7320_p6 = pnand %p7319_p0, %p7313_p1 }
  0x31   : > { %7323 = shalt.err (!%p7320_p6)
}
  0x32   : > { %s8819_s17 = smov 64   ;;  %s8821_s25 = smov 4  }
  0x33   : > { %7058 = dma.hbm_to_vmem [thread:$0]  (!%p7646_p11), %s8835_s2, 9216, %s7639_s30, [#allocation7], %s8819_s17, %s8819_s17, %s8821_s25  }
  0x34   : > { %s8836_s3 = sld [smem:[#allocation25_spill]] }
  0x3a   : > { %s7324_s11 = scalar_lea.hbm %s8836_s3, 5248 }
  0x3b   : > { %p7325_p1 = scmp.ne.s32.totalorder %s8836_s3, %s7324_s11  ;;  %p7331_p10 = scmp.lt.u32.totalorder %s7324_s11, %s8836_s3 }
  0x3d   : > { %p7327_p2 = pnand %p7325_p1, %p7298_p13 }
  0x3f   : > { %p7328_p6 = pneg %p7327_p2 }
  0x41   : > { %p7333_p3 = pnand %p7331_p10, %p7328_p6 }
  0x43   : > { %7336 = shalt.err (!%p7333_p3)
}
  0x44   : > { %s7337_s30 = scalar_lea.vmem %s7650_s8, 5248  ;;  %p7345_p12 = scmp.lt.s32.totalorder %s7650_s8, %s7650_s8 }
  0x45   : > { %p7338_p5 = scmp.ne.s32.totalorder %s7650_s8, %s7337_s30  ;;  %p7346_p0 = scmp.lt.s32.totalorder %s7337_s30, %s7337_s30 }
  0x47   : > { %p7340_p7 = pnand %p7338_p5, %p7298_p13  ;;  %p7347_p1 = por %p7346_p0, %p7345_p12 }
  0x49   : > { %p7341_p9 = pneg %p7340_p7 }
  0x4b   : > { %p7348_p2 = pnand %p7347_p1, %p7341_p9 }
  0x4d   : > { %7351 = shalt.err (!%p7348_p2)
}
  0x4e   : > { %s7544_s16 = smov 128   ;;  %s7545_s29 = smov 8  }
  0x4f   : > { %7061 = dma.hbm_to_vmem [thread:$0]  (!%p7646_p11), %s8836_s3, 5248, %s7650_s8, [#allocation10], %s7544_s16, %s7544_s16, %s7545_s29  }
  0x50   : > { %s41_s10 = sadd.s32 1, %s7534_s22  ;;  %s50_s11 = sadd.s32 1, %s7526_s20 }
  0x51   : > { %p43_p13 = scmp.ge.s32.totalorder %s41_s10, 2  ;;  %p57_p6 = scmp.ne.s32.totalorder %s7526_s20, %s7522_s19 }
  0x52   : > { %p58_p10 = scmp.eq.s32.totalorder %s7538_s23, 0  ;;  %p7078_p3 = scmp.lt.s32.totalorder %s7538_s23, 2 }
  0x53   : > { %s8860_s10 = smov (%p43_p13, %s41_s10), 0  ;;  %p8838_p7 = scmp.eq.s32.totalorder %s7616_s24, 1 }
  0x54   : > { %8837 = sst [smem:[#allocation21_spill]] %s8860_s10  ;;  %p59_p5 = por %p58_p10, %p57_p6 }
  0x55   : > { %p7717_p9 = por %p8838_p7, %p57_p6  ;;  %s47_s6 = ssub.s32 %s7534_s22, %s8860_s10 }
  0x56   : > { %s237_s13 = sand.u32 1, %s7526_s20   ;;  %p48_p12 = scmp.eq.s32.totalorder %s47_s6, 0 }
  0x57   : > { %s8839_s12 = scalar_select %p7717_p9, 1, 0 }
  0x58   : > { %s7724_s8 = sshll.u32 %s237_s13, 7  ;;  %s4911_s14 = sshll.u32 %s7534_s22, 11 }
  0x59   : > { %s7728_s15 = scalar_select %p48_p12, %s7526_s20, %s50_s11  }
  0x5a   : > { %s8841_s0 = sld [smem:[#allocation23_spill]]  ;;  %s241_s7 = scalar_lea.vmem [#allocation3], %s7724_s8 }
  0x5b   : > { %8840 = sst [smem:[#allocation22_spill]] %s7728_s15  ;;  %s249_s9 = sshll.u32 %s241_s7, 4  ;;  %s7742_s9 = int_to_ptr.vmem [resolvable:$true] %s249_s9 }
  0x5c   : > { %p7738_p11 = pnand %p7078_p3, %p59_p5  ;;  %s7747_s30 = scalar_lea.hbm %s8813_s1, %s4911_s14 }
  0x5d   : > { %s7749_s16 = scalar_lea.sflag [#allocation4], %s237_s13 }
  0x5e   : > { %p7354_p1 = pneg %p7738_p11 }
  0x60   : > { %s7733_s29 = scalar_lea.hbm %s8841_s0, %s4911_s14  ;;  %s7357_s3 = scalar_lea.hbm %s8841_s0, 4096 }
  0x61   : > { %s7352_s25 = scalar_lea.hbm %s7733_s29, 2048  ;;  %p7358_p6 = scmp.lt.u32.totalorder %s7733_s29, %s8841_s0 }
  0x62   : > { %p7353_p0 = scmp.ne.s32.totalorder %s7733_s29, %s7352_s25  ;;  %p7359_p10 = scmp.lt.u32.totalorder %s7357_s3, %s7352_s25 }
  0x63   : > { %p7361_p5 = scmp.lt.u32.totalorder %s7352_s25, %s7733_s29 }
  0x64   : > { %p7355_p2 = pnand %p7354_p1, %p7353_p0  ;;  %p7360_p3 = por %p7359_p10, %p7358_p6 }
  0x66   : > { %p7356_p13 = pneg %p7355_p2  ;;  %p7362_p7 = por %p7361_p5, %p7360_p3 }
  0x68   : > { %p7363_p12 = pnand %p7362_p7, %p7356_p13 }
  0x6a   : > { %7366 = shalt.err (!%p7363_p12)
}
  0x6b   : > { %s7367_s17 = scalar_lea.vmem %s7742_s9, 2048  ;;  %s7546_s2 = smov [#allocation3]  }
  0x6c   : > { %p7368_p0 = scmp.ne.s32.totalorder %s7742_s9, %s7367_s17  ;;  %s7372_s13 = sshll.u32 %s7546_s2, 4  ;;  %s7373_s13 = int_to_ptr.vmem [resolvable:$false] %s7372_s13 }
  0x6d   : > { %s7374_s22 = scalar_lea.vmem %s7373_s13, 4096  ;;  %p7375_p4 = scmp.lt.s32.totalorder %s7742_s9, %s7373_s13 }
  0x6e   : > { %p7370_p2 = pnand %p7368_p0, %p7354_p1  ;;  %p7376_p6 = scmp.lt.s32.totalorder %s7374_s22, %s7367_s17 }
  0x70   : > { %p7371_p9 = pneg %p7370_p2  ;;  %p7377_p10 = por %p7376_p6, %p7375_p4 }
  0x72   : > { %p7378_p3 = pnand %p7377_p10, %p7371_p9 }
  0x74   : > { %7381 = shalt.err (!%p7378_p3)
}
  0x75   : > { %s8843_s3 = smov 4   ;;  %s8844_s25 = smov 64  }
  0x76   : > { %7065 = dma.hbm_to_vmem [thread:$0]  (!%p7738_p11), %s7733_s29, 2048, %s7742_s9, %s7749_s16, %s8844_s25, %s8844_s25, %s8843_s3  }
  0x77   : > { %s263_s10 = scalar_lea.vmem [#allocation6], %s7724_s8  ;;  %s259_s11 = sand.u32 1, %s7538_s23  }
  0x78   : > { %s271_s14 = sshll.u32 %s263_s10, 4  ;;  %s7784_s7 = scalar_lea.sflag [#allocation7], %s259_s11  ;;  %s7782_s14 = int_to_ptr.vmem [resolvable:$true] %s271_s14 }
  0x79   : > { %s7382_s17 = scalar_lea.hbm %s7747_s30, 2048  ;;  %s7387_s22 = scalar_lea.hbm %s8813_s1, 4096 }
  0x7a   : > { %p7383_p4 = scmp.ne.s32.totalorder %s7747_s30, %s7382_s17  ;;  %p7388_p5 = scmp.lt.u32.totalorder %s7747_s30, %s8813_s1 }
  0x7b   : > { %p7389_p7 = scmp.lt.u32.totalorder %s7387_s22, %s7382_s17  ;;  %p7391_p0 = scmp.lt.u32.totalorder %s7382_s17, %s7747_s30 }
  0x7c   : > { %p7385_p9 = pnand %p7383_p4, %p7354_p1 }
  0x7d   : > { %p7390_p12 = por %p7389_p7, %p7388_p5 }
  0x7e   : > { %p7386_p13 = pneg %p7385_p9 }
  0x7f   : > { %p7392_p2 = por %p7391_p0, %p7390_p12 }
  0x81   : > { %p7393_p6 = pnand %p7392_p2, %p7386_p13 }
  0x83   : > { %7396 = shalt.err (!%p7393_p6)
}
  0x84   : > { %s7397_s8 = scalar_lea.vmem %s7782_s14, 2048  ;;  %s7547_s29 = smov [#allocation6]  }
  0x85   : > { %p7398_p10 = scmp.ne.s32.totalorder %s7782_s14, %s7397_s8  ;;  %s7402_s9 = sshll.u32 %s7547_s29, 4  ;;  %s7403_s9 = int_to_ptr.vmem [resolvable:$false] %s7402_s9 }
  0x86   : > { %s7404_s0 = scalar_lea.vmem %s7403_s9, 4096  ;;  %p7405_p9 = scmp.lt.s32.totalorder %s7782_s14, %s7403_s9 }
  0x87   : > { %p7400_p3 = pnand %p7398_p10, %p7354_p1  ;;  %p7406_p5 = scmp.lt.s32.totalorder %s7404_s0, %s7397_s8 }
  0x89   : > { %p7401_p4 = pneg %p7400_p3  ;;  %p7407_p7 = por %p7406_p5, %p7405_p9 }
  0x8b   : > { %p7408_p12 = pnand %p7407_p7, %p7401_p4 }
  0x8d   : > { %7411 = shalt.err (!%p7408_p12)
}
  0x8e   : > { %7068 = dma.hbm_to_vmem [thread:$0]  (!%p7738_p11), %s7747_s30, 2048, %s7782_s14, %s7784_s7, %s8844_s25, %s8844_s25, %s8843_s3  }
  0x8f   : > { %283 = sbr.rel (%p7635_p8) target bundleno = 1298 (0x512), region = 36  ;;  %s7816_s15 = sand.u32 (!%p7635_p8), 1, %s7522_s19  }
  0x90   : > { %s4788_s16 = sshll.u32 (!%p7635_p8), %s7816_s15, 7  ;;  %s286_s10 = scalar_lea.sflag (!%p7635_p8), [#allocation4], %s7816_s15 }
  0x91   : > { %s7820_s11 = scalar_lea.vmem (!%p7635_p8), [#allocation3], %s4788_s16  ;;  %p8845_p1 = scmp.ne.s32.totalorder (!%p7635_p8), %s8831_s26, 0 }
  0x96   : > { %7493 = dma.done.wait (%p8845_p1), %s286_s10, 2048  }
  0x97   : > { %7495 = vsyncadd (%p8845_p1), %s286_s10, 4294965248  ;;  %s294_s6 = sand.u32 1, %s7616_s24   ;;  %s7827_s30 = scalar_lea.vmem [#allocation6], %s4788_s16 }
  0x98   : > { %s295_s28 = scalar_lea.sflag [#allocation7], %s294_s6 }
  0x99   : > { %7497 = dma.done.wait (%p8845_p1), %s295_s28, 2048  }
  0x9a   : > { %7499 = vsyncadd (%p8845_p1), %s295_s28, 4294965248  ;;  %p8846_p8 = scmp.eq.s32.totalorder %s7616_s24, 0 }
  0x9c   : > { %7501 = dma.done.wait (%p8846_p8), [#allocation7], 9216   ;;  %p8847_p11 = pmov %p8846_p8 }
  0x9d   : > { %p8848_p13 = pmov %p8846_p8 }
  0x9e   : > { %7503 = vsyncadd (%p8847_p11), [#allocation7], 4294958080 }
  0x9f   : > { %7505 = dma.done.wait (%p8848_p13), [#allocation10], 5248   ;;  %p8849_p0 = pmov %p8846_p8 }
  0xa0   : > { %v7548_v0 = vmov 0.0   ;;  %vm7549_vm0 = vmmov 0   ;;  %v5019_v1 = vld [vmem:[%s7827_s30] sm:$0xff]   ;;  %v5197_v2 = vld [vmem:[%s7827_s30 + $0x8] sm:$0xff]   ;;  %v5198_v3 = vld [vmem:[%s7827_s30 + $0x10] sm:$0xff]   ;;  %s7550_s24 = smov 4  }
  0xa1   : > { %7507 = vsyncadd (%p8849_p0), [#allocation10], 4294962048  ;;  %5492 = vmatprep.subr.bf16.mxu1 %v7548_v0  ;;  %352 = vst [vmem:[#allocation2] sm:$0xff] %v7548_v0  ;;  %5892 = vmatprep.subr.bf16.mxu0 %v7548_v0  ;;  %v5020_v4 = vunpack.c.l.bf16 %v5019_v1  ;;  %v5021_v5 = vunpack.c.h.bf16 %v5019_v1  ;;  %v5024_v6 = vunpack.c.l.bf16 %v5197_v2  ;;  %v5025_v7 = vunpack.c.h.bf16 %v5197_v2  ;;  %v5199_v10 = vld [vmem:[%s7827_s30 + $0x18] sm:$0xff]   ;;  %v5200_v11 = vld [vmem:[%s7827_s30 + $0x20] sm:$0xff]   ;;  %s7037_s26 = smul.u32 164, %s7816_s15 }
  0xa2   : > { %353 = vst [vmem:[#allocation2 + $0x8] sm:$0xff] %v7548_v0  ;;  %354 = vst [vmem:[#allocation2 + $0x10] sm:$0xff] %v7548_v0  ;;  %5508 = vmatprep.mubr.msk.bf16.mxu1 %vm7549_vm0, %v7548_v0  ;;  %5908 = vmatprep.mubr.msk.bf16.mxu0 %vm7549_vm0, %v7548_v0  ;;  %v5028_v8 = vunpack.c.l.bf16 %v5198_v3  ;;  %v5029_v9 = vunpack.c.h.bf16 %v5198_v3  ;;  %v5201_v13 = vld [vmem:[%s7827_s30 + $0x28] sm:$0xff]   ;;  %v5202_v15 = vld [vmem:[%s7827_s30 + $0x30] sm:$0xff]   ;;  %v5033_v18 = vunpack.c.h.bf16 %v5199_v10  ;;  %v5036_v19 = vunpack.c.l.bf16 %v5200_v11  ;;  %s4792_s25 = sshll.u32 %s7816_s15, 3  ;;  %s7038_s7 = smul.u32 2624, %s7530_s21 }
  0xa3   : > { %355 = vst [vmem:[#allocation2 + $0x18] sm:$0xff] %v7548_v0  ;;  %356 = vst [vmem:[#allocation2 + $0x20] sm:$0xff] %v7548_v0  ;;  %v7141_v12 = vpack.i.bf16 %v5021_v5, %v5020_v4  ;;  %v7213_v16 = vld [vmem:[#allocation8 + $0x40] sm:$0xff]   ;;  %v7146_v17 = vpack.i.bf16 %v5025_v7, %v5024_v6  ;;  %v7214_v20 = vld [vmem:[#allocation8 + $0x48] sm:$0xff]   ;;  %v5032_v21 = vunpack.c.l.bf16 %v5199_v10  ;;  %v5037_v22 = vunpack.c.h.bf16 %v5200_v11  ;;  %s8670_s3 = scalar_lea.vmem [#allocation11], %s7037_s26  ;;  %s8693_s14 = scalar_lea.vmem [#allocation12], %s4792_s25 }
  0xa4   : > { %357 = vst [vmem:[#allocation2 + $0x28] sm:$0xff] %v7548_v0  ;;  %358 = vst [vmem:[#allocation2 + $0x30] sm:$0xff] %v7548_v0  ;;  %v7151_v14 = vpack.i.bf16 %v5029_v9, %v5028_v8  ;;  %v5040_v23 = vunpack.c.l.bf16 %v5201_v13  ;;  %5493 = vmatpush3.bf16.msra.mxu1 %v7213_v16  ;;  %v7215_v24 = vld [vmem:[#allocation8 + $0x100] sm:$0xff]   ;;  %v7217_v25 = vld [vmem:[#allocation8 + $0x108] sm:$0xff]   ;;  %v7156_v26 = vpack.i.bf16 %v5036_v19, %v5033_v18  ;;  %v5041_v27 = vunpack.c.h.bf16 %v5201_v13  ;;  %s4604_s17 = sshll.u32 %s8670_s3, 4  ;;  %s8722_s22 = scalar_lea.hbm %s8816_s4, %s7038_s7  ;;  %s8724_s17 = int_to_ptr.vmem [resolvable:$true] %s4604_s17 }
  0xa5   : > { %359 = vst [vmem:[#allocation2 + $0x38] sm:$0xff] %v7548_v0  ;;  %360 = vst [vmem:[#allocation2 + $0x40] sm:$0xff] %v7548_v0  ;;  %7142 = vrot.lane.b32.xlu0 %v7141_v12, %s7550_s24  ;;  %5494 = vmatprep.subr.bf16.mxu1 %v7548_v0  ;;  %v5044_v28 = vunpack.c.l.bf16 %v5202_v15  ;;  %v5203_v29 = vld [vmem:[%s7827_s30 + $0x38] sm:$0xff]   ;;  %v7216_v31 = vld [vmem:[#allocation8 + $0x50] sm:$0xff]   ;;  %v5045_v38 = vunpack.c.h.bf16 %v5202_v15  ;;  %vm402_vm1 = vcmask 31744   ;;  %vm507_vm2 = vcmask 64544  }
  0xa6   : > { %361 = vst [vmem:[#allocation2 + $0x48] sm:$0xff] %v7548_v0  ;;  %362 = vst [vmem:[#allocation2 + $0x50] sm:$0xff] %v7548_v0  ;;  %7152 = vrot.lane.b32.xlu1 %v7151_v14, %s7550_s24  ;;  %5893 = vmatpush3.bf16.msra.mxu0 %v7215_v24  ;;  %v7161_v30 = vpack.i.bf16 %v5040_v23, %v5037_v22  ;;  %v5204_v32 = vld [vmem:[%s7827_s30 + $0x40] sm:$0xff]   ;;  %v7219_v33 = vld [vmem:[#allocation8 + $0x110] sm:$0xff]   ;;  %v5048_v35 = vunpack.c.l.bf16 %v5203_v29  ;;  %v5049_v36 = vunpack.c.h.bf16 %v5203_v29  ;;  %vm4482_vm3 = vcmask 1043456   ;;  %s4585_s8 = scalar_lea.sflag [#allocation5], %s7816_s15 }
  0xa7   : > { %363 = vst [vmem:[#allocation2 + $0x58] sm:$0xff] %v7548_v0  ;;  %364 = vst [vmem:[#allocation2 + $0x60] sm:$0xff] %v7548_v0  ;;  %5894 = vmatprep.subr.bf16.mxu0 %v7548_v0  ;;  %v7166_v34 = vpack.i.bf16 %v5044_v28, %v5041_v27  ;;  %v5205_v37 = vld [vmem:[%s7827_s30 + $0x48] sm:$0xff]   ;;  %v5052_v39 = vunpack.c.l.bf16 %v5204_v32  ;;  %v5053_v40 = vunpack.c.h.bf16 %v5204_v32  ;;  %v7218_v41 = vld [vmem:[#allocation8 + $0x58] sm:$0xff]   ;;  %s7412_s29 = scalar_lea.vmem %s8724_s17, 2624  ;;  %p8850_p6 = scmp.ne.s32.totalorder %s8839_s12, 0 }
  0xa8   : > { %365 = vst [vmem:[#allocation2 + $0x68] sm:$0xff] %v7548_v0  ;;  %366 = vst [vmem:[#allocation2 + $0x70] sm:$0xff] %v7548_v0  ;;  %5495 = vmatpush3.bf16.msra.mxu1 %v7214_v20  ;;  %v7221_v42 = vld [vmem:[#allocation8 + $0x118] sm:$0xff]   ;;  %v7171_v43 = vpack.i.bf16 %v5049_v36, %v5048_v35  ;;  %v5056_v44 = vunpack.c.l.bf16 %v5205_v37  ;;  %v5057_v45 = vunpack.c.h.bf16 %v5205_v37  ;;  %v5206_v48 = vld [vmem:[%s7827_s30 + $0x50] sm:$0xff]   ;;  %p7413_p2 = scmp.ne.s32.totalorder %s8724_s17, %s7412_s29  ;;  %s7552_s9 = smov [#allocation11]  }
  0xa9   : > { %367 = vst [vmem:[#allocation2 + $0x78] sm:$0xff] %v7548_v0  ;;  %368 = vst [vmem:[#allocation2 + $0x80] sm:$0xff] %v7548_v0  ;;  %7147 = vrot.lane.b32.xlu0 %v7146_v17, %s7550_s24  ;;  %5496 = vmatprep.subr.bf16.mxu1 %v7548_v0  ;;  %v5207_v46 = vld [vmem:[%s7827_s30 + $0x58] sm:$0xff]   ;;  %v7176_v47 = vpack.i.bf16 %v5053_v40, %v5052_v39  ;;  %v7220_v49 = vld [vmem:[#allocation8 + $0x60] sm:$0xff]   ;;  %v5061_v51 = vunpack.c.h.bf16 %v5206_v48  ;;  %v5060_v56 = vunpack.c.l.bf16 %v5206_v48  ;;  %s7416_s0 = sshll.u32 %s7552_s9, 4  ;;  %s7417_s0 = int_to_ptr.vmem [resolvable:$false] %s7416_s0 }
  0xaa   : > { %369 = vst [vmem:[#allocation2 + $0x88] sm:$0xff] %v7548_v0  ;;  %370 = vst [vmem:[#allocation2 + $0x90] sm:$0xff] %v7548_v0  ;;  %544 = vrot.lane.b32.xlu1 %v5032_v21, %s7550_s24  ;;  %5895 = vmatpush3.bf16.msra.mxu0 %v7217_v25  ;;  %v5208_v50 = vld [vmem:[%s7827_s30 + $0x60] sm:$0xff]   ;;  %v5064_v52 = vunpack.c.l.bf16 %v5207_v46  ;;  %v7181_v55 = vpack.i.bf16 %v5057_v45, %v5056_v44  ;;  %v5182_v59 = vld [vmem:[%s7820_s11 + $0x8] sm:$0xff]   ;;  %v5065_v61 = vunpack.c.h.bf16 %v5207_v46  ;;  %p7414_p10 = pnand %p7413_p2, %p8850_p6  ;;  %s7418_s16 = scalar_lea.vmem %s7417_s0, 5248 }
  0xab   : > { %371 = vst [vmem:[#allocation2 + $0x98] sm:$0xff] %v7548_v0  ;;  %372 = vst [vmem:[#allocation2 + $0xa0] sm:$0xff] %v7548_v0  ;;  %5896 = vmatprep.subr.bf16.mxu0 %v7548_v0  ;;  %v7223_v53 = vld [vmem:[#allocation8 + $0x120] sm:$0xff]   ;;  %v7222_v60 = vld [vmem:[#allocation8 + $0x68] sm:$0xff]   ;;  %v5068_v62 = vunpack.c.l.bf16 %v5208_v50  ;;  %v4960_v1 = vunpack.c.l.bf16 %v5182_v59  ;;  %v4961_v2 = vunpack.c.h.bf16 %v5182_v59  ;;  %v5069_v7 = vunpack.c.h.bf16 %v5208_v50  ;;  %p7419_p4 = scmp.lt.s32.totalorder %s8724_s17, %s7417_s0  ;;  %p7420_p9 = scmp.lt.s32.totalorder %s7418_s16, %s7412_s29 }
  0xac   : > { %373 = vst [vmem:[#allocation2 + $0xa8] sm:$0xff] %v7548_v0  ;;  %374 = vst [vmem:[#allocation2 + $0xb0] sm:$0xff] %v7548_v0  ;;  %5497 = vmatpush3.bf16.msra.mxu1 %v7216_v31  ;;  %v4955_v54 = vld [vmem:[%s7820_s11] sm:$0xff]   ;;  %v7927_v63 = vld [vmem:[%s7827_s30 + $0x68] sm:$0xff]   ;;  %v7186_v3 = vpack.i.bf16 %v5064_v52, %v5061_v51  ;;  %p7415_p3 = pneg %p7414_p10 }
  0xad   : > { %375 = vst [vmem:[#allocation2 + $0xb8] sm:$0xff] %v7548_v0  ;;  %376 = vst [vmem:[#allocation2 + $0xc0] sm:$0xff] %v7548_v0  ;;  %7157 = vrot.lane.b32.xlu0 %v7156_v26, %s7550_s24  ;;  %5498 = vmatprep.subr.bf16.mxu1 %v7548_v0  ;;  %v4956_v57 = vunpack.c.l.bf16 %v4955_v54  ;;  %v4957_v58 = vunpack.c.h.bf16 %v4955_v54  ;;  %v7225_v4 = vld [vmem:[#allocation8 + $0x128] sm:$0xff]   ;;  %v5183_v5 = vld [vmem:[%s7820_s11 + $0x10] sm:$0xff]   ;;  %v5072_v8 = vunpack.c.l.bf16 %v7927_v63  ;;  %v7191_v11 = vpack.i.bf16 %v5068_v62, %v5065_v61  ;;  %p7421_p5 = por %p7420_p9, %p7419_p4 }
  0xae   : > { %377 = vst [vmem:[#allocation2 + $0xc8] sm:$0xff] %v7548_v0  ;;  %378 = vst [vmem:[#allocation2 + $0xd0] sm:$0xff] %v7548_v0  ;;  %7162 = vrot.lane.b32.xlu1 %v7161_v30, %s7550_s24  ;;  %5897 = vmatpush3.bf16.msra.mxu0 %v7219_v33  ;;  %v7224_v6 = vld [vmem:[#allocation8 + $0x70] sm:$0xff]   ;;  %v4964_v9 = vunpack.c.l.bf16 %v5183_v5  ;;  %v4965_v10 = vunpack.c.h.bf16 %v5183_v5  ;;  %v5184_v12 = vld [vmem:[%s7820_s11 + $0x18] sm:$0xff]   ;;  %v5073_v27 = vunpack.c.h.bf16 %v7927_v63 }
  0xaf   : > { %379 = vst [vmem:[#allocation2 + $0xd8] sm:$0xff] %v7548_v0  ;;  %380 = vst [vmem:[#allocation2 + $0xe0] sm:$0xff] %v7548_v0  ;;  %5898 = vmatprep.subr.bf16.mxu0 %v7548_v0  ;;  %v5185_v13 = vld [vmem:[%s7820_s11 + $0x20] sm:$0xff]   ;;  %v7227_v14 = vld [vmem:[#allocation8 + $0x130] sm:$0xff]   ;;  %v4969_v15 = vunpack.c.h.bf16 %v5184_v12  ;;  %v4968_v17 = vunpack.c.l.bf16 %v5184_v12  ;;  %v7196_v23 = vpack.i.bf16 %v5072_v8, %v5069_v7  ;;  %p7422_p7 = pnand %p7421_p5, %p7415_p3 }
  0xb0   : > { %381 = vst [vmem:[#allocation2 + $0xe8] sm:$0xff] %v7548_v0  ;;  %382 = vst [vmem:[#allocation2 + $0xf0] sm:$0xff] %v7548_v0  ;;  %5499 = vmatpush3.bf16.msra.mxu1 %v7218_v41  ;;  %v4972_v16 = vunpack.c.l.bf16 %v5185_v13  ;;  %v4973_v18 = vunpack.c.h.bf16 %v5185_v13  ;;  %v7226_v19 = vld [vmem:[#allocation8 + $0x78] sm:$0xff]   ;;  %v5210_v22 = vld [vmem:[%s7827_s30 + $0x70] sm:$0xff]  }
  0xb1   : > { %383 = vst [vmem:[#allocation2 + $0xf8] sm:$0xff] %v7548_v0  ;;  %384 = vst [vmem:[#allocation2 + $0x100] sm:$0xff] %v7548_v0  ;;  %7167 = vrot.lane.b32.xlu0 %v7166_v34, %s7550_s24  ;;  %5500 = vmatprep.subr.bf16.mxu1 %v7548_v0  ;;  %v798_v20 = vld [vmem:[#allocation2 + $0x1] sm:$0xff]  ;;  %v799_v21 = vld [vmem:[#allocation2 + $0x9] sm:$0xff]  ;;  %v5076_v32 = vunpack.c.l.bf16 %v5210_v22  ;;  %v5077_v33 = vunpack.c.h.bf16 %v5210_v22 }
  0xb2   : > { %385 = vst [vmem:[#allocation2 + $0x108] sm:$0xff] %v7548_v0  ;;  %386 = vst [vmem:[#allocation2 + $0x110] sm:$0xff] %v7548_v0  ;;  %588 = vrot.lane.b32.xlu1 %v5045_v38, %s7550_s24  ;;  %5899 = vmatpush3.bf16.msra.mxu0 %v7221_v42  ;;  %v5186_v24 = vld [vmem:[%s7820_s11 + $0x28] sm:$0xff]   ;;  %v7228_v25 = vld [vmem:[#allocation8 + $0x138] sm:$0xff]   ;;  %v839_v37 = vpack.c.bf16 %v799_v21, %v798_v20 }
  0xb3   : > { %387 = vst [vmem:[#allocation2 + $0x118] sm:$0xff] %v7548_v0  ;;  %388 = vst [vmem:[#allocation2 + $0x120] sm:$0xff] %v7548_v0  ;;  %5900 = vmatprep.subr.bf16.mxu0 %v7548_v0  ;;  %v2109_v26 = vld [vmem:[#allocation2 + $0x13] sm:$0xff]  ;;  %v5211_v28 = vld [vmem:[%s7827_s30 + $0x78] sm:$0xff]   ;;  %v4976_v29 = vunpack.c.l.bf16 %v5186_v24  ;;  %v4977_v30 = vunpack.c.h.bf16 %v5186_v24  ;;  %v7201_v42 = vpack.i.bf16 %v5077_v33, %v5076_v32 }
  0xb4   : > { %389 = vst [vmem:[#allocation2 + $0x128] sm:$0xff] %v7548_v0  ;;  %390 = vst [vmem:[#allocation2 + $0x130] sm:$0xff] %v7548_v0  ;;  %5501 = vmatpush3.bf16.msra.mxu1 %v7220_v49  ;;  %v2110_v31 = vld [vmem:[#allocation2 + $0x1b] sm:$0xff]  ;;  %v7230_v35 = vld [vmem:[#allocation8] sm:$0xff]   ;;  %v5080_v38 = vunpack.c.l.bf16 %v5211_v28  ;;  %v5081_v39 = vunpack.c.h.bf16 %v5211_v28 }
  0xb5   : > { %391 = vst [vmem:[#allocation2 + $0x138] sm:$0xff] %v7548_v0  ;;  %392 = vst [vmem:[#allocation2 + $0x140] sm:$0xff] %v7548_v0  ;;  %7172 = vrot.lane.b32.xlu0 %v7171_v43, %s7550_s24  ;;  %5502 = vmatprep.subr.bf16.mxu1 %v7548_v0  ;;  %v5187_v34 = vld [vmem:[%s7820_s11 + $0x30] sm:$0xff]   ;;  %v7229_v40 = vld [vmem:[#allocation8 + $0x140] sm:$0xff]   ;;  %v2150_v41 = vpack.c.bf16 %v2110_v31, %v2109_v26 }
  0xb6   : > { %393 = vst [vmem:[#allocation2 + $0x148] sm:$0xff] %v7548_v0  ;;  %394 = vst [vmem:[#allocation2 + $0x150] sm:$0xff] %v7548_v0  ;;  %7177 = vrot.lane.b32.xlu1 %v7176_v47, %s7550_s24  ;;  %5901 = vmatpush3.bf16.msra.mxu0 %v7223_v53  ;;  %v4980_v36 = vunpack.c.l.bf16 %v5187_v34  ;;  %v800_v43 = vld [vmem:[#allocation2 + $0x11] sm:$0xff]  ;;  %v801_v44 = vld [vmem:[#allocation2 + $0x19] sm:$0xff]  ;;  %v7206_v45 = vpack.i.bf16 %v5081_v39, %v5080_v38  ;;  %v4981_v48 = vunpack.c.h.bf16 %v5187_v34 }
  0xb7   : > { %395 = vst [vmem:[#allocation2 + $0x158] sm:$0xff] %v7548_v0  ;;  %396 = vst [vmem:[#allocation2 + $0x160] sm:$0xff] %v7548_v0  ;;  %5902 = vmatprep.subr.bf16.mxu0 %v7548_v0  ;;  %v7233_v46 = vld [vmem:[#allocation8 + $0x8] sm:$0xff]   ;;  %v5188_v47 = vld [vmem:[%s7820_s11 + $0x38] sm:$0xff]   ;;  %v840_v52 = vpack.c.bf16 %v801_v44, %v800_v43 }
  0xb8   : > { %397 = vst [vmem:[#allocation2 + $0x168] sm:$0xff] %v7548_v0  ;;  %403 = vst.msk [vmem:[#allocation2 + $0x26] sm:$0xff] %vm402_vm1, %v4956_v57  ;;  %5503 = vmatpush3.bf16.msra.mxu1 %v7222_v60  ;;  %v7231_v49 = vld [vmem:[#allocation8 + $0x148] sm:$0xff]   ;;  %v4984_v50 = vunpack.c.l.bf16 %v5188_v47  ;;  %v4985_v51 = vunpack.c.h.bf16 %v5188_v47  ;;  %v7232_v53 = vld [vmem:[#allocation8 + $0x150] sm:$0xff]  }
  0xb9   : > { %404 = vst.msk [vmem:[#allocation2 + $0x2e] sm:$0xff] %vm402_vm1, %v4957_v58  ;;  %409 = vst.msk [vmem:[#allocation2 + $0x38] sm:$0xff] %vm402_vm1, %v4960_v1  ;;  %7182 = vrot.lane.b32.xlu0 %v7181_v55, %s7550_s24  ;;  %5504 = vmatprep.subr.bf16.mxu1 %v7548_v0  ;;  %v7236_v54 = vld [vmem:[#allocation8 + $0x10] sm:$0xff]   ;;  %v7234_v55 = vld [vmem:[#allocation8 + $0x158] sm:$0xff]  }
  0xba   : > { %410 = vst.msk [vmem:[#allocation2 + $0x40] sm:$0xff] %vm402_vm1, %v4961_v2  ;;  %642 = vrot.lane.b32.xlu1 %v5060_v56, %s7550_s24  ;;  %415 = vst.msk [vmem:[#allocation2 + $0x4a] sm:$0xff] %vm402_vm1, %v4964_v9  ;;  %5903 = vmatpush3.bf16.msra.mxu0 %v7225_v4  ;;  %v7235_v56 = vld [vmem:[#allocation8 + $0x160] sm:$0xff]   ;;  %v7237_v58 = vld [vmem:[#allocation8 + $0x168] sm:$0xff]  }
  0xbb   : > { %416 = vst.msk [vmem:[#allocation2 + $0x52] sm:$0xff] %vm402_vm1, %v4965_v10  ;;  %5904 = vmatprep.subr.bf16.mxu0 %v7548_v0  ;;  %422 = vst.msk [vmem:[#allocation2 + $0x64] sm:$0xff] %vm402_vm1, %v4969_v15  ;;  %v5189_v57 = vld [vmem:[%s7820_s11 + $0x40] sm:$0xff]   ;;  %v7238_v61 = vld [vmem:[#allocation8 + $0x170] sm:$0xff]  }
  0xbc   : > { %427 = vst.msk [vmem:[#allocation2 + $0x6e] sm:$0xff] %vm402_vm1, %v4972_v16  ;;  %421 = vst.msk [vmem:[#allocation2 + $0x5c] sm:$0xff] %vm402_vm1, %v4968_v17  ;;  %5505 = vmatpush3.bf16.msra.mxu1 %v7224_v6  ;;  %v4988_v59 = vunpack.c.l.bf16 %v5189_v57  ;;  %v4989_v60 = vunpack.c.h.bf16 %v5189_v57  ;;  %v5190_v62 = vld [vmem:[%s7820_s11 + $0x48] sm:$0xff]   ;;  %v7239_v63 = vld [vmem:[#allocation8 + $0x18] sm:$0xff]  }
  0xbd   : > { %7187 = vrot.lane.b32.xlu0 %v7186_v3, %s7550_s24  ;;  %428 = vst.msk [vmem:[#allocation2 + $0x76] sm:$0xff] %vm402_vm1, %v4973_v18  ;;  %5506 = vmatprep.subr.bf16.mxu1 %v7548_v0  ;;  %433 = vst.msk [vmem:[#allocation2 + $0x80] sm:$0xff] %vm402_vm1, %v4976_v29  ;;  %v4992_v1 = vunpack.c.l.bf16 %v5190_v62  ;;  %v4993_v2 = vunpack.c.h.bf16 %v5190_v62  ;;  %v7240_v3 = vld [vmem:[#allocation8 + $0x178] sm:$0xff]   ;;  %v5191_v4 = vld [vmem:[%s7820_s11 + $0x50] sm:$0xff]  }
  0xbe   : > { %7192 = vrot.lane.b32.xlu1 %v7191_v11, %s7550_s24  ;;  %5905 = vmatpush3.bf16.msra.mxu0 %v7227_v14  ;;  %434 = vst.msk [vmem:[#allocation2 + $0x88] sm:$0xff] %vm402_vm1, %v4977_v30  ;;  %439 = vst.msk [vmem:[#allocation2 + $0x92] sm:$0xff] %vm402_vm1, %v4980_v36  ;;  %v4996_v5 = vunpack.c.l.bf16 %v5191_v4  ;;  %v4997_v6 = vunpack.c.h.bf16 %v5191_v4  ;;  %v5192_v7 = vld [vmem:[%s7820_s11 + $0x58] sm:$0xff]   ;;  %v7242_v8 = vld [vmem:[#allocation8 + $0x20] sm:$0xff]  }
  0xbf   : > { %5906 = vmatprep.subr.bf16.mxu0 %v7548_v0  ;;  %440 = vst.msk [vmem:[#allocation2 + $0x9a] sm:$0xff] %vm402_vm1, %v4981_v48  ;;  %445 = vst.msk [vmem:[#allocation2 + $0xa4] sm:$0xff] %vm402_vm1, %v4984_v50  ;;  %v5000_v9 = vunpack.c.l.bf16 %v5192_v7  ;;  %v5001_v10 = vunpack.c.h.bf16 %v5192_v7  ;;  %v5193_v11 = vld [vmem:[%s7820_s11 + $0x60] sm:$0xff]   ;;  %v5194_v14 = vld [vmem:[%s7820_s11 + $0x68] sm:$0xff]  }
  0xc0   : > { %5507 = vmatpush3.bf16.msra.mxu1 %v7226_v19  ;;  %446 = vst.msk [vmem:[#allocation2 + $0xac] sm:$0xff] %vm402_vm1, %v4985_v51  ;;  %451 = vst.msk [vmem:[#allocation2 + $0xb6] sm:$0xff] %vm402_vm1, %v4988_v59  ;;  %v5004_v12 = vunpack.c.l.bf16 %v5193_v11  ;;  %v5005_v13 = vunpack.c.h.bf16 %v5193_v11  ;;  %v5008_v15 = vunpack.c.l.bf16 %v5194_v14  ;;  %v7244_v16 = vld [vmem:[#allocation8 + $0x28] sm:$0xff]   ;;  %v5009_v17 = vunpack.c.h.bf16 %v5194_v14  ;;  %v5195_v18 = vld [vmem:[%s7820_s11 + $0x70] sm:$0xff]  }
  0xc1   : > { %7197 = vrot.lane.b32.xlu0 %v7196_v23, %s7550_s24  ;;  %5592 = vmatprep.subr.bf16.mxu1 %v7548_v0  ;;  %452 = vst.msk [vmem:[#allocation2 + $0xbe] sm:$0xff] %vm402_vm1, %v4989_v60  ;;  %457 = vst.msk [vmem:[#allocation2 + $0xc8] sm:$0xff] %vm402_vm1, %v4992_v1  ;;  %v5012_v19 = vunpack.c.l.bf16 %v5195_v18  ;;  %v5013_v20 = vunpack.c.h.bf16 %v5195_v18  ;;  %v5196_v31 = vld [vmem:[%s7820_s11 + $0x78] sm:$0xff]   ;;  %v7246_v32 = vld [vmem:[#allocation8 + $0x30] sm:$0xff]  }
  0xc2   : > { %686 = vrot.lane.b32.xlu1 %v5073_v27, %s7550_s24  ;;  %5907 = vmatpush3.bf16.msra.mxu0 %v7228_v25  ;;  %458 = vst.msk [vmem:[#allocation2 + $0xd0] sm:$0xff] %vm402_vm1, %v4993_v2  ;;  %463 = vst.msk [vmem:[#allocation2 + $0xda] sm:$0xff] %vm402_vm1, %v4996_v5  ;;  %v5016_v33 = vunpack.c.l.bf16 %v5196_v31  ;;  %v5017_v34 = vunpack.c.h.bf16 %v5196_v31 }
  0xc3   : > { %5509 = vmatmul.mubr.bf16.vlgmr.msra.gmra.mrb[0].mxu1 %v839_v37  ;;  %5992 = vmatprep.subr.bf16.mxu0 %v7548_v0  ;;  %464 = vst.msk [vmem:[#allocation2 + $0xe2] sm:$0xff] %vm402_vm1, %v4997_v6  ;;  %469 = vst.msk [vmem:[#allocation2 + $0xec] sm:$0xff] %vm402_vm1, %v5000_v9 }
  0xc4   : > { %5512 = vmatprep.mubr.msk.bf16.mxu1 %vm7549_vm0, %v7548_v0  ;;  %5593 = vmatpush3.bf16.msra.mxu1 %v7230_v35  ;;  %470 = vst.msk [vmem:[#allocation2 + $0xf4] sm:$0xff] %vm402_vm1, %v5001_v10  ;;  %475 = vst.msk [vmem:[#allocation2 + $0xfe] sm:$0xff] %vm402_vm1, %v5004_v12 }
  0xc5   : > { %5909 = vmatmul.mubr.bf16.vlgmr.msra.gmra.mrb[0].mxu0 %v2150_v41  ;;  %7202 = vrot.lane.b32.xlu0 %v7201_v42, %s7550_s24  ;;  %476 = vst.msk [vmem:[#allocation2 + $0x106] sm:$0xff] %vm402_vm1, %v5005_v13  ;;  %481 = vst.msk [vmem:[#allocation2 + $0x110] sm:$0xff] %vm402_vm1, %v5008_v15 }
  0xc6   : > { %5993 = vmatpush3.bf16.msra.mxu0 %v7229_v40  ;;  %5912 = vmatprep.mubr.msk.bf16.mxu0 %vm7549_vm0, %v7548_v0  ;;  %482 = vst.msk [vmem:[#allocation2 + $0x118] sm:$0xff] %vm402_vm1, %v5009_v17  ;;  %487 = vst.msk [vmem:[#allocation2 + $0x122] sm:$0xff] %vm402_vm1, %v5012_v19 }
  0xc7   : > { %5994 = vmatprep.subr.bf16.mxu0 %v7548_v0  ;;  %7207 = vrot.lane.b32.xlu1 %v7206_v45, %s7550_s24  ;;  %488 = vst.msk [vmem:[#allocation2 + $0x12a] sm:$0xff] %vm402_vm1, %v5013_v20  ;;  %493 = vst.msk [vmem:[#allocation2 + $0x134] sm:$0xff] %vm402_vm1, %v5016_v33  ;;  %v7248_v20 = vld [vmem:[#allocation8 + $0x38] sm:$0xff]  }
  0xc8   : > { %5594 = vmatprep.subr.bf16.mxu1 %v7548_v0  ;;  %494 = vst.msk [vmem:[#allocation2 + $0x13c] sm:$0xff] %vm402_vm1, %v5017_v34 }
  0xc9   : > { %5595 = vmatpush3.bf16.msra.mxu1 %v7233_v46 }
  0xca   : > { %5995 = vmatpush3.bf16.msra.mxu0 %v7231_v49  ;;  %5596 = vmatprep.subr.bf16.mxu1 %v7548_v0 }
  0xcb   : > { %5513 = vmatmul.mubr.bf16.gmra.mrb[4].mxu1 %v840_v52  ;;  %5996 = vmatprep.subr.bf16.mxu0 %v7548_v0 }
  0xcc   : > { %5516 = vmatprep.mubr.msk.bf16.mxu1 %vm7549_vm0, %v7548_v0 }
  0xcd   : > { %5597 = vmatpush3.bf16.msra.mxu1 %v7236_v54 }
  0xce   : > { %5997 = vmatpush3.bf16.msra.mxu0 %v7232_v53  ;;  %5598 = vmatprep.subr.bf16.mxu1 %v7548_v0 }
  0xcf   : > { %5998 = vmatprep.subr.bf16.mxu0 %v7548_v0 }
  0xd1   : > { %5599 = vmatpush3.bf16.msra.mxu1 %v7239_v63 }
  0xd2   : > { %5999 = vmatpush3.bf16.msra.mxu0 %v7234_v55  ;;  %5600 = vmatprep.subr.bf16.mxu1 %v7548_v0 }
  0xd3   : > { %6000 = vmatprep.subr.bf16.mxu0 %v7548_v0 }
  0xd5   : > { %5601 = vmatpush3.bf16.msra.mxu1 %v7242_v8 }
  0xd6   : > { %6001 = vmatpush3.bf16.msra.mxu0 %v7235_v56  ;;  %5602 = vmatprep.subr.bf16.mxu1 %v7548_v0 }
  0xd7   : > { %6002 = vmatprep.subr.bf16.mxu0 %v7548_v0 }
  0xd9   : > { %5603 = vmatpush3.bf16.msra.mxu1 %v7244_v16 }
  0xda   : > { %6003 = vmatpush3.bf16.msra.mxu0 %v7237_v58  ;;  %5604 = vmatprep.subr.bf16.mxu1 %v7548_v0 }
  0xdb   : > { %6004 = vmatprep.subr.bf16.mxu0 %v7548_v0 }
  0xdd   : > { %5605 = vmatpush3.bf16.msra.mxu1 %v7246_v32 }
  0xde   : > { %6005 = vmatpush3.bf16.msra.mxu0 %v7238_v61  ;;  %5606 = vmatprep.subr.bf16.mxu1 %v7548_v0 }
  0xdf   : > { %6006 = vmatprep.subr.bf16.mxu0 %v7548_v0 }
  0xe1   : > { %5607 = vmatpush3.bf16.msra.mxu1 %v7248_v20 }
  0xe2   : > { %6007 = vmatpush3.bf16.msra.mxu0 %v7240_v3  ;;  %v8038_v3 = vld [vmem:[#allocation2] sm:$0xff] }
  0xe3   : > { %6092 = vmatprep.subr.bf16.mxu0 %v7548_v0  ;;  %5692 = vmatprep.subr.bf16.mxu1 %v8038_v3 }
 0x117   : > { %v7143_v21 = vpop.permute.xlu0 %7142 }
 0x118   : > { %v7145_v22 = vunpack.i.h.bf16 %v7143_v21  ;;  %v7144_v23 = vunpack.i.l.bf16 %v7143_v21  ;;  %v7153_v24 = vpop.permute.xlu1 %7152 }
 0x119   : > { %v7155_v25 = vunpack.i.h.bf16 %v7153_v24  ;;  %v7154_v26 = vunpack.i.l.bf16 %v7153_v24 }
 0x11a   : > { %508 = vst.msk [vmem:[#allocation2 + $0x26] sm:$0xff] %vm507_vm2, %v7144_v23  ;;  %509 = vst.msk [vmem:[#allocation2 + $0x2e] sm:$0xff] %vm507_vm2, %v7145_v22 }
 0x11b   : > { %v7148_v27 = vpop.permute.xlu0 %7147  ;;  %536 = vst.msk [vmem:[#allocation2 + $0x4a] sm:$0xff] %vm507_vm2, %v7154_v26  ;;  %537 = vst.msk [vmem:[#allocation2 + $0x52] sm:$0xff] %vm507_vm2, %v7155_v25 }
 0x11c   : > { %v7150_v28 = vunpack.i.h.bf16 %v7148_v27  ;;  %v7149_v29 = vunpack.i.l.bf16 %v7148_v27  ;;  %v545_v30 = vpop.permute.xlu1 %544 }
 0x11d   : > { %550 = vst.msk [vmem:[#allocation2 + $0x5c] sm:$0xff] %vm507_vm2, %v545_v30 }
 0x11e   : > { %522 = vst.msk [vmem:[#allocation2 + $0x38] sm:$0xff] %vm507_vm2, %v7149_v29  ;;  %523 = vst.msk [vmem:[#allocation2 + $0x40] sm:$0xff] %vm507_vm2, %v7150_v28 }
 0x11f   : > { %v7158_v35 = vpop.permute.xlu0 %7157 }
 0x120   : > { %v7160_v36 = vunpack.i.h.bf16 %v7158_v35  ;;  %v7159_v37 = vunpack.i.l.bf16 %v7158_v35  ;;  %v7163_v38 = vpop.permute.xlu1 %7162 }
 0x121   : > { %v802_v39 = vld [vmem:[#allocation2 + $0x21] sm:$0xff]  ;;  %v803_v40 = vld [vmem:[#allocation2 + $0x29] sm:$0xff]  ;;  %v7165_v42 = vunpack.i.h.bf16 %v7163_v38  ;;  %v7164_v43 = vunpack.i.l.bf16 %v7163_v38 }
 0x122   : > { %v2111_v41 = vld [vmem:[#allocation2 + $0x23] sm:$0xff]  ;;  %v841_v44 = vpack.c.bf16 %v803_v40, %v802_v39  ;;  %v2112_v45 = vld [vmem:[#allocation2 + $0x2b] sm:$0xff]  ;;  %551 = vst.msk [vmem:[#allocation2 + $0x64] sm:$0xff] %vm507_vm2, %v7159_v37  ;;  %564 = vst.msk [vmem:[#allocation2 + $0x6e] sm:$0xff] %vm507_vm2, %v7160_v36 }
 0x123   : > { %v2151_v46 = vpack.c.bf16 %v2112_v45, %v2111_v41  ;;  %565 = vst.msk [vmem:[#allocation2 + $0x76] sm:$0xff] %vm507_vm2, %v7164_v43  ;;  %578 = vst.msk [vmem:[#allocation2 + $0x80] sm:$0xff] %vm507_vm2, %v7165_v42  ;;  %v7168_v47 = vpop.permute.xlu0 %7167  ;;  %v807_v5 = vld [vmem:[#allocation2 + $0x49] sm:$0xff]  ;;  %v808_v21 = vld [vmem:[#allocation2 + $0x51] sm:$0xff] }
 0x124   : > { %5517 = vmatmul.mubr.bf16.gmra.mrb[8].mxu1 %v841_v44  ;;  %v7170_v48 = vunpack.i.h.bf16 %v7168_v47  ;;  %v7169_v49 = vunpack.i.l.bf16 %v7168_v47  ;;  %v589_v50 = vpop.permute.xlu1 %588  ;;  %v2116_v8 = vld [vmem:[#allocation2 + $0x4b] sm:$0xff]  ;;  %v809_v22 = vld [vmem:[#allocation2 + $0x59] sm:$0xff] }
 0x125   : > { %5913 = vmatmul.mubr.bf16.gmra.mrb[4].mxu0 %v2151_v46  ;;  %5520 = vmatprep.mubr.msk.bf16.mxu1 %vm7549_vm0, %v7548_v0  ;;  %593 = vst.msk [vmem:[#allocation2 + $0x9a] sm:$0xff] %vm507_vm2, %v589_v50  ;;  %v804_v51 = vld [vmem:[#allocation2 + $0x31] sm:$0xff]  ;;  %v805_v52 = vld [vmem:[#allocation2 + $0x39] sm:$0xff]  ;;  %v806_v4 = vld [vmem:[#allocation2 + $0x41] sm:$0xff]  ;;  %v844_v26 = vpack.c.bf16 %v809_v22, %v808_v21 }
 0x126   : > { %5916 = vmatprep.mubr.msk.bf16.mxu0 %vm7549_vm0, %v7548_v0  ;;  %579 = vst.msk [vmem:[#allocation2 + $0x88] sm:$0xff] %vm507_vm2, %v7169_v49  ;;  %592 = vst.msk [vmem:[#allocation2 + $0x92] sm:$0xff] %vm507_vm2, %v7170_v48  ;;  %v2113_v54 = vld [vmem:[#allocation2 + $0x33] sm:$0xff]  ;;  %v2114_v55 = vld [vmem:[#allocation2 + $0x3b] sm:$0xff]  ;;  %v842_v61 = vpack.c.bf16 %v805_v52, %v804_v51  ;;  %v843_v14 = vpack.c.bf16 %v807_v5, %v806_v4 }
 0x127   : > { %v7173_v53 = vpop.permute.xlu0 %7172  ;;  %v2152_v0 = vpack.c.bf16 %v2114_v55, %v2113_v54  ;;  %v2115_v7 = vld [vmem:[#allocation2 + $0x43] sm:$0xff]  ;;  %v2117_v23 = vld [vmem:[#allocation2 + $0x53] sm:$0xff]  ;;  %v2118_v24 = vld [vmem:[#allocation2 + $0x5b] sm:$0xff] }
 0x128   : > { %v7175_v56 = vunpack.i.h.bf16 %v7173_v53  ;;  %v7174_v57 = vunpack.i.l.bf16 %v7173_v53  ;;  %v7178_v58 = vpop.permute.xlu1 %7177  ;;  %v2153_v15 = vpack.c.bf16 %v2116_v8, %v2115_v7  ;;  %v2154_v29 = vpack.c.bf16 %v2118_v24, %v2117_v23  ;;  %v2478_v7 = vld [vmem:[#allocation2 + $0x1c] sm:$0xff]  ;;  %v7247_v23 = vld [vmem:[#allocation8 + $0x198] sm:$0xff]  }
 0x129   : > { %v7180_v59 = vunpack.i.h.bf16 %v7178_v58  ;;  %v7179_v60 = vunpack.i.l.bf16 %v7178_v58  ;;  %v810_v33 = vld [vmem:[#allocation2 + $0x61] sm:$0xff]  ;;  %v811_v34 = vld [vmem:[#allocation2 + $0x69] sm:$0xff] }
 0x12a   : > { %606 = vst.msk [vmem:[#allocation2 + $0xa4] sm:$0xff] %vm507_vm2, %v7174_v57  ;;  %607 = vst.msk [vmem:[#allocation2 + $0xac] sm:$0xff] %vm507_vm2, %v7175_v56  ;;  %v2119_v35 = vld [vmem:[#allocation2 + $0x63] sm:$0xff]  ;;  %v2120_v36 = vld [vmem:[#allocation2 + $0x6b] sm:$0xff]  ;;  %v845_v37 = vpack.c.bf16 %v811_v34, %v810_v33 }
 0x12b   : > { %620 = vst.msk [vmem:[#allocation2 + $0xb6] sm:$0xff] %vm507_vm2, %v7179_v60  ;;  %621 = vst.msk [vmem:[#allocation2 + $0xbe] sm:$0xff] %vm507_vm2, %v7180_v59  ;;  %v7183_v62 = vpop.permute.xlu0 %7182  ;;  %v2155_v38 = vpack.c.bf16 %v2120_v36, %v2119_v35  ;;  %v812_v39 = vld [vmem:[#allocation2 + $0x71] sm:$0xff]  ;;  %v813_v40 = vld [vmem:[#allocation2 + $0x79] sm:$0xff] }
 0x12c   : > { %5521 = vmatmul.mubr.bf16.gmra.mrb[12].mxu1 %v842_v61  ;;  %v7185_v63 = vunpack.i.h.bf16 %v7183_v62  ;;  %v7184_v1 = vunpack.i.l.bf16 %v7183_v62  ;;  %v643_v2 = vpop.permute.xlu1 %642  ;;  %v2121_v41 = vld [vmem:[#allocation2 + $0x73] sm:$0xff]  ;;  %v2122_v42 = vld [vmem:[#allocation2 + $0x7b] sm:$0xff]  ;;  %v846_v43 = vpack.c.bf16 %v813_v40, %v812_v39  ;;  %v2483_v33 = vld [vmem:[#allocation2 + $0x44] sm:$0xff] }
 0x12d   : > { %5917 = vmatmul.mubr.bf16.gmra.mrb[8].mxu0 %v2152_v0  ;;  %5524 = vmatprep.mubr.msk.bf16.mxu1 %vm7549_vm0, %v8038_v3  ;;  %648 = vst.msk [vmem:[#allocation2 + $0xda] sm:$0xff] %vm507_vm2, %v643_v2  ;;  %v2156_v44 = vpack.c.bf16 %v2122_v42, %v2121_v41  ;;  %v814_v45 = vld [vmem:[#allocation2 + $0x81] sm:$0xff]  ;;  %v815_v46 = vld [vmem:[#allocation2 + $0x89] sm:$0xff]  ;;  %v816_v51 = vld [vmem:[#allocation2 + $0x91] sm:$0xff] }
 0x12e   : > { %5920 = vmatprep.mubr.msk.bf16.mxu0 %vm7549_vm0, %v8038_v3  ;;  %634 = vst.msk [vmem:[#allocation2 + $0xc8] sm:$0xff] %vm507_vm2, %v7184_v1  ;;  %635 = vst.msk [vmem:[#allocation2 + $0xd0] sm:$0xff] %vm507_vm2, %v7185_v63  ;;  %v2123_v47 = vld [vmem:[#allocation2 + $0x83] sm:$0xff]  ;;  %v2124_v48 = vld [vmem:[#allocation2 + $0x8b] sm:$0xff]  ;;  %v847_v49 = vpack.c.bf16 %v815_v46, %v814_v45 }
 0x12f   : > { %v7188_v6 = vpop.permute.xlu0 %7187  ;;  %v2157_v50 = vpack.c.bf16 %v2124_v48, %v2123_v47  ;;  %v817_v52 = vld [vmem:[#allocation2 + $0x99] sm:$0xff]  ;;  %v2484_v34 = vld [vmem:[#allocation2 + $0x4c] sm:$0xff]  ;;  %v2487_v47 = vld [vmem:[#allocation2 + $0x64] sm:$0xff] }
 0x130   : > { %v7190_v9 = vunpack.i.h.bf16 %v7188_v6  ;;  %v7189_v10 = vunpack.i.l.bf16 %v7188_v6  ;;  %v7193_v11 = vpop.permute.xlu1 %7192  ;;  %v2125_v53 = vld [vmem:[#allocation2 + $0x93] sm:$0xff]  ;;  %v2126_v54 = vld [vmem:[#allocation2 + $0x9b] sm:$0xff]  ;;  %v848_v55 = vpack.c.bf16 %v817_v52, %v816_v51  ;;  %v8114_v36 = vpack.c.bf16 %v2484_v34, %v2483_v33  ;;  %v7255_v39 = vld [vmem:[#allocation8 + $0x1b8] sm:$0xff]  }
 0x131   : > { %v7195_v12 = vunpack.i.h.bf16 %v7193_v11  ;;  %v7194_v13 = vunpack.i.l.bf16 %v7193_v11  ;;  %v2158_v56 = vpack.c.bf16 %v2126_v54, %v2125_v53  ;;  %v2127_v57 = vld [vmem:[#allocation2 + $0xa3] sm:$0xff]  ;;  %v2128_v58 = vld [vmem:[#allocation2 + $0xab] sm:$0xff]  ;;  %v2477_v6 = vld [vmem:[#allocation2 + $0x14] sm:$0xff] }
 0x132   : > { %649 = vst.msk [vmem:[#allocation2 + $0xe2] sm:$0xff] %vm507_vm2, %v7189_v10  ;;  %662 = vst.msk [vmem:[#allocation2 + $0xec] sm:$0xff] %vm507_vm2, %v7190_v9  ;;  %v818_v59 = vld [vmem:[#allocation2 + $0xa1] sm:$0xff]  ;;  %v819_v60 = vld [vmem:[#allocation2 + $0xa9] sm:$0xff]  ;;  %v2159_v61 = vpack.c.bf16 %v2128_v58, %v2127_v57  ;;  %v2518_v10 = vpack.c.bf16 %v2478_v7, %v2477_v6 }
 0x133   : > { %663 = vst.msk [vmem:[#allocation2 + $0xf4] sm:$0xff] %vm507_vm2, %v7194_v13  ;;  %676 = vst.msk [vmem:[#allocation2 + $0xfe] sm:$0xff] %vm507_vm2, %v7195_v12  ;;  %v7198_v16 = vpop.permute.xlu0 %7197  ;;  %v849_v0 = vpack.c.bf16 %v819_v60, %v818_v59  ;;  %v820_v62 = vld [vmem:[#allocation2 + $0xb1] sm:$0xff]  ;;  %v821_v63 = vld [vmem:[#allocation2 + $0xb9] sm:$0xff] }
 0x134   : > { %5525 = vmatmul.mubr.bf16.gmra.mrb[16].mxu1 %v843_v14  ;;  %v7200_v17 = vunpack.i.h.bf16 %v7198_v16  ;;  %v7199_v18 = vunpack.i.l.bf16 %v7198_v16  ;;  %v687_v19 = vpop.permute.xlu1 %686  ;;  %v2129_v1 = vld [vmem:[#allocation2 + $0xb3] sm:$0xff]  ;;  %v2130_v2 = vld [vmem:[#allocation2 + $0xbb] sm:$0xff]  ;;  %v850_v4 = vpack.c.bf16 %v821_v63, %v820_v62  ;;  %v2491_v59 = vld [vmem:[#allocation2 + $0x84] sm:$0xff] }
 0x135   : > { %5921 = vmatmul.mubr.bf16.gmra.mrb[12].mxu0 %v2153_v15  ;;  %5528 = vmatprep.mubr.msk.bf16.mxu1 %vm7549_vm0, %v8038_v3  ;;  %691 = vst.msk [vmem:[#allocation2 + $0x118] sm:$0xff] %vm507_vm2, %v687_v19  ;;  %v2160_v5 = vpack.c.bf16 %v2130_v2, %v2129_v1  ;;  %v822_v8 = vld [vmem:[#allocation2 + $0xc1] sm:$0xff]  ;;  %v823_v9 = vld [vmem:[#allocation2 + $0xc9] sm:$0xff]  ;;  %v824_v13 = vld [vmem:[#allocation2 + $0xd1] sm:$0xff] }
 0x136   : > { %5924 = vmatprep.mubr.msk.bf16.mxu0 %vm7549_vm0, %v8038_v3  ;;  %677 = vst.msk [vmem:[#allocation2 + $0x106] sm:$0xff] %vm507_vm2, %v7199_v18  ;;  %690 = vst.msk [vmem:[#allocation2 + $0x110] sm:$0xff] %vm507_vm2, %v7200_v17  ;;  %v851_v11 = vpack.c.bf16 %v823_v9, %v822_v8  ;;  %v7241_v12 = vld [vmem:[#allocation8 + $0x180] sm:$0xff]   ;;  %v825_v14 = vld [vmem:[#allocation2 + $0xd9] sm:$0xff] }
 0x137   : > { %v7203_v25 = vpop.permute.xlu0 %7202  ;;  %v7243_v15 = vld [vmem:[#allocation8 + $0x188] sm:$0xff]   ;;  %v852_v16 = vpack.c.bf16 %v825_v14, %v824_v13  ;;  %v2479_v17 = vld [vmem:[#allocation2 + $0x24] sm:$0xff]  ;;  %v2480_v18 = vld [vmem:[#allocation2 + $0x2c] sm:$0xff] }
 0x138   : > { %v7205_v27 = vunpack.i.h.bf16 %v7203_v25  ;;  %v7204_v28 = vunpack.i.l.bf16 %v7203_v25  ;;  %v7245_v19 = vld [vmem:[#allocation8 + $0x190] sm:$0xff]   ;;  %v8096_v20 = vpack.c.bf16 %v2480_v18, %v2479_v17  ;;  %v2481_v25 = vld [vmem:[#allocation2 + $0x34] sm:$0xff]  ;;  %v2488_v48 = vld [vmem:[#allocation2 + $0x6c] sm:$0xff] }
 0x139   : > { %v7208_v30 = vpop.permute.xlu1 %7207  ;;  %v826_v21 = vld [vmem:[#allocation2 + $0xe1] sm:$0xff]  ;;  %v827_v22 = vld [vmem:[#allocation2 + $0xe9] sm:$0xff]  ;;  %v2485_v41 = vld [vmem:[#allocation2 + $0x54] sm:$0xff] }
 0x13a   : > { %704 = vst.msk [vmem:[#allocation2 + $0x122] sm:$0xff] %vm507_vm2, %v7204_v28  ;;  %705 = vst.msk [vmem:[#allocation2 + $0x12a] sm:$0xff] %vm507_vm2, %v7205_v27  ;;  %v7210_v31 = vunpack.i.h.bf16 %v7208_v30  ;;  %v7209_v32 = vunpack.i.l.bf16 %v7208_v30  ;;  %v853_v24 = vpack.c.bf16 %v827_v22, %v826_v21  ;;  %v7249_v27 = vld [vmem:[#allocation8 + $0x1a0] sm:$0xff]   ;;  %v829_v30 = vld [vmem:[#allocation2 + $0xf9] sm:$0xff] }
 0x13b   : > { %v7253_v35 = vld [vmem:[#allocation8 + $0x1b0] sm:$0xff]   ;;  %v2489_v53 = vld [vmem:[#allocation2 + $0x74] sm:$0xff]  ;;  %v2492_v60 = vld [vmem:[#allocation2 + $0x8c] sm:$0xff] }
 0x13c   : > { %5529 = vmatmul.mubr.bf16.gmra.mrb[20].mxu1 %v844_v26  ;;  %718 = vst.msk [vmem:[#allocation2 + $0x134] sm:$0xff] %vm507_vm2, %v7209_v32  ;;  %719 = vst.msk [vmem:[#allocation2 + $0x13c] sm:$0xff] %vm507_vm2, %v7210_v31  ;;  %v2482_v26 = vld [vmem:[#allocation2 + $0x3c] sm:$0xff]  ;;  %v2493_v63 = vld [vmem:[#allocation2 + $0x94] sm:$0xff] }
 0x13d   : > { %5925 = vmatmul.mubr.bf16.gmra.mrb[16].mxu0 %v2154_v29  ;;  %5532 = vmatprep.mubr.msk.bf16.mxu1 %vm7549_vm0, %v8038_v3  ;;  %v8105_v28 = vpack.c.bf16 %v2482_v26, %v2481_v25  ;;  %v828_v29 = vld [vmem:[#allocation2 + $0xf1] sm:$0xff]  ;;  %v2486_v42 = vld [vmem:[#allocation2 + $0x5c] sm:$0xff]  ;;  %v7256_v14 = vld [vmem:[#allocation8 + $0x98] sm:$0xff]  }
 0x13e   : > { %5928 = vmatprep.mubr.msk.bf16.mxu0 %vm7549_vm0, %v8038_v3  ;;  %v7251_v31 = vld [vmem:[#allocation8 + $0x1a8] sm:$0xff]   ;;  %v854_v32 = vpack.c.bf16 %v829_v30, %v828_v29  ;;  %v2496_v6 = vld [vmem:[#allocation2 + $0xac] sm:$0xff]  ;;  %v2499_v17 = vld [vmem:[#allocation2 + $0xc4] sm:$0xff] }
 0x13f   : > { %v833_v45 = vld [vmem:[#allocation2 + $0x119] sm:$0xff]  ;;  %v7250_v7 = vld [vmem:[#allocation8 + $0x80] sm:$0xff]   ;;  %v729_v33 = vld [vmem:[#allocation2 + $0x48] sm:$0xff] }
 0x140   : > { %v2490_v54 = vld [vmem:[#allocation2 + $0x7c] sm:$0xff]  ;;  %v2500_v18 = vld [vmem:[#allocation2 + $0xcc] sm:$0xff]  ;;  %v2501_v25 = vld [vmem:[#allocation2 + $0xd4] sm:$0xff] }
 0x141   : > { %v835_v51 = vld [vmem:[#allocation2 + $0x129] sm:$0xff]  ;;  %v2494_v1 = vld [vmem:[#allocation2 + $0x9c] sm:$0xff]  ;;  %v8178_v22 = vpack.c.bf16 %v2500_v18, %v2499_v17 }
 0x142   : > { %v8152_v2 = vpack.c.bf16 %v2494_v1, %v2493_v63  ;;  %v7252_v9 = vld [vmem:[#allocation8 + $0x88] sm:$0xff]   ;;  %v7258_v21 = vld [vmem:[#allocation8 + $0xa0] sm:$0xff]   ;;  %v7262_v30 = vld [vmem:[#allocation8 + $0xb0] sm:$0xff]  }
 0x143   : > { %v837_v57 = vld [vmem:[#allocation2 + $0x139] sm:$0xff]  ;;  %v2503_v34 = vld [vmem:[#allocation2 + $0xe4] sm:$0xff]  ;;  %v2512_v1 = vld [vmem:[#allocation2 + $0x12c] sm:$0xff] }
 0x144   : > { %5533 = vmatmul.mubr.bf16.gmra.mrb[24].mxu1 %v845_v37  ;;  %v830_v37 = vld [vmem:[#allocation2 + $0x101] sm:$0xff] }
 0x145   : > { %5929 = vmatmul.mubr.bf16.gmra.mrb[20].mxu0 %v2155_v38  ;;  %5536 = vmatprep.mubr.msk.bf16.mxu1 %vm7549_vm0, %v8038_v3  ;;  %v831_v38 = vld [vmem:[#allocation2 + $0x109] sm:$0xff]  ;;  %v2502_v26 = vld [vmem:[#allocation2 + $0xdc] sm:$0xff] }
 0x146   : > { %5932 = vmatprep.mubr.msk.bf16.mxu0 %vm7549_vm0, %v8038_v3  ;;  %v855_v40 = vpack.c.bf16 %v831_v38, %v830_v37  ;;  %v2511_v63 = vld [vmem:[#allocation2 + $0x124] sm:$0xff] }
 0x147   : > { %v741_v17 = vld [vmem:[#allocation2 + $0xa8] sm:$0xff] }
 0x14c   : > { %5537 = vmatmul.mubr.bf16.gmra.mrb[28].mxu1 %v846_v43  ;;  %v8123_v43 = vpack.c.bf16 %v2486_v42, %v2485_v41  ;;  %v731_v41 = vld [vmem:[#allocation2 + $0x58] sm:$0xff] }
 0x14d   : > { %5933 = vmatmul.mubr.bf16.gmra.mrb[24].mxu0 %v2156_v44  ;;  %5540 = vmatprep.mubr.msk.bf16.mxu1 %vm7549_vm0, %v8038_v3  ;;  %v832_v44 = vld [vmem:[#allocation2 + $0x111] sm:$0xff] }
 0x14e   : > { %5936 = vmatprep.mubr.msk.bf16.mxu0 %vm7549_vm0, %v8038_v3  ;;  %v856_v46 = vpack.c.bf16 %v833_v45, %v832_v44  ;;  %v2505_v42 = vld [vmem:[#allocation2 + $0xf4] sm:$0xff]  ;;  %v2506_v44 = vld [vmem:[#allocation2 + $0xfc] sm:$0xff] }
 0x154   : > { %5541 = vmatmul.mubr.bf16.gmra.mrb[32].mxu1 %v847_v49  ;;  %v8131_v49 = vpack.c.bf16 %v2488_v48, %v2487_v47  ;;  %v732_v47 = vld [vmem:[#allocation2 + $0x60] sm:$0xff]  ;;  %v733_v48 = vld [vmem:[#allocation2 + $0x68] sm:$0xff] }
 0x155   : > { %5937 = vmatmul.mubr.bf16.gmra.mrb[28].mxu0 %v2157_v50  ;;  %5544 = vmatprep.mubr.msk.bf16.mxu1 %vm7549_vm0, %v8038_v3  ;;  %v834_v50 = vld [vmem:[#allocation2 + $0x121] sm:$0xff] }
 0x156   : > { %5940 = vmatprep.mubr.msk.bf16.mxu0 %vm7549_vm0, %v8038_v3  ;;  %v857_v52 = vpack.c.bf16 %v835_v51, %v834_v50  ;;  %v2507_v50 = vld [vmem:[#allocation2 + $0x104] sm:$0xff]  ;;  %v2508_v51 = vld [vmem:[#allocation2 + $0x10c] sm:$0xff] }
 0x15c   : > { %5545 = vmatmul.mubr.bf16.gmra.mrb[36].mxu1 %v848_v55  ;;  %v8138_v55 = vpack.c.bf16 %v2490_v54, %v2489_v53  ;;  %v8211_v53 = vpack.c.bf16 %v2508_v51, %v2507_v50  ;;  %v734_v54 = vld [vmem:[#allocation2 + $0x70] sm:$0xff]  ;;  %v7269_v50 = vld [vmem:[#allocation8 + $0x1f0] sm:$0xff]  }
 0x15d   : > { %5941 = vmatmul.mubr.bf16.gmra.mrb[32].mxu0 %v2158_v56  ;;  %5548 = vmatprep.mubr.msk.bf16.mxu1 %vm7549_vm0, %v8038_v3  ;;  %v836_v56 = vld [vmem:[#allocation2 + $0x131] sm:$0xff]  ;;  %v752_v51 = vld [vmem:[#allocation2 + $0x100] sm:$0xff] }
 0x15e   : > { %5944 = vmatprep.mubr.msk.bf16.mxu0 %vm7549_vm0, %v8038_v3  ;;  %v858_v58 = vpack.c.bf16 %v837_v57, %v836_v56  ;;  %v735_v56 = vld [vmem:[#allocation2 + $0x78] sm:$0xff] }
 0x15f   : > { %v2509_v57 = vld [vmem:[#allocation2 + $0x114] sm:$0xff] }
 0x164   : > { %5549 = vmatmul.mubr.bf16.gmra.mrb[40].mxu1 %v849_v0  ;;  %v838_v0 = vld [vmem:[#allocation2 + $0x141] sm:$0xf] }
 0x165   : > { %5945 = vmatmul.mubr.bf16.gmra.mrb[36].mxu0 %v2159_v61  ;;  %5552 = vmatprep.mubr.msk.bf16.mxu1 %vm7549_vm0, %v8038_v3  ;;  %v8145_v61 = vpack.c.bf16 %v2492_v60, %v2491_v59  ;;  %v859_v62 = vpack.c.bf16 %v838_v0, %v838_v0  ;;  %v768_v59 = vpack.c.bf16 %v735_v56, %v734_v54  ;;  %v736_v0 = vld [vmem:[#allocation2 + $0x80] sm:$0xff]  ;;  %v755_v56 = vld [vmem:[#allocation2 + $0x118] sm:$0xff] }
 0x166   : > { %5948 = vmatprep.mubr.msk.bf16.mxu0 %vm7549_vm0, %v8038_v3 }
 0x16c   : > { %5553 = vmatmul.mubr.bf16.gmra.mrb[44].mxu1 %v850_v4  ;;  %v761_v4 = vpack.c.bf16 %v8038_v3, %v8038_v3 }
 0x16d   : > { %5949 = vmatmul.mubr.bf16.gmra.mrb[40].mxu0 %v2160_v5  ;;  %5556 = vmatprep.mubr.msk.bf16.mxu1 %vm7549_vm0, %v8038_v3  ;;  %v2495_v5 = vld [vmem:[#allocation2 + $0xa4] sm:$0xff] }
 0x16e   : > { %6008 = vmatprep.mubr.msk.bf16.mxu0 %vm7549_vm0, %v8038_v3  ;;  %v8161_v8 = vpack.c.bf16 %v2496_v6, %v2495_v5  ;;  %v8225_v5 = vpack.c.bf16 %v2512_v1, %v2511_v63  ;;  %v738_v6 = vld [vmem:[#allocation2 + $0x90] sm:$0xff]  ;;  %v760_v63 = vld [vmem:[#allocation2 + $0x140] sm:$0xf] }
 0x16f   : > { %v1373_v1 = vld [vmem:[#allocation2 + $0x2] sm:$0xff] }
 0x174   : > { %5557 = vmatmul.mubr.bf16.gmra.mrb[48].mxu1 %v851_v11  ;;  %v2498_v11 = vld [vmem:[#allocation2 + $0xbc] sm:$0xff] }
 0x175   : > { %6009 = vmatmul.mubr.bf16.vlgmr.msra.gmra.mrb[0].mxu0 %v2518_v10  ;;  %5560 = vmatprep.mubr.msk.bf16.mxu1 %vm7549_vm0, %v8038_v3  ;;  %v2497_v10 = vld [vmem:[#allocation2 + $0xb4] sm:$0xff] }
 0x176   : > { %6093 = vmatpush3.bf16.msra.mxu0 %v7241_v12  ;;  %6012 = vmatprep.mubr.msk.bf16.mxu0 %vm7549_vm0, %v8038_v3  ;;  %v7254_v12 = vld [vmem:[#allocation8 + $0x90] sm:$0xff]   ;;  %v8169_v13 = vpack.c.bf16 %v2498_v11, %v2497_v10 }
 0x177   : > { %6094 = vmatprep.subr.bf16.mxu0 %v8038_v3  ;;  %v2514_v10 = vld [vmem:[#allocation2 + $0x13c] sm:$0xff] }
 0x17a   : > { %6095 = vmatpush3.bf16.msra.mxu0 %v7243_v15  ;;  %v724_v15 = vld [vmem:[#allocation2 + $0x20] sm:$0xff] }
 0x17b   : > { %6096 = vmatprep.subr.bf16.mxu0 %v8038_v3 }
 0x17c   : > { %5561 = vmatmul.mubr.bf16.gmra.mrb[52].mxu1 %v852_v16  ;;  %v725_v16 = vld [vmem:[#allocation2 + $0x28] sm:$0xff] }
 0x17d   : > { %6013 = vmatmul.mubr.bf16.gmra.mrb[4].mxu0 %v8096_v20  ;;  %5564 = vmatprep.mubr.msk.bf16.mxu1 %vm7549_vm0, %v8038_v3 }
 0x17e   : > { %6016 = vmatprep.mubr.msk.bf16.mxu0 %vm7549_vm0, %v8038_v3  ;;  %6097 = vmatpush3.bf16.msra.mxu0 %v7245_v19  ;;  %v763_v19 = vpack.c.bf16 %v725_v16, %v724_v15  ;;  %v2516_v15 = vld [vmem:[#allocation2 + $0x14c] sm:$0xff]  ;;  %v740_v16 = vld [vmem:[#allocation2 + $0xa0] sm:$0xff] }
 0x17f   : > { %6098 = vmatprep.subr.bf16.mxu0 %v8038_v3 }
 0x182   : > { %6099 = vmatpush3.bf16.msra.mxu0 %v7247_v23  ;;  %v7260_v23 = vld [vmem:[#allocation8 + $0xa8] sm:$0xff]  }
 0x183   : > { %6100 = vmatprep.subr.bf16.mxu0 %v8038_v3 }
 0x184   : > { %5565 = vmatmul.mubr.bf16.gmra.mrb[56].mxu1 %v853_v24  ;;  %v727_v24 = vld [vmem:[#allocation2 + $0x38] sm:$0xff] }
 0x185   : > { %6017 = vmatmul.mubr.bf16.gmra.mrb[8].mxu0 %v8105_v28  ;;  %5568 = vmatprep.mubr.msk.bf16.mxu1 %vm7549_vm0, %v8038_v3 }
 0x186   : > { %6020 = vmatprep.mubr.msk.bf16.mxu0 %vm7549_vm0, %v8038_v3  ;;  %6101 = vmatpush3.bf16.msra.mxu0 %v7249_v27  ;;  %v726_v27 = vld [vmem:[#allocation2 + $0x30] sm:$0xff] }
 0x187   : > { %6102 = vmatprep.subr.bf16.mxu0 %v8038_v3  ;;  %v764_v29 = vpack.c.bf16 %v727_v24, %v726_v27  ;;  %v743_v24 = vld [vmem:[#allocation2 + $0xb8] sm:$0xff]  ;;  %v744_v27 = vld [vmem:[#allocation2 + $0xc0] sm:$0xff] }
 0x18a   : > { %6103 = vmatpush3.bf16.msra.mxu0 %v7251_v31  ;;  %v8187_v31 = vpack.c.bf16 %v2502_v26, %v2501_v25 }
 0x18b   : > { %6104 = vmatprep.subr.bf16.mxu0 %v8038_v3 }
 0x18c   : > { %5569 = vmatmul.mubr.bf16.gmra.mrb[60].mxu1 %v854_v32  ;;  %v728_v32 = vld [vmem:[#allocation2 + $0x40] sm:$0xff] }
 0x18d   : > { %6021 = vmatmul.mubr.bf16.gmra.mrb[12].mxu0 %v8114_v36  ;;  %5572 = vmatprep.mubr.msk.bf16.mxu1 %vm7549_vm0, %v8038_v3  ;;  %v765_v37 = vpack.c.bf16 %v729_v33, %v728_v32  ;;  %v7257_v32 = vld [vmem:[#allocation8 + $0x1c0] sm:$0xff]   ;;  %v7259_v33 = vld [vmem:[#allocation8 + $0x1c8] sm:$0xff]  }
 0x18e   : > { %6024 = vmatprep.mubr.msk.bf16.mxu0 %vm7549_vm0, %v8038_v3  ;;  %6105 = vmatpush3.bf16.msra.mxu0 %v7253_v35  ;;  %v2504_v35 = vld [vmem:[#allocation2 + $0xec] sm:$0xff] }
 0x18f   : > { %6106 = vmatprep.subr.bf16.mxu0 %v8038_v3  ;;  %v8196_v38 = vpack.c.bf16 %v2504_v35, %v2503_v34  ;;  %v746_v34 = vld [vmem:[#allocation2 + $0xd0] sm:$0xff]  ;;  %v747_v35 = vld [vmem:[#allocation2 + $0xd8] sm:$0xff] }
 0x192   : > { %6107 = vmatpush3.bf16.msra.mxu0 %v7255_v39  ;;  %v7264_v39 = vld [vmem:[#allocation8 + $0xb8] sm:$0xff]  }
 0x193   : > { %6192 = vmatprep.subr.bf16.mxu0 %v8038_v3 }
 0x194   : > { %5573 = vmatmul.mubr.bf16.gmra.mrb[64].mxu1 %v855_v40  ;;  %v730_v40 = vld [vmem:[#allocation2 + $0x50] sm:$0xff] }
 0x195   : > { %6025 = vmatmul.mubr.bf16.gmra.mrb[16].mxu0 %v8123_v43  ;;  %5576 = vmatprep.mubr.msk.bf16.mxu1 %vm7549_vm0, %v8038_v3  ;;  %v766_v45 = vpack.c.bf16 %v731_v41, %v730_v40  ;;  %v748_v40 = vld [vmem:[#allocation2 + $0xe0] sm:$0xff]  ;;  %v749_v41 = vld [vmem:[#allocation2 + $0xe8] sm:$0xff] }
 0x196   : > { %6028 = vmatprep.mubr.msk.bf16.mxu0 %vm7549_vm0, %v8038_v3 }
 0x19c   : > { %5577 = vmatmul.mubr.bf16.gmra.mrb[68].mxu1 %v856_v46  ;;  %v8204_v46 = vpack.c.bf16 %v2506_v44, %v2505_v42  ;;  %v775_v42 = vpack.c.bf16 %v749_v41, %v748_v40  ;;  %v7265_v44 = vld [vmem:[#allocation8 + $0x1e0] sm:$0xff]   ;;  %v2884_v41 = vld [vmem:[#allocation2 + $0x15c] sm:$0xff] }
 0x19d   : > { %6029 = vmatmul.mubr.bf16.gmra.mrb[20].mxu0 %v8131_v49  ;;  %5580 = vmatprep.mubr.msk.bf16.mxu1 %vm7549_vm0, %v8038_v3 }
 0x19e   : > { %6032 = vmatprep.mubr.msk.bf16.mxu0 %vm7549_vm0, %v8038_v3 }
 0x1a4   : > { %5581 = vmatmul.mubr.bf16.gmra.mrb[72].mxu1 %v857_v52  ;;  %v767_v52 = vpack.c.bf16 %v733_v48, %v732_v47  ;;  %v751_v47 = vld [vmem:[#allocation2 + $0xf8] sm:$0xff] }
 0x1a5   : > { %6033 = vmatmul.mubr.bf16.gmra.mrb[24].mxu0 %v8138_v55  ;;  %5584 = vmatprep.mubr.msk.bf16.mxu1 %vm7549_vm0, %v8038_v3 }
 0x1a6   : > { %6036 = vmatprep.mubr.msk.bf16.mxu0 %vm7549_vm0, %v8038_v3 }
 0x1ac   : > { %5585 = vmatmul.mubr.bf16.gmra.mrb[76].mxu1 %v858_v58  ;;  %v2510_v58 = vld [vmem:[#allocation2 + $0x11c] sm:$0xff] }
 0x1ad   : > { %6037 = vmatmul.mubr.bf16.gmra.mrb[28].mxu0 %v8145_v61  ;;  %5588 = vmatprep.mubr.msk.bf16.mxu1 %vm7549_vm0, %v8038_v3  ;;  %v8218_v60 = vpack.c.bf16 %v2510_v58, %v2509_v57  ;;  %v756_v58 = vld [vmem:[#allocation2 + $0x120] sm:$0xff] }
 0x1ae   : > { %6040 = vmatprep.mubr.msk.bf16.mxu0 %vm7549_vm0, %v8038_v3 }
 0x1b4   : > { %5589 = vmatmul.mubr.bf16.gmra.mrb[80].mxu1 %v859_v62  ;;  %v737_v62 = vld [vmem:[#allocation2 + $0x88] sm:$0xff] }
 0x1b5   : > { %6041 = vmatmul.mubr.bf16.gmra.mrb[32].mxu0 %v8152_v2  ;;  %5608 = vmatprep.mubr.msk.bf16.mxu1 %vm7549_vm0, %v8038_v3 }
 0x1b6   : > { %6044 = vmatprep.mubr.msk.bf16.mxu0 %vm7549_vm0, %v8038_v3 }
 0x1bc   : > { %5609 = vmatmul.mubr.bf16.vlgmr.msra.gmra.mrb[0].mxu1 %v761_v4 }
 0x1bd   : > { %6045 = vmatmul.mubr.bf16.gmra.mrb[36].mxu0 %v8161_v8  ;;  %5612 = vmatprep.mubr.msk.bf16.mxu1 %vm7549_vm0, %v8038_v3 }
 0x1be   : > { %6048 = vmatprep.mubr.msk.bf16.mxu0 %vm7549_vm0, %v8038_v3  ;;  %5693 = vmatpush3.bf16.msra.mxu1 %v7250_v7  ;;  %v739_v7 = vld [vmem:[#allocation2 + $0x98] sm:$0xff] }
 0x1bf   : > { %5694 = vmatprep.subr.bf16.mxu1 %v8038_v3  ;;  %v770_v11 = vpack.c.bf16 %v739_v7, %v738_v6  ;;  %v7266_v6 = vld [vmem:[#allocation8 + $0xc0] sm:$0xff]  }
 0x1c0   : > { %v1375_v7 = vld [vmem:[#allocation2 + $0x12] sm:$0xff] }
 0x1c2   : > { %5695 = vmatpush3.bf16.msra.mxu1 %v7252_v9  ;;  %v2513_v9 = vld [vmem:[#allocation2 + $0x134] sm:$0xff] }
 0x1c3   : > { %5696 = vmatprep.subr.bf16.mxu1 %v8038_v3 }
 0x1c4   : > { %5613 = vmatmul.mubr.bf16.gmra.mrb[4].mxu1 %v761_v4  ;;  %v769_v4 = vpack.c.bf16 %v737_v62, %v736_v0  ;;  %v758_v0 = vld [vmem:[#allocation2 + $0x130] sm:$0xff] }
 0x1c5   : > { %6049 = vmatmul.mubr.bf16.gmra.mrb[40].mxu0 %v8169_v13  ;;  %5616 = vmatprep.mubr.msk.bf16.mxu1 %vm7549_vm0, %v8038_v3 }
 0x1c6   : > { %6052 = vmatprep.mubr.msk.bf16.mxu0 %vm7549_vm0, %v8038_v3  ;;  %5697 = vmatpush3.bf16.msra.mxu1 %v7254_v12  ;;  %v8232_v12 = vpack.c.bf16 %v2514_v10, %v2513_v9  ;;  %v1376_v9 = vld [vmem:[#allocation2 + $0x1a] sm:$0xff] }
 0x1c7   : > { %5698 = vmatprep.subr.bf16.mxu1 %v8038_v3  ;;  %v8309_v10 = vpack.c.bf16 %v1376_v9, %v1375_v7  ;;  %v3217_v7 = vld [vmem:[#allocation2 + $0x45] sm:$0xff]  ;;  %v3218_v9 = vld [vmem:[#allocation2 + $0x4d] sm:$0xff] }
 0x1ca   : > { %5699 = vmatpush3.bf16.msra.mxu1 %v7256_v14  ;;  %v2515_v14 = vld [vmem:[#allocation2 + $0x144] sm:$0xff] }
 0x1cb   : > { %5700 = vmatprep.subr.bf16.mxu1 %v8038_v3  ;;  %v8239_v18 = vpack.c.bf16 %v2516_v15, %v2515_v14  ;;  %v1377_v14 = vld [vmem:[#allocation2 + $0x22] sm:$0xff]  ;;  %v1378_v15 = vld [vmem:[#allocation2 + $0x2a] sm:$0xff] }
 0x1cc   : > { %5617 = vmatmul.mubr.bf16.gmra.mrb[8].mxu1 %v763_v19  ;;  %v771_v19 = vpack.c.bf16 %v741_v17, %v740_v16  ;;  %v8319_v16 = vpack.c.bf16 %v1378_v15, %v1377_v14  ;;  %v7274_v17 = vld [vmem:[#allocation8 + $0xe0] sm:$0xff]   ;;  %v7282_v14 = vld [vmem:[#allocation8 + $0x228] sm:$0xff]  }
 0x1cd   : > { %6053 = vmatmul.mubr.bf16.gmra.mrb[44].mxu0 %v8178_v22  ;;  %5620 = vmatprep.mubr.msk.bf16.mxu1 %vm7549_vm0, %v8038_v3  ;;  %v1403_v15 = vld [vmem:[#allocation2 + $0xf2] sm:$0xff] }
 0x1ce   : > { %6056 = vmatprep.mubr.msk.bf16.mxu0 %vm7549_vm0, %v8038_v3  ;;  %5701 = vmatpush3.bf16.msra.mxu1 %v7258_v21  ;;  %v2517_v21 = vld [vmem:[#allocation2 + $0x154] sm:$0xf] }
 0x1cf   : > { %5702 = vmatprep.subr.bf16.mxu1 %v8038_v3  ;;  %v2538_v25 = vpack.c.bf16 %v2517_v21, %v2517_v21  ;;  %v1380_v21 = vld [vmem:[#allocation2 + $0x3a] sm:$0xff] }
 0x1d2   : > { %5703 = vmatpush3.bf16.msra.mxu1 %v7260_v23  ;;  %v742_v23 = vld [vmem:[#allocation2 + $0xb0] sm:$0xff] }
 0x1d3   : > { %5704 = vmatprep.subr.bf16.mxu1 %v8038_v3  ;;  %v772_v26 = vpack.c.bf16 %v743_v24, %v742_v23  ;;  %v7278_v24 = vld [vmem:[#allocation8 + $0xf0] sm:$0xff]  }
 0x1d4   : > { %5621 = vmatmul.mubr.bf16.gmra.mrb[12].mxu1 %v764_v29  ;;  %v745_v29 = vld [vmem:[#allocation2 + $0xc8] sm:$0xff] }
 0x1d5   : > { %6057 = vmatmul.mubr.bf16.gmra.mrb[48].mxu0 %v8187_v31  ;;  %5624 = vmatprep.mubr.msk.bf16.mxu1 %vm7549_vm0, %v8038_v3 }
 0x1d6   : > { %6060 = vmatprep.mubr.msk.bf16.mxu0 %vm7549_vm0, %v8038_v3  ;;  %5705 = vmatpush3.bf16.msra.mxu1 %v7262_v30  ;;  %v773_v30 = vpack.c.bf16 %v745_v29, %v744_v27  ;;  %v1383_v27 = vld [vmem:[#allocation2 + $0x52] sm:$0xff]  ;;  %v1384_v29 = vld [vmem:[#allocation2 + $0x5a] sm:$0xff] }
 0x1d7   : > { %5706 = vmatprep.subr.bf16.mxu1 %v8038_v3 }
 0x1da   : > { %5707 = vmatpush3.bf16.msra.mxu1 %v7264_v39  ;;  %v7261_v39 = vld [vmem:[#allocation8 + $0x1d0] sm:$0xff]  }
 0x1db   : > { %5792 = vmatprep.subr.bf16.mxu1 %v8038_v3 }
 0x1dc   : > { %5625 = vmatmul.mubr.bf16.gmra.mrb[16].mxu1 %v765_v37  ;;  %v774_v37 = vpack.c.bf16 %v747_v35, %v746_v34  ;;  %v1388_v34 = vld [vmem:[#allocation2 + $0x7a] sm:$0xff] }
 0x1dd   : > { %6061 = vmatmul.mubr.bf16.gmra.mrb[52].mxu0 %v8196_v38  ;;  %5628 = vmatprep.mubr.msk.bf16.mxu1 %vm7549_vm0, %v8038_v3 }
 0x1de   : > { %6064 = vmatprep.mubr.msk.bf16.mxu0 %vm7549_vm0, %v8038_v3 }
 0x1e4   : > { %5629 = vmatmul.mubr.bf16.gmra.mrb[20].mxu1 %v766_v45  ;;  %v750_v45 = vld [vmem:[#allocation2 + $0xf0] sm:$0xff] }
 0x1e5   : > { %6065 = vmatmul.mubr.bf16.gmra.mrb[56].mxu0 %v8204_v46  ;;  %5632 = vmatprep.mubr.msk.bf16.mxu1 %vm7549_vm0, %v8038_v3  ;;  %v776_v48 = vpack.c.bf16 %v751_v47, %v750_v45  ;;  %v1395_v47 = vld [vmem:[#allocation2 + $0xb2] sm:$0xff] }
 0x1e6   : > { %6068 = vmatprep.mubr.msk.bf16.mxu0 %vm7549_vm0, %v8038_v3 }
 0x1ec   : > { %5633 = vmatmul.mubr.bf16.gmra.mrb[24].mxu1 %v767_v52  ;;  %v753_v52 = vld [vmem:[#allocation2 + $0x108] sm:$0xff] }
 0x1ed   : > { %6069 = vmatmul.mubr.bf16.gmra.mrb[60].mxu0 %v8211_v53  ;;  %5636 = vmatprep.mubr.msk.bf16.mxu1 %vm7549_vm0, %v8038_v3  ;;  %v777_v54 = vpack.c.bf16 %v753_v52, %v752_v51  ;;  %v1397_v51 = vld [vmem:[#allocation2 + $0xc2] sm:$0xff]  ;;  %v1398_v52 = vld [vmem:[#allocation2 + $0xca] sm:$0xff] }
 0x1ee   : > { %6072 = vmatprep.mubr.msk.bf16.mxu0 %vm7549_vm0, %v8038_v3 }
 0x1f4   : > { %5637 = vmatmul.mubr.bf16.gmra.mrb[28].mxu1 %v768_v59 }
 0x1f5   : > { %6073 = vmatmul.mubr.bf16.gmra.mrb[64].mxu0 %v8218_v60  ;;  %5640 = vmatprep.mubr.msk.bf16.mxu1 %vm7549_vm0, %v8038_v3 }
 0x1f6   : > { %6076 = vmatprep.mubr.msk.bf16.mxu0 %vm7549_vm0, %v8038_v3 }
 0x1fc   : > { %5641 = vmatmul.mubr.bf16.gmra.mrb[32].mxu1 %v769_v4  ;;  %v1374_v4 = vld [vmem:[#allocation2 + $0xa] sm:$0xff] }
 0x1fd   : > { %6077 = vmatmul.mubr.bf16.gmra.mrb[68].mxu0 %v8225_v5  ;;  %5644 = vmatprep.mubr.msk.bf16.mxu1 %vm7549_vm0, %v8038_v3 }
 0x1fe   : > { %6080 = vmatprep.mubr.msk.bf16.mxu0 %vm7549_vm0, %v8038_v3 }
 0x204   : > { %5645 = vmatmul.mubr.bf16.gmra.mrb[36].mxu1 %v770_v11  ;;  %v7270_v11 = vld [vmem:[#allocation8 + $0xd0] sm:$0xff]  }
 0x205   : > { %6081 = vmatmul.mubr.bf16.gmra.mrb[72].mxu0 %v8232_v12  ;;  %5648 = vmatprep.mubr.msk.bf16.mxu1 %vm7549_vm0, %v8038_v3 }
 0x206   : > { %6084 = vmatprep.mubr.msk.bf16.mxu0 %vm7549_vm0, %v8038_v3 }
 0x20c   : > { %5649 = vmatmul.mubr.bf16.gmra.mrb[40].mxu1 %v771_v19  ;;  %v1379_v19 = vld [vmem:[#allocation2 + $0x32] sm:$0xff] }
 0x20d   : > { %6085 = vmatmul.mubr.bf16.gmra.mrb[76].mxu0 %v8239_v18  ;;  %5652 = vmatprep.mubr.msk.bf16.mxu1 %vm7549_vm0, %v8038_v3  ;;  %v8329_v23 = vpack.c.bf16 %v1380_v21, %v1379_v19  ;;  %v3220_v19 = vld [vmem:[#allocation2 + $0x5d] sm:$0xff] }
 0x20e   : > { %6088 = vmatprep.mubr.msk.bf16.mxu0 %vm7549_vm0, %v8038_v3 }
 0x214   : > { %5653 = vmatmul.mubr.bf16.gmra.mrb[44].mxu1 %v772_v26 }
 0x215   : > { %6089 = vmatmul.mubr.bf16.gmra.mrb[80].mxu0 %v2538_v25  ;;  %5656 = vmatprep.mubr.msk.bf16.mxu1 %vm7549_vm0, %v8038_v3  ;;  %v1382_v25 = vld [vmem:[#allocation2 + $0x4a] sm:$0xff] }
 0x216   : > { %6108 = vmatprep.mubr.msk.bf16.mxu0 %vm7549_vm0, %v8038_v3 }
 0x21c   : > { %5657 = vmatmul.mubr.bf16.gmra.mrb[48].mxu1 %v773_v30  ;;  %v8347_v30 = vld [vmem:[#allocation2] sm:$0xff] }
 0x21d   : > { %6109 = vmatmul.mubr.bf16.vlgmr.msra.gmra.mrb[0].mxu0 %v8096_v20  ;;  %5660 = vmatprep.mubr.msk.bf16.mxu1 %vm7549_vm0, %v8038_v3  ;;  %v7263_v20 = vld [vmem:[#allocation8 + $0x1d8] sm:$0xff]  }
 0x21e   : > { %6193 = vmatpush3.bf16.msra.mxu0 %v7257_v32  ;;  %6112 = vmatprep.mubr.msk.bf16.mxu0 %vm7549_vm0, %v8038_v3  ;;  %v8350_v32 = vpack.c.bf16 %v1384_v29, %v1383_v27  ;;  %v1406_v27 = vld [vmem:[#allocation2 + $0x10a] sm:$0xff] }
 0x21f   : > { %6194 = vmatprep.subr.bf16.mxu0 %v8038_v3  ;;  %v3221_v29 = vld [vmem:[#allocation2 + $0x65] sm:$0xff] }
 0x222   : > { %6195 = vmatpush3.bf16.msra.mxu0 %v7259_v33 }
 0x223   : > { %6196 = vmatprep.subr.bf16.mxu0 %v8038_v3 }
 0x224   : > { %5661 = vmatmul.mubr.bf16.gmra.mrb[52].mxu1 %v774_v37  ;;  %v1390_v37 = vld [vmem:[#allocation2 + $0x8a] sm:$0xff] }
 0x225   : > { %6113 = vmatmul.mubr.bf16.gmra.mrb[4].mxu0 %v8105_v28  ;;  %5664 = vmatprep.mubr.msk.bf16.mxu1 %vm7549_vm0, %v8038_v3  ;;  %v7267_v28 = vld [vmem:[#allocation8 + $0x1e8] sm:$0xff]  }
 0x226   : > { %6116 = vmatprep.mubr.msk.bf16.mxu0 %vm7549_vm0, %v8038_v3  ;;  %6197 = vmatpush3.bf16.msra.mxu0 %v7261_v39 }
 0x227   : > { %6198 = vmatprep.subr.bf16.mxu0 %v8038_v3 }
 0x22a   : > { %6199 = vmatpush3.bf16.msra.mxu0 %v7263_v20  ;;  %v1392_v20 = vld [vmem:[#allocation2 + $0x9a] sm:$0xff] }
 0x22b   : > { %6200 = vmatprep.subr.bf16.mxu0 %v8038_v3 }
 0x22c   : > { %5665 = vmatmul.mubr.bf16.gmra.mrb[56].mxu1 %v775_v42  ;;  %v1393_v42 = vld [vmem:[#allocation2 + $0xa2] sm:$0xff] }
 0x22d   : > { %6117 = vmatmul.mubr.bf16.gmra.mrb[8].mxu0 %v8114_v36  ;;  %5668 = vmatprep.mubr.msk.bf16.mxu1 %vm7549_vm0, %v8038_v3  ;;  %v7271_v36 = vld [vmem:[#allocation8 + $0x1f8] sm:$0xff]  }
 0x22e   : > { %6120 = vmatprep.mubr.msk.bf16.mxu0 %vm7549_vm0, %v8038_v3  ;;  %6201 = vmatpush3.bf16.msra.mxu0 %v7265_v44  ;;  %v1394_v44 = vld [vmem:[#allocation2 + $0xaa] sm:$0xff] }
 0x22f   : > { %6202 = vmatprep.subr.bf16.mxu0 %v8038_v3  ;;  %v8390_v45 = vpack.c.bf16 %v1394_v44, %v1393_v42  ;;  %v1410_v42 = vld [vmem:[#allocation2 + $0x12a] sm:$0xff] }
 0x230   : > { %v3225_v44 = vld [vmem:[#allocation2 + $0x85] sm:$0xff] }
 0x232   : > { %6203 = vmatpush3.bf16.msra.mxu0 %v7267_v28 }
 0x233   : > { %6204 = vmatprep.subr.bf16.mxu0 %v8038_v3 }
 0x234   : > { %5669 = vmatmul.mubr.bf16.gmra.mrb[60].mxu1 %v776_v48  ;;  %v1396_v48 = vld [vmem:[#allocation2 + $0xba] sm:$0xff] }
 0x235   : > { %6121 = vmatmul.mubr.bf16.gmra.mrb[12].mxu0 %v8123_v43  ;;  %5672 = vmatprep.mubr.msk.bf16.mxu1 %vm7549_vm0, %v8038_v3  ;;  %v754_v43 = vld [vmem:[#allocation2 + $0x110] sm:$0xff] }
 0x236   : > { %6124 = vmatprep.mubr.msk.bf16.mxu0 %vm7549_vm0, %v8038_v3  ;;  %6205 = vmatpush3.bf16.msra.mxu0 %v7269_v50  ;;  %v778_v57 = vpack.c.bf16 %v755_v56, %v754_v43  ;;  %v3214_v43 = vld [vmem:[#allocation2 + $0x2d] sm:$0xff]  ;;  %v8404_v56 = vpack.c.bf16 %v1398_v52, %v1397_v51  ;;  %v3227_v51 = vld [vmem:[#allocation2 + $0x95] sm:$0xff]  ;;  %v3228_v52 = vld [vmem:[#allocation2 + $0x9d] sm:$0xff] }
 0x237   : > { %6206 = vmatprep.subr.bf16.mxu0 %v8038_v3 }
 0x23a   : > { %6207 = vmatpush3.bf16.msra.mxu0 %v7271_v36  ;;  %v8397_v36 = vpack.c.bf16 %v1396_v48, %v1395_v47  ;;  %v1411_v48 = vld [vmem:[#allocation2 + $0x132] sm:$0xff] }
 0x23b   : > { %6292 = vmatprep.subr.bf16.mxu0 %v8038_v3 }
 0x23c   : > { %5673 = vmatmul.mubr.bf16.gmra.mrb[64].mxu1 %v777_v54  ;;  %v3213_v54 = vld [vmem:[#allocation2 + $0x25] sm:$0xff] }
 0x23d   : > { %6125 = vmatmul.mubr.bf16.gmra.mrb[16].mxu0 %v8131_v49  ;;  %5676 = vmatprep.mubr.msk.bf16.mxu1 %vm7549_vm0, %v8038_v3  ;;  %v757_v49 = vld [vmem:[#allocation2 + $0x128] sm:$0xff] }
 0x23e   : > { %6128 = vmatprep.mubr.msk.bf16.mxu0 %vm7549_vm0, %v8038_v3  ;;  %v779_v59 = vpack.c.bf16 %v757_v49, %v756_v58  ;;  %v3254_v58 = vpack.c.bf16 %v3214_v43, %v3213_v54  ;;  %v7275_v49 = vld [vmem:[#allocation8 + $0x208] sm:$0xff]   ;;  %v3261_v43 = vpack.c.bf16 %v3228_v52, %v3227_v51  ;;  %v3250_v51 = vld [vmem:[#allocation2 + $0x14d] sm:$0xff] }
 0x23f   : > { %v4163_v52 = vld [vmem:[#allocation9 + $0x40] sm:$0xff] }
 0x244   : > { %5677 = vmatmul.mubr.bf16.gmra.mrb[68].mxu1 %v778_v57  ;;  %v7273_v57 = vld [vmem:[#allocation8 + $0x200] sm:$0xff]  }
 0x245   : > { %6129 = vmatmul.mubr.bf16.gmra.mrb[20].mxu0 %v8138_v55  ;;  %5680 = vmatprep.mubr.msk.bf16.mxu1 %vm7549_vm0, %v8038_v3  ;;  %v759_v55 = vld [vmem:[#allocation2 + $0x138] sm:$0xff] }
 0x246   : > { %6132 = vmatprep.mubr.msk.bf16.mxu0 %vm7549_vm0, %v8038_v3  ;;  %v780_v62 = vpack.c.bf16 %v759_v55, %v758_v0  ;;  %v1400_v0 = vld [vmem:[#allocation2 + $0xda] sm:$0xff] }
 0x247   : > { %v3215_v55 = vld [vmem:[#allocation2 + $0x35] sm:$0xff] }
 0x24c   : > { %5681 = vmatmul.mubr.bf16.gmra.mrb[72].mxu1 %v779_v59  ;;  %v1399_v59 = vld [vmem:[#allocation2 + $0xd2] sm:$0xff] }
 0x24d   : > { %6133 = vmatmul.mubr.bf16.gmra.mrb[24].mxu0 %v8145_v61  ;;  %5684 = vmatprep.mubr.msk.bf16.mxu1 %vm7549_vm0, %v8038_v3  ;;  %v781_v61 = vpack.c.bf16 %v760_v63, %v760_v63  ;;  %v8412_v63 = vpack.c.bf16 %v1400_v0, %v1399_v59 }
 0x24e   : > { %6136 = vmatprep.mubr.msk.bf16.mxu0 %vm7549_vm0, %v8038_v3 }
 0x254   : > { %5685 = vmatmul.mubr.bf16.gmra.mrb[76].mxu1 %v780_v62  ;;  %v3216_v62 = vld [vmem:[#allocation2 + $0x3d] sm:$0xff] }
 0x255   : > { %6137 = vmatmul.mubr.bf16.gmra.mrb[28].mxu0 %v8152_v2  ;;  %5688 = vmatprep.mubr.msk.bf16.mxu1 %vm7549_vm0, %v8038_v3  ;;  %v1414_v2 = vpack.c.bf16 %v1374_v4, %v1373_v1  ;;  %v3255_v1 = vpack.c.bf16 %v3216_v62, %v3215_v55  ;;  %v7279_v4 = vld [vmem:[#allocation8 + $0x218] sm:$0xff]   ;;  %v3231_v55 = vld [vmem:[#allocation2 + $0xb5] sm:$0xff]  ;;  %v3232_v62 = vld [vmem:[#allocation2 + $0xbd] sm:$0xff] }
 0x256   : > { %6140 = vmatprep.mubr.msk.bf16.mxu0 %vm7549_vm0, %v8038_v3 }
 0x25c   : > { %5689 = vmatmul.mubr.bf16.gmra.mrb[80].mxu1 %v781_v61  ;;  %v7277_v61 = vld [vmem:[#allocation8 + $0x210] sm:$0xff]  }
 0x25d   : > { %6141 = vmatmul.mubr.bf16.gmra.mrb[32].mxu0 %v8161_v8  ;;  %5708 = vmatprep.mubr.msk.bf16.mxu1 %vm7549_vm0, %v8038_v3  ;;  %v7268_v8 = vld [vmem:[#allocation8 + $0xc8] sm:$0xff]  }
 0x25e   : > { %6144 = vmatprep.mubr.msk.bf16.mxu0 %vm7549_vm0, %v8038_v3 }
 0x264   : > { %5709 = vmatmul.mubr.bf16.vlgmr.msra.gmra.mrb[0].mxu1 %v1414_v2  ;;  %v1401_v2 = vld [vmem:[#allocation2 + $0xe2] sm:$0xff] }
 0x265   : > { %6145 = vmatmul.mubr.bf16.gmra.mrb[36].mxu0 %v8169_v13  ;;  %5712 = vmatprep.mubr.msk.bf16.mxu1 %vm7549_vm0, %v8038_v3  ;;  %v7272_v13 = vld [vmem:[#allocation8 + $0xd8] sm:$0xff]  }
 0x266   : > { %6148 = vmatprep.mubr.msk.bf16.mxu0 %vm7549_vm0, %v8038_v3  ;;  %5793 = vmatpush3.bf16.msra.mxu1 %v7266_v6  ;;  %v1402_v6 = vld [vmem:[#allocation2 + $0xea] sm:$0xff] }
 0x267   : > { %5794 = vmatprep.subr.bf16.mxu1 %v8038_v3 }
 0x26a   : > { %5795 = vmatpush3.bf16.msra.mxu1 %v7268_v8  ;;  %v8421_v8 = vpack.c.bf16 %v1402_v6, %v1401_v2  ;;  %v3234_v2 = vld [vmem:[#allocation2 + $0xcd] sm:$0xff]  ;;  %v7288_v6 = vld [vmem:[#allocation8 + $0x108] sm:$0xff]  }
 0x26b   : > { %5796 = vmatprep.subr.bf16.mxu1 %v8038_v3 }
 0x26c   : > { %5713 = vmatmul.mubr.bf16.gmra.mrb[4].mxu1 %v8309_v10 }
 0x26d   : > { %6149 = vmatmul.mubr.bf16.gmra.mrb[40].mxu0 %v8178_v22  ;;  %5716 = vmatprep.mubr.msk.bf16.mxu1 %vm7549_vm0, %v8038_v3  ;;  %v7276_v22 = vld [vmem:[#allocation8 + $0xe8] sm:$0xff]  }
 0x26e   : > { %6152 = vmatprep.mubr.msk.bf16.mxu0 %vm7549_vm0, %v8038_v3  ;;  %5797 = vmatpush3.bf16.msra.mxu1 %v7270_v11  ;;  %v7281_v11 = vld [vmem:[#allocation8 + $0x220] sm:$0xff]  }
 0x26f   : > { %5798 = vmatprep.subr.bf16.mxu1 %v8038_v3 }
 0x272   : > { %5799 = vmatpush3.bf16.msra.mxu1 %v7272_v13  ;;  %v3256_v13 = vpack.c.bf16 %v3218_v9, %v3217_v7  ;;  %v3235_v9 = vld [vmem:[#allocation2 + $0xd5] sm:$0xff] }
 0x273   : > { %5800 = vmatprep.subr.bf16.mxu1 %v8038_v3 }
 0x274   : > { %5717 = vmatmul.mubr.bf16.gmra.mrb[8].mxu1 %v8319_v16 }
 0x275   : > { %6153 = vmatmul.mubr.bf16.gmra.mrb[44].mxu0 %v8187_v31  ;;  %5720 = vmatprep.mubr.msk.bf16.mxu1 %vm7549_vm0, %v8038_v3  ;;  %v1381_v31 = vld [vmem:[#allocation2 + $0x42] sm:$0xff] }
 0x276   : > { %6156 = vmatprep.mubr.msk.bf16.mxu0 %vm7549_vm0, %v8038_v3  ;;  %5801 = vmatpush3.bf16.msra.mxu1 %v7274_v17  ;;  %v8339_v26 = vpack.c.bf16 %v1382_v25, %v1381_v31  ;;  %v1404_v17 = vld [vmem:[#allocation2 + $0xfa] sm:$0xff]  ;;  %v7284_v25 = vld [vmem:[#allocation8 + $0x238] sm:$0xff]  }
 0x277   : > { %5802 = vmatprep.subr.bf16.mxu1 %v8038_v3  ;;  %v8430_v21 = vpack.c.bf16 %v1404_v17, %v1403_v15  ;;  %v3237_v15 = vld [vmem:[#allocation2 + $0xe5] sm:$0xff]  ;;  %v3238_v17 = vld [vmem:[#allocation2 + $0xed] sm:$0xff] }
 0x27a   : > { %5803 = vmatpush3.bf16.msra.mxu1 %v7276_v22  ;;  %v3219_v22 = vld [vmem:[#allocation2 + $0x55] sm:$0xff] }
 0x27b   : > { %5804 = vmatprep.subr.bf16.mxu1 %v8038_v3  ;;  %v3257_v31 = vpack.c.bf16 %v3220_v19, %v3219_v22  ;;  %v7292_v22 = vld [vmem:[#allocation8 + $0x128] sm:$0xff]   ;;  %v3266_v19 = vpack.c.bf16 %v3238_v17, %v3237_v15 }
 0x27c   : > { %5721 = vmatmul.mubr.bf16.gmra.mrb[12].mxu1 %v8329_v23  ;;  %v3584_v15 = vld [vmem:[#allocation2 + $0x3e] sm:$0xff] }
 0x27d   : > { %6157 = vmatmul.mubr.bf16.gmra.mrb[48].mxu0 %v8196_v38  ;;  %5724 = vmatprep.mubr.msk.bf16.mxu1 %vm7549_vm0, %v8038_v3  ;;  %v7280_v38 = vld [vmem:[#allocation8 + $0xf8] sm:$0xff]   ;;  %v4176_v17 = vld [vmem:[#allocation9 + $0xa8] sm:$0xff] }
 0x27e   : > { %6160 = vmatprep.mubr.msk.bf16.mxu0 %vm7549_vm0, %v8038_v3  ;;  %5805 = vmatpush3.bf16.msra.mxu1 %v7278_v24  ;;  %v7283_v24 = vld [vmem:[#allocation8 + $0x230] sm:$0xff]  }
 0x27f   : > { %5806 = vmatprep.subr.bf16.mxu1 %v8038_v3 }
 0x282   : > { %5807 = vmatpush3.bf16.msra.mxu1 %v7280_v38  ;;  %v1405_v38 = vld [vmem:[#allocation2 + $0x102] sm:$0xff] }
 0x283   : > { %6392 = vmatprep.subr.bf16.mxu1 %v8347_v30 }
 0x284   : > { %5725 = vmatmul.mubr.bf16.gmra.mrb[16].mxu1 %v8339_v26 }
 0x285   : > { %6161 = vmatmul.mubr.bf16.gmra.mrb[52].mxu0 %v8204_v46  ;;  %5728 = vmatprep.mubr.msk.bf16.mxu1 %vm7549_vm0, %v8038_v3  ;;  %v1386_v46 = vld [vmem:[#allocation2 + $0x6a] sm:$0xff] }
 0x286   : > { %6164 = vmatprep.mubr.msk.bf16.mxu0 %vm7549_vm0, %v8038_v3  ;;  %v1385_v3 = vld [vmem:[#allocation2 + $0x62] sm:$0xff] }
 0x287   : > { %v8358_v33 = vpack.c.bf16 %v1386_v46, %v1385_v3  ;;  %v3222_v3 = vld [vmem:[#allocation2 + $0x6d] sm:$0xff]  ;;  %v8439_v46 = vpack.c.bf16 %v1406_v27, %v1405_v38 }
 0x288   : > { %v3242_v27 = vld [vmem:[#allocation2 + $0x10d] sm:$0xff] }
 0x28c   : > { %5729 = vmatmul.mubr.bf16.gmra.mrb[20].mxu1 %v8350_v32 }
 0x28d   : > { %6165 = vmatmul.mubr.bf16.gmra.mrb[56].mxu0 %v8211_v53  ;;  %5732 = vmatprep.mubr.msk.bf16.mxu1 %vm7549_vm0, %v8347_v30  ;;  %v1387_v53 = vld [vmem:[#allocation2 + $0x72] sm:$0xff] }
 0x28e   : > { %6168 = vmatprep.mubr.msk.bf16.mxu0 %vm7549_vm0, %v8347_v30  ;;  %v8366_v35 = vpack.c.bf16 %v1388_v34, %v1387_v53  ;;  %v3258_v53 = vpack.c.bf16 %v3222_v3, %v3221_v29  ;;  %v1407_v34 = vld [vmem:[#allocation2 + $0x112] sm:$0xff]  ;;  %v3244_v3 = vld [vmem:[#allocation2 + $0x11d] sm:$0xff] }
 0x294   : > { %5733 = vmatmul.mubr.bf16.gmra.mrb[24].mxu1 %v8358_v33 }
 0x295   : > { %6169 = vmatmul.mubr.bf16.gmra.mrb[60].mxu0 %v8218_v60  ;;  %5736 = vmatprep.mubr.msk.bf16.mxu1 %vm7549_vm0, %v8347_v30  ;;  %v1389_v60 = vld [vmem:[#allocation2 + $0x82] sm:$0xff] }
 0x296   : > { %6172 = vmatprep.mubr.msk.bf16.mxu0 %vm7549_vm0, %v8347_v30  ;;  %v8374_v39 = vpack.c.bf16 %v1390_v37, %v1389_v60  ;;  %v1408_v60 = vld [vmem:[#allocation2 + $0x11a] sm:$0xff] }
 0x297   : > { %v3223_v37 = vld [vmem:[#allocation2 + $0x75] sm:$0xff] }
 0x29c   : > { %5737 = vmatmul.mubr.bf16.gmra.mrb[28].mxu1 %v8366_v35 }
 0x29d   : > { %6173 = vmatmul.mubr.bf16.gmra.mrb[64].mxu0 %v8225_v5  ;;  %5740 = vmatprep.mubr.msk.bf16.mxu1 %vm7549_vm0, %v8347_v30  ;;  %v1391_v5 = vld [vmem:[#allocation2 + $0x92] sm:$0xff] }
 0x29e   : > { %6176 = vmatprep.mubr.msk.bf16.mxu0 %vm7549_vm0, %v8347_v30  ;;  %v8382_v40 = vpack.c.bf16 %v1392_v20, %v1391_v5  ;;  %v3224_v5 = vld [vmem:[#allocation2 + $0x7d] sm:$0xff]  ;;  %v8446_v20 = vpack.c.bf16 %v1408_v60, %v1407_v34  ;;  %v4155_v60 = vld [vmem:[#allocation9] sm:$0xff] }
 0x29f   : > { %v4156_v34 = vld [vmem:[#allocation9 + $0x8] sm:$0xff] }
 0x2a4   : > { %5741 = vmatmul.mubr.bf16.gmra.mrb[32].mxu1 %v8374_v39 }
 0x2a5   : > { %6177 = vmatmul.mubr.bf16.gmra.mrb[68].mxu0 %v8232_v12  ;;  %5744 = vmatprep.mubr.msk.bf16.mxu1 %vm7549_vm0, %v8347_v30  ;;  %v2883_v12 = vld [vmem:[#allocation2 + $0x154] sm:$0xff] }
 0x2a6   : > { %6180 = vmatprep.mubr.msk.bf16.mxu0 %vm7549_vm0, %v8347_v30  ;;  %v2905_v28 = vpack.c.bf16 %v2884_v41, %v2883_v12  ;;  %v3259_v12 = vpack.c.bf16 %v3224_v5, %v3223_v37  ;;  %v1409_v41 = vld [vmem:[#allocation2 + $0x122] sm:$0xff]  ;;  %v3246_v5 = vld [vmem:[#allocation2 + $0x12d] sm:$0xff] }
 0x2a7   : > { %v3245_v37 = vld [vmem:[#allocation2 + $0x125] sm:$0xff] }
 0x2ac   : > { %5745 = vmatmul.mubr.bf16.gmra.mrb[36].mxu1 %v8382_v40 }
 0x2ad   : > { %6181 = vmatmul.mubr.bf16.gmra.mrb[72].mxu0 %v8239_v18  ;;  %5748 = vmatprep.mubr.msk.bf16.mxu1 %vm7549_vm0, %v8347_v30  ;;  %v2885_v18 = vld [vmem:[#allocation2 + $0x164] sm:$0xf] }
 0x2ae   : > { %6184 = vmatprep.mubr.msk.bf16.mxu0 %vm7549_vm0, %v8347_v30  ;;  %v2906_v50 = vpack.c.bf16 %v2885_v18, %v2885_v18  ;;  %v8453_v18 = vpack.c.bf16 %v1410_v42, %v1409_v41  ;;  %v4158_v41 = vld [vmem:[#allocation9 + $0x18] sm:$0xff]  ;;  %v4159_v42 = vld [vmem:[#allocation9 + $0x20] sm:$0xff] }
 0x2b4   : > { %5749 = vmatmul.mubr.bf16.gmra.mrb[40].mxu1 %v8390_v45 }
 0x2b5   : > { %6185 = vmatmul.mubr.bf16.gmra.mrb[76].mxu0 %v2905_v28  ;;  %5752 = vmatprep.mubr.msk.bf16.mxu1 %vm7549_vm0, %v8347_v30  ;;  %v3226_v28 = vld [vmem:[#allocation2 + $0x8d] sm:$0xff] }
 0x2b6   : > { %6188 = vmatprep.mubr.msk.bf16.mxu0 %vm7549_vm0, %v8347_v30  ;;  %v3260_v47 = vpack.c.bf16 %v3226_v28, %v3225_v44  ;;  %v3247_v44 = vld [vmem:[#allocation2 + $0x135] sm:$0xff]  ;;  %v3248_v28 = vld [vmem:[#allocation2 + $0x13d] sm:$0xff] }
 0x2bc   : > { %5753 = vmatmul.mubr.bf16.gmra.mrb[44].mxu1 %v8397_v36 }
 0x2bd   : > { %6189 = vmatmul.mubr.bf16.gmra.mrb[80].mxu0 %v2906_v50  ;;  %5756 = vmatprep.mubr.msk.bf16.mxu1 %vm7549_vm0, %v8347_v30  ;;  %v1412_v50 = vld [vmem:[#allocation2 + $0x13a] sm:$0xff] }
 0x2be   : > { %6208 = vmatprep.mubr.msk.bf16.mxu0 %vm7549_vm0, %v8347_v30  ;;  %v8460_v54 = vpack.c.bf16 %v1412_v50, %v1411_v48  ;;  %v4160_v48 = vld [vmem:[#allocation9 + $0x28] sm:$0xff]  ;;  %v3249_v50 = vld [vmem:[#allocation2 + $0x145] sm:$0xff] }
 0x2c4   : > { %5757 = vmatmul.mubr.bf16.gmra.mrb[48].mxu1 %v8404_v56 }
 0x2c5   : > { %6209 = vmatmul.mubr.bf16.vlgmr.msra.gmra.mrb[0].mxu0 %v3254_v58  ;;  %5760 = vmatprep.mubr.msk.bf16.mxu1 %vm7549_vm0, %v8347_v30  ;;  %v3229_v58 = vld [vmem:[#allocation2 + $0xa5] sm:$0xff] }
 0x2c6   : > { %6293 = vmatpush3.bf16.msra.mxu0 %v7273_v57  ;;  %6212 = vmatprep.mubr.msk.bf16.mxu0 %vm7549_vm0, %v8347_v30  ;;  %v1413_v57 = vld [vmem:[#allocation2 + $0x142] sm:$0xf] }
 0x2c7   : > { %6294 = vmatprep.subr.bf16.mxu0 %v8347_v30  ;;  %v1434_v59 = vpack.c.bf16 %v1413_v57, %v1413_v57  ;;  %v4165_v57 = vld [vmem:[#allocation9 + $0x50] sm:$0xff] }
 0x2ca   : > { %6295 = vmatpush3.bf16.msra.mxu0 %v7275_v49  ;;  %v3230_v49 = vld [vmem:[#allocation2 + $0xad] sm:$0xff] }
 0x2cb   : > { %6296 = vmatprep.subr.bf16.mxu0 %v8347_v30  ;;  %v3262_v0 = vpack.c.bf16 %v3230_v49, %v3229_v58  ;;  %v3251_v58 = vld [vmem:[#allocation2 + $0x155] sm:$0xff]  ;;  %v3252_v49 = vld [vmem:[#allocation2 + $0x15d] sm:$0xff] }
 0x2cc   : > { %5761 = vmatmul.mubr.bf16.gmra.mrb[52].mxu1 %v8412_v63 }
 0x2cd   : > { %6213 = vmatmul.mubr.bf16.gmra.mrb[4].mxu0 %v3255_v1  ;;  %5764 = vmatprep.mubr.msk.bf16.mxu1 %vm7549_vm0, %v8347_v30  ;;  %v7287_v1 = vld [vmem:[#allocation8 + $0x100] sm:$0xff]  }
 0x2ce   : > { %6216 = vmatprep.mubr.msk.bf16.mxu0 %vm7549_vm0, %v8347_v30  ;;  %6297 = vmatpush3.bf16.msra.mxu0 %v7277_v61  ;;  %v3263_v61 = vpack.c.bf16 %v3232_v62, %v3231_v55  ;;  %v3273_v55 = vpack.c.bf16 %v3252_v49, %v3251_v58  ;;  %v4169_v62 = vld [vmem:[#allocation9 + $0x70] sm:$0xff]  ;;  %v1781_v49 = vld [vmem:[#allocation2 + $0x152] sm:$0xf] }
 0x2cf   : > { %6298 = vmatprep.subr.bf16.mxu0 %v8347_v30 }
 0x2d2   : > { %6299 = vmatpush3.bf16.msra.mxu0 %v7279_v4  ;;  %v3233_v4 = vld [vmem:[#allocation2 + $0xc5] sm:$0xff] }
 0x2d3   : > { %6300 = vmatprep.subr.bf16.mxu0 %v8347_v30  ;;  %v3264_v7 = vpack.c.bf16 %v3234_v2, %v3233_v4  ;;  %v4171_v2 = vld [vmem:[#allocation9 + $0x80] sm:$0xff] }
 0x2d4   : > { %5765 = vmatmul.mubr.bf16.gmra.mrb[56].mxu1 %v8421_v8 }
 0x2d5   : > { %6217 = vmatmul.mubr.bf16.gmra.mrb[8].mxu0 %v3256_v13  ;;  %5768 = vmatprep.mubr.msk.bf16.mxu1 %vm7549_vm0, %v8347_v30  ;;  %v7290_v13 = vld [vmem:[#allocation8 + $0x118] sm:$0xff]  }
 0x2d6   : > { %6220 = vmatprep.mubr.msk.bf16.mxu0 %vm7549_vm0, %v8347_v30  ;;  %6301 = vmatpush3.bf16.msra.mxu0 %v7281_v11  ;;  %v3236_v11 = vld [vmem:[#allocation2 + $0xdd] sm:$0xff] }
 0x2d7   : > { %6302 = vmatprep.subr.bf16.mxu0 %v8347_v30 }
 0x2da   : > { %6303 = vmatpush3.bf16.msra.mxu0 %v7282_v14  ;;  %v3265_v14 = vpack.c.bf16 %v3236_v11, %v3235_v9  ;;  %v4172_v9 = vld [vmem:[#allocation9 + $0x88] sm:$0xff]  ;;  %v4175_v11 = vld [vmem:[#allocation9 + $0xa0] sm:$0xff] }
 0x2db   : > { %6304 = vmatprep.subr.bf16.mxu0 %v8347_v30 }
 0x2dc   : > { %5769 = vmatmul.mubr.bf16.gmra.mrb[60].mxu1 %v8430_v21 }
 0x2dd   : > { %6221 = vmatmul.mubr.bf16.gmra.mrb[12].mxu0 %v3257_v31  ;;  %5772 = vmatprep.mubr.msk.bf16.mxu1 %vm7549_vm0, %v8347_v30  ;;  %v3240_v31 = vld [vmem:[#allocation2 + $0xfd] sm:$0xff] }
 0x2de   : > { %6224 = vmatprep.mubr.msk.bf16.mxu0 %vm7549_vm0, %v8347_v30  ;;  %6305 = vmatpush3.bf16.msra.mxu0 %v7283_v24  ;;  %v3239_v24 = vld [vmem:[#allocation2 + $0xf5] sm:$0xff] }
 0x2df   : > { %6306 = vmatprep.subr.bf16.mxu0 %v8347_v30  ;;  %v3267_v38 = vpack.c.bf16 %v3240_v31, %v3239_v24  ;;  %v3585_v24 = vld [vmem:[#allocation2 + $0x46] sm:$0xff]  ;;  %v3586_v31 = vld [vmem:[#allocation2 + $0x4e] sm:$0xff] }
 0x2e2   : > { %6307 = vmatpush3.bf16.msra.mxu0 %v7284_v25  ;;  %v7294_v25 = vld [vmem:[#allocation8 + $0x138] sm:$0xff]  }
 0x2e4   : > { %5773 = vmatmul.mubr.bf16.gmra.mrb[64].mxu1 %v8439_v46 }
 0x2e5   : > { %6225 = vmatmul.mubr.bf16.gmra.mrb[16].mxu0 %v3258_v53  ;;  %5776 = vmatprep.mubr.msk.bf16.mxu1 %vm7549_vm0, %v8347_v30 }
 0x2e6   : > { %6228 = vmatprep.mubr.msk.bf16.mxu0 %vm7549_vm0, %v8347_v30 }
 0x2ec   : > { %5777 = vmatmul.mubr.bf16.gmra.mrb[68].mxu1 %v8446_v20 }
 0x2ed   : > { %6229 = vmatmul.mubr.bf16.gmra.mrb[20].mxu0 %v3259_v12  ;;  %5780 = vmatprep.mubr.msk.bf16.mxu1 %vm7549_vm0, %v8347_v30  ;;  %v3270_v12 = vpack.c.bf16 %v3246_v5, %v3245_v37  ;;  %v3590_v37 = vld [vmem:[#allocation2 + $0x6e] sm:$0xff]  ;;  %v4188_v5 = vld [vmem:[#allocation9 + $0x108] sm:$0xff] }
 0x2ee   : > { %6232 = vmatprep.mubr.msk.bf16.mxu0 %vm7549_vm0, %v8347_v30 }
 0x2f4   : > { %5781 = vmatmul.mubr.bf16.gmra.mrb[72].mxu1 %v8453_v18 }
 0x2f5   : > { %6233 = vmatmul.mubr.bf16.gmra.mrb[24].mxu0 %v3260_v47  ;;  %5784 = vmatprep.mubr.msk.bf16.mxu1 %vm7549_vm0, %v8347_v30  ;;  %v3271_v47 = vpack.c.bf16 %v3248_v28, %v3247_v44  ;;  %v3592_v44 = vld [vmem:[#allocation2 + $0x7e] sm:$0xff] }
 0x2f6   : > { %6236 = vmatprep.mubr.msk.bf16.mxu0 %vm7549_vm0, %v8347_v30  ;;  %v4192_v28 = vld [vmem:[#allocation9 + $0x128] sm:$0xff] }
 0x2fc   : > { %5785 = vmatmul.mubr.bf16.gmra.mrb[76].mxu1 %v8460_v54 }
 0x2fd   : > { %6237 = vmatmul.mubr.bf16.gmra.mrb[28].mxu0 %v3261_v43  ;;  %5788 = vmatprep.mubr.msk.bf16.mxu1 %vm7549_vm0, %v8347_v30  ;;  %v3272_v43 = vpack.c.bf16 %v3250_v51, %v3249_v50  ;;  %v3594_v50 = vld [vmem:[#allocation2 + $0x8e] sm:$0xff] }
 0x2fe   : > { %6240 = vmatprep.mubr.msk.bf16.mxu0 %vm7549_vm0, %v8347_v30 }
 0x304   : > { %5789 = vmatmul.mubr.bf16.gmra.mrb[80].mxu1 %v1434_v59  ;;  %v4164_v59 = vld [vmem:[#allocation9 + $0x48] sm:$0xff] }
 0x305   : > { %6241 = vmatmul.mubr.bf16.gmra.mrb[32].mxu0 %v3262_v0  ;;  %5808 = vmatprep.mubr.msk.bf16.mxu1 %vm7549_vm0, %v8347_v30  ;;  %v4167_v0 = vld [vmem:[#allocation9 + $0x60] sm:$0xff] }
 0x306   : > { %6244 = vmatprep.mubr.msk.bf16.mxu0 %vm7549_vm0, %v8347_v30 }
 0x30c   : > { %5809 = vmatmul.mubr.bf16.vlgmr.msra.gmra.mrb[0].mxu1 %v8309_v10  ;;  %v7289_v10 = vld [vmem:[#allocation8 + $0x110] sm:$0xff]  }
 0x30d   : > { %6245 = vmatmul.mubr.bf16.gmra.mrb[36].mxu0 %v3263_v61  ;;  %5812 = vmatprep.mubr.msk.bf16.mxu1 %vm7549_vm0, %v8347_v30  ;;  %v3253_v61 = vld [vmem:[#allocation2 + $0x165] sm:$0xf] }
 0x30e   : > { %6248 = vmatprep.mubr.msk.bf16.mxu0 %vm7549_vm0, %v8347_v30  ;;  %6400 = vmatpush3.bf16.msra.mxu1 %v7287_v1  ;;  %v4168_v1 = vld [vmem:[#allocation9 + $0x68] sm:$0xff]  ;;  %v3274_v4 = vpack.c.bf16 %v3253_v61, %v3253_v61 }
 0x30f   : > { %6393 = vmatprep.subr.bf16.mxu1 %v8347_v30  ;;  %v3599_v61 = vld [vmem:[#allocation2 + $0xb6] sm:$0xff] }
 0x312   : > { %6401 = vmatpush3.bf16.msra.mxu1 %v7288_v6  ;;  %v4173_v6 = vld [vmem:[#allocation9 + $0x90] sm:$0xff] }
 0x313   : > { %6394 = vmatprep.subr.bf16.mxu1 %v8347_v30 }
 0x314   : > { %5813 = vmatmul.mubr.bf16.gmra.mrb[4].mxu1 %v8319_v16  ;;  %v7291_v16 = vld [vmem:[#allocation8 + $0x120] sm:$0xff]  }
 0x315   : > { %6249 = vmatmul.mubr.bf16.gmra.mrb[40].mxu0 %v3264_v7  ;;  %5816 = vmatprep.mubr.msk.bf16.mxu1 %vm7549_vm0, %v8347_v30  ;;  %v3581_v7 = vld [vmem:[#allocation2 + $0x26] sm:$0xff] }
 0x316   : > { %6252 = vmatprep.mubr.msk.bf16.mxu0 %vm7549_vm0, %v8347_v30  ;;  %6402 = vmatpush3.bf16.msra.mxu1 %v7289_v10  ;;  %v3582_v10 = vld [vmem:[#allocation2 + $0x2e] sm:$0xff] }
 0x317   : > { %6395 = vmatprep.subr.bf16.mxu1 %v8347_v30 }
 0x31a   : > { %6403 = vmatpush3.bf16.msra.mxu1 %v7290_v13  ;;  %v3622_v13 = vpack.c.bf16 %v3582_v10, %v3581_v7  ;;  %v3601_v7 = vld [vmem:[#allocation2 + $0xc6] sm:$0xff]  ;;  %v3602_v10 = vld [vmem:[#allocation2 + $0xce] sm:$0xff] }
 0x31b   : > { %6396 = vmatprep.subr.bf16.mxu1 %v8347_v30 }
 0x31c   : > { %5817 = vmatmul.mubr.bf16.gmra.mrb[8].mxu1 %v8329_v23  ;;  %v7293_v23 = vld [vmem:[#allocation8 + $0x130] sm:$0xff]  }
 0x31d   : > { %6253 = vmatmul.mubr.bf16.gmra.mrb[44].mxu0 %v3265_v14  ;;  %5820 = vmatprep.mubr.msk.bf16.mxu1 %vm7549_vm0, %v8347_v30  ;;  %v4177_v14 = vld [vmem:[#allocation9 + $0xb0] sm:$0xff] }
 0x31e   : > { %6256 = vmatprep.mubr.msk.bf16.mxu0 %vm7549_vm0, %v8347_v30  ;;  %6404 = vmatpush3.bf16.msra.mxu1 %v7291_v16  ;;  %v3583_v16 = vld [vmem:[#allocation2 + $0x36] sm:$0xff] }
 0x31f   : > { %6397 = vmatprep.subr.bf16.mxu1 %v8347_v30 }
 0x322   : > { %6405 = vmatpush3.bf16.msra.mxu1 %v7292_v22  ;;  %v4179_v22 = vld [vmem:[#allocation9 + $0xc0] sm:$0xff] }
 0x323   : > { %6398 = vmatprep.subr.bf16.mxu1 %v8347_v30 }
 0x324   : > { %5821 = vmatmul.mubr.bf16.gmra.mrb[12].mxu1 %v8339_v26  ;;  %v3241_v26 = vld [vmem:[#allocation2 + $0x105] sm:$0xff] }
 0x325   : > { %6257 = vmatmul.mubr.bf16.gmra.mrb[48].mxu0 %v3266_v19  ;;  %5824 = vmatprep.mubr.msk.bf16.mxu1 %vm7549_vm0, %v8347_v30  ;;  %v3268_v29 = vpack.c.bf16 %v3242_v27, %v3241_v26  ;;  %v3623_v19 = vpack.c.bf16 %v3584_v15, %v3583_v16  ;;  %v3624_v26 = vpack.c.bf16 %v3586_v31, %v3585_v24  ;;  %v4185_v27 = vld [vmem:[#allocation9 + $0xf0] sm:$0xff] }
 0x326   : > { %6260 = vmatprep.mubr.msk.bf16.mxu0 %vm7549_vm0, %v8347_v30  ;;  %6406 = vmatpush3.bf16.msra.mxu1 %v7293_v23  ;;  %v4181_v23 = vld [vmem:[#allocation9 + $0xd0] sm:$0xff] }
 0x327   : > { %6399 = vmatprep.subr.bf16.mxu1 %v8347_v30  ;;  %v3604_v16 = vld [vmem:[#allocation2 + $0xde] sm:$0xff] }
 0x32a   : > { %6407 = vmatpush3.bf16.msra.mxu1 %v7294_v25  ;;  %v4180_v25 = vld [vmem:[#allocation9 + $0xc8] sm:$0xff] }
 0x32c   : > { %5825 = vmatmul.mubr.bf16.gmra.mrb[16].mxu1 %v8350_v32  ;;  %v3243_v32 = vld [vmem:[#allocation2 + $0x115] sm:$0xff] }
 0x32d   : > { %6261 = vmatmul.mubr.bf16.gmra.mrb[52].mxu0 %v3267_v38  ;;  %5828 = vmatprep.mubr.msk.bf16.mxu1 %vm7549_vm0, %v8347_v30  ;;  %v3269_v53 = vpack.c.bf16 %v3244_v3, %v3243_v32  ;;  %v4183_v38 = vld [vmem:[#allocation9 + $0xe0] sm:$0xff]  ;;  %v3588_v32 = vld [vmem:[#allocation2 + $0x5e] sm:$0xff] }
 0x32e   : > { %6264 = vmatprep.mubr.msk.bf16.mxu0 %vm7549_vm0, %v8347_v30  ;;  %v4184_v3 = vld [vmem:[#allocation9 + $0xe8] sm:$0xff] }
 0x334   : > { %5829 = vmatmul.mubr.bf16.gmra.mrb[20].mxu1 %v8358_v33  ;;  %v7551_v33 = vmov 0  }
 0x335   : > { %6265 = vmatmul.mubr.bf16.gmra.mrb[56].mxu0 %v3268_v29  ;;  %5832 = vmatprep.mubr.msk.bf16.mxu1 %vm7549_vm0, %v8347_v30  ;;  %v3587_v29 = vld [vmem:[#allocation2 + $0x56] sm:$0xff] }
 0x336   : > { %6268 = vmatprep.mubr.msk.bf16.mxu0 %vm7549_vm0, %v8347_v30  ;;  %7212 = vset.pattern.permute.xlu1 %v7551_v33 }
 0x337   : > { %7211 = vset.pattern.permute.xlu0 %v7551_v33  ;;  %4203 = vperm.xlu1 %7212, %v4156_v34   ;;  %v3625_v34 = vpack.c.bf16 %v3588_v32, %v3587_v29  ;;  %v3589_v33 = vld [vmem:[#allocation2 + $0x66] sm:$0xff]  ;;  %v2141_v32 = vld [vmem:[#allocation2 + $0x113] sm:$0xff] }
 0x338   : > { %4198 = vperm.xlu0 %7211, %v4155_v60   ;;  %v4189_v60 = vld [vmem:[#allocation9 + $0x110] sm:$0xff] }
 0x33c   : > { %5833 = vmatmul.mubr.bf16.gmra.mrb[24].mxu1 %v8366_v35  ;;  %v4157_v35 = vld [vmem:[#allocation9 + $0x10] sm:$0xff]  ;;  %4213 = vperm.xlu0 %7211, %v4158_v41  }
 0x33d   : > { %6269 = vmatmul.mubr.bf16.gmra.mrb[60].mxu0 %v3269_v53  ;;  %5836 = vmatprep.mubr.msk.bf16.mxu1 %vm7549_vm0, %v8347_v30  ;;  %v4187_v53 = vld [vmem:[#allocation9 + $0x100] sm:$0xff]  ;;  %v4193_v41 = vld [vmem:[#allocation9 + $0x130] sm:$0xff] }
 0x33e   : > { %6272 = vmatprep.mubr.msk.bf16.mxu0 %vm7549_vm0, %v8347_v30  ;;  %4208 = vperm.xlu1 %7212, %v4157_v35   ;;  %v3626_v35 = vpack.c.bf16 %v3590_v37, %v3589_v33  ;;  %v2143_v37 = vld [vmem:[#allocation2 + $0x123] sm:$0xff] }
 0x340   : > { %4223 = vperm.xlu0 %7211, %v4160_v48   ;;  %v4194_v48 = vld [vmem:[#allocation9 + $0x138] sm:$0xff] }
 0x342   : > { %4218 = vperm.xlu1 %7212, %v4159_v42   ;;  %v3591_v42 = vld [vmem:[#allocation2 + $0x76] sm:$0xff] }
 0x344   : > { %5837 = vmatmul.mubr.bf16.gmra.mrb[28].mxu1 %v8374_v39  ;;  %v4161_v39 = vld [vmem:[#allocation9 + $0x30] sm:$0xff] }
 0x345   : > { %6273 = vmatmul.mubr.bf16.gmra.mrb[64].mxu0 %v3270_v12  ;;  %5840 = vmatprep.mubr.msk.bf16.mxu1 %vm7549_vm0, %v8347_v30  ;;  %v4191_v12 = vld [vmem:[#allocation9 + $0x120] sm:$0xff] }
 0x346   : > { %6276 = vmatprep.mubr.msk.bf16.mxu0 %vm7549_vm0, %v8347_v30  ;;  %4228 = vperm.xlu1 %7212, %v4161_v39   ;;  %v3627_v39 = vpack.c.bf16 %v3592_v44, %v3591_v42 }
 0x34a   : > { %4238 = vperm.xlu1 %7212, %v4163_v52   ;;  %v1780_v52 = vld [vmem:[#allocation2 + $0x14a] sm:$0xff] }
 0x34c   : > { %5841 = vmatmul.mubr.bf16.gmra.mrb[32].mxu1 %v8382_v40  ;;  %v4162_v40 = vld [vmem:[#allocation9 + $0x38] sm:$0xff] }
 0x34d   : > { %6277 = vmatmul.mubr.bf16.gmra.mrb[68].mxu0 %v3271_v47  ;;  %5844 = vmatprep.mubr.msk.bf16.mxu1 %vm7549_vm0, %v8347_v30  ;;  %v4195_v47 = vld [vmem:[#allocation9 + $0x140] sm:$0xf] }
 0x34e   : > { %6280 = vmatprep.mubr.msk.bf16.mxu0 %vm7549_vm0, %v8347_v30  ;;  %4233 = vperm.xlu0 %7211, %v4162_v40   ;;  %v3596_v40 = vld [vmem:[#allocation2 + $0x9e] sm:$0xff] }
 0x34f   : > { %4248 = vperm.xlu1 %7212, %v4165_v57  }
 0x352   : > { %4243 = vperm.xlu0 %7211, %v4164_v59   ;;  %v3597_v59 = vld [vmem:[#allocation2 + $0xa6] sm:$0xff] }
 0x353   : > { %4258 = vperm.xlu1 %7212, %v4167_v0   ;;  %v3598_v0 = vld [vmem:[#allocation2 + $0xae] sm:$0xff] }
 0x354   : > { %5845 = vmatmul.mubr.bf16.gmra.mrb[36].mxu1 %v8390_v45  ;;  %v4166_v45 = vld [vmem:[#allocation9 + $0x58] sm:$0xff] }
 0x355   : > { %6281 = vmatmul.mubr.bf16.gmra.mrb[72].mxu0 %v3272_v43  ;;  %5848 = vmatprep.mubr.msk.bf16.mxu1 %vm7549_vm0, %v8347_v30  ;;  %v3595_v43 = vld [vmem:[#allocation2 + $0x96] sm:$0xff] }
 0x356   : > { %6284 = vmatprep.mubr.msk.bf16.mxu0 %vm7549_vm0, %v8347_v30  ;;  %4253 = vperm.xlu0 %7211, %v4166_v45   ;;  %v3629_v58 = vpack.c.bf16 %v3596_v40, %v3595_v43  ;;  %v2131_v45 = vld [vmem:[#allocation2 + $0xc3] sm:$0xff] }
 0x357   : > { %4268 = vperm.xlu1 %7212, %v4169_v62   ;;  %v2132_v62 = vld [vmem:[#allocation2 + $0xcb] sm:$0xff] }
 0x35a   : > { %4263 = vperm.xlu0 %7211, %v4168_v1   ;;  %v3600_v1 = vld [vmem:[#allocation2 + $0xbe] sm:$0xff] }
 0x35b   : > { %4278 = vperm.xlu1 %7212, %v4171_v2   ;;  %v3631_v2 = vpack.c.bf16 %v3600_v1, %v3599_v61  ;;  %v8625_v1 = vld [vmem:[#allocation2] sm:$0xff] }
 0x35c   : > { %5849 = vmatmul.mubr.bf16.gmra.mrb[40].mxu1 %v8397_v36  ;;  %v4170_v36 = vld [vmem:[#allocation9 + $0x78] sm:$0xff]  ;;  %351 = vst [vmem:[%s8693_s14] sm:$0xff] %v8625_v1 }
 0x35d   : > { %6285 = vmatmul.mubr.bf16.gmra.mrb[76].mxu0 %v3273_v55  ;;  %5852 = vmatprep.mubr.msk.bf16.mxu1 %vm7549_vm0, %v8347_v30  ;;  %v3630_v55 = vpack.c.bf16 %v3598_v0, %v3597_v59  ;;  %v3615_v59 = vld [vmem:[#allocation2 + $0x136] sm:$0xff]  ;;  %v3616_v0 = vld [vmem:[#allocation2 + $0x13e] sm:$0xff] }
 0x35e   : > { %6288 = vmatprep.mubr.msk.bf16.mxu0 %vm7549_vm0, %v8347_v30  ;;  %4273 = vperm.xlu0 %7211, %v4170_v36   ;;  %v2133_v36 = vld [vmem:[#allocation2 + $0xd3] sm:$0xff]  ;;  %v3639_v61 = vpack.c.bf16 %v3616_v0, %v3615_v59 }
 0x35f   : > { %4288 = vperm.xlu1 %7212, %v4173_v6   ;;  %v2134_v6 = vld [vmem:[#allocation2 + $0xdb] sm:$0xff] }
 0x362   : > { %4283 = vperm.xlu0 %7211, %v4172_v9   ;;  %v2162_v9 = vpack.c.bf16 %v2134_v6, %v2133_v36 }
 0x363   : > { %4298 = vperm.xlu1 %7212, %v4175_v11   ;;  %v3632_v11 = vpack.c.bf16 %v3602_v10, %v3601_v7 }
 0x364   : > { %5853 = vmatmul.mubr.bf16.gmra.mrb[44].mxu1 %v8404_v56  ;;  %v4174_v56 = vld [vmem:[#allocation9 + $0x98] sm:$0xff] }
 0x365   : > { %6289 = vmatmul.mubr.bf16.gmra.mrb[80].mxu0 %v3274_v4  ;;  %5856 = vmatprep.mubr.msk.bf16.mxu1 %vm7549_vm0, %v8347_v30  ;;  %v2161_v4 = vpack.c.bf16 %v2132_v62, %v2131_v45 }
 0x366   : > { %6308 = vmatprep.mubr.msk.bf16.mxu0 %vm7549_vm0, %v8347_v30  ;;  %4293 = vperm.xlu0 %7211, %v4174_v56   ;;  %v2136_v56 = vld [vmem:[#allocation2 + $0xeb] sm:$0xff] }
 0x367   : > { %4308 = vperm.xlu1 %7212, %v4177_v14   ;;  %v3603_v14 = vld [vmem:[#allocation2 + $0xd6] sm:$0xff] }
 0x36a   : > { %4303 = vperm.xlu0 %7211, %v4176_v17   ;;  %v3633_v17 = vpack.c.bf16 %v3604_v16, %v3603_v14 }
 0x36b   : > { %4318 = vperm.xlu1 %7212, %v4179_v22   ;;  %v2137_v22 = vld [vmem:[#allocation2 + $0xf3] sm:$0xff] }
 0x36c   : > { %5857 = vmatmul.mubr.bf16.gmra.mrb[48].mxu1 %v8412_v63  ;;  %v4178_v63 = vld [vmem:[#allocation9 + $0xb8] sm:$0xff] }
 0x36d   : > { %6309 = vmatmul.mubr.bf16.vlgmr.msra.gmra.mrb[0].mxu0 %v3622_v13  ;;  %5860 = vmatprep.mubr.msk.bf16.mxu1 %vm7549_vm0, %v8347_v30  ;;  %v2135_v13 = vld [vmem:[#allocation2 + $0xe3] sm:$0xff] }
 0x36e   : > { %6312 = vmatprep.mubr.msk.bf16.mxu0 %vm7549_vm0, %v8347_v30  ;;  %4313 = vperm.xlu0 %7211, %v4178_v63   ;;  %v2163_v15 = vpack.c.bf16 %v2136_v56, %v2135_v13  ;;  %v3605_v63 = vld [vmem:[#allocation2 + $0xe6] sm:$0xff]  ;;  %v3619_v13 = vld [vmem:[#allocation2 + $0x156] sm:$0xff]  ;;  %v3620_v56 = vld [vmem:[#allocation2 + $0x15e] sm:$0xff] }
 0x36f   : > { %4328 = vperm.xlu1 %7212, %v4181_v23   ;;  %v3606_v23 = vld [vmem:[#allocation2 + $0xee] sm:$0xff] }
 0x370   : > { %v3634_v31 = vpack.c.bf16 %v3606_v23, %v3605_v63 }
 0x372   : > { %4323 = vperm.xlu0 %7211, %v4180_v25   ;;  %v2139_v25 = vld [vmem:[#allocation2 + $0x103] sm:$0xff] }
 0x373   : > { %4338 = vperm.xlu1 %7212, %v4183_v38   ;;  %v2140_v38 = vld [vmem:[#allocation2 + $0x10b] sm:$0xff] }
 0x374   : > { %5861 = vmatmul.mubr.bf16.gmra.mrb[52].mxu1 %v8421_v8  ;;  %v4182_v8 = vld [vmem:[#allocation9 + $0xd8] sm:$0xff] }
 0x375   : > { %6313 = vmatmul.mubr.bf16.gmra.mrb[4].mxu0 %v3623_v19  ;;  %5864 = vmatprep.mubr.msk.bf16.mxu1 %vm7549_vm0, %v8347_v30  ;;  %v2138_v19 = vld [vmem:[#allocation2 + $0xfb] sm:$0xff] }
 0x376   : > { %6316 = vmatprep.mubr.msk.bf16.mxu0 %vm7549_vm0, %v8347_v30  ;;  %4333 = vperm.xlu0 %7211, %v4182_v8   ;;  %v2164_v24 = vpack.c.bf16 %v2138_v19, %v2137_v22  ;;  %v3608_v8 = vld [vmem:[#allocation2 + $0xfe] sm:$0xff]  ;;  %v3621_v19 = vld [vmem:[#allocation2 + $0x166] sm:$0xf] }
 0x377   : > { %4348 = vperm.xlu1 %7212, %v4185_v27   ;;  %v2165_v27 = vpack.c.bf16 %v2140_v38, %v2139_v25 }
 0x37a   : > { %4343 = vperm.xlu0 %7211, %v4184_v3   ;;  %v2142_v3 = vld [vmem:[#allocation2 + $0x11b] sm:$0xff] }
 0x37b   : > { %4358 = vperm.xlu1 %7212, %v4187_v53   ;;  %v3609_v53 = vld [vmem:[#allocation2 + $0x106] sm:$0xff] }
 0x37c   : > { %5865 = vmatmul.mubr.bf16.gmra.mrb[56].mxu1 %v8430_v21  ;;  %v4186_v21 = vld [vmem:[#allocation9 + $0xf8] sm:$0xff] }
 0x37d   : > { %6317 = vmatmul.mubr.bf16.gmra.mrb[8].mxu0 %v3624_v26  ;;  %5868 = vmatprep.mubr.msk.bf16.mxu1 %vm7549_vm0, %v8347_v30  ;;  %v3607_v26 = vld [vmem:[#allocation2 + $0xf6] sm:$0xff] }
 0x37e   : > { %6320 = vmatprep.mubr.msk.bf16.mxu0 %vm7549_vm0, %v8347_v30  ;;  %4353 = vperm.xlu0 %7211, %v4186_v21   ;;  %v3635_v29 = vpack.c.bf16 %v3608_v8, %v3607_v26  ;;  %v2166_v21 = vpack.c.bf16 %v2142_v3, %v2141_v32 }
 0x37f   : > { %4368 = vperm.xlu1 %7212, %v4189_v60  }
 0x382   : > { %4363 = vperm.xlu0 %7211, %v4188_v5   ;;  %v2144_v5 = vld [vmem:[#allocation2 + $0x12b] sm:$0xff] }
 0x383   : > { %4378 = vperm.xlu1 %7212, %v4191_v12   ;;  %v2167_v44 = vpack.c.bf16 %v2144_v5, %v2143_v37 }
 0x384   : > { %5869 = vmatmul.mubr.bf16.gmra.mrb[60].mxu1 %v8439_v46  ;;  %v4190_v46 = vld [vmem:[#allocation9 + $0x118] sm:$0xff] }
 0x385   : > { %6321 = vmatmul.mubr.bf16.gmra.mrb[12].mxu0 %v3625_v34  ;;  %5872 = vmatprep.mubr.msk.bf16.mxu1 %vm7549_vm0, %v8347_v30  ;;  %v3610_v34 = vld [vmem:[#allocation2 + $0x10e] sm:$0xff] }
 0x386   : > { %6324 = vmatprep.mubr.msk.bf16.mxu0 %vm7549_vm0, %v8347_v30  ;;  %4373 = vperm.xlu0 %7211, %v4190_v46   ;;  %v3636_v60 = vpack.c.bf16 %v3610_v34, %v3609_v53  ;;  %v3612_v46 = vld [vmem:[#allocation2 + $0x11e] sm:$0xff] }
 0x387   : > { %4388 = vperm.xlu1 %7212, %v4193_v41  }
 0x38a   : > { %4383 = vperm.xlu0 %7211, %v4192_v28  }
 0x38b   : > { %4398 = vperm.xlu1 %7212, %v4195_v47  }
 0x38c   : > { %5873 = vmatmul.mubr.bf16.gmra.mrb[64].mxu1 %v8446_v20  ;;  %v3593_v20 = vld [vmem:[#allocation2 + $0x86] sm:$0xff] }
 0x38d   : > { %6325 = vmatmul.mubr.bf16.gmra.mrb[16].mxu0 %v3626_v35  ;;  %5876 = vmatprep.mubr.msk.bf16.mxu1 %vm7549_vm0, %v8347_v30  ;;  %v3628_v51 = vpack.c.bf16 %v3594_v50, %v3593_v20  ;;  %v3611_v35 = vld [vmem:[#allocation2 + $0x116] sm:$0xff]  ;;  %v3613_v50 = vld [vmem:[#allocation2 + $0x126] sm:$0xff] }
 0x38e   : > { %6328 = vmatprep.mubr.msk.bf16.mxu0 %vm7549_vm0, %v8347_v30  ;;  %4393 = vperm.xlu0 %7211, %v4194_v48   ;;  %v3637_v28 = vpack.c.bf16 %v3612_v46, %v3611_v35  ;;  %v2146_v48 = vld [vmem:[#allocation2 + $0x13b] sm:$0xff] }
 0x394   : > { %5877 = vmatmul.mubr.bf16.gmra.mrb[68].mxu1 %v8453_v18  ;;  %v1779_v18 = vld [vmem:[#allocation2 + $0x142] sm:$0xff] }
 0x395   : > { %6329 = vmatmul.mubr.bf16.gmra.mrb[20].mxu0 %v3627_v39  ;;  %5880 = vmatprep.mubr.msk.bf16.mxu1 %vm7549_vm0, %v8347_v30  ;;  %v1801_v57 = vpack.c.bf16 %v1780_v52, %v1779_v18  ;;  %v2145_v39 = vld [vmem:[#allocation2 + $0x133] sm:$0xff] }
 0x396   : > { %6332 = vmatprep.mubr.msk.bf16.mxu0 %vm7549_vm0, %v8347_v30  ;;  %v2168_v43 = vpack.c.bf16 %v2146_v48, %v2145_v39 }
 0x39c   : > { %5881 = vmatmul.mubr.bf16.gmra.mrb[72].mxu1 %v8460_v54  ;;  %v1802_v54 = vpack.c.bf16 %v1781_v49, %v1781_v49  ;;  %v2148_v49 = vld [vmem:[#allocation2 + $0x14b] sm:$0xff] }
 0x39d   : > { %6333 = vmatmul.mubr.bf16.gmra.mrb[24].mxu0 %v3628_v51  ;;  %5884 = vmatprep.mubr.msk.bf16.mxu1 %vm7549_vm0, %v8347_v30  ;;  %v3614_v51 = vld [vmem:[#allocation2 + $0x12e] sm:$0xff] }
 0x39e   : > { %6336 = vmatprep.mubr.msk.bf16.mxu0 %vm7549_vm0, %v8347_v30  ;;  %v3638_v40 = vpack.c.bf16 %v3614_v51, %v3613_v50 }
 0x3a4   : > { %5885 = vmatmul.mubr.bf16.gmra.mrb[76].mxu1 %v1801_v57 }
 0x3a5   : > { %6337 = vmatmul.mubr.bf16.gmra.mrb[28].mxu0 %v3629_v58  ;;  %5888 = vmatprep.mubr.msk.bf16.mxu1 %vm7549_vm0, %v8347_v30  ;;  %v2147_v58 = vld [vmem:[#allocation2 + $0x143] sm:$0xff] }
 0x3a6   : > { %6340 = vmatprep.mubr.msk.bf16.mxu0 %vm7549_vm0, %v8347_v30  ;;  %v2169_v62 = vpack.c.bf16 %v2148_v49, %v2147_v58 }
 0x3ac   : > { %5889 = vmatmul.mubr.bf16.gmra.mrb[80].mxu1 %v1802_v54 }
 0x3ad   : > { %6341 = vmatmul.mubr.bf16.gmra.mrb[32].mxu0 %v3630_v55  ;;  %5952 = vmatprep.mubr.msk.bf16.mxu1 %vm7549_vm0, %v8347_v30 }
 0x3ae   : > { %6344 = vmatprep.mubr.msk.bf16.mxu0 %vm7549_vm0, %v8347_v30 }
 0x3b4   : > { %5953 = vmatmul.mubr.bf16.vlgmr.msra.gmra.mrb[44].mxu1 %v2161_v4  ;;  %v3617_v4 = vld [vmem:[#allocation2 + $0x146] sm:$0xff] }
 0x3b5   : > { %6345 = vmatmul.mubr.bf16.gmra.mrb[36].mxu0 %v3631_v2  ;;  %5956 = vmatprep.mubr.msk.bf16.mxu1 %vm7549_vm0, %v8347_v30  ;;  %v3618_v2 = vld [vmem:[#allocation2 + $0x14e] sm:$0xff] }
 0x3b6   : > { %6348 = vmatprep.mubr.msk.bf16.mxu0 %vm7549_vm0, %v8347_v30 }
 0x3bc   : > { %5957 = vmatmul.mubr.bf16.gmra.mrb[48].mxu1 %v2162_v9  ;;  %v3640_v9 = vpack.c.bf16 %v3618_v2, %v3617_v4 }
 0x3bd   : > { %6349 = vmatmul.mubr.bf16.gmra.mrb[40].mxu0 %v3632_v11  ;;  %5960 = vmatprep.mubr.msk.bf16.mxu1 %vm7549_vm0, %v8347_v30 }
 0x3be   : > { %6352 = vmatprep.mubr.msk.bf16.mxu0 %vm7549_vm0, %v8347_v30 }
 0x3c4   : > { %5961 = vmatmul.mubr.bf16.gmra.mrb[52].mxu1 %v2163_v15 }
 0x3c5   : > { %6353 = vmatmul.mubr.bf16.gmra.mrb[44].mxu0 %v3633_v17  ;;  %5964 = vmatprep.mubr.msk.bf16.mxu1 %vm7549_vm0, %v8347_v30  ;;  %v3641_v17 = vpack.c.bf16 %v3620_v56, %v3619_v13 }
 0x3c6   : > { %6356 = vmatprep.mubr.msk.bf16.mxu0 %vm7549_vm0, %v8347_v30 }
 0x3cc   : > { %5965 = vmatmul.mubr.bf16.gmra.mrb[56].mxu1 %v2164_v24 }
 0x3cd   : > { %6357 = vmatmul.mubr.bf16.gmra.mrb[48].mxu0 %v3634_v31  ;;  %5968 = vmatprep.mubr.msk.bf16.mxu1 %vm7549_vm0, %v8347_v30  ;;  %v3642_v31 = vpack.c.bf16 %v3621_v19, %v3621_v19 }
 0x3ce   : > { %6360 = vmatprep.mubr.msk.bf16.mxu0 %vm7549_vm0, %v8347_v30 }
 0x3d4   : > { %5969 = vmatmul.mubr.bf16.gmra.mrb[60].mxu1 %v2165_v27 }
 0x3d5   : > { %6361 = vmatmul.mubr.bf16.gmra.mrb[52].mxu0 %v3635_v29  ;;  %5972 = vmatprep.mubr.msk.bf16.mxu1 %vm7549_vm0, %v8347_v30 }
 0x3d6   : > { %6364 = vmatprep.mubr.msk.bf16.mxu0 %vm7549_vm0, %v8347_v30 }
 0x3dc   : > { %5973 = vmatmul.mubr.bf16.gmra.mrb[64].mxu1 %v2166_v21 }
 0x3dd   : > { %6365 = vmatmul.mubr.bf16.gmra.mrb[56].mxu0 %v3636_v60  ;;  %5976 = vmatprep.mubr.msk.bf16.mxu1 %vm7549_vm0, %v8347_v30 }
 0x3de   : > { %6368 = vmatprep.mubr.msk.bf16.mxu0 %vm7549_vm0, %v8347_v30 }
 0x3df   : > { %v8605_v33 = vpop.f32.mrb[0].mxu1 }
 0x3e0   : > { %v5810_v12 = vpop.f32.mrb[1].mxu1 }
 0x3e1   : > { %v8607_v41 = vpop.f32.mrb[2].mxu1 }
 0x3e2   : > { %v5811_v42 = vpop.f32.mrb[3].mxu1 }
 0x3e4   : > { %5977 = vmatmul.mubr.bf16.gmra.mrb[68].mxu1 %v2167_v44 }
 0x3e5   : > { %6369 = vmatmul.mubr.bf16.gmra.mrb[60].mxu0 %v3637_v28  ;;  %5980 = vmatprep.mubr.msk.bf16.mxu1 %vm7549_vm0, %v8347_v30 }
 0x3e6   : > { %6372 = vmatprep.mubr.msk.bf16.mxu0 %vm7549_vm0, %v8347_v30 }
 0x3e7   : > { %v8613_v47 = vpop.f32.mrb[4].mxu1 }
 0x3e8   : > { %v5814_v20 = vpop.f32.mrb[5].mxu1 }
 0x3e9   : > { %v8615_v18 = vpop.f32.mrb[6].mxu1  ;;  %v4199_v20 = vpop.permute.xlu0 %4198 }
 0x3ea   : > { %v5815_v52 = vpop.f32.mrb[7].mxu1 }
 0x3ec   : > { %5981 = vmatmul.mubr.bf16.gmra.mrb[72].mxu1 %v2168_v43  ;;  %v4204_v43 = vpop.permute.xlu1 %4203 }
 0x3ed   : > { %6373 = vmatmul.mubr.bf16.gmra.mrb[64].mxu0 %v3638_v40  ;;  %5984 = vmatprep.mubr.msk.bf16.mxu1 %vm7549_vm0, %v8347_v30 }
 0x3ee   : > { %6376 = vmatprep.mubr.msk.bf16.mxu0 %vm7549_vm0, %v8347_v30  ;;  %v2149_v30 = vld [vmem:[#allocation2 + $0x153] sm:$0xf] }
 0x3ef   : > { %v8621_v57 = vpop.f32.mrb[8].mxu1  ;;  %v2170_v7 = vpack.c.bf16 %v2149_v30, %v2149_v30 }
 0x3f0   : > { %v5818_v54 = vpop.f32.mrb[9].mxu1 }
 0x3f1   : > { %v8623_v55 = vpop.f32.mrb[10].mxu1 }
 0x3f2   : > { %v5819_v45 = vpop.f32.mrb[11].mxu1 }
 0x3f4   : > { %5985 = vmatmul.mubr.bf16.gmra.mrb[76].mxu1 %v2169_v62 }
 0x3f5   : > { %6377 = vmatmul.mubr.bf16.gmra.mrb[68].mxu0 %v3639_v61  ;;  %5988 = vmatprep.mubr.msk.bf16.mxu1 %vm7549_vm0, %v8625_v1 }
 0x3f6   : > { %6380 = vmatprep.mubr.msk.bf16.mxu0 %vm7549_vm0, %v8625_v1 }
 0x3f7   : > { %v8631_v36 = vpop.f32.mrb[12].mxu1 }
 0x3f8   : > { %v5822_v6 = vpop.f32.mrb[13].mxu1 }
 0x3f9   : > { %v8633_v10 = vpop.f32.mrb[14].mxu1 }
 0x3fa   : > { %v5823_v11 = vpop.f32.mrb[15].mxu1 }
 0x3fc   : > { %5989 = vmatmul.mubr.bf16.gmra.mrb[80].mxu1 %v2170_v7  ;;  %v4214_v7 = vpop.permute.xlu0 %4213 }
 0x3fd   : > { %6381 = vmatmul.mubr.bf16.gmra.mrb[72].mxu0 %v3640_v9 }
 0x3fe   : > { %6384 = vmatprep.mubr.msk.bf16.mxu0 %vm7549_vm0, %v8625_v1 }
 0x3ff   : > { %v8637_v14 = vpop.f32.mrb[16].mxu1 }
 0x400   : > { %v5826_v16 = vpop.f32.mrb[17].mxu1 }
 0x401   : > { %v8639_v15 = vpop.f32.mrb[18].mxu1 }
 0x402   : > { %v5827_v22 = vpop.f32.mrb[19].mxu1 }
 0x405   : > { %6385 = vmatmul.mubr.bf16.gmra.mrb[76].mxu0 %v3641_v17 }
 0x406   : > { %6388 = vmatprep.mubr.msk.bf16.mxu0 %vm7549_vm0, %v8625_v1 }
 0x407   : > { %v8643_v63 = vpop.f32.mrb[20].mxu1 }
 0x408   : > { %v5830_v23 = vpop.f32.mrb[21].mxu1 }
 0x409   : > { %v8645_v24 = vpop.f32.mrb[22].mxu1 }
 0x40a   : > { %v5831_v25 = vpop.f32.mrb[23].mxu1 }
 0x40d   : > { %6389 = vmatmul.mubr.bf16.gmra.mrb[80].mxu0 %v3642_v31 }
 0x40f   : > { %v8647_v38 = vpop.f32.mrb[24].mxu1 }
 0x410   : > { %v5834_v26 = vpop.f32.mrb[25].mxu1 }
 0x411   : > { %v8649_v8 = vpop.f32.mrb[26].mxu1 }
 0x412   : > { %v5835_v27 = vpop.f32.mrb[27].mxu1 }
 0x417   : > { %v8651_v29 = vpop.f32.mrb[28].mxu1 }
 0x418   : > { %v5838_v32 = vpop.f32.mrb[29].mxu1 }
 0x419   : > { %v8653_v3 = vpop.f32.mrb[30].mxu1 }
 0x41a   : > { %v5839_v53 = vpop.f32.mrb[31].mxu1 }
 0x41f   : > { %v8655_v34 = vpop.f32.mrb[32].mxu1 }
 0x420   : > { %v5842_v21 = vpop.f32.mrb[33].mxu1 }
 0x421   : > { %v8657_v60 = vpop.f32.mrb[34].mxu1 }
 0x422   : > { %v5843_v37 = vpop.f32.mrb[35].mxu1 }
 0x423   : > { %v4224_v37 = vpop.permute.xlu0 %4223 }
 0x427   : > { %v8659_v5 = vpop.f32.mrb[36].mxu1 }
 0x428   : > { %v5846_v12 = vpop.f32.mrb[37].mxu1 }
 0x429   : > { %v8661_v35 = vpop.f32.mrb[38].mxu1 }
 0x42a   : > { %v5847_v46 = vpop.f32.mrb[39].mxu1 }
 0x42f   : > { %v8663_v42 = vpop.f32.mrb[40].mxu1 }
 0x430   : > { %v5850_v44 = vpop.f32.mrb[41].mxu1 }
 0x431   : > { %v8665_v28 = vpop.f32.mrb[42].mxu1 }
 0x432   : > { %v5851_v39 = vpop.f32.mrb[43].mxu1 }
 0x440   : > { %v3742_v48 = vpop.f32.mrb[0].mxu0 }
 0x441   : > { %v6408_v50 = vadd.f32 %v3742_v48, %v8605_v33  ;;  %v6310_v51 = vpop.f32.mrb[1].mxu0  ;;  %v4209_v33 = vpop.permute.xlu1 %4208 }
 0x442   : > { %v3745_v52 = vpop.f32.mrb[2].mxu0 }
 0x443   : > { %v4401_v40 = vmul.f32 %v6408_v50, %v4199_v20  ;;  %v6409_v58 = vadd.f32 %v3745_v52, %v8607_v41  ;;  %v6311_v49 = vpop.f32.mrb[3].mxu0 }
 0x445   : > { %v5085_v54 = vpack.c.bf16 %v6409_v58, %v6408_v50  ;;  %v4402_v59 = vmul.f32 %v6409_v58, %v4204_v43  ;;  %v4494_v0 = vmul.f32 %v6408_v50, %v4401_v40  ;;  %v4219_v27 = vpop.permute.xlu1 %4218 }
 0x447   : > { %5086 = vst [vmem:[%s8670_s3] sm:$0xff] %v5085_v54   ;;  %v4495_v45 = vmul.f32 %v6409_v58, %v4402_v59  ;;  %v4443_v62 = vadd.f32 %v4402_v59, %v4401_v40  ;;  %v4234_v59 = vpop.permute.xlu0 %4233 }
 0x448   : > { %v3750_v61 = vpop.f32.mrb[4].mxu0 }
 0x449   : > { %v4535_v30 = vadd.f32 %v4495_v45, %v4494_v0  ;;  %v6410_v4 = vadd.f32 %v3750_v61, %v8613_v47  ;;  %v6314_v2 = vpop.f32.mrb[5].mxu0  ;;  %v4229_v40 = vpop.permute.xlu1 %4228 }
 0x44a   : > { %v3753_v6 = vpop.f32.mrb[6].mxu0 }
 0x44b   : > { %v4403_v41 = vmul.f32 %v6410_v4, %v4209_v33  ;;  %v6411_v9 = vadd.f32 %v3753_v6, %v8615_v18  ;;  %v6315_v11 = vpop.f32.mrb[7].mxu0 }
 0x44d   : > { %v4496_v13 = vmul.f32 %v6410_v4, %v4403_v41  ;;  %v5090_v56 = vpack.c.bf16 %v6411_v9, %v6410_v4  ;;  %v4404_v16 = vmul.f32 %v6411_v9, %v4214_v7  ;;  %v4444_v17 = vadd.f32 %v4443_v62, %v4403_v41  ;;  %v4239_v41 = vpop.permute.xlu1 %4238 }
 0x44f   : > { %5212 = vst [vmem:[%s8670_s3 + $0x8] sm:$0xff] %v5090_v56   ;;  %v4445_v22 = vadd.f32 %v4444_v17, %v4404_v16  ;;  %v4497_v19 = vmul.f32 %v6411_v9, %v4404_v16  ;;  %v4536_v23 = vadd.f32 %v4535_v30, %v4496_v13  ;;  %v4244_v56 = vpop.permute.xlu0 %4243 }
 0x450   : > { %v3758_v31 = vpop.f32.mrb[8].mxu0 }
 0x451   : > { %v4537_v25 = vadd.f32 %v4536_v23, %v4497_v19  ;;  %v6412_v47 = vadd.f32 %v3758_v31, %v8621_v57  ;;  %v6318_v26 = vpop.f32.mrb[9].mxu0 }
 0x452   : > { %v3761_v32 = vpop.f32.mrb[10].mxu0 }
 0x453   : > { %v4405_v53 = vmul.f32 %v6412_v47, %v4219_v27  ;;  %v6413_v18 = vadd.f32 %v3761_v32, %v8623_v55  ;;  %v6319_v21 = vpop.f32.mrb[11].mxu0  ;;  %v4249_v32 = vpop.permute.xlu1 %4248 }
 0x455   : > { %v4446_v12 = vadd.f32 %v4445_v22, %v4405_v53  ;;  %v4498_v46 = vmul.f32 %v6412_v47, %v4405_v53  ;;  %v5095_v44 = vpack.c.bf16 %v6413_v18, %v6412_v47  ;;  %v4406_v39 = vmul.f32 %v6413_v18, %v4224_v37  ;;  %v4254_v37 = vpop.permute.xlu0 %4253 }
 0x457   : > { %v4538_v48 = vadd.f32 %v4537_v25, %v4498_v46  ;;  %5213 = vst [vmem:[%s8670_s3 + $0x10] sm:$0xff] %v5095_v44   ;;  %v4447_v20 = vadd.f32 %v4446_v12, %v4406_v39  ;;  %v4499_v50 = vmul.f32 %v6413_v18, %v4406_v39 }
 0x458   : > { %v3766_v51 = vpop.f32.mrb[12].mxu0 }
 0x459   : > { %v4539_v52 = vadd.f32 %v4538_v48, %v4499_v50  ;;  %v6414_v57 = vadd.f32 %v3766_v51, %v8631_v36  ;;  %v6322_v43 = vpop.f32.mrb[13].mxu0 }
 0x45a   : > { %v3769_v58 = vpop.f32.mrb[14].mxu0  ;;  %v4259_v43 = vpop.permute.xlu1 %4258 }
 0x45b   : > { %v4407_v49 = vmul.f32 %v6414_v57, %v4229_v40  ;;  %v6415_v55 = vadd.f32 %v3769_v58, %v8633_v10  ;;  %v6323_v54 = vpop.f32.mrb[15].mxu0 }
 0x45d   : > { %v4448_v0 = vadd.f32 %v4447_v20, %v4407_v49  ;;  %v4500_v45 = vmul.f32 %v6414_v57, %v4407_v49  ;;  %v5100_v62 = vpack.c.bf16 %v6415_v55, %v6414_v57  ;;  %v4408_v61 = vmul.f32 %v6415_v55, %v4234_v59 }
 0x45f   : > { %v4540_v30 = vadd.f32 %v4539_v52, %v4500_v45  ;;  %5214 = vst [vmem:[%s8670_s3 + $0x18] sm:$0xff] %v5100_v62   ;;  %v4449_v33 = vadd.f32 %v4448_v0, %v4408_v61  ;;  %v4501_v4 = vmul.f32 %v6415_v55, %v4408_v61  ;;  %v4264_v55 = vpop.permute.xlu0 %4263 }
 0x460   : > { %v3774_v2 = vpop.f32.mrb[16].mxu0 }
 0x461   : > { %v4541_v6 = vadd.f32 %v4540_v30, %v4501_v4  ;;  %v6416_v36 = vadd.f32 %v3774_v2, %v8637_v14  ;;  %v6326_v7 = vpop.f32.mrb[17].mxu0 }
 0x462   : > { %v3777_v9 = vpop.f32.mrb[18].mxu0 }
 0x463   : > { %v4409_v11 = vmul.f32 %v6416_v36, %v4239_v41  ;;  %v6417_v10 = vadd.f32 %v3777_v9, %v8639_v15  ;;  %v6327_v13 = vpop.f32.mrb[19].mxu0  ;;  %v4274_v9 = vpop.permute.xlu0 %4273 }
 0x465   : > { %v4450_v16 = vadd.f32 %v4449_v33, %v4409_v11  ;;  %v4502_v17 = vmul.f32 %v6416_v36, %v4409_v11  ;;  %v5105_v22 = vpack.c.bf16 %v6417_v10, %v6416_v36  ;;  %v4410_v19 = vmul.f32 %v6417_v10, %v4244_v56 }
 0x467   : > { %v4542_v23 = vadd.f32 %v4541_v6, %v4502_v17  ;;  %5215 = vst [vmem:[%s8670_s3 + $0x20] sm:$0xff] %v5105_v22   ;;  %v4451_v31 = vadd.f32 %v4450_v16, %v4410_v19  ;;  %v4503_v25 = vmul.f32 %v6417_v10, %v4410_v19 }
 0x468   : > { %v3782_v47 = vpop.f32.mrb[20].mxu0 }
 0x469   : > { %v4543_v26 = vadd.f32 %v4542_v23, %v4503_v25  ;;  %v6418_v14 = vadd.f32 %v3782_v47, %v8643_v63  ;;  %v6330_v27 = vpop.f32.mrb[21].mxu0 }
 0x46a   : > { %v3785_v53 = vpop.f32.mrb[22].mxu0 }
 0x46b   : > { %v4411_v18 = vmul.f32 %v6418_v14, %v4249_v32  ;;  %v6419_v15 = vadd.f32 %v3785_v53, %v8645_v24  ;;  %v6331_v21 = vpop.f32.mrb[23].mxu0 }
 0x46d   : > { %v4452_v12 = vadd.f32 %v4451_v31, %v4411_v18  ;;  %v4504_v46 = vmul.f32 %v6418_v14, %v4411_v18  ;;  %v5110_v44 = vpack.c.bf16 %v6419_v15, %v6418_v14  ;;  %v4412_v39 = vmul.f32 %v6419_v15, %v4254_v37  ;;  %v4284_v14 = vpop.permute.xlu0 %4283 }
 0x46f   : > { %v4544_v48 = vadd.f32 %v4543_v26, %v4504_v46  ;;  %5216 = vst [vmem:[%s8670_s3 + $0x28] sm:$0xff] %v5110_v44   ;;  %v4453_v20 = vadd.f32 %v4452_v12, %v4412_v39  ;;  %v4505_v50 = vmul.f32 %v6419_v15, %v4412_v39 }
 0x470   : > { %v3790_v51 = vpop.f32.mrb[24].mxu0 }
 0x471   : > { %v4545_v52 = vadd.f32 %v4544_v48, %v4505_v50  ;;  %v6420_v63 = vadd.f32 %v3790_v51, %v8647_v38  ;;  %v6334_v57 = vpop.f32.mrb[25].mxu0 }
 0x472   : > { %v3793_v40 = vpop.f32.mrb[26].mxu0 }
 0x473   : > { %v4413_v24 = vmul.f32 %v6420_v63, %v4259_v43  ;;  %v6421_v58 = vadd.f32 %v3793_v40, %v8649_v8  ;;  %v6335_v49 = vpop.f32.mrb[27].mxu0  ;;  %v4269_v8 = vpop.permute.xlu1 %4268 }
 0x474   : > { %v4294_v43 = vpop.permute.xlu0 %4293 }
 0x475   : > { %v4454_v54 = vadd.f32 %v4453_v20, %v4413_v24  ;;  %v4506_v59 = vmul.f32 %v6420_v63, %v4413_v24  ;;  %v5115_v0 = vpack.c.bf16 %v6421_v58, %v6420_v63  ;;  %v4414_v45 = vmul.f32 %v6421_v58, %v4264_v55 }
 0x477   : > { %v4546_v62 = vadd.f32 %v4545_v52, %v4506_v59  ;;  %5217 = vst [vmem:[%s8670_s3 + $0x30] sm:$0xff] %v5115_v0   ;;  %v4455_v61 = vadd.f32 %v4454_v54, %v4414_v45  ;;  %v4507_v30 = vmul.f32 %v6421_v58, %v4414_v45  ;;  %v4279_v19 = vpop.permute.xlu1 %4278 }
 0x478   : > { %v3798_v33 = vpop.f32.mrb[28].mxu0 }
 0x479   : > { %v4547_v38 = vadd.f32 %v4546_v62, %v4507_v30  ;;  %v6422_v4 = vadd.f32 %v3798_v33, %v8651_v29  ;;  %v6338_v2 = vpop.f32.mrb[29].mxu0 }
 0x47a   : > { %v3801_v6 = vpop.f32.mrb[30].mxu0 }
 0x47b   : > { %v4415_v36 = vmul.f32 %v6422_v4, %v4269_v8  ;;  %v6423_v7 = vadd.f32 %v3801_v6, %v8653_v3  ;;  %v6339_v41 = vpop.f32.mrb[31].mxu0  ;;  %v4289_v15 = vpop.permute.xlu1 %4288 }
 0x47d   : > { %v4456_v11 = vadd.f32 %v4455_v61, %v4415_v36  ;;  %v4508_v10 = vmul.f32 %v6422_v4, %v4415_v36  ;;  %v5120_v13 = vpack.c.bf16 %v6423_v7, %v6422_v4  ;;  %v4416_v56 = vmul.f32 %v6423_v7, %v4274_v9  ;;  %v4304_v36 = vpop.permute.xlu0 %4303 }
 0x47f   : > { %v4548_v16 = vadd.f32 %v4547_v38, %v4508_v10  ;;  %5218 = vst [vmem:[%s8670_s3 + $0x38] sm:$0xff] %v5120_v13   ;;  %v4457_v29 = vadd.f32 %v4456_v11, %v4416_v56  ;;  %v4509_v17 = vmul.f32 %v6423_v7, %v4416_v56  ;;  %v4299_v55 = vpop.permute.xlu1 %4298 }
 0x480   : > { %v3806_v22 = vpop.f32.mrb[32].mxu0 }
 0x481   : > { %v4549_v23 = vadd.f32 %v4548_v16, %v4509_v17  ;;  %v6424_v1 = vadd.f32 %v3806_v22, %v8655_v34  ;;  %v6342_v31 = vpop.f32.mrb[33].mxu0 }
 0x482   : > { %v3809_v25 = vpop.f32.mrb[34].mxu0 }
 0x483   : > { %v4417_v47 = vmul.f32 %v6424_v1, %v4279_v19  ;;  %v6425_v3 = vadd.f32 %v3809_v25, %v8657_v60  ;;  %v6343_v26 = vpop.f32.mrb[35].mxu0  ;;  %v4309_v10 = vpop.permute.xlu1 %4308 }
 0x484   : > { %v4314_v26 = vpop.permute.xlu0 %4313 }
 0x485   : > { %v4458_v27 = vadd.f32 %v4457_v29, %v4417_v47  ;;  %v4510_v32 = vmul.f32 %v6424_v1, %v4417_v47  ;;  %v5125_v53 = vpack.c.bf16 %v6425_v3, %v6424_v1  ;;  %v4418_v18 = vmul.f32 %v6425_v3, %v4284_v14 }
 0x487   : > { %v4550_v21 = vadd.f32 %v4549_v23, %v4510_v32  ;;  %5219 = vst [vmem:[%s8670_s3 + $0x40] sm:$0xff] %v5125_v53   ;;  %v4459_v37 = vadd.f32 %v4458_v27, %v4418_v18  ;;  %v4511_v12 = vmul.f32 %v6425_v3, %v4418_v18  ;;  %v2358_v46 = vpop.f32.mrb[44].mxu1  ;;  %v4319_v18 = vpop.permute.xlu1 %4318 }
 0x488   : > { %v3814_v44 = vpop.f32.mrb[36].mxu0  ;;  %v5954_v39 = vpop.f32.mrb[45].mxu1 }
 0x489   : > { %v4551_v34 = vadd.f32 %v4550_v21, %v4511_v12  ;;  %v6426_v48 = vadd.f32 %v3814_v44, %v8659_v5  ;;  %v6346_v20 = vpop.f32.mrb[37].mxu0  ;;  %v2361_v60 = vpop.f32.mrb[46].mxu1 }
 0x48a   : > { %v3817_v50 = vpop.f32.mrb[38].mxu0  ;;  %v5955_v51 = vpop.f32.mrb[47].mxu1 }
 0x48b   : > { %v4419_v52 = vmul.f32 %v6426_v48, %v4289_v15  ;;  %v6427_v63 = vadd.f32 %v3817_v50, %v8661_v35  ;;  %v6347_v57 = vpop.f32.mrb[39].mxu0 }
 0x48c   : > { %v4324_v57 = vpop.permute.xlu0 %4323 }
 0x48d   : > { %v4460_v40 = vadd.f32 %v4459_v37, %v4419_v52  ;;  %v4512_v24 = vmul.f32 %v6426_v48, %v4419_v52  ;;  %v5130_v58 = vpack.c.bf16 %v6427_v63, %v6426_v48  ;;  %v4420_v49 = vmul.f32 %v6427_v63, %v4294_v43 }
 0x48f   : > { %v4552_v54 = vadd.f32 %v4551_v34, %v4512_v24  ;;  %5220 = vst [vmem:[%s8670_s3 + $0x48] sm:$0xff] %v5130_v58   ;;  %v4461_v59 = vadd.f32 %v4460_v40, %v4420_v49  ;;  %v4513_v0 = vmul.f32 %v6427_v63, %v4420_v49  ;;  %v2366_v45 = vpop.f32.mrb[48].mxu1  ;;  %v4329_v49 = vpop.permute.xlu1 %4328 }
 0x490   : > { %v3822_v5 = vpop.f32.mrb[40].mxu0  ;;  %v5958_v62 = vpop.f32.mrb[49].mxu1 }
 0x491   : > { %v4553_v61 = vadd.f32 %v4552_v54, %v4513_v0  ;;  %v6428_v30 = vadd.f32 %v3822_v5, %v8663_v42  ;;  %v6350_v33 = vpop.f32.mrb[41].mxu0  ;;  %v2369_v35 = vpop.f32.mrb[50].mxu1 }
 0x492   : > { %v3825_v38 = vpop.f32.mrb[42].mxu0  ;;  %v5959_v4 = vpop.f32.mrb[51].mxu1 }
 0x493   : > { %v4421_v2 = vmul.f32 %v6428_v30, %v4299_v55  ;;  %v6429_v8 = vadd.f32 %v3825_v38, %v8665_v28  ;;  %v6351_v6 = vpop.f32.mrb[43].mxu0 }
 0x494   : > { %v4334_v6 = vpop.permute.xlu0 %4333 }
 0x495   : > { %v4462_v7 = vadd.f32 %v4461_v59, %v4421_v2  ;;  %v4514_v41 = vmul.f32 %v6428_v30, %v4421_v2  ;;  %v5135_v9 = vpack.c.bf16 %v6429_v8, %v6428_v30  ;;  %v4422_v11 = vmul.f32 %v6429_v8, %v4304_v36 }
 0x497   : > { %v4554_v13 = vadd.f32 %v4553_v61, %v4514_v41  ;;  %5221 = vst [vmem:[%s8670_s3 + $0x50] sm:$0xff] %v5135_v9   ;;  %v4463_v56 = vadd.f32 %v4462_v7, %v4422_v11  ;;  %v4515_v16 = vmul.f32 %v6429_v8, %v4422_v11  ;;  %v2374_v29 = vpop.f32.mrb[52].mxu1  ;;  %v4339_v11 = vpop.permute.xlu1 %4338 }
 0x498   : > { %v3830_v42 = vpop.f32.mrb[44].mxu0  ;;  %v5962_v17 = vpop.f32.mrb[53].mxu1 }
 0x499   : > { %v4555_v22 = vadd.f32 %v4554_v13, %v4515_v16  ;;  %v6430_v19 = vadd.f32 %v3830_v42, %v2358_v46  ;;  %v6354_v23 = vpop.f32.mrb[45].mxu0  ;;  %v2377_v1 = vpop.f32.mrb[54].mxu1 }
 0x49a   : > { %v3833_v28 = vpop.f32.mrb[46].mxu0  ;;  %v5963_v31 = vpop.f32.mrb[55].mxu1 }
 0x49b   : > { %v4423_v25 = vmul.f32 %v6430_v19, %v4309_v10  ;;  %v6431_v47 = vadd.f32 %v3833_v28, %v2361_v60  ;;  %v6355_v3 = vpop.f32.mrb[47].mxu0 }
 0x49c   : > { %v4344_v3 = vpop.permute.xlu0 %4343 }
 0x49d   : > { %v4464_v14 = vadd.f32 %v4463_v56, %v4423_v25  ;;  %v4516_v27 = vmul.f32 %v6430_v19, %v4423_v25  ;;  %v5140_v32 = vpack.c.bf16 %v6431_v47, %v6430_v19  ;;  %v4424_v53 = vmul.f32 %v6431_v47, %v4314_v26 }
 0x49f   : > { %v4556_v15 = vadd.f32 %v4555_v22, %v4516_v27  ;;  %5222 = vst [vmem:[%s8670_s3 + $0x58] sm:$0xff] %v5140_v32   ;;  %v4465_v21 = vadd.f32 %v4464_v14, %v4424_v53  ;;  %v4517_v37 = vmul.f32 %v6431_v47, %v4424_v53  ;;  %v2382_v12 = vpop.f32.mrb[56].mxu1  ;;  %v4349_v53 = vpop.permute.xlu1 %4348 }
 0x4a0   : > { %v3838_v44 = vpop.f32.mrb[48].mxu0  ;;  %v5966_v46 = vpop.f32.mrb[57].mxu1 }
 0x4a1   : > { %v4557_v39 = vadd.f32 %v4556_v15, %v4517_v37  ;;  %v6432_v34 = vadd.f32 %v3838_v44, %v2366_v45  ;;  %v6358_v48 = vpop.f32.mrb[49].mxu0  ;;  %v2385_v20 = vpop.f32.mrb[58].mxu1 }
 0x4a2   : > { %v3841_v60 = vpop.f32.mrb[50].mxu0  ;;  %v5967_v50 = vpop.f32.mrb[59].mxu1 }
 0x4a3   : > { %v4425_v51 = vmul.f32 %v6432_v34, %v4319_v18  ;;  %v6433_v52 = vadd.f32 %v3841_v60, %v2369_v35  ;;  %v6359_v63 = vpop.f32.mrb[51].mxu0 }
 0x4a4   : > { %v4354_v63 = vpop.permute.xlu0 %4353 }
 0x4a5   : > { %v4466_v43 = vadd.f32 %v4465_v21, %v4425_v51  ;;  %v4518_v40 = vmul.f32 %v6432_v34, %v4425_v51  ;;  %v5145_v24 = vpack.c.bf16 %v6433_v52, %v6432_v34  ;;  %v4426_v58 = vmul.f32 %v6433_v52, %v4324_v57 }
 0x4a7   : > { %v4558_v55 = vadd.f32 %v4557_v39, %v4518_v40  ;;  %5223 = vst [vmem:[%s8670_s3 + $0x60] sm:$0xff] %v5145_v24   ;;  %v4467_v54 = vadd.f32 %v4466_v43, %v4426_v58  ;;  %v4519_v59 = vmul.f32 %v6433_v52, %v4426_v58  ;;  %v2390_v0 = vpop.f32.mrb[60].mxu1  ;;  %v4359_v58 = vpop.permute.xlu1 %4358 }
 0x4a8   : > { %v3846_v5 = vpop.f32.mrb[52].mxu0  ;;  %v5970_v45 = vpop.f32.mrb[61].mxu1 }
 0x4a9   : > { %v4559_v62 = vadd.f32 %v4558_v55, %v4519_v59  ;;  %v6434_v61 = vadd.f32 %v3846_v5, %v2374_v29  ;;  %v6362_v30 = vpop.f32.mrb[53].mxu0  ;;  %v2393_v33 = vpop.f32.mrb[62].mxu1 }
 0x4aa   : > { %v3849_v35 = vpop.f32.mrb[54].mxu0  ;;  %v5971_v38 = vpop.f32.mrb[63].mxu1 }
 0x4ab   : > { %v4427_v4 = vmul.f32 %v6434_v61, %v4329_v49  ;;  %v6435_v2 = vadd.f32 %v3849_v35, %v2377_v1  ;;  %v6363_v8 = vpop.f32.mrb[55].mxu0 }
 0x4ac   : > { %v4364_v8 = vpop.permute.xlu0 %4363 }
 0x4ad   : > { %v4468_v36 = vadd.f32 %v4467_v54, %v4427_v4  ;;  %v4520_v7 = vmul.f32 %v6434_v61, %v4427_v4  ;;  %v5150_v41 = vpack.c.bf16 %v6435_v2, %v6434_v61  ;;  %v4428_v9 = vmul.f32 %v6435_v2, %v4334_v6 }
 0x4af   : > { %v4560_v10 = vadd.f32 %v4559_v62, %v4520_v7  ;;  %5224 = vst [vmem:[%s8670_s3 + $0x68] sm:$0xff] %v5150_v41   ;;  %v4469_v13 = vadd.f32 %v4468_v36, %v4428_v9  ;;  %v4521_v56 = vmul.f32 %v6435_v2, %v4428_v9  ;;  %v2398_v16 = vpop.f32.mrb[64].mxu1  ;;  %v4369_v9 = vpop.permute.xlu1 %4368 }
 0x4b0   : > { %v3854_v42 = vpop.f32.mrb[56].mxu0  ;;  %v5974_v29 = vpop.f32.mrb[65].mxu1 }
 0x4b1   : > { %v4561_v17 = vadd.f32 %v4560_v10, %v4521_v56  ;;  %v6436_v22 = vadd.f32 %v3854_v42, %v2382_v12  ;;  %v6366_v19 = vpop.f32.mrb[57].mxu0  ;;  %v2401_v23 = vpop.f32.mrb[66].mxu1 }
 0x4b2   : > { %v3857_v1 = vpop.f32.mrb[58].mxu0  ;;  %v5975_v28 = vpop.f32.mrb[67].mxu1 }
 0x4b3   : > { %v4429_v31 = vmul.f32 %v6436_v22, %v4339_v11  ;;  %v6437_v25 = vadd.f32 %v3857_v1, %v2385_v20  ;;  %v6367_v47 = vpop.f32.mrb[59].mxu0 }
 0x4b4   : > { %v4374_v47 = vpop.permute.xlu0 %4373 }
 0x4b5   : > { %v4470_v26 = vadd.f32 %v4469_v13, %v4429_v31  ;;  %v4522_v14 = vmul.f32 %v6436_v22, %v4429_v31  ;;  %v5155_v27 = vpack.c.bf16 %v6437_v25, %v6436_v22  ;;  %v4430_v32 = vmul.f32 %v6437_v25, %v4344_v3 }
 0x4b7   : > { %v4562_v18 = vadd.f32 %v4561_v17, %v4522_v14  ;;  %5225 = vst [vmem:[%s8670_s3 + $0x70] sm:$0xff] %v5155_v27   ;;  %v4471_v15 = vadd.f32 %v4470_v26, %v4430_v32  ;;  %v4523_v21 = vmul.f32 %v6437_v25, %v4430_v32  ;;  %v2406_v37 = vpop.f32.mrb[68].mxu1  ;;  %v4379_v32 = vpop.permute.xlu1 %4378 }
 0x4b8   : > { %v3862_v44 = vpop.f32.mrb[60].mxu0  ;;  %v5978_v12 = vpop.f32.mrb[69].mxu1 }
 0x4b9   : > { %v4563_v46 = vadd.f32 %v4562_v18, %v4523_v21  ;;  %v6438_v39 = vadd.f32 %v3862_v44, %v2390_v0  ;;  %v6370_v34 = vpop.f32.mrb[61].mxu0  ;;  %v2409_v48 = vpop.f32.mrb[70].mxu1 }
 0x4ba   : > { %v3865_v20 = vpop.f32.mrb[62].mxu0  ;;  %v5979_v60 = vpop.f32.mrb[71].mxu1 }
 0x4bb   : > { %v4431_v50 = vmul.f32 %v6438_v39, %v4349_v53  ;;  %v6439_v51 = vadd.f32 %v3865_v20, %v2393_v33  ;;  %v6371_v52 = vpop.f32.mrb[63].mxu0 }
 0x4bc   : > { %v4384_v52 = vpop.permute.xlu0 %4383 }
 0x4bd   : > { %v4472_v57 = vadd.f32 %v4471_v15, %v4431_v50  ;;  %v4524_v43 = vmul.f32 %v6438_v39, %v4431_v50  ;;  %v5160_v40 = vpack.c.bf16 %v6439_v51, %v6438_v39  ;;  %v4432_v24 = vmul.f32 %v6439_v51, %v4354_v63 }
 0x4bf   : > { %v4564_v49 = vadd.f32 %v4563_v46, %v4524_v43  ;;  %5226 = vst [vmem:[%s8670_s3 + $0x78] sm:$0xff] %v5160_v40   ;;  %v4473_v55 = vadd.f32 %v4472_v57, %v4432_v24  ;;  %v4525_v54 = vmul.f32 %v6439_v51, %v4432_v24  ;;  %v2414_v59 = vpop.f32.mrb[72].mxu1 }
 0x4c0   : > { %v3870_v5 = vpop.f32.mrb[64].mxu0  ;;  %v5982_v0 = vpop.f32.mrb[73].mxu1 }
 0x4c1   : > { %v4565_v45 = vadd.f32 %v4564_v49, %v4525_v54  ;;  %v6440_v62 = vadd.f32 %v3870_v5, %v2398_v16  ;;  %v6374_v61 = vpop.f32.mrb[65].mxu0  ;;  %v2417_v30 = vpop.f32.mrb[74].mxu1 }
 0x4c2   : > { %v3873_v33 = vpop.f32.mrb[66].mxu0  ;;  %v5983_v35 = vpop.f32.mrb[75].mxu1 }
 0x4c3   : > { %v4433_v38 = vmul.f32 %v6440_v62, %v4359_v58  ;;  %v6441_v4 = vadd.f32 %v3873_v33, %v2401_v23  ;;  %v6375_v2 = vpop.f32.mrb[67].mxu0  ;;  %v4389_v0 = vpop.permute.xlu1 %4388 }
 0x4c4   : > { %v4394_v33 = vpop.permute.xlu0 %4393 }
 0x4c5   : > { %v4474_v6 = vadd.f32 %v4473_v55, %v4433_v38  ;;  %v4526_v36 = vmul.f32 %v6440_v62, %v4433_v38  ;;  %v5165_v7 = vpack.c.bf16 %v6441_v4, %v6440_v62  ;;  %v4434_v41 = vmul.f32 %v6441_v4, %v4364_v8 }
 0x4c7   : > { %v4566_v11 = vadd.f32 %v4565_v45, %v4526_v36  ;;  %5227 = vst [vmem:[%s8670_s3 + $0x80] sm:$0xff] %v5165_v7   ;;  %v4475_v10 = vadd.f32 %v4474_v6, %v4434_v41  ;;  %v4527_v13 = vmul.f32 %v6441_v4, %v4434_v41  ;;  %v2422_v56 = vpop.f32.mrb[76].mxu1 }
 0x4c8   : > { %v3878_v42 = vpop.f32.mrb[68].mxu0  ;;  %v5986_v16 = vpop.f32.mrb[77].mxu1 }
 0x4c9   : > { %v4567_v29 = vadd.f32 %v4566_v11, %v4527_v13  ;;  %v6442_v17 = vadd.f32 %v3878_v42, %v2406_v37  ;;  %v6378_v22 = vpop.f32.mrb[69].mxu0  ;;  %v2425_v19 = vpop.f32.mrb[78].mxu1 }
 0x4ca   : > { %v3881_v23 = vpop.f32.mrb[70].mxu0  ;;  %v5987_v1 = vpop.f32.mrb[79].mxu1 }
 0x4cb   : > { %v4435_v28 = vmul.f32 %v6442_v17, %v4369_v9  ;;  %v6443_v31 = vadd.f32 %v3881_v23, %v2409_v48  ;;  %v6379_v25 = vpop.f32.mrb[71].mxu0 }
 0x4cd   : > { %v4476_v3 = vadd.f32 %v4475_v10, %v4435_v28  ;;  %v4528_v26 = vmul.f32 %v6442_v17, %v4435_v28  ;;  %v5170_v14 = vpack.c.bf16 %v6443_v31, %v6442_v17  ;;  %v4436_v27 = vmul.f32 %v6443_v31, %v4374_v47  ;;  %v4399_v10 = vpop.permute.xlu1 %4398 }
 0x4cf   : > { %v4568_v53 = vadd.f32 %v4567_v29, %v4528_v26  ;;  %5228 = vst [vmem:[%s8670_s3 + $0x88] sm:$0xff] %v5170_v14   ;;  %v4477_v18 = vadd.f32 %v4476_v3, %v4436_v27  ;;  %v4529_v15 = vmul.f32 %v6443_v31, %v4436_v27  ;;  %v2430_v21 = vpop.f32.mrb[80].mxu1 }
 0x4d0   : > { %v3886_v44 = vpop.f32.mrb[72].mxu0  ;;  %v5990_v37 = vpop.f32.mrb[81].mxu1 }
 0x4d1   : > { %v4569_v12 = vadd.f32 %v4568_v53, %v4529_v15  ;;  %v6444_v46 = vadd.f32 %v3886_v44, %v2414_v59  ;;  %v6382_v39 = vpop.f32.mrb[73].mxu0  ;;  %v2433_v34 = vpop.f32.mrb[82].mxu1 }
 0x4d2   : > { %v3889_v48 = vpop.f32.mrb[74].mxu0  ;;  %v5991_v20 = vpop.f32.mrb[83].mxu1 }
 0x4d3   : > { %v4437_v60 = vmul.f32 %v6444_v46, %v4379_v32  ;;  %v6445_v50 = vadd.f32 %v3889_v48, %v2417_v30  ;;  %v6383_v51 = vpop.f32.mrb[75].mxu0 }
 0x4d5   : > { %v4478_v63 = vadd.f32 %v4477_v18, %v4437_v60  ;;  %v4530_v57 = vmul.f32 %v6444_v46, %v4437_v60  ;;  %v5175_v43 = vpack.c.bf16 %v6445_v50, %v6444_v46  ;;  %v4438_v40 = vmul.f32 %v6445_v50, %v4384_v52 }
 0x4d7   : > { %v4570_v24 = vadd.f32 %v4569_v12, %v4530_v57  ;;  %5229 = vst [vmem:[%s8670_s3 + $0x90] sm:$0xff] %v5175_v43   ;;  %v4479_v58 = vadd.f32 %v4478_v63, %v4438_v40  ;;  %v4531_v49 = vmul.f32 %v6445_v50, %v4438_v40 }
 0x4d8   : > { %v3894_v55 = vpop.f32.mrb[76].mxu0 }
 0x4d9   : > { %v4571_v54 = vadd.f32 %v4570_v24, %v4531_v49  ;;  %v6446_v59 = vadd.f32 %v3894_v55, %v2422_v56  ;;  %v6386_v5 = vpop.f32.mrb[77].mxu0 }
 0x4da   : > { %v3897_v45 = vpop.f32.mrb[78].mxu0 }
 0x4db   : > { %v4439_v62 = vmul.f32 %v6446_v59, %v4389_v0  ;;  %v6447_v61 = vadd.f32 %v3897_v45, %v2425_v19  ;;  %v6387_v30 = vpop.f32.mrb[79].mxu0 }
 0x4dd   : > { %v4480_v35 = vadd.f32 %v4479_v58, %v4439_v62  ;;  %v4532_v38 = vmul.f32 %v6446_v59, %v4439_v62  ;;  %v5180_v4 = vpack.c.bf16 %v6447_v61, %v6446_v59  ;;  %v4440_v2 = vmul.f32 %v6447_v61, %v4394_v33 }
 0x4df   : > { %v4572_v8 = vadd.f32 %v4571_v54, %v4532_v38  ;;  %5230 = vst [vmem:[%s8670_s3 + $0x98] sm:$0xff] %v5180_v4   ;;  %v4481_v6 = vadd.f32 %v4480_v35, %v4440_v2  ;;  %v4533_v36 = vmul.f32 %v6447_v61, %v4440_v2 }
 0x4e0   : > { %v3902_v7 = vpop.f32.mrb[80].mxu0 }
 0x4e1   : > { %v4573_v41 = vadd.f32 %v4572_v8, %v4533_v36  ;;  %v6448_v9 = vadd.f32 %v3902_v7, %v2430_v21  ;;  %v6390_v11 = vpop.f32.mrb[81].mxu0 }
 0x4e2   : > { %v3905_v13 = vpop.f32.mrb[82].mxu0 }
 0x4e3   : > { %v4953_v56 = vpack.c.bf16 %v6448_v9, %v6448_v9  ;;  %v4441_v42 = vmul.f32 %v6448_v9, %v4399_v10  ;;  %v6391_v16 = vpop.f32.mrb[83].mxu0 }
 0x4e5   : > { %4154 = vst [vmem:[%s8670_s3 + $0xa0] sm:$0x3] %v4953_v56  ;;  %v4483_v29 = vsel %vm4482_vm3, %v4441_v42, 0.0  ;;  %v4534_v17 = vmul.f32 %v6448_v9, %v4441_v42 }
 0x4e6   : > { %v4484_v22 = vadd.f32 %v4483_v29, %v4481_v6 }
 0x4e7   : > { %7425 = shalt.err (!%p7422_p7)
}
 0x4e8   : > { %s7426_s10 = scalar_lea.hbm %s8722_s22, 2624  ;;  %s7430_s28 = scalar_lea.hbm %s8816_s4, 5248 }
 0x4e9   : > { %p7427_p12 = scmp.ne.s32.totalorder %s8722_s22, %s7426_s10  ;;  %p7431_p11 = scmp.lt.u32.totalorder %s8722_s22, %s8816_s4 }
 0x4ea   : > { %p7432_p13 = scmp.lt.u32.totalorder %s7430_s28, %s7426_s10  ;;  %p7434_p2 = scmp.lt.u32.totalorder %s7426_s10, %s8722_s22 }
 0x4eb   : > { %p7428_p1 = pnand %p7427_p12, %p8850_p6 }
 0x4ec   : > { %p7433_p0 = por %p7432_p13, %p7431_p11 }
 0x4ed   : > { %p7429_p8 = pneg %p7428_p1 }
 0x4ee   : > { %p7435_p10 = por %p7434_p2, %p7433_p0 }
 0x4f0   : > { %p7436_p3 = pnand %p7435_p10, %p7429_p8 }
 0x4f2   : > { %7439 = shalt.err (!%p7436_p3)
}
 0x4f3   : > { %s7553_s3 = smov 64   ;;  %v4574_v19 = vsel %vm4482_vm3, %v4534_v17, 0.0  ;;  %v4485_v23 = vrot.slane %v4484_v22, 4  ;;  %v4442_v32 = vld [vmem:[%s8693_s14] sm:$0x1]  ;;  %s4620_s25 = sshll.u32 %s8693_s14, 4  ;;  %s8764_s25 = int_to_ptr.vmem [resolvable:$true] %s4620_s25 }
 0x4f4   : > { %7051 = dma.vmem_to_hbm [thread:$0]  (%p8850_p6), %s8724_s17, 2624, %s8722_s22, %s4585_s8, %s7553_s3, %s7553_s3, %s7550_s24   ;;  %v4575_v1 = vadd.f32 %v4574_v19, %v4573_v41 }
 0x4f5   : > { %v4486_v28 = vadd.f32 %v4485_v23, %v4484_v22  ;;  %v4493_v15 = vld [vmem:[%s8693_s14 + $0x1] sm:$0x1]  ;;  %s4908_s24 = sshll.u32 %s7530_s21, 7  ;;  %s4590_s13 = scalar_lea.sflag [#allocation13], %s7816_s15 }
 0x4f6   : > { %v4576_v31 = vrot.slane %v4575_v1, 4  ;;  %s8762_s2 = scalar_lea.hbm %s8817_s5, %s4908_s24  ;;  %s7440_s22 = scalar_lea.vmem %s8764_s25, 128 }
 0x4f7   : > { %v4487_v25 = vrot.slane %v4486_v28, 2  ;;  %p7441_p4 = scmp.ne.s32.totalorder %s8764_s25, %s7440_s22  ;;  %s7554_s21 = smov [#allocation12]  }
 0x4f8   : > { %v4577_v47 = vadd.f32 %v4576_v31, %v4575_v1  ;;  %s7444_s8 = sshll.u32 %s7554_s21, 4  ;;  %s7445_s8 = int_to_ptr.vmem [resolvable:$false] %s7444_s8 }
 0x4f9   : > { %v4488_v3 = vadd.f32 %v4487_v25, %v4486_v28  ;;  %p7442_p9 = pnand %p7441_p4, %p8850_p6  ;;  %s7446_s29 = scalar_lea.vmem %s7445_s8, 256 }
 0x4fa   : > { %v4578_v26 = vrot.slane %v4577_v47, 2  ;;  %p7447_p7 = scmp.lt.s32.totalorder %s8764_s25, %s7445_s8  ;;  %p7448_p12 = scmp.lt.s32.totalorder %s7446_s29, %s7440_s22 }
 0x4fb   : > { %v4489_v14 = vrot.slane %v4488_v3, 1  ;;  %p7443_p5 = pneg %p7442_p9 }
 0x4fc   : > { %v4579_v27 = vadd.f32 %v4578_v26, %v4577_v47  ;;  %p7449_p1 = por %p7448_p12, %p7447_p7 }
 0x4fd   : > { %v4490_v53 = vadd.f32 %v4489_v14, %v4488_v3 }
 0x4fe   : > { %v4580_v18 = vrot.slane %v4579_v27, 1  ;;  %p7450_p8 = pnand %p7449_p1, %p7443_p5 }
 0x4ff   : > { %v4491_v44 = vadd.f32 %v4490_v53, %v4442_v32 }
 0x500   : > { %v4581_v21 = vadd.f32 %v4580_v18, %v4579_v27 }
 0x501   : > { %4492 = vst [vmem:[%s8693_s14] sm:$0x1] %v4491_v44 }
 0x502   : > { %v4582_v37 = vadd.f32 %v4581_v21, %v4493_v15 }
 0x504   : > { %4583 = vst [vmem:[%s8693_s14 + $0x1] sm:$0x1] %v4582_v37 }
 0x505   : > { %7453 = shalt.err (!%p7450_p8)
}
 0x506   : > { %s7454_s15 = scalar_lea.hbm %s8762_s2, 128  ;;  %s7458_s0 = scalar_lea.hbm %s8817_s5, 256 }
 0x507   : > { %p7455_p11 = scmp.ne.s32.totalorder %s8762_s2, %s7454_s15  ;;  %p7459_p2 = scmp.lt.u32.totalorder %s8762_s2, %s8817_s5 }
 0x508   : > { %p7460_p10 = scmp.lt.u32.totalorder %s7458_s0, %s7454_s15  ;;  %p7462_p4 = scmp.lt.u32.totalorder %s7454_s15, %s8762_s2 }
 0x509   : > { %p7456_p13 = pnand %p7455_p11, %p8850_p6 }
 0x50a   : > { %p7461_p3 = por %p7460_p10, %p7459_p2 }
 0x50b   : > { %p7457_p0 = pneg %p7456_p13 }
 0x50c   : > { %p7463_p9 = por %p7462_p4, %p7461_p3 }
 0x50e   : > { %p7464_p5 = pnand %p7463_p9, %p7457_p0 }
 0x510   : > { %7467 = shalt.err (!%p7464_p5)
}
 0x511   : > { %7052 = dma.vmem_to_hbm [thread:$0]  (%p8850_p6), %s8764_s25, 128, %s8762_s2, %s4590_s13  }
 0x512 PF: > { %s4632_s11 = sand.u32 1, %s7518_s18   ;;  %p8851_p7 = scmp.ne.s32.totalorder %s8832_s27, 0 }
 0x513   : > { %p8852_p12 = scmp.ge.s32.totalorder %s7538_s23, 2  ;;  %s4633_s6 = scalar_lea.sflag [#allocation5], %s4632_s11 }
 0x515   : > { %p7070_p1 = pnand %p8852_p12, %p8851_p7 }
 0x517   : > { %7509 = dma.done.wait (!%p7070_p1), %s4633_s6, 2624  }
 0x518   : > { %7511 = vsyncadd (!%p7070_p1), %s4633_s6, 4294964672  ;;  %s4642_s28 = scalar_lea.sflag [#allocation13], %s4632_s11 }
 0x519   : > { %7513 = dma.done.wait (!%p7070_p1), %s4642_s28, 128  }
 0x51a   : > { %7515 = vsyncadd (!%p7070_p1), %s4642_s28, 4294967168  ;;  %s29_s23 = sadd.s32 1, %s7538_s23   ;;  %s8853_s12 = sld [smem:[#allocation22_spill]] }
 0x51b   : > { %p26_p8 = scmp.ge.s32.totalorder %s29_s23, 4   ;;  %s8854_s21 = sld [smem:[#allocation20_spill]] }
 0x51c   : > { %s8855_s22 = sld [smem:[#allocation21_spill]]  ;;  %s8856_s18 = smov %s7522_s19 }
 0x51d   : > { %s8857_s19 = smov %s7526_s20  ;;  %28 = sbr.rel (!%p26_p8) target bundleno = 15 (0xf), region = 131 }
 0x520   : > { %s8858_s20 = smov %s8853_s12 }
 0x524   :  { %4647 = vsyncpa [#allocation4], 1 }
 0x525   :  { %4649 = vsyncpa [#allocation4 + $0x1], 1 }
 0x526   :  { %4650 = vsyncpa [#allocation7], 1 }
 0x527   :  { %4652 = vsyncpa [#allocation7 + $0x1], 1 }
 0x528   :  { %4653 = vsyncpa [#allocation10], 1 }
 0x529   :  { %4654 = vsyncpa [#allocation5], 1 }
 0x52a   :  { %4656 = vsyncpa [#allocation5 + $0x1], 1 }
 0x52b   :  { %4657 = vsyncpa [#allocation13], 1 }
 0x52c   :  { %4659 = vsyncpa [#allocation13 + $0x1], 1 }

// kernel: up_forward.6
= control target key start
LH: loop header
LB: loop body
LE: loop exit
PB: predicated region body
PF: predicated region fallthrough
CT: control target
= control target key end

     0   :  { %s10623_s0 = inlined_call_operand.hbm [shape: bf16[2,324,128], index: 0, kind: input, shape index: {}]   ;;  %s10624_s1 = inlined_call_operand.hbm [shape: f32[8,128], index: 1, kind: input, shape index: {}]   ;;  %s10625_s2 = inlined_call_operand.hbm [shape: f32[1,128], index: 2, kind: input, shape index: {}]   ;;  %s10626_s3 = inlined_call_operand.hbm [shape: f32[1,128], index: 3, kind: input, shape index: {}]   ;;  %s10627_s4 = inlined_call_operand.hbm [shape: f32[2,8,8], index: 4, kind: input, shape index: {}]   ;;  %s10628_s5 = inlined_call_operand.hbm [shape: f32[8,128], index: 5, kind: input, shape index: {}]   ;;  %s10629_s6 = inlined_call_operand.hbm [shape: f32[1,128], index: 6, kind: input, shape index: {}]   ;;  %s10630_s7 = inlined_call_operand.hbm [shape: f32[324,1], index: 7, kind: input, shape index: {}]   ;;  %s10631_s8 = inlined_call_operand.hbm [shape: bf16[9,128,128], index: 8, kind: input, shape index: {}]   ;;  %s10632_s9 = inlined_call_operand.hbm [shape: bf16[2,324,128], index: 9, kind: output, shape index: {0}]   ;;  %s10633_s10 = inlined_call_operand.hbm [shape: f32[2,8,128], index: 10, kind: output, shape index: {1}]  }
   0x1   :  { %10711 = sst [smem:[#allocation90_spill]] %s10623_s0 }
   0x2   :  { %10712 = sst [smem:[#allocation91_spill]] %s10624_s1 }
   0x3   :  { %10713 = sst [smem:[#allocation92_spill]] %s10625_s2 }
   0x4   :  { %10714 = sst [smem:[#allocation93_spill]] %s10626_s3 }
   0x5   :  { %10715 = sst [smem:[#allocation94_spill]] %s10630_s7 }
   0x6   :  { %10716 = sst [smem:[#allocation95_spill]] %s10632_s9 }
   0x7   :  { %10717 = sst [smem:[#allocation96_spill]] %s10633_s10 }
   0x8   :  { %16 = vsyncpa [#allocation4], 0 }
   0x9   :  { %18 = vsyncpa [#allocation4 + $0x1], 0 }
   0xa   :  { %19 = vsyncpa [#allocation7], 0 }
   0xb   :  { %20 = vsyncpa [#allocation10], 0 }
   0xc   :  { %21 = vsyncpa [#allocation15], 0 }
   0xd   :  { %22 = vsyncpa [#allocation5], 0 }
   0xe   :  { %24 = vsyncpa [#allocation5 + $0x1], 0 }
   0xf   :  { %25 = vsyncpa [#allocation19], 0 }
  0x10   :  { %27 = vsyncpa [#allocation19 + $0x1], 0  ;;  %s8480_s13 = smov 0   ;;  %s8482_s14 = smov 0  }
  0x11   :  { %s8484_s15 = smov 0   ;;  %s8486_s16 = smov 0  }
  0x12   :  { %s8488_s17 = smov 0   ;;  %s8490_s18 = smov 0  }
  0x13 LB: > { %10718 = sst [smem:[#allocation29_spill]] %s8383_s13  ;;  %s8511_s19 = sadd.s32 4294967295, %s8403_s18   ;;  %s8403_s18 = sphi %s8490_s18, %s33_s18   ;;  %s8399_s17 = sphi %s8488_s17, %s10932_s17   ;;  %s8395_s16 = sphi %s8486_s16, %s10931_s16   ;;  %s8391_s15 = sphi %s8484_s15, %s10930_s15   ;;  %s8387_s14 = sphi %s8482_s14, %s10929_s14   ;;  %s8383_s13 = sphi %s8480_s13, %s10928_s13  }
  0x14   : > { %10719 = sst [smem:[#allocation30_spill]] %s8403_s18  ;;  %p5382_p0 = scmp.ge.s32.totalorder %s8403_s18, 1 }
  0x15   : > { %p10634_p1 = scmp.eq.s32.totalorder %s8511_s19, 0  ;;  %p307_p2 = scmp.lt.s32.totalorder %s8403_s18, 3 }
  0x16   : > { %s8405_s21 = smov [#allocation6]   ;;  %s8406_s23 = smov [#allocation8]  }
  0x17   : > { %p8516_p3 = pnand %p5382_p0, %p307_p2  ;;  %s320_s22 = sshll.u32 %s8405_s21, 4  ;;  %s321_s22 = int_to_ptr.vmem [resolvable:$true] %s320_s22 }
  0x18   : > { %s331_s24 = sshll.u32 %s8406_s23, 4  ;;  %s8407_s26 = smov [#allocation9]   ;;  %s8529_s24 = int_to_ptr.vmem [resolvable:$true] %s331_s24 }
  0x19   : > { %s10720_s20 = scalar_select %p8516_p3, 1, 0 }
  0x1a   : > { %p7637_p5 = pneg %p8516_p3  ;;  %s342_s27 = sshll.u32 %s8407_s26, 4  ;;  %s8531_s27 = int_to_ptr.vmem [resolvable:$true] %s342_s27 }
  0x1b   : > { %s10722_s1 = sld [smem:[#allocation91_spill]] }
  0x1c   : > { %p8525_p6 = pnand %p7637_p5, %p10634_p1 }
  0x1e   : > { %s10721_s25 = scalar_select %p8525_p6, 1, 0 }
  0x1f   : > { %p8541_p8 = pneg %p8525_p6 }
  0x21   : > { %s8009_s30 = scalar_lea.hbm %s10722_s1, 128 }
  0x22   : > { %p8010_p7 = scmp.ne.s32.totalorder %s10722_s1, %s8009_s30  ;;  %p8016_p11 = scmp.lt.u32.totalorder %s8009_s30, %s10722_s1 }
  0x24   : > { %p8012_p9 = pnand %p8541_p8, %p8010_p7 }
  0x26   : > { %p8013_p10 = pneg %p8012_p9 }
  0x28   : > { %p8018_p12 = pnand %p8016_p11, %p8013_p10 }
  0x2a   : > { %8021 = shalt.err (!%p8018_p12)
}
  0x2b   : > { %s8022_s28 = scalar_lea.vmem %s321_s22, 128  ;;  %p8030_p5 = scmp.lt.s32.totalorder %s321_s22, %s321_s22 }
  0x2c   : > { %p8023_p13 = scmp.ne.s32.totalorder %s321_s22, %s8022_s28  ;;  %p8031_p4 = scmp.lt.s32.totalorder %s8022_s28, %s8022_s28 }
  0x2e   : > { %p8025_p0 = pnand %p8023_p13, %p8541_p8  ;;  %p8032_p1 = por %p8031_p4, %p8030_p5 }
  0x30   : > { %p8026_p2 = pneg %p8025_p0 }
  0x32   : > { %p8033_p3 = pnand %p8032_p1, %p8026_p2 }
  0x34   : > { %8036 = shalt.err (!%p8033_p3)
}
  0x35   : > { %7640 = dma.hbm_to_vmem [thread:$0]  (!%p8525_p6), %s10722_s1, 128, %s321_s22, [#allocation7]  }
  0x36   : > { %s10724_s2 = sld [smem:[#allocation92_spill]] }
  0x3c   : > { %s8037_s23 = scalar_lea.hbm %s10724_s2, 16 }
  0x3d   : > { %p8038_p7 = scmp.ne.s32.totalorder %s10724_s2, %s8037_s23  ;;  %p8044_p1 = scmp.lt.u32.totalorder %s8037_s23, %s10724_s2 }
  0x3f   : > { %p8040_p9 = pnand %p8038_p7, %p8541_p8 }
  0x41   : > { %p8041_p4 = pneg %p8040_p9 }
  0x43   : > { %p8046_p3 = pnand %p8044_p1, %p8041_p4 }
  0x45   : > { %8049 = shalt.err (!%p8046_p3)
}
  0x46   : > { %s8050_s22 = scalar_lea.vmem %s8529_s24, 16  ;;  %s8057_s10 = scalar_lea.vmem %s8529_s24, 32 }
  0x47   : > { %p8051_p10 = scmp.ne.s32.totalorder %s8529_s24, %s8050_s22  ;;  %p8058_p13 = scmp.lt.s32.totalorder %s8529_s24, %s8529_s24 }
  0x48   : > { %p8059_p0 = scmp.lt.s32.totalorder %s8057_s10, %s8050_s22 }
  0x49   : > { %p8053_p11 = pnand %p8051_p10, %p8541_p8 }
  0x4a   : > { %p8060_p2 = por %p8059_p0, %p8058_p13 }
  0x4b   : > { %p8054_p12 = pneg %p8053_p11 }
  0x4d   : > { %p8061_p5 = pnand %p8060_p2, %p8054_p12 }
  0x4f   : > { %8064 = shalt.err (!%p8061_p5)
}
  0x50   : > { %7643 = dma.hbm_to_vmem [thread:$0]  (!%p8525_p6), %s10724_s2, 16, %s8529_s24, [#allocation7]  }
  0x51   : > { %s10725_s3 = sld [smem:[#allocation93_spill]] }
  0x57   : > { %s8065_s12 = scalar_lea.hbm %s10725_s3, 16 }
  0x58   : > { %p8066_p7 = scmp.ne.s32.totalorder %s10725_s3, %s8065_s12  ;;  %p8072_p1 = scmp.lt.u32.totalorder %s8065_s12, %s10725_s3 }
  0x5a   : > { %p8068_p9 = pnand %p8066_p7, %p8541_p8 }
  0x5c   : > { %p8069_p4 = pneg %p8068_p9 }
  0x5e   : > { %p8074_p3 = pnand %p8072_p1, %p8069_p4 }
  0x60   : > { %8077 = shalt.err (!%p8074_p3)
}
  0x61   : > { %s8078_s24 = scalar_lea.vmem %s8531_s27, 16  ;;  %s8085_s10 = scalar_lea.vmem %s8531_s27, 32 }
  0x62   : > { %p8079_p10 = scmp.ne.s32.totalorder %s8531_s27, %s8078_s24  ;;  %p8086_p13 = scmp.lt.s32.totalorder %s8531_s27, %s8531_s27 }
  0x63   : > { %p8087_p0 = scmp.lt.s32.totalorder %s8085_s10, %s8078_s24 }
  0x64   : > { %p8081_p11 = pnand %p8079_p10, %p8541_p8 }
  0x65   : > { %p8088_p2 = por %p8087_p0, %p8086_p13 }
  0x66   : > { %p8082_p12 = pneg %p8081_p11 }
  0x68   : > { %p8089_p5 = pnand %p8088_p2, %p8082_p12 }
  0x6a   : > { %8092 = shalt.err (!%p8089_p5)
}
  0x6b   : > { %7646 = dma.hbm_to_vmem [thread:$0]  (!%p8525_p6), %s10725_s3, 16, %s8531_s27, [#allocation10]  }
  0x6c   : > { %s8408_s11 = smov [#allocation14]   ;;  %s10726_s7 = sld [smem:[#allocation94_spill]] }
  0x6d   : > { %s374_s30 = sshll.u32 %s8408_s11, 4  ;;  %s375_s30 = int_to_ptr.vmem [resolvable:$true] %s374_s30 }
  0x72   : > { %s8093_s26 = scalar_lea.hbm %s10726_s7, 5248 }
  0x73   : > { %p8094_p7 = scmp.ne.s32.totalorder %s10726_s7, %s8093_s26  ;;  %p8100_p1 = scmp.lt.u32.totalorder %s8093_s26, %s10726_s7 }
  0x75   : > { %p8096_p9 = pnand %p8094_p7, %p8541_p8 }
  0x77   : > { %p8097_p4 = pneg %p8096_p9 }
  0x79   : > { %p8102_p3 = pnand %p8100_p1, %p8097_p4 }
  0x7b   : > { %8105 = shalt.err (!%p8102_p3)
}
  0x7c   : > { %s8106_s27 = scalar_lea.vmem %s375_s30, 5248  ;;  %p8114_p13 = scmp.lt.s32.totalorder %s375_s30, %s375_s30 }
  0x7d   : > { %p8107_p10 = scmp.ne.s32.totalorder %s375_s30, %s8106_s27  ;;  %p8115_p0 = scmp.lt.s32.totalorder %s8106_s27, %s8106_s27 }
  0x7f   : > { %p8109_p11 = pnand %p8107_p10, %p8541_p8  ;;  %p8116_p2 = por %p8115_p0, %p8114_p13 }
  0x81   : > { %p8110_p12 = pneg %p8109_p11 }
  0x83   : > { %p8117_p5 = pnand %p8116_p2, %p8110_p12 }
  0x85   : > { %8120 = shalt.err (!%p8117_p5)
}
  0x86   : > { %s8409_s9 = smov 128   ;;  %s8410_s29 = smov 8  }
  0x87   : > { %7655 = dma.hbm_to_vmem [thread:$0]  (!%p8525_p6), %s10726_s7, 5248, %s375_s30, [#allocation15], %s8409_s9, %s8409_s9, %s8410_s29  }
  0x88   : > { %s5381_s23 = sadd.s32 4294967294, %s8403_s18   ;;  %s45_s26 = sadd.s32 1, %s8399_s17 }
  0x89   : > { %p47_p7 = scmp.ge.s32.totalorder %s45_s26, 2  ;;  %s54_s28 = sadd.s32 1, %s8391_s15 }
  0x8a   : > { %p61_p9 = scmp.ne.s32.totalorder %s8391_s15, %s8387_s14  ;;  %p62_p4 = scmp.eq.s32.totalorder %s8403_s18, 0 }
  0x8b   : > { %s10934_s26 = smov (%p47_p7, %s45_s26), 0  ;;  %p67_p3 = scmp.ne.s32.totalorder %s8387_s14, %s8383_s13 }
  0x8c   : > { %10727 = sst [smem:[#allocation31_spill]] %s10934_s26  ;;  %p8631_p1 = por %p62_p4, %p61_p9 }
  0x8d   : > { %s51_s30 = ssub.s32 %s8399_s17, %s10934_s26  ;;  %p268_p10 = scmp.eq.s32.totalorder %s8511_s19, 1 }
  0x8e   : > { %p52_p11 = scmp.eq.s32.totalorder %s51_s30, 0  ;;  %p10729_p12 = scmp.eq.s32.totalorder %s8511_s19, 0 }
  0x8f   : > { %p8646_p0 = por %p268_p10, %p61_p9  ;;  %p274_p2 = scmp.eq.s32.totalorder %s5381_s23, 1 }
  0x90   : > { %p8642_p13 = por %p10729_p12, %p67_p3  ;;  %p7680_p7 = scmp.lt.s32.totalorder %s8403_s18, 2 }
  0x91   : > { %s10731_s10 = scalar_select %p8646_p0, 1, 0 }
  0x92   : > { %s10730_s24 = scalar_select %p8642_p13, 1, 0 }
  0x93   : > { %s8651_s27 = scalar_select %p52_p11, %s8391_s15, %s54_s28  }
  0x94   : > { %p8653_p5 = por %p274_p2, %p67_p3  ;;  %s401_s29 = sand.u32 1, %s8403_s18  }
  0x95   : > { %10732 = sst [smem:[#allocation32_spill]] %s8651_s27  ;;  %s10638_s11 = sand.u32 1, %s8391_s15  }
  0x96   : > { %s10733_s9 = scalar_select %p8653_p5, 1, 0 }
  0x97   : > { %s7597_s12 = smul.u32 164, %s10638_s11  ;;  %p8665_p4 = pnand %p7680_p7, %p8631_p1 }
  0x98   : > { %10734 = sst [smem:[#allocation33_spill]] %s10733_s9  ;;  %s7598_s30 = smul.u32 2624, %s8399_s17 }
  0x99   : > { %s10735_s1 = scalar_select %p8665_p4, 1, 0 }
  0x9a   : > { %s10736_s0 = sld [smem:[#allocation90_spill]]  ;;  %s405_s28 = scalar_lea.vmem [#allocation3], %s7597_s12 }
  0x9b   : > { %s413_s7 = sshll.u32 %s405_s28, 4  ;;  %s8676_s22 = scalar_lea.sflag [#allocation4], %s401_s29  ;;  %s8674_s7 = int_to_ptr.vmem [resolvable:$true] %s413_s7 }
  0x9c   : > { %p10648_p1 = pneg %p8665_p4 }
  0xa0   : > { %s8672_s23 = scalar_lea.hbm %s10736_s0, %s7598_s30  ;;  %s8126_s30 = scalar_lea.hbm %s10736_s0, 5248 }
  0xa1   : > { %s8121_s11 = scalar_lea.hbm %s8672_s23, 2624  ;;  %p8127_p11 = scmp.lt.u32.totalorder %s8672_s23, %s10736_s0 }
  0xa2   : > { %p8122_p9 = scmp.ne.s32.totalorder %s8672_s23, %s8121_s11  ;;  %p8128_p12 = scmp.lt.u32.totalorder %s8126_s30, %s8121_s11 }
  0xa3   : > { %p8130_p7 = scmp.lt.u32.totalorder %s8121_s11, %s8672_s23 }
  0xa4   : > { %p8124_p3 = pnand %p10648_p1, %p8122_p9  ;;  %p8129_p2 = por %p8128_p12, %p8127_p11 }
  0xa6   : > { %p8125_p10 = pneg %p8124_p3  ;;  %p8131_p5 = por %p8130_p7, %p8129_p2 }
  0xa8   : > { %p8132_p0 = pnand %p8131_p5, %p8125_p10 }
  0xaa   : > { %8135 = shalt.err (!%p8132_p0)
}
  0xab   : > { %s8136_s29 = scalar_lea.vmem %s8674_s7, 2624  ;;  %s8411_s12 = smov [#allocation3]  }
  0xac   : > { %p8137_p9 = scmp.ne.s32.totalorder %s8674_s7, %s8136_s29  ;;  %s8141_s28 = sshll.u32 %s8411_s12, 4  ;;  %s8142_s28 = int_to_ptr.vmem [resolvable:$false] %s8141_s28 }
  0xad   : > { %s8143_s26 = scalar_lea.vmem %s8142_s28, 5248  ;;  %p8144_p6 = scmp.lt.s32.totalorder %s8674_s7, %s8142_s28 }
  0xae   : > { %p8139_p3 = pnand %p8137_p9, %p10648_p1  ;;  %p8145_p11 = scmp.lt.s32.totalorder %s8143_s26, %s8136_s29 }
  0xb0   : > { %p8140_p13 = pneg %p8139_p3  ;;  %p8146_p12 = por %p8145_p11, %p8144_p6 }
  0xb2   : > { %p8147_p2 = pnand %p8146_p12, %p8140_p13 }
  0xb4   : > { %8150 = shalt.err (!%p8147_p2)
}
  0xb5   : > { %s8412_s27 = smov 64   ;;  %s8413_s11 = smov 4  }
  0xb6   : > { %7662 = dma.hbm_to_vmem [thread:$0]  (!%p8665_p4), %s8672_s23, 2624, %s8674_s7, %s8676_s22, %s8412_s27, %s8412_s27, %s8413_s11  }
  0xb7   : > { %s8414_s2 = smov [#allocation12]   ;;  %s8415_s30 = smov [#allocation13]  }
  0xb8   : > { %s353_s3 = sshll.u32 %s8414_s2, 4  ;;  %s364_s29 = sshll.u32 %s8415_s30, 4  ;;  %s354_s3 = int_to_ptr.vmem [resolvable:$true] %s353_s3  ;;  %s365_s29 = int_to_ptr.vmem [resolvable:$true] %s364_s29 }
  0xb9   : > { %s8151_s26 = scalar_lea.hbm %s10628_s5, 128 }
  0xba   : > { %p8152_p6 = scmp.ne.s32.totalorder %s10628_s5, %s8151_s26  ;;  %p8158_p5 = scmp.lt.u32.totalorder %s8151_s26, %s10628_s5 }
  0xbc   : > { %p8154_p13 = pnand %p8152_p6, %p8541_p8 }
  0xbe   : > { %p8155_p0 = pneg %p8154_p13 }
  0xc0   : > { %p8160_p10 = pnand %p8158_p5, %p8155_p0 }
  0xc2   : > { %8163 = shalt.err (!%p8160_p10)
}
  0xc3   : > { %s8164_s7 = scalar_lea.vmem %s354_s3, 128  ;;  %p8172_p11 = scmp.lt.s32.totalorder %s354_s3, %s354_s3 }
  0xc4   : > { %p8165_p7 = scmp.ne.s32.totalorder %s354_s3, %s8164_s7  ;;  %p8173_p12 = scmp.lt.s32.totalorder %s8164_s7, %s8164_s7 }
  0xc6   : > { %p8167_p9 = pnand %p8165_p7, %p8541_p8  ;;  %p8174_p2 = por %p8173_p12, %p8172_p11 }
  0xc8   : > { %p8168_p3 = pneg %p8167_p9 }
  0xca   : > { %p8175_p1 = pnand %p8174_p2, %p8168_p3 }
  0xcc   : > { %8178 = shalt.err (!%p8175_p1)
}
  0xcd   : > { %p10737_p6 = scmp.ne.s32.totalorder %s10721_s25, 0  ;;  %s8179_s23 = scalar_lea.hbm %s10629_s6, 16 }
  0xce   : > { %p8180_p13 = scmp.ne.s32.totalorder %s10629_s6, %s8179_s23  ;;  %p8186_p1 = scmp.lt.u32.totalorder %s8179_s23, %s10629_s6 }
  0xcf   : > { %7649 = dma.hbm_to_vmem [thread:$0]  (!%p10737_p6), %s10628_s5, 128, %s354_s3, [#allocation7]  }
  0xd0   : > { %p8182_p0 = pnand %p8180_p13, %p8541_p8 }
  0xd2   : > { %p8183_p5 = pneg %p8182_p0 }
  0xd4   : > { %p8188_p10 = pnand %p8186_p1, %p8183_p5 }
  0xd6   : > { %8191 = shalt.err (!%p8188_p10)
}
  0xd7   : > { %s8192_s26 = scalar_lea.vmem %s365_s29, 16  ;;  %s8199_s3 = scalar_lea.vmem %s365_s29, 32 }
  0xd8   : > { %p8193_p7 = scmp.ne.s32.totalorder %s365_s29, %s8192_s26  ;;  %p8200_p11 = scmp.lt.s32.totalorder %s365_s29, %s365_s29 }
  0xd9   : > { %p8201_p12 = scmp.lt.s32.totalorder %s8199_s3, %s8192_s26 }
  0xda   : > { %p8195_p9 = pnand %p8193_p7, %p8541_p8 }
  0xdb   : > { %p8202_p2 = por %p8201_p12, %p8200_p11 }
  0xdc   : > { %p8196_p3 = pneg %p8195_p9 }
  0xde   : > { %p8203_p4 = pnand %p8202_p2, %p8196_p3 }
  0xe0   : > { %8206 = shalt.err (!%p8203_p4)
}
  0xe1   : > { %7652 = dma.hbm_to_vmem [thread:$0]  (!%p10737_p6), %s10629_s6, 16, %s365_s29, [#allocation10]  }
  0xe2   : > { %s8416_s18 = smov [#allocation16]   ;;  %s10738_s9 = sand.u32 1, %s8391_s15  }
  0xe3   : > { %s387_s13 = sshll.u32 %s8416_s18, 4  ;;  %s5392_s23 = sshll.u32 %s10738_s9, 3  ;;  %s388_s13 = int_to_ptr.vmem [resolvable:$true] %s387_s13 }
  0xe4   : > { %s8207_s12 = scalar_lea.hbm %s10631_s8, 9216 }
  0xe5   : > { %p8208_p4 = scmp.ne.s32.totalorder %s10631_s8, %s8207_s12  ;;  %p8214_p5 = scmp.lt.u32.totalorder %s8207_s12, %s10631_s8 }
  0xe7   : > { %p8210_p13 = pnand %p8208_p4, %p8541_p8 }
  0xe9   : > { %p8211_p0 = pneg %p8210_p13 }
  0xeb   : > { %p8216_p1 = pnand %p8214_p5, %p8211_p0 }
  0xed   : > { %8219 = shalt.err (!%p8216_p1)
}
  0xee   : > { %s8220_s29 = scalar_lea.vmem %s388_s13, 9216  ;;  %p8228_p3 = scmp.lt.s32.totalorder %s388_s13, %s388_s13 }
  0xef   : > { %p8221_p10 = scmp.ne.s32.totalorder %s388_s13, %s8220_s29  ;;  %p8229_p11 = scmp.lt.s32.totalorder %s8220_s29, %s8220_s29 }
  0xf1   : > { %p8223_p7 = pnand %p8221_p10, %p8541_p8  ;;  %p8230_p12 = por %p8229_p11, %p8228_p3 }
  0xf3   : > { %p8224_p9 = pneg %p8223_p7 }
  0xf5   : > { %p8231_p2 = pnand %p8230_p12, %p8224_p9 }
  0xf7   : > { %8234 = shalt.err (!%p8231_p2)
}
  0xf8   : > { %7658 = dma.hbm_to_vmem [thread:$0]  (!%p10737_p6), %s10631_s8, 9216, %s388_s13, [#allocation15], %s8412_s27, %s8412_s27, %s8413_s11  }
  0xf9   : > { %s5393_s9 = sshll.u32 %s8399_s17, 7  ;;  %s427_s21 = scalar_lea.vmem [#allocation11], %s5392_s23 }
  0xfa   : > { %s435_s2 = sshll.u32 %s427_s21, 4  ;;  %s433_s28 = scalar_lea.hbm %s10627_s4, %s5393_s9  ;;  %s436_s2 = int_to_ptr.vmem [resolvable:$true] %s435_s2 }
  0xfb   : > { %s8235_s26 = scalar_lea.hbm %s433_s28, 128  ;;  %p10739_p4 = scmp.ne.s32.totalorder %s10735_s1, 0 }
  0xfc   : > { %p8236_p8 = scmp.ne.s32.totalorder %s433_s28, %s8235_s26  ;;  %s8240_s7 = scalar_lea.hbm %s10627_s4, 256 }
  0xfd   : > { %p10740_p13 = pneg %p10739_p4  ;;  %p8241_p6 = scmp.lt.u32.totalorder %s433_s28, %s10627_s4 }
  0xfe   : > { %p8242_p1 = scmp.lt.u32.totalorder %s8240_s7, %s8235_s26  ;;  %p8244_p7 = scmp.lt.u32.totalorder %s8235_s26, %s433_s28 }
  0xff   : > { %p8238_p0 = pnand %p8236_p8, %p10740_p13 }
 0x100   : > { %p8243_p10 = por %p8242_p1, %p8241_p6 }
 0x101   : > { %p8239_p5 = pneg %p8238_p0 }
 0x102   : > { %p8245_p9 = por %p8244_p7, %p8243_p10 }
 0x104   : > { %p8246_p3 = pnand %p8245_p9, %p8239_p5 }
 0x106   : > { %8249 = shalt.err (!%p8246_p3)
}
 0x107   : > { %s8250_s11 = scalar_lea.vmem %s436_s2, 128  ;;  %p10741_p12 = pmov %p10740_p13 }
 0x108   : > { %p8251_p11 = scmp.ne.s32.totalorder %s436_s2, %s8250_s11  ;;  %s8417_s13 = smov [#allocation11]  }
 0x109   : > { %s8255_s23 = sshll.u32 %s8417_s13, 4  ;;  %s8256_s23 = int_to_ptr.vmem [resolvable:$false] %s8255_s23 }
 0x10a   : > { %p8253_p2 = pnand %p8251_p11, %p10741_p12  ;;  %s8257_s0 = scalar_lea.vmem %s8256_s23, 256 }
 0x10b   : > { %p8258_p13 = scmp.lt.s32.totalorder %s436_s2, %s8256_s23  ;;  %p8259_p0 = scmp.lt.s32.totalorder %s8257_s0, %s8250_s11 }
 0x10c   : > { %p8254_p8 = pneg %p8253_p2 }
 0x10d   : > { %p8260_p1 = por %p8259_p0, %p8258_p13 }
 0x10f   : > { %p8261_p6 = pnand %p8260_p1, %p8254_p8 }
 0x111   : > { %8264 = shalt.err (!%p8261_p6)
}
 0x112   : > { %7665 = dma.hbm_to_vmem [thread:$0]  (!%p10739_p4), %s433_s28, 128, %s436_s2, %s8676_s22  }
 0x113   : > { %p10742_p5 = scmp.ne.s32.totalorder %s10720_s20, 0 }
 0x115   : > { %444 = sbr.rel (%p10742_p5) target bundleno = 1623 (0x657), region = 56 }
 0x11c   : > { %s446_s18 = sand.u32 1, %s8511_s19   ;;  %s8789_s9 = sand.u32 1, %s8387_s14  }
 0x11d   : > { %s7599_s21 = smul.u32 164, %s8789_s9  ;;  %s447_s30 = scalar_lea.sflag [#allocation4], %s446_s18 }
 0x11e   : > { %p10743_p10 = scmp.ne.s32.totalorder %s10730_s24, 0 }
 0x11f   : > { %s8794_s12 = scalar_lea.vmem [#allocation3], %s7599_s21 }
 0x120   : > { %8346 = dma.done.wait (%p10743_p10), %s447_s30, 2624  }
 0x121   : > { %8348 = vsyncadd (%p10743_p10), %s447_s30, 4294964672  ;;  %p10744_p4 = scmp.eq.s32.totalorder %s8511_s19, 0 }
 0x123   : > { %8350 = dma.done.wait (%p10744_p4), [#allocation7], 144   ;;  %p10745_p7 = pmov %p10744_p4 }
 0x124   : > { %p10746_p9 = pmov %p10744_p4 }
 0x125   : > { %8352 = vsyncadd (%p10745_p7), [#allocation7], 4294967152 }
 0x126   : > { %8354 = dma.done.wait (%p10746_p9), [#allocation10], 16   ;;  %p10747_p3 = pmov %p10744_p4 }
 0x127   : > { %s5398_s1 = sshll.u32 %s8789_s9, 3 }
 0x128   : > { %8356 = vsyncadd (%p10747_p3), [#allocation10], 4294967280  ;;  %s8811_s20 = scalar_lea.vmem [#allocation11], %s5398_s1 }
 0x129   : > { %8358 = dma.done.wait (%p10743_p10), %s447_s30, 128  }
 0x12a   : > { %8360 = vsyncadd (%p10743_p10), %s447_s30, 4294967168  ;;  %p10748_p11 = pmov %p10747_p3 }
 0x12b   : > { %p10749_p12 = pmov %p10747_p3 }
 0x12c   : > { %8362 = dma.done.wait (%p10748_p11), [#allocation7], 128  }
 0x12d   : > { %8364 = vsyncadd (%p10749_p12), [#allocation7], 4294967168  ;;  %p10750_p2 = pmov %p10747_p3 }
 0x12f   : > { %8366 = dma.done.wait (%p10750_p2), [#allocation10], 16   ;;  %p10751_p8 = pmov %p10750_p2 }
 0x130   : > { %p10752_p13 = pmov %p10750_p2 }
 0x131   : > { %8368 = vsyncadd (%p10751_p8), [#allocation10], 4294967280 }
 0x132   : > { %8370 = dma.done.wait (%p10752_p13), [#allocation15], 14464   ;;  %p10753_p0 = pmov %p10750_p2 }
 0x133   : > { %v8418_v0 = vmov 0.0   ;;  %vm8419_vm0 = vmmov 0   ;;  %v8420_v1 = vmov 0   ;;  %vm1074_vm1 = vcmask 64512   ;;  %v1066_v2 = vld [vmem:[#allocation12] sm:$0xff]  ;;  %v1065_v3 = vld [vmem:[%s8811_s20] sm:$0xff] }
 0x134   : > { %8372 = vsyncadd (%p10753_p0), [#allocation15], 4294952832  ;;  %6047 = vmatprep.subr.mxu0 %v8418_v0  ;;  %543 = vst [vmem:[#allocation2] sm:$0xff] %v8418_v0  ;;  %6049 = vmatprep.mubr.msk.f32.mxu0 %vm8419_vm0, %v8418_v0  ;;  %v1154_v4 = vld [vmem:[#allocation14] sm:$0xff]  ;;  %v1156_v5 = vld [vmem:[#allocation14 + $0x10] sm:$0xff]  ;;  %v681_v52 = vlaneseq  ;;  %s10320_s19 = scalar_lea.vmem [#allocation17], %s7599_s21 }
 0x135   : > { %544 = vst [vmem:[#allocation2 + $0x8] sm:$0xff] %v8418_v0  ;;  %545 = vst [vmem:[#allocation2 + $0x10] sm:$0xff] %v8418_v0  ;;  %7753 = vset.pattern.permute.xlu0 %v8420_v1  ;;  %7754 = vset.pattern.permute.xlu1 %v8420_v1  ;;  %v1155_v6 = vld [vmem:[#allocation14 + $0x8] sm:$0xff]  ;;  %v1157_v7 = vld [vmem:[#allocation14 + $0x18] sm:$0xff]  ;;  %s10334_s24 = scalar_lea.vmem [#allocation18], %s5398_s1  ;;  %s7600_s22 = smul.u32 2624, %s8395_s16 }
 0x136   : > { %546 = vst [vmem:[#allocation2 + $0x18] sm:$0xff] %v8418_v0  ;;  %547 = vst [vmem:[#allocation2 + $0x20] sm:$0xff] %v8418_v0  ;;  %6952 = vmatprep.subr.bf16.mxu1 %v8418_v0  ;;  %6508 = vmatprep.mubr.msk.bf16.mxu1 %vm8419_vm0, %v8418_v0  ;;  %v1158_v8 = vld [vmem:[#allocation14 + $0x20] sm:$0xff]  ;;  %v1159_v9 = vld [vmem:[#allocation14 + $0x28] sm:$0xff]  ;;  %v682_v53 = vshrl.u32 %v681_v52, 7  ;;  %s5165_s2 = sshll.u32 %s10320_s19, 4  ;;  %s10494_s2 = int_to_ptr.vmem [resolvable:$true] %s5165_s2 }
 0x137   : > { %548 = vst [vmem:[#allocation2 + $0x28] sm:$0xff] %v8418_v0  ;;  %549 = vst [vmem:[#allocation2 + $0x30] sm:$0xff] %v8418_v0  ;;  %6048 = vmatpush3.msra.mxu0 %v1066_v2  ;;  %1242 = vperm.xlu0 %7753, %v1154_v4   ;;  %v1160_v10 = vld [vmem:[#allocation14 + $0x30] sm:$0xff]  ;;  %v1161_v11 = vld [vmem:[#allocation14 + $0x38] sm:$0xff]  ;;  %s10904_s25 = sld [smem:[#allocation95_spill]]  ;;  %s5146_s7 = scalar_lea.sflag [#allocation5], %s8789_s9 }
 0x138   : > { %550 = vst [vmem:[#allocation2 + $0x38] sm:$0xff] %v8418_v0  ;;  %551 = vst [vmem:[#allocation2 + $0x40] sm:$0xff] %v8418_v0  ;;  %6050 = vmatmul.mubr.msk.f32.vlgmr.msra.gmra.mrb[0].mxu0 %vm1074_vm1, %v1065_v3  ;;  %1252 = vperm.xlu1 %7754, %v1156_v5   ;;  %v1174_v12 = vld [vmem:[#allocation14 + $0xa0] sm:$0xff]  ;;  %v1175_v13 = vld [vmem:[#allocation14 + $0xa8] sm:$0xff]  ;;  %v8885_v56 = vsub.s32 0, %v682_v53  ;;  %s8265_s29 = scalar_lea.vmem %s10494_s2, 2624 }
 0x139   : > { %552 = vst [vmem:[#allocation2 + $0x48] sm:$0xff] %v8418_v0  ;;  %553 = vst [vmem:[#allocation2 + $0x50] sm:$0xff] %v8418_v0  ;;  %6052 = vmatprep.subr.bf16.mxu0 %v8418_v0  ;;  %6068 = vmatprep.mubr.msk.bf16.mxu0 %vm8419_vm0, %v8418_v0  ;;  %v1162_v14 = vld [vmem:[#allocation14 + $0x40] sm:$0xff]  ;;  %v1163_v15 = vld [vmem:[#allocation14 + $0x48] sm:$0xff]  ;;  %p8266_p1 = scmp.ne.s32.totalorder %s10494_s2, %s8265_s29  ;;  %p10907_p6 = scmp.ne.s32.totalorder %s10731_s10, 0 }
 0x13a   : > { %554 = vst [vmem:[#allocation2 + $0x58] sm:$0xff] %v8418_v0  ;;  %555 = vst [vmem:[#allocation2 + $0x60] sm:$0xff] %v8418_v0  ;;  %v1176_v16 = vld [vmem:[#allocation14 + $0xb0] sm:$0xff]  ;;  %v1177_v17 = vld [vmem:[#allocation14 + $0xb8] sm:$0xff]  ;;  %s8421_s27 = smov [#allocation17]  }
 0x13b   : > { %556 = vst [vmem:[#allocation2 + $0x68] sm:$0xff] %v8418_v0  ;;  %557 = vst [vmem:[#allocation2 + $0x70] sm:$0xff] %v8418_v0  ;;  %1247 = vperm.xlu0 %7753, %v1155_v6   ;;  %v1164_v18 = vld [vmem:[#allocation14 + $0x50] sm:$0xff]  ;;  %v1165_v19 = vld [vmem:[#allocation14 + $0x58] sm:$0xff]  ;;  %p8267_p5 = pnand %p8266_p1, %p10907_p6  ;;  %s8269_s11 = sshll.u32 %s8421_s27, 4  ;;  %s8270_s11 = int_to_ptr.vmem [resolvable:$false] %s8269_s11 }
 0x13c   : > { %558 = vst [vmem:[#allocation2 + $0x78] sm:$0xff] %v8418_v0  ;;  %559 = vst [vmem:[#allocation2 + $0x80] sm:$0xff] %v8418_v0  ;;  %1257 = vperm.xlu1 %7754, %v1157_v7   ;;  %v1178_v20 = vld [vmem:[#allocation14 + $0xc0] sm:$0xff]  ;;  %v1179_v21 = vld [vmem:[#allocation14 + $0xc8] sm:$0xff]  ;;  %s8271_s13 = scalar_lea.vmem %s8270_s11, 5248  ;;  %p8272_p4 = scmp.lt.s32.totalorder %s10494_s2, %s8270_s11 }
 0x13d   : > { %560 = vst [vmem:[#allocation2 + $0x88] sm:$0xff] %v8418_v0  ;;  %561 = vst [vmem:[#allocation2 + $0x90] sm:$0xff] %v8418_v0  ;;  %v1166_v22 = vld [vmem:[#allocation14 + $0x60] sm:$0xff]  ;;  %v1167_v23 = vld [vmem:[#allocation14 + $0x68] sm:$0xff]  ;;  %s10490_s3 = scalar_lea.hbm %s10904_s25, %s7600_s22  ;;  %p8268_p10 = pneg %p8267_p5 }
 0x13e   : > { %562 = vst [vmem:[#allocation2 + $0x98] sm:$0xff] %v8418_v0  ;;  %563 = vst [vmem:[#allocation2 + $0xa0] sm:$0xff] %v8418_v0  ;;  %v1180_v24 = vld [vmem:[#allocation14 + $0xd0] sm:$0xff]  ;;  %v1181_v25 = vld [vmem:[#allocation14 + $0xd8] sm:$0xff]  ;;  %p8273_p7 = scmp.lt.s32.totalorder %s8271_s13, %s8265_s29 }
 0x13f   : > { %564 = vst [vmem:[#allocation2 + $0xa8] sm:$0xff] %v8418_v0  ;;  %565 = vst [vmem:[#allocation2 + $0xb0] sm:$0xff] %v8418_v0  ;;  %1262 = vperm.xlu0 %7753, %v1158_v8   ;;  %v1168_v26 = vld [vmem:[#allocation14 + $0x70] sm:$0xff]  ;;  %v1169_v27 = vld [vmem:[#allocation14 + $0x78] sm:$0xff] }
 0x140   : > { %566 = vst [vmem:[#allocation2 + $0xb8] sm:$0xff] %v8418_v0  ;;  %567 = vst [vmem:[#allocation2 + $0xc0] sm:$0xff] %v8418_v0  ;;  %1267 = vperm.xlu1 %7754, %v1159_v9   ;;  %v1182_v28 = vld [vmem:[#allocation14 + $0xe0] sm:$0xff]  ;;  %v1183_v29 = vld [vmem:[#allocation14 + $0xe8] sm:$0xff]  ;;  %p8274_p9 = por %p8273_p7, %p8272_p4 }
 0x141   : > { %568 = vst [vmem:[#allocation2 + $0xc8] sm:$0xff] %v8418_v0  ;;  %569 = vst [vmem:[#allocation2 + $0xd0] sm:$0xff] %v8418_v0  ;;  %v1170_v30 = vld [vmem:[#allocation14 + $0x80] sm:$0xff]  ;;  %v1171_v31 = vld [vmem:[#allocation14 + $0x88] sm:$0xff] }
 0x142   : > { %570 = vst [vmem:[#allocation2 + $0xd8] sm:$0xff] %v8418_v0  ;;  %571 = vst [vmem:[#allocation2 + $0xe0] sm:$0xff] %v8418_v0  ;;  %v1184_v32 = vld [vmem:[#allocation14 + $0xf0] sm:$0xff]  ;;  %v1185_v33 = vld [vmem:[#allocation14 + $0xf8] sm:$0xff]  ;;  %p8275_p3 = pnand %p8274_p9, %p8268_p10 }
 0x143   : > { %572 = vst [vmem:[#allocation2 + $0xe8] sm:$0xff] %v8418_v0  ;;  %573 = vst [vmem:[#allocation2 + $0xf0] sm:$0xff] %v8418_v0  ;;  %1272 = vperm.xlu0 %7753, %v1160_v10   ;;  %v1172_v34 = vld [vmem:[#allocation14 + $0x90] sm:$0xff]  ;;  %v1173_v35 = vld [vmem:[#allocation14 + $0x98] sm:$0xff] }
 0x144   : > { %574 = vst [vmem:[#allocation2 + $0xf8] sm:$0xff] %v8418_v0  ;;  %575 = vst [vmem:[#allocation2 + $0x100] sm:$0xff] %v8418_v0  ;;  %1277 = vperm.xlu1 %7754, %v1161_v11   ;;  %v1186_v36 = vld [vmem:[#allocation14 + $0x100] sm:$0xff]  ;;  %v1187_v37 = vld [vmem:[#allocation14 + $0x108] sm:$0xff] }
 0x145   : > { %576 = vst [vmem:[#allocation2 + $0x108] sm:$0xff] %v8418_v0  ;;  %577 = vst [vmem:[#allocation2 + $0x110] sm:$0xff] %v8418_v0  ;;  %v1188_v38 = vld [vmem:[#allocation14 + $0x110] sm:$0xff]  ;;  %v1189_v39 = vld [vmem:[#allocation14 + $0x118] sm:$0xff] }
 0x146   : > { %578 = vst [vmem:[#allocation2 + $0x118] sm:$0xff] %v8418_v0  ;;  %579 = vst [vmem:[#allocation2 + $0x120] sm:$0xff] %v8418_v0  ;;  %v1190_v40 = vld [vmem:[#allocation14 + $0x120] sm:$0xff]  ;;  %v1191_v41 = vld [vmem:[#allocation14 + $0x128] sm:$0xff] }
 0x147   : > { %580 = vst [vmem:[#allocation2 + $0x128] sm:$0xff] %v8418_v0  ;;  %581 = vst [vmem:[#allocation2 + $0x130] sm:$0xff] %v8418_v0  ;;  %1342 = vperm.xlu0 %7753, %v1174_v12   ;;  %v1192_v42 = vld [vmem:[#allocation14 + $0x130] sm:$0xff]  ;;  %v1193_v43 = vld [vmem:[#allocation14 + $0x138] sm:$0xff] }
 0x148   : > { %582 = vst [vmem:[#allocation2 + $0x138] sm:$0xff] %v8418_v0  ;;  %583 = vst [vmem:[#allocation2 + $0x140] sm:$0xff] %v8418_v0  ;;  %1347 = vperm.xlu1 %7754, %v1175_v13   ;;  %v1194_v44 = vld [vmem:[#allocation14 + $0x140] sm:$0xf]  ;;  %v589_v45 = vld [vmem:[#allocation6] sm:$0x1] }
 0x149   : > { %584 = vst [vmem:[#allocation2 + $0x148] sm:$0xff] %v8418_v0  ;;  %585 = vst [vmem:[#allocation2 + $0x150] sm:$0xff] %v8418_v0  ;;  %v590_v46 = vmul.f32 0.001953125, %v589_v45  ;;  %v591_v47 = vld [vmem:[#allocation6 + $0x1] sm:$0x1]  ;;  %v7755_v54 = vld [vmem:[#allocation16 + $0x40] sm:$0xff]  }
 0x14a   : > { %586 = vst [vmem:[#allocation2 + $0x158] sm:$0xff] %v8418_v0  ;;  %587 = vst [vmem:[#allocation2 + $0x160] sm:$0xff] %v8418_v0  ;;  %v592_v48 = vmul.f32 0.001953125, %v591_v47  ;;  %v7758_v55 = vld [vmem:[#allocation16 + $0x100] sm:$0xff]   ;;  %6053 = vmatpush3.bf16.msra.mxu0 %v7755_v54  ;;  %v597_v58 = vld [vmem:[#allocation8] sm:$0x1] }
 0x14b   : > { %588 = vst [vmem:[#allocation2 + $0x168] sm:$0xff] %v8418_v0  ;;  %1282 = vperm.xlu0 %7753, %v1162_v14   ;;  %v593_v49 = vmul.f32 %v590_v46, %v590_v46  ;;  %10754 = vst [vmem:[#allocation34_spill] sm:$0xff] %v8885_v56  ;;  %6054 = vmatprep.subr.bf16.mxu0 %v8418_v0  ;;  %v5567_v59 = vld [vmem:[%s8794_s12] sm:$0xff]   ;;  %v5746_v61 = vld [vmem:[%s8794_s12 + $0x8] sm:$0xff]   ;;  %v8892_v1 = vrot.slane %v590_v46, %v8885_v56 }
 0x14c   : > { %1287 = vperm.xlu1 %7754, %v1163_v15   ;;  %6960 = vmatpush3.bf16.msra.mxu1 %v7758_v55  ;;  %v7756_v60 = vld [vmem:[#allocation16 + $0x48] sm:$0xff]   ;;  %v5568_v63 = vunpack.c.l.bf16 %v5567_v59  ;;  %v5747_v2 = vld [vmem:[%s8794_s12 + $0x10] sm:$0xff]   ;;  %v5569_v3 = vunpack.c.h.bf16 %v5567_v59  ;;  %v5572_v6 = vunpack.c.l.bf16 %v5746_v61  ;;  %v7757_v7 = vld [vmem:[#allocation16 + $0x50] sm:$0xff]   ;;  %v5573_v11 = vunpack.c.h.bf16 %v5746_v61 }
 0x14d   : > { %v594_v50 = vsub.f32 %v592_v48, %v593_v49  ;;  %6953 = vmatprep.subr.bf16.mxu1 %v8418_v0  ;;  %v5748_v4 = vld [vmem:[%s8794_s12 + $0x18] sm:$0xff]   ;;  %v5576_v8 = vunpack.c.l.bf16 %v5747_v2  ;;  %v5755_v13 = vld [vmem:[%s8794_s12 + $0x50] sm:$0xff]   ;;  %v7762_v15 = vld [vmem:[#allocation16 + $0x110] sm:$0xff]  }
 0x14e   : > { %6055 = vmatpush3.bf16.msra.mxu0 %v7756_v60  ;;  %v7760_v5 = vld [vmem:[#allocation16 + $0x108] sm:$0xff]   ;;  %v685_v9 = vsub.f32 %v5568_v63, %v8892_v1  ;;  %v5580_v12 = vunpack.c.l.bf16 %v5748_v4  ;;  %v686_v14 = vsub.f32 %v5569_v3, %v8892_v1  ;;  %v7766_v47 = vld [vmem:[#allocation16 + $0x120] sm:$0xff]  }
 0x14f   : > { %1352 = vperm.xlu0 %7753, %v1176_v16   ;;  %v595_v51 = vadd.f32 1e-05, %v594_v50  ;;  %6056 = vmatprep.subr.bf16.mxu0 %v8418_v0  ;;  %v687_v16 = vsub.f32 %v5572_v6, %v8892_v1 }
 0x150   : > { %1357 = vperm.xlu1 %7754, %v1177_v17   ;;  %6961 = vmatpush3.bf16.msra.mxu1 %v7760_v5  ;;  %v5577_v17 = vunpack.c.h.bf16 %v5747_v2  ;;  %v7763_v2 = vld [vmem:[#allocation16 + $0x68] sm:$0xff]  }
 0x151   : > { %7827 = vrsqrt.f32 %v595_v51  ;;  %6954 = vmatprep.subr.bf16.mxu1 %v8418_v0 }
 0x152   : > { %6057 = vmatpush3.bf16.msra.mxu0 %v7757_v7 }
 0x153   : > { %1292 = vperm.xlu0 %7753, %v1164_v18   ;;  %6058 = vmatprep.subr.bf16.mxu0 %v8418_v0  ;;  %v689_v18 = vsub.f32 %v5576_v8, %v8892_v1 }
 0x154   : > { %1297 = vperm.xlu1 %7754, %v1165_v19   ;;  %v5608_v19 = vunpack.c.l.bf16 %v5755_v13  ;;  %6962 = vmatpush3.bf16.msra.mxu1 %v7762_v15 }
 0x155   : > { %6955 = vmatprep.subr.bf16.mxu1 %v8418_v0 }
 0x157   : > { %1362 = vperm.xlu0 %7753, %v1178_v20  }
 0x158   : > { %1367 = vperm.xlu1 %7754, %v1179_v21   ;;  %v688_v21 = vsub.f32 %v5573_v11, %v8892_v1 }
 0x15b   : > { %1302 = vperm.xlu0 %7753, %v1166_v22   ;;  %v7828_v57 = vpop.eup %7827  ;;  %v691_v22 = vsub.f32 %v5580_v12, %v8892_v1 }
 0x15c   : > { %1307 = vperm.xlu1 %7754, %v1167_v23   ;;  %v598_v62 = vmul.f32 %v7828_v57, %v597_v58  ;;  %v5749_v23 = vld [vmem:[%s8794_s12 + $0x20] sm:$0xff]  }
 0x15d   : > { %v5585_v46 = vunpack.c.h.bf16 %v5749_v23 }
 0x15e   : > { %v8899_v10 = vrot.slane %v598_v62, %v8885_v56 }
 0x15f   : > { %1372 = vperm.xlu0 %7753, %v1180_v24   ;;  %v8912_v24 = vld [vmem:[#allocation9] ss:$0 sm:$0xff]  ;;  %v694_v63 = vsub.f32 %v5585_v46, %v8892_v1 }
 0x160   : > { %1377 = vperm.xlu1 %7754, %v1181_v25   ;;  %v730_v20 = vmul.f32 %v8899_v10, %v685_v9  ;;  %v731_v25 = vmul.f32 %v8899_v10, %v686_v14 }
 0x163   : > { %1312 = vperm.xlu0 %7753, %v1168_v26   ;;  %v5581_v26 = vunpack.c.h.bf16 %v5748_v4 }
 0x164   : > { %1317 = vperm.xlu1 %7754, %v1169_v27   ;;  %v7759_v27 = vld [vmem:[#allocation16 + $0x58] sm:$0xff]  }
 0x165   : > { %6059 = vmatpush3.bf16.msra.mxu0 %v7759_v27 }
 0x166   : > { %6060 = vmatprep.subr.bf16.mxu0 %v8418_v0 }
 0x167   : > { %1382 = vperm.xlu0 %7753, %v1182_v28   ;;  %v732_v28 = vmul.f32 %v8899_v10, %v687_v16  ;;  %v8977_v16 = vld [vmem:[%s8794_s12 + $0x60] sm:$0xff]  }
 0x168   : > { %1387 = vperm.xlu1 %7754, %v1183_v29   ;;  %v690_v29 = vsub.f32 %v5577_v17, %v8892_v1  ;;  %v7768_v17 = vld [vmem:[#allocation16 + $0x128] sm:$0xff]  }
 0x16a   : > { %v735_v45 = vmul.f32 %v8899_v10, %v690_v29 }
 0x16b   : > { %1322 = vperm.xlu0 %7753, %v1170_v30   ;;  %v5756_v30 = vld [vmem:[%s8794_s12 + $0x58] sm:$0xff]  }
 0x16c   : > { %1327 = vperm.xlu1 %7754, %v1171_v31   ;;  %v7764_v31 = vld [vmem:[#allocation16 + $0x118] sm:$0xff]   ;;  %v5613_v55 = vunpack.c.h.bf16 %v5756_v30  ;;  %v8959_v62 = vadd.f32 %v8912_v24, %v735_v45 }
 0x16d   : > { %6963 = vmatpush3.bf16.msra.mxu1 %v7764_v31  ;;  %v9008_v45 = vld [vmem:[%s8794_s12 + $0x68] sm:$0xff]  }
 0x16e   : > { %6956 = vmatprep.subr.bf16.mxu1 %v8418_v0  ;;  %v708_v11 = vsub.f32 %v5613_v55, %v8892_v1 }
 0x16f   : > { %1392 = vperm.xlu0 %7753, %v1184_v32   ;;  %v734_v32 = vmul.f32 %v8899_v10, %v689_v18 }
 0x170   : > { %1397 = vperm.xlu1 %7754, %v1185_v33   ;;  %v705_v33 = vsub.f32 %v5608_v19, %v8892_v1  ;;  %v824_v19 = vsub.f32 0.0, %v8959_v62 }
 0x171   : > { %v8939_v48 = vadd.f32 %v8912_v24, %v734_v32  ;;  %6964 = vmatpush3.bf16.msra.mxu1 %v7766_v47 }
 0x172   : > { %v750_v49 = vmul.f32 %v8899_v10, %v705_v33  ;;  %6957 = vmatprep.subr.bf16.mxu1 %v8418_v0 }
 0x173   : > { %1332 = vperm.xlu0 %7753, %v1172_v34   ;;  %v5584_v34 = vunpack.c.l.bf16 %v5749_v23  ;;  %v823_v3 = vsub.f32 0.0, %v8939_v48 }
 0x174   : > { %1337 = vperm.xlu1 %7754, %v1173_v35   ;;  %v8921_v35 = vadd.f32 %v8912_v24, %v730_v20  ;;  %v8964_v4 = vadd.f32 %v8912_v24, %v750_v49  ;;  %v739_v20 = vmul.f32 %v8899_v10, %v694_v63  ;;  %v5617_v49 = vunpack.c.h.bf16 %v8977_v16 }
 0x175   : > { %v693_v50 = vsub.f32 %v5584_v34, %v8892_v1  ;;  %v868_v23 = vmul.f32 1.442695, %v823_v3  ;;  %6965 = vmatpush3.bf16.msra.mxu1 %v7768_v17  ;;  %v5751_v34 = vld [vmem:[%s8794_s12 + $0x30] sm:$0xff]   ;;  %v5621_v17 = vunpack.c.h.bf16 %v9008_v45 }
 0x176   : > { %v819_v52 = vsub.f32 0.0, %v8921_v35  ;;  %6958 = vmatprep.subr.bf16.mxu1 %v8418_v0  ;;  %v5592_v47 = vunpack.c.l.bf16 %v5751_v34  ;;  %v5593_v3 = vunpack.c.h.bf16 %v5751_v34 }
 0x177   : > { %1402 = vperm.xlu0 %7753, %v1186_v36   ;;  %v733_v36 = vmul.f32 %v8899_v10, %v688_v21  ;;  %v738_v5 = vmul.f32 %v8899_v10, %v693_v50  ;;  %v9013_v50 = vld [vmem:[%s8794_s12 + $0x38] sm:$0xff]  }
 0x178   : > { %1407 = vperm.xlu1 %7754, %v1187_v37   ;;  %v736_v37 = vmul.f32 %v8899_v10, %v691_v22  ;;  %v860_v7 = vmul.f32 1.442695, %v819_v52  ;;  %v7765_v22 = vld [vmem:[#allocation16 + $0x70] sm:$0xff]  }
 0x179   : > { %v8946_v53 = vadd.f32 %v8912_v24, %v733_v36  ;;  %v7770_v36 = vld [vmem:[#allocation16 + $0x130] sm:$0xff]  }
 0x17a   : > { %v8949_v54 = vadd.f32 %v8912_v24, %v736_v37  ;;  %7829 = vpow2.f32 %v860_v7  ;;  %v870_v37 = vmul.f32 1.442695, %v824_v19  ;;  %6966 = vmatpush3.bf16.msra.mxu1 %v7770_v36 }
 0x17b   : > { %1412 = vperm.xlu0 %7753, %v1188_v38   ;;  %v8926_v38 = vld [vmem:[%s8794_s12 + $0x28] sm:$0xff]   ;;  %v822_v8 = vsub.f32 0.0, %v8946_v53  ;;  %6959 = vmatprep.subr.bf16.mxu1 %v8418_v0 }
 0x17c   : > { %1417 = vperm.xlu1 %7754, %v1189_v39   ;;  %v8930_v39 = vadd.f32 %v8912_v24, %v731_v25  ;;  %v5588_v51 = vunpack.c.l.bf16 %v8926_v38  ;;  %v825_v9 = vsub.f32 0.0, %v8949_v54  ;;  %v5589_v21 = vunpack.c.h.bf16 %v8926_v38 }
 0x17d   : > { %v839_v25 = vsub.f32 0.0, %v8964_v4  ;;  %v9000_v38 = vadd.f32 %v8912_v24, %v739_v20 }
 0x17e   : > { %v820_v57 = vsub.f32 0.0, %v8930_v39  ;;  %v695_v6 = vsub.f32 %v5588_v51, %v8892_v1  ;;  %v872_v29 = vmul.f32 1.442695, %v825_v9  ;;  %v5596_v9 = vunpack.c.l.bf16 %v9013_v50 }
 0x17f   : > { %1422 = vperm.xlu0 %7753, %v1190_v40   ;;  %v692_v40 = vsub.f32 %v5581_v26, %v8892_v1  ;;  %v8985_v26 = vadd.f32 %v8912_v24, %v738_v5  ;;  %v1605_v5 = vld [vmem:[#allocation2 + $0x1] sm:$0xff] }
 0x180   : > { %1427 = vperm.xlu1 %7754, %v1191_v41   ;;  %v5609_v41 = vunpack.c.h.bf16 %v5755_v13  ;;  %v862_v12 = vmul.f32 1.442695, %v820_v57  ;;  %v740_v27 = vmul.f32 %v8899_v10, %v695_v6  ;;  %v7767_v57 = vld [vmem:[#allocation16 + $0x78] sm:$0xff]   ;;  %v1606_v6 = vld [vmem:[#allocation2 + $0x9] sm:$0xff]  ;;  %v699_v36 = vsub.f32 %v5596_v9, %v8892_v1 }
 0x181   : > { %v737_v58 = vmul.f32 %v8899_v10, %v692_v40  ;;  %v696_v40 = vsub.f32 %v5589_v21, %v8892_v1 }
 0x182   : > { %v706_v59 = vsub.f32 %v5609_v41, %v8892_v1  ;;  %7831 = vpow2.f32 %v862_v12  ;;  %v900_v41 = vmul.f32 1.442695, %v839_v25  ;;  %v7769_v12 = vld [vmem:[#allocation16] sm:$0xff]  }
 0x183   : > { %1432 = vperm.xlu0 %7753, %v1192_v42   ;;  %v5612_v42 = vunpack.c.l.bf16 %v5756_v30  ;;  %v8972_v13 = vadd.f32 %v8912_v24, %v737_v58  ;;  %v5616_v30 = vunpack.c.l.bf16 %v8977_v16  ;;  %v7771_v58 = vld [vmem:[#allocation16 + $0x138] sm:$0xff]   ;;  %v710_v16 = vsub.f32 %v5617_v49, %v8892_v1 }
 0x184   : > { %1437 = vperm.xlu1 %7754, %v1193_v43   ;;  %v7761_v43 = vld [vmem:[#allocation16 + $0x60] sm:$0xff]   ;;  %v751_v14 = vmul.f32 %v8899_v10, %v706_v59  ;;  %v828_v59 = vsub.f32 0.0, %v9000_v38  ;;  %6967 = vmatpush3.bf16.msra.mxu1 %v7771_v58  ;;  %v7830_v19 = vpop.eup %7829 }
 0x185   : > { %6061 = vmatpush3.bf16.msra.mxu0 %v7761_v43  ;;  %v707_v60 = vsub.f32 %v5612_v42, %v8892_v1  ;;  %v826_v31 = vsub.f32 0.0, %v8972_v13  ;;  %v827_v42 = vsub.f32 0.0, %v8985_v26  ;;  %v9005_v43 = vadd.f32 %v8912_v24, %v740_v27  ;;  %6552 = vmatprep.subr.bf16.mxu1 %v8418_v0 }
 0x186   : > { %6062 = vmatprep.subr.bf16.mxu0 %v8418_v0  ;;  %v8992_v32 = vadd.f32 %v8912_v24, %v751_v14  ;;  %v709_v46 = vsub.f32 %v5616_v30, %v8892_v1  ;;  %v878_v21 = vmul.f32 1.442695, %v828_v59 }
 0x187   : > { %1442 = vperm.xlu0 %7753, %v1194_v44   ;;  %v8935_v44 = vadd.f32 %v8912_v24, %v732_v28  ;;  %v752_v15 = vmul.f32 %v8899_v10, %v707_v60  ;;  %v866_v28 = vmul.f32 1.442695, %v822_v8  ;;  %v874_v51 = vmul.f32 1.442695, %v826_v31 }
 0x188   : > { %v840_v52 = vsub.f32 0.0, %v8992_v32  ;;  %v753_v60 = vmul.f32 %v8899_v10, %v708_v11  ;;  %v876_v63 = vmul.f32 1.442695, %v827_v42  ;;  %v754_v7 = vmul.f32 %v8899_v10, %v709_v46 }
 0x189   : > { %v821_v61 = vsub.f32 0.0, %v8935_v44  ;;  %6063 = vmatpush3.bf16.msra.mxu0 %v7763_v2  ;;  %v8995_v33 = vadd.f32 %v8912_v24, %v752_v15  ;;  %v829_v2 = vsub.f32 0.0, %v9005_v43  ;;  %v697_v8 = vsub.f32 %v5592_v47, %v8892_v1 }
 0x18a   : > { %6064 = vmatprep.subr.bf16.mxu0 %v8418_v0  ;;  %v1646_v11 = vpack.c.bf16 %v1606_v6, %v1605_v5  ;;  %v902_v14 = vmul.f32 1.442695, %v840_v52  ;;  %v9045_v31 = vadd.f32 %v8912_v24, %v754_v7  ;;  %v755_v42 = vmul.f32 %v8899_v10, %v710_v16  ;;  %v7772_v52 = vld [vmem:[#allocation16 + $0x8] sm:$0xff]  }
 0x18b   : > { %v864_v18 = vmul.f32 1.442695, %v821_v61  ;;  %v841_v55 = vsub.f32 0.0, %v8995_v33  ;;  %v5620_v61 = vunpack.c.l.bf16 %v9008_v45  ;;  %v9038_v27 = vmul.f32 1.442695, %v829_v2 }
 0x18c   : > { %v7832_v25 = vpop.eup %7831  ;;  %v742_v34 = vmul.f32 %v8899_v10, %v697_v8  ;;  %v712_v45 = vsub.f32 %v5621_v17, %v8892_v1  ;;  %v744_v2 = vmul.f32 %v8899_v10, %v699_v36  ;;  %v9069_v8 = vadd.f32 %v8912_v24, %v755_v42 }
 0x18d   : > { %6065 = vmatpush3.bf16.msra.mxu0 %v7765_v22  ;;  %7833 = vpow2.f32 %v864_v18  ;;  %v904_v15 = vmul.f32 1.442695, %v841_v55  ;;  %v9030_v18 = vld [vmem:[%s8794_s12 + $0x70] sm:$0xff]   ;;  %v9035_v22 = vadd.f32 %v8912_v24, %v753_v60  ;;  %v943_v47 = vadd.f32 1.0, %v7832_v25 }
 0x18e   : > { %6066 = vmatprep.subr.bf16.mxu0 %v8418_v0  ;;  %7835 = vpow2.f32 %v868_v23  ;;  %v711_v23 = vsub.f32 %v5620_v61, %v8892_v1  ;;  %10760 = vst [vmem:[#allocation40_spill] sm:$0xff] %v9069_v8  ;;  %v757_v9 = vmul.f32 %v8899_v10, %v712_v45  ;;  %v9085_v25 = vadd.f32 %v8912_v24, %v744_v2 }
 0x18f   : > { %7837 = vpow2.f32 %v866_v28  ;;  %v741_v28 = vmul.f32 %v8899_v10, %v696_v40  ;;  %v942_v40 = vadd.f32 1.0, %v7830_v19  ;;  %v842_v49 = vsub.f32 0.0, %v9035_v22 }
 0x190   : > { %7839 = vpow2.f32 %v872_v29  ;;  %v698_v29 = vsub.f32 %v5593_v3, %v8892_v1  ;;  %10763 = vst [vmem:[#allocation43_spill] sm:$0xff] %v9085_v25  ;;  %v9090_v36 = vadd.f32 %v8912_v24, %v757_v9 }
 0x191   : > { %7841 = vpow2.f32 %v870_v37  ;;  %6067 = vmatpush3.bf16.msra.mxu0 %v7767_v57  ;;  %v5624_v37 = vunpack.c.l.bf16 %v9030_v18 }
 0x192   : > { %7843 = vpow2.f32 %v900_v41  ;;  %6152 = vmatprep.subr.bf16.mxu0 %v8418_v0  ;;  %v743_v58 = vmul.f32 %v8899_v10, %v698_v29  ;;  %10764 = vst [vmem:[#allocation44_spill] sm:$0xff] %v9090_v36 }
 0x193   : > { %7845 = vpow2.f32 %v874_v51  ;;  %v756_v51 = vmul.f32 %v8899_v10, %v711_v23  ;;  %v713_v3 = vsub.f32 %v5624_v37, %v8892_v1 }
 0x194   : > { %6069 = vmatmul.mubr.bf16.vlgmr.msra.gmra.mrb[4].mxu0 %v1646_v11  ;;  %7847 = vpow2.f32 %v876_v63  ;;  %v9062_v63 = vadd.f32 %v8912_v24, %v742_v34  ;;  %v9072_v11 = vld [vmem:[#allocation2] sm:$0xff]  ;;  %v9081_v19 = vadd.f32 %v8912_v24, %v743_v58  ;;  %v844_v34 = vsub.f32 0.0, %v9069_v8 }
 0x195   : > { %6153 = vmatpush3.bf16.msra.mxu0 %v7769_v12  ;;  %6072 = vmatprep.mubr.msk.bf16.mxu0 %vm8419_vm0, %v8418_v0  ;;  %7849 = vpow2.f32 %v902_v14  ;;  %v843_v14 = vsub.f32 0.0, %v9045_v31 }
 0x196   : > { %6154 = vmatprep.subr.bf16.mxu0 %v8418_v0  ;;  %7851 = vpow2.f32 %v904_v15  ;;  %v9056_v0 = vadd.f32 %v8912_v24, %v741_v28  ;;  %10758 = vst [vmem:[#allocation38_spill] sm:$0xff] %v9062_v63  ;;  %v9077_v15 = vadd.f32 %v8912_v24, %v756_v51  ;;  %10762 = vst [vmem:[#allocation42_spill] sm:$0xff] %v9081_v19  ;;  %v831_v23 = vsub.f32 0.0, %v9062_v63  ;;  %v7777_v63 = vld [vmem:[#allocation16 + $0x18] sm:$0xff]  }
 0x197   : > { %v7834_v30 = vpop.eup %7833  ;;  %7853 = vpow2.f32 %v878_v21  ;;  %v758_v28 = vmul.f32 %v8899_v10, %v713_v3  ;;  %v910_v58 = vmul.f32 1.442695, %v844_v34 }
 0x198   : > { %v7836_v41 = vpop.eup %7835  ;;  %v944_v57 = vadd.f32 1.0, %v7834_v30  ;;  %10756 = vst [vmem:[#allocation36_spill] sm:$0xff] %v9056_v0  ;;  %7855 = vrcp.f32 %v942_v40  ;;  %10761 = vst [vmem:[#allocation41_spill] sm:$0xff] %v9077_v15  ;;  %v830_v17 = vsub.f32 0.0, %v9056_v0  ;;  %v906_v30 = vmul.f32 1.442695, %v842_v49 }
 0x199   : > { %v7838_v46 = vpop.eup %7837  ;;  %v946_v61 = vadd.f32 1.0, %v7836_v41  ;;  %6155 = vmatpush3.bf16.msra.mxu0 %v7772_v52  ;;  %7857 = vrcp.f32 %v943_v47  ;;  %v908_v41 = vmul.f32 1.442695, %v843_v14  ;;  %v845_v40 = vsub.f32 0.0, %v9077_v15 }
 0x19a   : > { %v7840_v55 = vpop.eup %7839  ;;  %v945_v7 = vadd.f32 1.0, %v7838_v46  ;;  %6156 = vmatprep.subr.bf16.mxu0 %v9072_v11  ;;  %7859 = vrcp.f32 %v944_v57  ;;  %v882_v46 = vmul.f32 1.442695, %v830_v17  ;;  %v832_v47 = vsub.f32 0.0, %v9081_v19 }
 0x19b   : > { %v7842_v59 = vpop.eup %7841  ;;  %v948_v12 = vadd.f32 1.0, %v7840_v55  ;;  %7861 = vrcp.f32 %v946_v61  ;;  %v884_v49 = vmul.f32 1.442695, %v831_v23  ;;  %v833_v52 = vsub.f32 0.0, %v9085_v25  ;;  %v639_v25 = vld [vmem:[%s8794_s12 + $0xa0] sm:$0x3] }
 0x19c   : > { %v7844_v5 = vpop.eup %7843  ;;  %v947_v16 = vadd.f32 1.0, %v7842_v59  ;;  %7863 = vrcp.f32 %v945_v7  ;;  %v9101_v55 = vadd.f32 %v8912_v24, %v758_v28  ;;  %v846_v59 = vsub.f32 0.0, %v9090_v36 }
 0x19d   : > { %v7846_v21 = vpop.eup %7845  ;;  %7865 = vrcp.f32 %v948_v12  ;;  %v912_v61 = vmul.f32 1.442695, %v845_v40  ;;  %v886_v3 = vmul.f32 1.442695, %v832_v47  ;;  %v888_v9 = vmul.f32 1.442695, %v833_v52 }
 0x19e   : > { %v7848_v29 = vpop.eup %7847  ;;  %7867 = vrcp.f32 %v947_v16  ;;  %10767 = vst [vmem:[#allocation47_spill] sm:$0xff] %v9101_v55  ;;  %v847_v12 = vsub.f32 0.0, %v9101_v55  ;;  %v5597_v14 = vunpack.c.h.bf16 %v9013_v50  ;;  %v914_v23 = vmul.f32 1.442695, %v846_v59  ;;  %v9177_v55 = vld [vmem:[%s8794_s12 + $0x98] sm:$0xff]  }
 0x19f   : > { %v7850_v42 = vpop.eup %7849  ;;  %7869 = vpow2.f32 %v9038_v27  ;;  %v5644_v15 = vunpack.c.l.bf16 %v9177_v55 }
 0x1a0   : > { %v7852_v51 = vpop.eup %7851  ;;  %7871 = vpow2.f32 %v906_v30  ;;  %v962_v30 = vadd.f32 1.0, %v7844_v5  ;;  %v700_v50 = vsub.f32 %v5597_v14, %v8892_v1  ;;  %v963_v5 = vadd.f32 1.0, %v7850_v42  ;;  %v5753_v14 = vld [vmem:[%s8794_s12 + $0x40] sm:$0xff]  }
 0x1a1   : > { %v7854_v57 = vpop.eup %7853  ;;  %7873 = vpow2.f32 %v908_v41  ;;  %v949_v41 = vadd.f32 1.0, %v7846_v21  ;;  %v7774_v42 = vld [vmem:[#allocation16 + $0x10] sm:$0xff]  }
 0x1a2   : > { %v9104_v2 = vpop.eup %7855  ;;  %7875 = vpow2.f32 %v882_v46  ;;  %v916_v46 = vmul.f32 1.442695, %v847_v12  ;;  %v745_v12 = vmul.f32 %v8899_v10, %v700_v50  ;;  %6157 = vmatpush3.bf16.msra.mxu0 %v7774_v42 }
 0x1a3   : > { %v9106_v7 = vpop.eup %7857  ;;  %7877 = vpow2.f32 %v884_v49  ;;  %v950_v49 = vadd.f32 1.0, %v7848_v29  ;;  %6158 = vmatprep.subr.bf16.mxu0 %v9072_v11 }
 0x1a4   : > { %v9112_v16 = vpop.eup %7859  ;;  %7879 = vpow2.f32 %v910_v58 }
 0x1a5   : > { %v9116_v28 = vpop.eup %7861  ;;  %7881 = vpow2.f32 %v912_v61  ;;  %v964_v61 = vadd.f32 1.0, %v7852_v51  ;;  %v5600_v51 = vunpack.c.l.bf16 %v5753_v14 }
 0x1a6   : > { %v9118_v34 = vpop.eup %7863  ;;  %7883 = vpow2.f32 %v886_v3  ;;  %6159 = vmatpush3.bf16.msra.mxu0 %v7777_v63 }
 0x1a7   : > { %v9120_v40 = vpop.eup %7865  ;;  %7885 = vpow2.f32 %v888_v9  ;;  %v951_v9 = vadd.f32 1.0, %v7854_v57  ;;  %v5625_v57 = vunpack.c.h.bf16 %v9030_v18  ;;  %v701_v42 = vsub.f32 %v5600_v51, %v8892_v1  ;;  %6160 = vmatprep.subr.bf16.mxu0 %v9072_v11 }
 0x1a8   : > { %v9123_v47 = vpop.eup %7867  ;;  %7887 = vpow2.f32 %v914_v23 }
 0x1a9   : > { %v7870_v52 = vpop.eup %7869  ;;  %7889 = vrcp.f32 %v962_v30  ;;  %v9132_v30 = vld [vmem:[%s8794_s12 + $0x78] sm:$0xff]  }
 0x1aa   : > { %v7872_v59 = vpop.eup %7871  ;;  %7891 = vrcp.f32 %v949_v41  ;;  %v952_v29 = vadd.f32 1.0, %v7870_v52 }
 0x1ab   : > { %v7874_v3 = vpop.eup %7873  ;;  %7893 = vpow2.f32 %v916_v46 }
 0x1ac   : > { %7895 = vrcp.f32 %v950_v49  ;;  %v966_v41 = vadd.f32 1.0, %v7874_v3  ;;  %v9138_v49 = vadd.f32 %v8912_v24, %v745_v12  ;;  %v5754_v3 = vld [vmem:[%s8794_s12 + $0x48] sm:$0xff]  }
 0x1ad   : > { %7897 = vrcp.f32 %v963_v5 }
 0x1ae   : > { %7899 = vrcp.f32 %v964_v61  ;;  %10773 = vst [vmem:[#allocation53_spill] sm:$0xff] %v9138_v49  ;;  %v5628_v61 = vunpack.c.l.bf16 %v9132_v30 }
 0x1af   : > { %7901 = vrcp.f32 %v951_v9  ;;  %v5601_v9 = vunpack.c.h.bf16 %v5753_v14 }
 0x1b0   : > { %7903 = vrcp.f32 %v952_v29 }
 0x1b6   : > { %v9032_v20 = vpop.permute.xlu0 %1242 }
 0x1b7   : > { %10755 = vst [vmem:[#allocation35_spill] sm:$0xff] %v9032_v20  ;;  %v9066_v6 = vpop.permute.xlu1 %1252 }
 0x1b8   : > { %10759 = vst [vmem:[#allocation39_spill] sm:$0xff] %v9066_v6  ;;  %v5761_v6 = vld [vmem:[%s8794_s12 + $0x80] sm:$0xff]  }
 0x1ba   : > { %v9059_v60 = vpop.permute.xlu0 %1247 }
 0x1bb   : > { %10757 = vst [vmem:[#allocation37_spill] sm:$0xff] %v9059_v60  ;;  %v9095_v45 = vpop.permute.xlu1 %1257 }
 0x1bc   : > { %10766 = vst [vmem:[#allocation46_spill] sm:$0xff] %v9095_v45  ;;  %v5604_v45 = vunpack.c.l.bf16 %v5754_v3 }
 0x1be   : > { %v9092_v37 = vpop.permute.xlu0 %1262 }
 0x1bf   : > { %10765 = vst [vmem:[#allocation45_spill] sm:$0xff] %v9092_v37  ;;  %v9114_v17 = vpop.permute.xlu1 %1267  ;;  %v714_v37 = vsub.f32 %v5625_v57, %v8892_v1  ;;  %v702_v57 = vsub.f32 %v5601_v9, %v8892_v1  ;;  %v703_v9 = vsub.f32 %v5604_v45, %v8892_v1 }
 0x1c0   : > { %10769 = vst [vmem:[#allocation49_spill] sm:$0xff] %v9114_v17 }
 0x1c2   : > { %v9108_v27 = vpop.permute.xlu0 %1272 }
 0x1c3   : > { %10768 = vst [vmem:[#allocation48_spill] sm:$0xff] %v9108_v27  ;;  %v9127_v21 = vpop.permute.xlu1 %1277  ;;  %v7876_v27 = vpop.eup %7875 }
 0x1c4   : > { %10771 = vst [vmem:[#allocation51_spill] sm:$0xff] %v9127_v21  ;;  %v7878_v23 = vpop.eup %7877  ;;  %v953_v50 = vadd.f32 1.0, %v7876_v27 }
 0x1c5   : > { %v7880_v17 = vpop.eup %7879 }
 0x1c6   : > { %v9125_v58 = vpop.permute.xlu0 %1342  ;;  %v7882_v46 = vpop.eup %7881 }
 0x1c7   : > { %10770 = vst [vmem:[#allocation50_spill] sm:$0xff] %v9125_v58  ;;  %v965_v58 = vadd.f32 1.0, %v7872_v59  ;;  %v7884_v52 = vpop.eup %7883  ;;  %v9140_v5 = vpop.permute.xlu1 %1347  ;;  %v954_v59 = vadd.f32 1.0, %v7878_v23  ;;  %v968_v12 = vadd.f32 1.0, %v7882_v46  ;;  %v834_v23 = vsub.f32 0.0, %v9138_v49 }
 0x1c8   : > { %10774 = vst [vmem:[#allocation54_spill] sm:$0xff] %v9140_v5  ;;  %v7886_v18 = vpop.eup %7885  ;;  %v955_v29 = vadd.f32 1.0, %v7884_v52  ;;  %v5629_v46 = vunpack.c.h.bf16 %v9132_v30  ;;  %v5763_v30 = vld [vmem:[%s8794_s12 + $0x90] sm:$0xff]  }
 0x1c9   : > { %7905 = vrcp.f32 %v965_v58  ;;  %v7888_v27 = vpop.eup %7887  ;;  %v715_v58 = vsub.f32 %v5628_v61, %v8892_v1  ;;  %v759_v61 = vmul.f32 %v8899_v10, %v714_v37  ;;  %v747_v37 = vmul.f32 %v8899_v10, %v702_v57 }
 0x1ca   : > { %v9135_v21 = vpop.permute.xlu0 %1282  ;;  %7907 = vrcp.f32 %v966_v41  ;;  %v9147_v5 = vpop.eup %7889  ;;  %v969_v51 = vadd.f32 1.0, %v7888_v27  ;;  %v5605_v27 = vunpack.c.h.bf16 %v5754_v3 }
 0x1cb   : > { %10772 = vst [vmem:[#allocation52_spill] sm:$0xff] %v9135_v21  ;;  %v967_v21 = vadd.f32 1.0, %v7880_v17  ;;  %7909 = vrcp.f32 %v953_v50  ;;  %v9151_v60 = vpop.eup %7891  ;;  %v956_v17 = vadd.f32 1.0, %v7886_v18  ;;  %v5762_v50 = vld [vmem:[%s8794_s12 + $0x88] sm:$0xff]   ;;  %v9161_v20 = vpop.permute.xlu1 %1287  ;;  %v5632_v18 = vunpack.c.l.bf16 %v5761_v6 }
 0x1cc   : > { %7911 = vrcp.f32 %v954_v59  ;;  %v7894_v14 = vpop.eup %7893  ;;  %10776 = vst [vmem:[#allocation56_spill] sm:$0xff] %v9161_v20  ;;  %v746_v59 = vmul.f32 %v8899_v10, %v701_v42  ;;  %v5636_v20 = vunpack.c.l.bf16 %v5762_v50  ;;  %v704_v57 = vsub.f32 %v5605_v27, %v8892_v1 }
 0x1cd   : > { %7913 = vrcp.f32 %v967_v21  ;;  %v9159_v52 = vpop.eup %7895  ;;  %v890_v21 = vmul.f32 1.442695, %v834_v23  ;;  %v970_v49 = vadd.f32 1.0, %v7894_v14  ;;  %v5633_v23 = vunpack.c.h.bf16 %v5761_v6 }
 0x1ce   : > { %v9154_v41 = vpop.permute.xlu0 %1352  ;;  %7915 = vrcp.f32 %v968_v12  ;;  %v9165_v56 = vpop.eup %7897  ;;  %v760_v12 = vmul.f32 %v8899_v10, %v715_v58  ;;  %v9182_v3 = vadd.f32 %v8912_v24, %v746_v59  ;;  %v717_v58 = vsub.f32 %v5632_v18, %v8892_v1 }
 0x1cf   : > { %10775 = vst [vmem:[#allocation55_spill] sm:$0xff] %v9154_v41  ;;  %7917 = vrcp.f32 %v955_v29  ;;  %v9169_v41 = vpop.eup %7899  ;;  %v716_v29 = vsub.f32 %v5629_v46, %v8892_v1  ;;  %v5640_v14 = vunpack.c.l.bf16 %v5763_v30  ;;  %v748_v6 = vmul.f32 %v8899_v10, %v703_v9  ;;  %v9197_v59 = vpop.permute.xlu1 %1357 }
 0x1d0   : > { %7919 = vrcp.f32 %v956_v17  ;;  %v9172_v42 = vpop.eup %7901  ;;  %10777 = vst [vmem:[#allocation57_spill] sm:$0xff] %v9182_v3  ;;  %v9185_v17 = vadd.f32 %v8912_v24, %v759_v61  ;;  %v5637_v46 = vunpack.c.h.bf16 %v5762_v50  ;;  %10780 = vst [vmem:[#allocation60_spill] sm:$0xff] %v9197_v59  ;;  %v9200_v61 = vadd.f32 %v8912_v24, %v760_v12 }
 0x1d1   : > { %7921 = vrcp.f32 %v969_v51  ;;  %v9179_v45 = vpop.eup %7903  ;;  %v719_v18 = vsub.f32 %v5636_v20, %v8892_v1  ;;  %v761_v50 = vmul.f32 %v8899_v10, %v716_v29  ;;  %v718_v9 = vsub.f32 %v5633_v23, %v8892_v1 }
 0x1d2   : > { %10778 = vst [vmem:[#allocation58_spill] sm:$0xff] %v9185_v17  ;;  %v9190_v36 = vpop.permute.xlu0 %1292  ;;  %7923 = vpow2.f32 %v890_v21  ;;  %10781 = vst [vmem:[#allocation61_spill] sm:$0xff] %v9200_v61  ;;  %v9207_v21 = vadd.f32 %v8912_v24, %v747_v37  ;;  %v5641_v27 = vunpack.c.h.bf16 %v5763_v30  ;;  %v762_v12 = vmul.f32 %v8899_v10, %v717_v58 }
 0x1d3   : > { %v9188_v51 = vpop.eup %7905  ;;  %10779 = vst [vmem:[#allocation59_spill] sm:$0xff] %v9190_v36  ;;  %7925 = vrcp.f32 %v970_v49  ;;  %v835_v49 = vsub.f32 0.0, %v9182_v3  ;;  %v721_v20 = vsub.f32 %v5640_v14, %v8892_v1  ;;  %v680_v59 = vunpack.c.l.bf16 %v639_v25 }
 0x1d4   : > { %v9195_v19 = vpop.eup %7907  ;;  %10783 = vst [vmem:[#allocation63_spill] sm:$0xff] %v9207_v21  ;;  %v848_v37 = vsub.f32 0.0, %v9185_v17  ;;  %v749_v29 = vmul.f32 %v8899_v10, %v704_v57  ;;  %v720_v30 = vsub.f32 %v5637_v46, %v8892_v1  ;;  %v849_v3 = vsub.f32 0.0, %v9200_v61 }
 0x1d5   : > { %v9204_v36 = vpop.eup %7909  ;;  %v764_v58 = vmul.f32 %v8899_v10, %v719_v18  ;;  %v723_v25 = vsub.f32 %v5644_v15, %v8892_v1  ;;  %v5645_v14 = vunpack.c.h.bf16 %v9177_v55  ;;  %v9236_v57 = vadd.f32 %v8912_v24, %v761_v50  ;;  %v9243_v15 = vpop.permute.xlu1 %1297 }
 0x1d6   : > { %10782 = vst [vmem:[#allocation62_spill] sm:$0xff] %v9204_v36  ;;  %v9211_v8 = vpop.eup %7911  ;;  %v9220_v36 = vadd.f32 %v8912_v24, %v748_v6  ;;  %v9232_v17 = vpop.permute.xlu0 %1362  ;;  %v836_v6 = vsub.f32 0.0, %v9207_v21  ;;  %v763_v46 = vmul.f32 %v8899_v10, %v718_v9  ;;  %v722_v61 = vsub.f32 %v5641_v27, %v8892_v1  ;;  %10790 = vst [vmem:[#allocation70_spill] sm:$0xff] %v9243_v15 }
 0x1d7   : > { %v9216_v0 = vpop.eup %7913  ;;  %10788 = vst [vmem:[#allocation68_spill] sm:$0xff] %v9232_v17  ;;  %v892_v63 = vmul.f32 1.442695, %v835_v49  ;;  %v9246_v55 = vadd.f32 %v8912_v24, %v762_v12  ;;  %v766_v17 = vmul.f32 %v8899_v10, %v721_v20  ;;  %v725_v21 = vsub.f32 %v680_v59, %v8892_v1 }
 0x1d8   : > { %10784 = vst [vmem:[#allocation64_spill] sm:$0xff] %v9216_v0  ;;  %10785 = vst [vmem:[#allocation65_spill] sm:$0xff] %v9220_v36  ;;  %v9224_v23 = vpop.eup %7915  ;;  %v837_v9 = vsub.f32 0.0, %v9220_v36  ;;  %v9254_v27 = vadd.f32 %v8912_v24, %v749_v29  ;;  %v9258_v49 = vadd.f32 %v8912_v24, %v764_v58  ;;  %v768_v12 = vmul.f32 %v8899_v10, %v723_v25 }
 0x1d9   : > { %10786 = vst [vmem:[#allocation66_spill] sm:$0xff] %v9224_v23  ;;  %v9230_v0 = vpop.eup %7917  ;;  %10791 = vst [vmem:[#allocation71_spill] sm:$0xff] %v9246_v55  ;;  %v920_v23 = vmul.f32 1.442695, %v849_v3  ;;  %v724_v20 = vsub.f32 %v5645_v14, %v8892_v1  ;;  %v894_v59 = vmul.f32 1.442695, %v836_v6  ;;  %v767_v29 = vmul.f32 %v8899_v10, %v722_v61  ;;  %v9280_v61 = vpop.permute.xlu1 %1367 }
 0x1da   : > { %10787 = vst [vmem:[#allocation67_spill] sm:$0xff] %v9230_v0  ;;  %v9241_v18 = vpop.eup %7919  ;;  %v918_v0 = vmul.f32 1.442695, %v848_v37  ;;  %v9264_v37 = vadd.f32 %v8912_v24, %v763_v46  ;;  %7927 = vpow2.f32 %v892_v63  ;;  %v851_v3 = vsub.f32 0.0, %v9246_v55  ;;  %v9274_v1 = vpop.permute.xlu0 %1302  ;;  %10794 = vst [vmem:[#allocation74_spill] sm:$0xff] %v9280_v61 }
 0x1db   : > { %10789 = vst [vmem:[#allocation69_spill] sm:$0xff] %v9241_v18  ;;  %v9250_v50 = vpop.eup %7921  ;;  %v765_v18 = vmul.f32 %v8899_v10, %v720_v30  ;;  %v9271_v30 = vadd.f32 %v8912_v24, %v766_v17  ;;  %v770_v58 = vmul.f32 %v8899_v10, %v725_v21  ;;  %10793 = vst [vmem:[#allocation73_spill] sm:$0xff] %v9274_v1  ;;  %v896_v25 = vmul.f32 1.442695, %v837_v9 }
 0x1dc   : > { %10792 = vst [vmem:[#allocation72_spill] sm:$0xff] %v9250_v50  ;;  %v7924_v15 = vpop.eup %7923  ;;  %v850_v50 = vsub.f32 0.0, %v9236_v57  ;;  %7929 = vpow2.f32 %v918_v0  ;;  %v838_v14 = vsub.f32 0.0, %v9254_v27  ;;  %v853_v63 = vsub.f32 0.0, %v9258_v49 }
 0x1dd   : > { %v9267_v36 = vpop.eup %7925  ;;  %v9278_v6 = vadd.f32 %v8912_v24, %v765_v18  ;;  %v957_v46 = vadd.f32 1.0, %v7924_v15  ;;  %v9284_v55 = vadd.f32 %v8912_v24, %v768_v12  ;;  %v769_v17 = vmul.f32 %v8899_v10, %v724_v20 }
 0x1de   : > { %7931 = vpow2.f32 %v920_v23  ;;  %v922_v21 = vmul.f32 1.442695, %v850_v50  ;;  %v852_v0 = vsub.f32 0.0, %v9264_v37  ;;  %v9289_v9 = vadd.f32 %v8912_v24, %v767_v29  ;;  %v9300_v20 = vpop.permute.xlu0 %1372 }
 0x1df   : > { %10795 = vst [vmem:[#allocation75_spill] sm:$0xff] %v9284_v55  ;;  %7933 = vpow2.f32 %v894_v59  ;;  %v924_v18 = vmul.f32 1.442695, %v851_v3  ;;  %v855_v1 = vsub.f32 0.0, %v9271_v30  ;;  %v9293_v15 = vadd.f32 %v8912_v24, %v770_v58  ;;  %10799 = vst [vmem:[#allocation79_spill] sm:$0xff] %v9300_v20  ;;  %v9303_v3 = vpop.permute.xlu1 %1307 }
 0x1e0   : > { %10796 = vst [vmem:[#allocation76_spill] sm:$0xff] %v9289_v9  ;;  %7935 = vpow2.f32 %v896_v25  ;;  %v898_v61 = vmul.f32 1.442695, %v838_v14  ;;  %v854_v12 = vsub.f32 0.0, %v9278_v6  ;;  %v928_v10 = vmul.f32 1.442695, %v853_v63 }
 0x1e1   : > { %10797 = vst [vmem:[#allocation77_spill] sm:$0xff] %v9293_v15  ;;  %7937 = vrcp.f32 %v957_v46  ;;  %v857_v23 = vsub.f32 0.0, %v9284_v55  ;;  %v9298_v50 = vadd.f32 %v8912_v24, %v769_v17  ;;  %v926_v59 = vmul.f32 1.442695, %v852_v0  ;;  %10800 = vst [vmem:[#allocation80_spill] sm:$0xff] %v9303_v3 }
 0x1e2   : > { %7939 = vpow2.f32 %v922_v21  ;;  %v856_v29 = vsub.f32 0.0, %v9289_v9  ;;  %v932_v58 = vmul.f32 1.442695, %v855_v1  ;;  %v859_v25 = vsub.f32 0.0, %v9293_v15  ;;  %v5405_v21 = vld [vmem:[#allocation13] ss:$0 sm:$0xff]  ;;  %v9307_v55 = vpop.permute.xlu0 %1312 }
 0x1e3   : > { %10798 = vst [vmem:[#allocation78_spill] sm:$0xff] %v9298_v50  ;;  %7941 = vpow2.f32 %v924_v18  ;;  %v930_v14 = vmul.f32 1.442695, %v854_v12  ;;  %v936_v63 = vmul.f32 1.442695, %v857_v23  ;;  %v858_v24 = vsub.f32 0.0, %v9298_v50  ;;  %v9309_v3 = vpop.permute.xlu1 %1377 }
 0x1e4   : > { %7943 = vpow2.f32 %v898_v61  ;;  %v7928_v46 = vpop.eup %7927  ;;  %v934_v20 = vmul.f32 1.442695, %v856_v29  ;;  %v940_v0 = vmul.f32 1.442695, %v859_v25  ;;  %10801 = vst [vmem:[#allocation81_spill] sm:$0xff] %v9307_v55  ;;  %10802 = vst [vmem:[#allocation82_spill] sm:$0xff] %v9309_v3 }
 0x1e5   : > { %7945 = vpow2.f32 %v928_v10  ;;  %v958_v18 = vadd.f32 1.0, %v7928_v46  ;;  %v938_v12 = vmul.f32 1.442695, %v858_v24  ;;  %v7780_v29 = vld [vmem:[#allocation16 + $0x20] sm:$0xff]  }
 0x1e6   : > { %v7930_v17 = vpop.eup %7929  ;;  %7947 = vpow2.f32 %v926_v59  ;;  %6161 = vmatpush3.bf16.msra.mxu0 %v7780_v29  ;;  %v9317_v24 = vpop.permute.xlu0 %1382 }
 0x1e7   : > { %7949 = vpow2.f32 %v932_v58  ;;  %v971_v59 = vadd.f32 1.0, %v7930_v17  ;;  %6162 = vmatprep.subr.bf16.mxu0 %v9072_v11  ;;  %10803 = vst [vmem:[#allocation83_spill] sm:$0xff] %v9317_v24 }
 0x1e8   : > { %v7932_v9 = vpop.eup %7931  ;;  %7951 = vpow2.f32 %v930_v14 }
 0x1e9   : > { %v7934_v1 = vpop.eup %7933  ;;  %7953 = vpow2.f32 %v936_v63  ;;  %v972_v25 = vadd.f32 1.0, %v7932_v9 }
 0x1ea   : > { %v7936_v10 = vpop.eup %7935  ;;  %7955 = vpow2.f32 %v934_v20  ;;  %v959_v3 = vadd.f32 1.0, %v7934_v1 }
 0x1eb   : > { %v9313_v58 = vpop.eup %7937  ;;  %7957 = vpow2.f32 %v940_v0  ;;  %v960_v20 = vadd.f32 1.0, %v7936_v10 }
 0x1ec   : > { %v7940_v55 = vpop.eup %7939  ;;  %7959 = vrcp.f32 %v958_v18 }
 0x1ed   : > { %v7942_v46 = vpop.eup %7941  ;;  %7961 = vpow2.f32 %v938_v12  ;;  %v973_v9 = vadd.f32 1.0, %v7940_v55 }
 0x1ee   : > { %v7944_v63 = vpop.eup %7943  ;;  %7963 = vrcp.f32 %v971_v59  ;;  %v974_v18 = vadd.f32 1.0, %v7942_v46  ;;  %v9321_v59 = vpop.permute.xlu0 %1322 }
 0x1ef   : > { %v7946_v17 = vpop.eup %7945  ;;  %7965 = vrcp.f32 %v972_v25  ;;  %v961_v1 = vadd.f32 1.0, %v7944_v63 }
 0x1f0   : > { %v7948_v0 = vpop.eup %7947  ;;  %v976_v29 = vadd.f32 1.0, %v7946_v17 }
 0x1f1   : > { %v975_v24 = vadd.f32 1.0, %v7948_v0 }
 0x20b   : > { %v1144_v61 = vpop.f32.mrb[0].mxu0 }
 0x20c   : > { %v9311_v23 = vadd.f32 %v5405_v21, %v1144_v61  ;;  %v6051_v50 = vpop.f32.mrb[1].mxu0  ;;  %v9319_v21 = vpop.permute.xlu1 %1317 }
 0x20d   : > { %10804 = vst [vmem:[#allocation84_spill] sm:$0xff] %v9319_v21  ;;  %v7950_v61 = vpop.eup %7949 }
 0x20e   : > { %v1148_v14 = vsub.f32 0.0, %v9311_v23  ;;  %v7952_v12 = vpop.eup %7951  ;;  %v978_v10 = vadd.f32 1.0, %v7950_v61 }
 0x20f   : > { %v7954_v15 = vpop.eup %7953  ;;  %v977_v55 = vadd.f32 1.0, %v7952_v12 }
 0x210   : > { %v1149_v50 = vmul.f32 1.442695, %v1148_v14  ;;  %v7956_v14 = vpop.eup %7955  ;;  %v9323_v25 = vpop.permute.xlu1 %1387 }
 0x211   : > { %v7958_v21 = vpop.eup %7957  ;;  %10805 = vst [vmem:[#allocation85_spill] sm:$0xff] %v9323_v25 }
 0x212   : > { %7967 = vpow2.f32 %v1149_v50  ;;  %v9325_v46 = vpop.eup %7959  ;;  %v979_v50 = vadd.f32 1.0, %v7956_v14  ;;  %v982_v17 = vadd.f32 1.0, %v7958_v21 }
 0x213   : > { %7969 = vrcp.f32 %v959_v3  ;;  %v980_v3 = vadd.f32 1.0, %v7954_v15  ;;  %v7962_v63 = vpop.eup %7961 }
 0x214   : > { %7971 = vrcp.f32 %v960_v20  ;;  %v7964_v20 = vpop.eup %7963  ;;  %v981_v61 = vadd.f32 1.0, %v7962_v63  ;;  %v9329_v12 = vpop.permute.xlu1 %1327  ;;  %v1025_v63 = vmul.f32 %v9106_v7, %v8930_v39  ;;  %v1031_v7 = vmul.f32 %v9151_v60, %v8972_v13  ;;  %v10810_v60 = vld [vmem:[#allocation36_spill] sm:$0xff] }
 0x215   : > { %7973 = vrcp.f32 %v973_v9  ;;  %v7966_v9 = vpop.eup %7965  ;;  %10807 = vst [vmem:[#allocation87_spill] sm:$0xff] %v9329_v12 }
 0x216   : > { %7975 = vrcp.f32 %v974_v18  ;;  %v9327_v18 = vpop.permute.xlu0 %1392 }
 0x217   : > { %7977 = vrcp.f32 %v961_v1  ;;  %10806 = vst [vmem:[#allocation86_spill] sm:$0xff] %v9327_v18 }
 0x218   : > { %7979 = vrcp.f32 %v976_v29 }
 0x219   : > { %7981 = vrcp.f32 %v975_v24 }
 0x21a   : > { %7983 = vrcp.f32 %v978_v10  ;;  %v9331_v10 = vpop.permute.xlu0 %1332 }
 0x21b   : > { %7985 = vrcp.f32 %v977_v55  ;;  %10808 = vst [vmem:[#allocation88_spill] sm:$0xff] %v9331_v10  ;;  %v1030_v10 = vmul.f32 %v9120_v40, %v8949_v54  ;;  %v1046_v54 = vmul.f32 %v9169_v41, %v8995_v33  ;;  %v10813_v40 = vld [vmem:[#allocation40_spill] sm:$0xff]  ;;  %v10816_v41 = vld [vmem:[#allocation66_spill] sm:$0xff] }
 0x21c   : > { %v7968_v0 = vpop.eup %7967  ;;  %7987 = vrcp.f32 %v980_v3  ;;  %v1024_v3 = vmul.f32 %v9104_v2, %v8921_v35  ;;  %v1029_v35 = vmul.f32 %v9123_v47, %v8959_v62  ;;  %v7784_v2 = vld [vmem:[#allocation16 + $0x28] sm:$0xff]   ;;  %v1033_v62 = vmul.f32 %v9172_v42, %v9000_v38  ;;  %v10818_v42 = vld [vmem:[#allocation67_spill] sm:$0xff] }
 0x21d   : > { %v7970_v25 = vpop.eup %7969  ;;  %v1151_v1 = vadd.f32 1.0, %v7968_v0  ;;  %7989 = vrcp.f32 %v979_v50  ;;  %v1026_v50 = vmul.f32 %v9112_v16, %v8935_v44  ;;  %v9339_v0 = vpop.permute.xlu1 %1397  ;;  %v1044_v44 = vmul.f32 %v9147_v5, %v8964_v4  ;;  %6163 = vmatpush3.bf16.msra.mxu0 %v7784_v2  ;;  %v10814_v47 = vld [vmem:[#allocation64_spill] sm:$0xff]  ;;  %v10815_v5 = vld [vmem:[#allocation41_spill] sm:$0xff] }
 0x21e   : > { %v7972_v29 = vpop.eup %7971  ;;  %7991 = vrcp.f32 %v982_v17  ;;  %10809 = vst [vmem:[#allocation89_spill] sm:$0xff] %v9339_v0  ;;  %v1047_v4 = vmul.f32 %v9188_v51, %v9035_v22  ;;  %v1049_v38 = vmul.f32 %v10814_v47, %v10813_v40  ;;  %6164 = vmatprep.subr.bf16.mxu0 %v9072_v11  ;;  %v1050_v22 = vmul.f32 %v10816_v41, %v10815_v5  ;;  %v10819_v51 = vld [vmem:[#allocation43_spill] sm:$0xff]  ;;  %v10821_v2 = vld [vmem:[#allocation44_spill] sm:$0xff]  ;;  %v9382_v0 = vpop.permute.xlu0 %1402  ;;  %v10825_v47 = vld [vmem:[#allocation53_spill] sm:$0xff] }
 0x21f   : > { %v7974_v15 = vpop.eup %7973  ;;  %7993 = vrcp.f32 %v1151_v1  ;;  %v1027_v1 = vmul.f32 %v9118_v34, %v8946_v53  ;;  %v1045_v53 = vmul.f32 %v9165_v56, %v8992_v32  ;;  %v10811_v56 = vld [vmem:[#allocation62_spill] sm:$0xff]  ;;  %10823 = vst [vmem:[#allocation36_spill] sm:$0xff] %v9382_v0  ;;  %v9388_v12 = vmul.f32 %v9313_v58, %v10825_v47  ;;  %v10826_v5 = vld [vmem:[#allocation57_spill] sm:$0xff] }
 0x220   : > { %v7976_v24 = vpop.eup %7975  ;;  %7995 = vrcp.f32 %v981_v61  ;;  %v1028_v61 = vmul.f32 %v9116_v28, %v8939_v48  ;;  %v1032_v48 = vmul.f32 %v9159_v52, %v8985_v26  ;;  %v1034_v28 = vmul.f32 %v9179_v45, %v9005_v43  ;;  %v10812_v34 = vld [vmem:[#allocation38_spill] sm:$0xff]  ;;  %v10831_v58 = vld [vmem:[#allocation65_spill] sm:$0xff] }
 0x221   : > { %v7978_v14 = vpop.eup %7977  ;;  %v1048_v26 = vmul.f32 %v9195_v19, %v9045_v31  ;;  %v1035_v32 = vmul.f32 %v10811_v56, %v10810_v60  ;;  %v1036_v33 = vmul.f32 %v9211_v8, %v10812_v34  ;;  %v10817_v52 = vld [vmem:[#allocation42_spill] sm:$0xff]  ;;  %v10820_v31 = vld [vmem:[#allocation69_spill] sm:$0xff]  ;;  %v10822_v60 = vld [vmem:[#allocation72_spill] sm:$0xff]  ;;  %v9392_v41 = vmul.f32 %v9325_v46, %v10826_v5 }
 0x222   : > { %v7980_v21 = vpop.eup %7979  ;;  %v1037_v45 = vmul.f32 %v10818_v42, %v10817_v52  ;;  %v1038_v19 = vmul.f32 %v10820_v31, %v10819_v51  ;;  %v1051_v56 = vmul.f32 %v10822_v60, %v10821_v2  ;;  %v10824_v34 = vld [vmem:[#allocation47_spill] sm:$0xff]  ;;  %v10827_v52 = vld [vmem:[#allocation58_spill] sm:$0xff]  ;;  %v9397_v51 = vpop.permute.xlu1 %1337  ;;  %v10829_v60 = vld [vmem:[#allocation61_spill] sm:$0xff]  ;;  %v9407_v47 = vmul.f32 %v7972_v29, %v10831_v58 }
 0x223   : > { %v7982_v55 = vpop.eup %7981  ;;  %v1052_v40 = vmul.f32 %v9267_v36, %v10824_v34  ;;  %v9395_v42 = vmul.f32 %v7964_v20, %v10827_v52  ;;  %10828 = vst [vmem:[#allocation62_spill] sm:$0xff] %v9397_v51  ;;  %v9401_v0 = vmul.f32 %v7966_v9, %v10829_v60  ;;  %v10830_v36 = vld [vmem:[#allocation63_spill] sm:$0xff]  ;;  %v9410_v46 = vmul.f32 %v7974_v15, %v9236_v57  ;;  %v10833_v9 = vld [vmem:[#allocation34_spill] sm:$0xff] }
 0x224   : > { %v7984_v17 = vpop.eup %7983  ;;  %v9404_v34 = vmul.f32 %v7970_v25, %v10830_v36  ;;  %v10832_v5 = vld [vmem:[#allocation71_spill] sm:$0xff]  ;;  %v9416_v52 = vmul.f32 %v7978_v14, %v9254_v27  ;;  %v9425_v25 = vmul.f32 %v7982_v55, %v9264_v37  ;;  %v10835_v27 = vld [vmem:[#allocation76_spill] sm:$0xff] }
 0x225   : > { %v7986_v39 = vpop.eup %7985  ;;  %v9413_v20 = vmul.f32 %v7976_v24, %v10832_v5  ;;  %v9428_v29 = vmul.f32 %v7984_v17, %v9271_v30  ;;  %v10834_v15 = vld [vmem:[#allocation75_spill] sm:$0xff]  ;;  %v9449_v17 = vpop.permute.xlu0 %1412 }
 0x226   : > { %v7988_v16 = vpop.eup %7987  ;;  %v9431_v57 = vmul.f32 %v7986_v39, %v9278_v6  ;;  %10839 = vst [vmem:[#allocation40_spill] sm:$0xff] %v9449_v17  ;;  %v10841_v5 = vld [vmem:[#allocation35_spill] sm:$0xff] }
 0x227   : > { %v7990_v13 = vpop.eup %7989  ;;  %v9434_v24 = vmul.f32 %v7988_v16, %v10834_v15  ;;  %v10843_v15 = vld [vmem:[#allocation39_spill] sm:$0xff] }
 0x228   : > { %v7992_v43 = vpop.eup %7991  ;;  %v9437_v14 = vmul.f32 %v7990_v13, %v10835_v27  ;;  %v10844_v27 = vld [vmem:[#allocation46_spill] sm:$0xff] }
 0x229   : > { %v7994_v8 = vpop.eup %7993 }
 0x22a   : > { %v7996_v31 = vpop.eup %7995  ;;  %v1153_v2 = vmul.f32 %v7994_v8, %v9311_v23  ;;  %v9419_v23 = vmul.f32 %v7980_v21, %v9258_v49  ;;  %v10836_v49 = vld [vmem:[#allocation77_spill] sm:$0xff] }
 0x22b   : > { %v9440_v21 = vmul.f32 %v7992_v43, %v10836_v49  ;;  %v9477_v49 = vpop.permute.xlu0 %1422 }
 0x22c   : > { %v9422_v8 = vrot.slane %v1153_v2, %v10833_v9  ;;  %v10837_v2 = vld [vmem:[#allocation78_spill] sm:$0xff]  ;;  %v10842_v9 = vld [vmem:[#allocation37_spill] sm:$0xff]  ;;  %10845 = vst [vmem:[#allocation41_spill] sm:$0xff] %v9477_v49 }
 0x22d   : > { %v9443_v60 = vmul.f32 %v7996_v31, %v10837_v2  ;;  %v9455_v31 = vpop.permute.xlu1 %1407 }
 0x22e   : > { %v1199_v37 = vadd.f32 %v9422_v8, %v1024_v3  ;;  %v1200_v30 = vadd.f32 %v9422_v8, %v1025_v63  ;;  %v1201_v55 = vadd.f32 %v9422_v8, %v1026_v50  ;;  %v1202_v6 = vadd.f32 %v9422_v8, %v1027_v1  ;;  %10840 = vst [vmem:[#allocation64_spill] sm:$0xff] %v9455_v31 }
 0x22f   : > { %10838 = vst [vmem:[#allocation38_spill] sm:$0xff] %v9443_v60  ;;  %v1203_v39 = vadd.f32 %v9422_v8, %v1028_v61  ;;  %v1204_v16 = vadd.f32 %v9422_v8, %v1029_v35  ;;  %v1205_v13 = vadd.f32 %v9422_v8, %v1030_v10  ;;  %v1206_v43 = vadd.f32 %v9422_v8, %v1031_v7 }
 0x230   : > { %v1207_v3 = vadd.f32 %v9422_v8, %v1032_v48  ;;  %v1208_v63 = vadd.f32 %v9422_v8, %v1033_v62  ;;  %v1209_v50 = vadd.f32 %v9422_v8, %v1034_v28  ;;  %v1210_v1 = vadd.f32 %v9422_v8, %v1035_v32 }
 0x231   : > { %v1211_v36 = vadd.f32 %v9422_v8, %v1036_v33  ;;  %v1212_v61 = vadd.f32 %v9422_v8, %v1037_v45  ;;  %v1213_v35 = vadd.f32 %v9422_v8, %v1038_v19  ;;  %v1219_v10 = vadd.f32 %v9422_v8, %v1044_v44 }
 0x232   : > { %v1220_v7 = vadd.f32 %v9422_v8, %v1045_v53  ;;  %v1221_v58 = vadd.f32 %v9422_v8, %v1046_v54  ;;  %v1222_v48 = vadd.f32 %v9422_v8, %v1047_v4  ;;  %v1223_v62 = vadd.f32 %v9422_v8, %v1048_v26  ;;  %v7786_v4 = vld [vmem:[#allocation16 + $0x30] sm:$0xff]  }
 0x233   : > { %v1224_v28 = vadd.f32 %v9422_v8, %v1049_v38  ;;  %v1225_v32 = vadd.f32 %v9422_v8, %v1050_v22  ;;  %v1226_v33 = vadd.f32 %v9422_v8, %v1051_v56  ;;  %v1227_v45 = vadd.f32 %v9422_v8, %v1052_v40  ;;  %v10846_v26 = vld [vmem:[#allocation45_spill] sm:$0xff]  ;;  %v10848_v22 = vld [vmem:[#allocation48_spill] sm:$0xff]  ;;  %v10849_v56 = vld [vmem:[#allocation51_spill] sm:$0xff]  ;;  %v9483_v40 = vpop.permute.xlu1 %1417  ;;  %6165 = vmatpush3.bf16.msra.mxu0 %v7786_v4 }
 0x234   : > { %v1445_v19 = vmul.f32 %v10841_v5, %v1199_v37  ;;  %v1446_v44 = vmul.f32 %v10842_v9, %v1200_v30  ;;  %v1447_v53 = vmul.f32 %v10843_v15, %v1201_v55  ;;  %v1448_v54 = vmul.f32 %v10844_v27, %v1202_v6  ;;  %v10847_v38 = vld [vmem:[#allocation49_spill] sm:$0xff]  ;;  %10850 = vst [vmem:[#allocation66_spill] sm:$0xff] %v9483_v40  ;;  %v10851_v37 = vld [vmem:[#allocation52_spill] sm:$0xff]  ;;  %v10853_v55 = vld [vmem:[#allocation59_spill] sm:$0xff] }
 0x235   : > { %v1449_v2 = vmul.f32 %v10846_v26, %v1203_v39  ;;  %v1450_v60 = vmul.f32 %v10847_v38, %v1204_v16  ;;  %v1451_v31 = vmul.f32 %v10848_v22, %v1205_v13  ;;  %v1452_v17 = vmul.f32 %v10849_v56, %v1206_v43  ;;  %v10852_v30 = vld [vmem:[#allocation56_spill] sm:$0xff]  ;;  %v10854_v6 = vld [vmem:[#allocation70_spill] sm:$0xff]  ;;  %v10855_v39 = vld [vmem:[#allocation73_spill] sm:$0xff]  ;;  %6166 = vmatprep.subr.bf16.mxu0 %v9072_v11 }
 0x236   : > { %v1453_v5 = vmul.f32 %v10851_v37, %v1207_v3  ;;  %v1454_v9 = vmul.f32 %v10852_v30, %v1208_v63  ;;  %v1455_v15 = vmul.f32 %v10853_v55, %v1209_v50  ;;  %v1456_v27 = vmul.f32 %v10854_v6, %v1210_v1  ;;  %1486 = vst [vmem:[#allocation2 + $0x13] sm:$0xff] %v1445_v19  ;;  %v10856_v13 = vld [vmem:[#allocation80_spill] sm:$0xff]  ;;  %v10857_v43 = vld [vmem:[#allocation81_spill] sm:$0xff]  ;;  %v10858_v38 = vld [vmem:[#allocation50_spill] sm:$0xff] }
 0x237   : > { %1487 = vst [vmem:[#allocation2 + $0x1b] sm:$0xff] %v1446_v44  ;;  %1488 = vst [vmem:[#allocation2 + $0x23] sm:$0xff] %v1447_v53  ;;  %v1457_v16 = vmul.f32 %v10855_v39, %v1211_v36  ;;  %v1458_v22 = vmul.f32 %v10856_v13, %v1212_v61  ;;  %v1459_v56 = vmul.f32 %v10857_v43, %v1213_v35  ;;  %v10859_v3 = vld [vmem:[#allocation54_spill] sm:$0xff]  ;;  %v10860_v50 = vld [vmem:[#allocation55_spill] sm:$0xff] }
 0x238   : > { %1489 = vst [vmem:[#allocation2 + $0x2b] sm:$0xff] %v1448_v54  ;;  %v9493_v26 = vmul.f32 %v10858_v38, %v1219_v10  ;;  %1490 = vst [vmem:[#allocation2 + $0x33] sm:$0xff] %v1449_v2  ;;  %v9497_v63 = vmul.f32 %v10859_v3, %v1220_v7  ;;  %v9500_v1 = vmul.f32 %v10860_v50, %v1221_v58  ;;  %v10861_v36 = vld [vmem:[#allocation60_spill] sm:$0xff]  ;;  %v10864_v11 = vld [vmem:[#allocation79_spill] sm:$0xff] }
 0x239   : > { %1491 = vst [vmem:[#allocation2 + $0x3b] sm:$0xff] %v1450_v60  ;;  %1492 = vst [vmem:[#allocation2 + $0x43] sm:$0xff] %v1451_v31  ;;  %v9503_v19 = vmul.f32 %v10861_v36, %v1222_v48  ;;  %v10862_v61 = vld [vmem:[#allocation68_spill] sm:$0xff]  ;;  %v10863_v60 = vld [vmem:[#allocation74_spill] sm:$0xff]  ;;  %v9512_v31 = vmul.f32 %v10864_v11, %v1225_v32  ;;  %v1214_v48 = vadd.f32 %v9422_v8, %v9388_v12 }
 0x23a   : > { %1493 = vst [vmem:[#allocation2 + $0x4b] sm:$0xff] %v1452_v17  ;;  %v9506_v35 = vmul.f32 %v10862_v61, %v1223_v62  ;;  %1494 = vst [vmem:[#allocation2 + $0x53] sm:$0xff] %v1453_v5  ;;  %v9509_v17 = vmul.f32 %v10863_v60, %v1224_v28  ;;  %v10865_v10 = vld [vmem:[#allocation82_spill] sm:$0xff]  ;;  %v10866_v58 = vld [vmem:[#allocation83_spill] sm:$0xff]  ;;  %v1215_v62 = vadd.f32 %v9422_v8, %v9392_v41 }
 0x23b   : > { %1495 = vst [vmem:[#allocation2 + $0x5b] sm:$0xff] %v1454_v9  ;;  %1496 = vst [vmem:[#allocation2 + $0x63] sm:$0xff] %v1455_v15  ;;  %v9515_v7 = vmul.f32 %v10865_v10, %v1226_v33  ;;  %v9518_v44 = vmul.f32 %v10866_v58, %v1227_v45  ;;  %v1228_v28 = vadd.f32 %v9422_v8, %v9395_v42  ;;  %v9533_v33 = vpop.permute.xlu0 %1432  ;;  %v9547_v45 = vpop.permute.xlu1 %1427  ;;  %v10869_v5 = vld [vmem:[#allocation84_spill] sm:$0xff]  ;;  %v10870_v53 = vld [vmem:[#allocation85_spill] sm:$0xff] }
 0x23c   : > { %1497 = vst [vmem:[#allocation2 + $0x6b] sm:$0xff] %v1456_v27  ;;  %1498 = vst [vmem:[#allocation2 + $0x73] sm:$0xff] %v1457_v16  ;;  %v1229_v32 = vadd.f32 %v9422_v8, %v9401_v0  ;;  %v1216_v12 = vadd.f32 %v9422_v8, %v9404_v34  ;;  %v1217_v41 = vadd.f32 %v9422_v8, %v9407_v47  ;;  %v10871_v54 = vld [vmem:[#allocation87_spill] sm:$0xff]  ;;  %v10872_v4 = vld [vmem:[#allocation88_spill] sm:$0xff] }
 0x23d   : > { %1499 = vst [vmem:[#allocation2 + $0x7b] sm:$0xff] %v1458_v22  ;;  %1500 = vst [vmem:[#allocation2 + $0x83] sm:$0xff] %v1459_v56  ;;  %v1230_v42 = vadd.f32 %v9422_v8, %v9410_v46  ;;  %v1231_v0 = vadd.f32 %v9422_v8, %v9413_v20  ;;  %v1460_v9 = vmul.f32 %v10869_v5, %v1214_v48  ;;  %v10873_v46 = vld [vmem:[#allocation89_spill] sm:$0xff]  ;;  %v10874_v20 = vld [vmem:[#allocation36_spill] sm:$0xff] }
 0x23e   : > { %1506 = vst [vmem:[#allocation2 + $0xb3] sm:$0xff] %v9493_v26  ;;  %1507 = vst [vmem:[#allocation2 + $0xbb] sm:$0xff] %v9497_v63  ;;  %v1461_v15 = vmul.f32 %v9321_v59, %v1215_v62  ;;  %v9552_v27 = vmul.f32 %v10870_v53, %v1228_v28  ;;  %v9555_v34 = vmul.f32 %v9327_v18, %v1229_v32 }
 0x23f   : > { %1508 = vst [vmem:[#allocation2 + $0xc3] sm:$0xff] %v9500_v1  ;;  %1509 = vst [vmem:[#allocation2 + $0xcb] sm:$0xff] %v9503_v19  ;;  %v1462_v47 = vmul.f32 %v10871_v54, %v1216_v12  ;;  %v1463_v2 = vmul.f32 %v10872_v4, %v1217_v41  ;;  %v9560_v22 = vmul.f32 %v10873_v46, %v1230_v42  ;;  %v1607_v12 = vld [vmem:[#allocation2 + $0x11] sm:$0xff] }
 0x240   : > { %1510 = vst [vmem:[#allocation2 + $0xd3] sm:$0xff] %v9506_v35  ;;  %10867 = vst [vmem:[#allocation42_spill] sm:$0xff] %v9533_v33  ;;  %v9563_v56 = vmul.f32 %v10874_v20, %v1231_v0  ;;  %v1218_v16 = vadd.f32 %v9422_v8, %v9416_v52  ;;  %v1233_v48 = vadd.f32 %v9422_v8, %v9419_v23  ;;  %v10875_v42 = vld [vmem:[#allocation40_spill] sm:$0xff] }
 0x241   : > { %1511 = vst [vmem:[#allocation2 + $0xdb] sm:$0xff] %v9509_v17  ;;  %1512 = vst [vmem:[#allocation2 + $0xe3] sm:$0xff] %v9512_v31  ;;  %v1232_v62 = vadd.f32 %v9422_v8, %v9425_v25  ;;  %v1235_v28 = vadd.f32 %v9422_v8, %v9428_v29  ;;  %v1234_v32 = vadd.f32 %v9422_v8, %v9431_v57  ;;  %v1608_v29 = vld [vmem:[#allocation2 + $0x19] sm:$0xff] }
 0x242   : > { %1513 = vst [vmem:[#allocation2 + $0xeb] sm:$0xff] %v9515_v7  ;;  %1514 = vst [vmem:[#allocation2 + $0xf3] sm:$0xff] %v9518_v44  ;;  %v1237_v52 = vadd.f32 %v9422_v8, %v9434_v24  ;;  %v1236_v23 = vadd.f32 %v9422_v8, %v9437_v14  ;;  %v1239_v25 = vadd.f32 %v9422_v8, %v9440_v21  ;;  %v9595_v24 = vpop.permute.xlu0 %1442 }
 0x243   : > { %10868 = vst [vmem:[#allocation67_spill] sm:$0xff] %v9547_v45  ;;  %1501 = vst [vmem:[#allocation2 + $0x8b] sm:$0xff] %v1460_v9  ;;  %v1464_v41 = vmul.f32 %v9397_v51, %v1218_v16  ;;  %v9587_v0 = vmul.f32 %v10875_v42, %v1233_v48  ;;  %v10876_v9 = vld [vmem:[#allocation64_spill] sm:$0xff]  ;;  %v9593_v57 = vmul.f32 %v9477_v49, %v1235_v28  ;;  %v9607_v16 = vpop.permute.xlu1 %1437  ;;  %v10879_v48 = vld [vmem:[#allocation38_spill] sm:$0xff] }
 0x244   : > { %1502 = vst [vmem:[#allocation2 + $0x93] sm:$0xff] %v1461_v15  ;;  %1515 = vst [vmem:[#allocation2 + $0xfb] sm:$0xff] %v9552_v27  ;;  %v9590_v15 = vmul.f32 %v10876_v9, %v1232_v62  ;;  %v9598_v14 = vmul.f32 %v9483_v40, %v1234_v32  ;;  %v9601_v21 = vmul.f32 %v9533_v33, %v1237_v52  ;;  %v7773_v52 = vld [vmem:[#allocation16 + $0x140] sm:$0xff]  }
 0x245   : > { %1516 = vst [vmem:[#allocation2 + $0x103] sm:$0xff] %v9555_v34  ;;  %1503 = vst [vmem:[#allocation2 + $0x9b] sm:$0xff] %v1462_v47  ;;  %v9604_v47 = vmul.f32 %v9547_v45, %v1236_v23  ;;  %v1238_v62 = vadd.f32 %v9422_v8, %v10879_v48  ;;  %v1647_v28 = vpack.c.bf16 %v1608_v29, %v1607_v12  ;;  %v7775_v8 = vld [vmem:[#allocation16 + $0x148] sm:$0xff]   ;;  %v7776_v48 = vld [vmem:[#allocation16 + $0x150] sm:$0xff]  }
 0x246   : > { %1504 = vst [vmem:[#allocation2 + $0xa3] sm:$0xff] %v1463_v2  ;;  %1517 = vst [vmem:[#allocation2 + $0x10b] sm:$0xff] %v9560_v22  ;;  %v1485_v2 = vmul.f32 %v9595_v24, %v1239_v25  ;;  %v2967_v32 = vpack.c.bf16 %v9497_v63, %v9493_v26  ;;  %v9622_v25 = vld [vmem:[#allocation2] sm:$0xff]  ;;  %v1610_v63 = vld [vmem:[#allocation2 + $0x29] sm:$0xff] }
 0x247   : > { %1518 = vst [vmem:[#allocation2 + $0x113] sm:$0xff] %v9563_v56  ;;  %10877 = vst [vmem:[#allocation43_spill] sm:$0xff] %v9595_v24  ;;  %v9620_v23 = vmul.f32 %v9607_v16, %v1238_v62  ;;  %6073 = vmatmul.mubr.bf16.gmra.mrb[8].mxu0 %v1647_v28  ;;  %v1609_v26 = vld [vmem:[#allocation2 + $0x21] sm:$0xff]  ;;  %v2975_v12 = vpack.c.bf16 %v9604_v47, %v9593_v57 }
 0x248   : > { %10878 = vst [vmem:[#allocation69_spill] sm:$0xff] %v9607_v16  ;;  %1505 = vst [vmem:[#allocation2 + $0xab] sm:$0xff] %v1464_v41  ;;  %6509 = vmatmul.mubr.bf16.vlgmr.msra.gmra.mrb[0].mxu1 %v2967_v32  ;;  %6076 = vmatprep.mubr.msk.bf16.mxu0 %vm8419_vm0, %v9622_v25  ;;  %v1648_v41 = vpack.c.bf16 %v1610_v63, %v1609_v26  ;;  %v7778_v62 = vld [vmem:[#allocation16 + $0x158] sm:$0xff]   ;;  %v1611_v32 = vld [vmem:[#allocation2 + $0x31] sm:$0xff] }
 0x249   : > { %1520 = vst [vmem:[#allocation2 + $0x123] sm:$0xff] %v9587_v0  ;;  %1519 = vst [vmem:[#allocation2 + $0x11b] sm:$0xff] %v9590_v15  ;;  %6512 = vmatprep.mubr.msk.bf16.mxu1 %vm8419_vm0, %v9622_v25  ;;  %6553 = vmatpush3.bf16.msra.mxu1 %v7773_v52  ;;  %v2976_v29 = vpack.c.bf16 %v9620_v23, %v9601_v21  ;;  %v7788_v28 = vld [vmem:[#allocation16 + $0x38] sm:$0xff]   ;;  %v7781_v26 = vld [vmem:[#allocation16 + $0x168] sm:$0xff]  }
 0x24a   : > { %1522 = vst [vmem:[#allocation2 + $0x133] sm:$0xff] %v9593_v57  ;;  %1521 = vst [vmem:[#allocation2 + $0x12b] sm:$0xff] %v9598_v14  ;;  %6554 = vmatprep.subr.bf16.mxu1 %v9622_v25  ;;  %v1612_v52 = vld [vmem:[#allocation2 + $0x39] sm:$0xff]  ;;  %6167 = vmatpush3.bf16.msra.mxu0 %v7788_v28  ;;  %v1613_v63 = vld [vmem:[#allocation2 + $0x41] sm:$0xff] }
 0x24b   : > { %1524 = vst [vmem:[#allocation2 + $0x143] sm:$0xff] %v9601_v21  ;;  %1523 = vst [vmem:[#allocation2 + $0x13b] sm:$0xff] %v9604_v47  ;;  %6252 = vmatprep.subr.bf16.mxu0 %v9622_v25  ;;  %v1616_v28 = vld [vmem:[#allocation2 + $0x59] sm:$0xff]  ;;  %v1629_v21 = vld [vmem:[#allocation2 + $0xc1] sm:$0xff] }
 0x24c   : > { %1526 = vst [vmem:[#allocation2 + $0x153] sm:$0xf] %v1485_v2  ;;  %1525 = vst [vmem:[#allocation2 + $0x14b] sm:$0xff] %v9620_v23  ;;  %v2968_v2 = vpack.c.bf16 %v9503_v19, %v9500_v1  ;;  %v1649_v1 = vpack.c.bf16 %v1612_v52, %v1611_v32  ;;  %v2969_v19 = vpack.c.bf16 %v9509_v17, %v9506_v35  ;;  %v7782_v17 = vld [vmem:[#allocation16 + $0x170] sm:$0xff]   ;;  %v1618_v52 = vld [vmem:[#allocation2 + $0x69] sm:$0xff] }
 0x24d   : > { %6555 = vmatpush3.bf16.msra.mxu1 %v7775_v8  ;;  %v7779_v8 = vld [vmem:[#allocation16 + $0x160] sm:$0xff]   ;;  %v2970_v35 = vpack.c.bf16 %v9515_v7, %v9512_v31  ;;  %v2971_v31 = vpack.c.bf16 %v9552_v27, %v9518_v44  ;;  %v1619_v44 = vld [vmem:[#allocation2 + $0x71] sm:$0xff]  ;;  %v1620_v27 = vld [vmem:[#allocation2 + $0x79] sm:$0xff] }
 0x24e   : > { %6556 = vmatprep.subr.bf16.mxu1 %v9622_v25  ;;  %v1617_v7 = vld [vmem:[#allocation2 + $0x61] sm:$0xff]  ;;  %v1628_v47 = vld [vmem:[#allocation2 + $0xb9] sm:$0xff]  ;;  %v1630_v23 = vld [vmem:[#allocation2 + $0xc9] sm:$0xff] }
 0x24f   : > { %6077 = vmatmul.mubr.bf16.gmra.mrb[12].mxu0 %v1648_v41  ;;  %v1614_v41 = vld [vmem:[#allocation2 + $0x49] sm:$0xff]  ;;  %v1627_v57 = vld [vmem:[#allocation2 + $0xb1] sm:$0xff] }
 0x250   : > { %6513 = vmatmul.mubr.bf16.gmra.mrb[4].mxu1 %v2968_v2  ;;  %6080 = vmatprep.mubr.msk.bf16.mxu0 %vm8419_vm0, %v9622_v25  ;;  %v1650_v2 = vpack.c.bf16 %v1614_v41, %v1613_v63  ;;  %v2974_v41 = vpack.c.bf16 %v9598_v14, %v9587_v0  ;;  %v1625_v0 = vld [vmem:[#allocation2 + $0xa1] sm:$0xff]  ;;  %v1626_v14 = vld [vmem:[#allocation2 + $0xa9] sm:$0xff] }
 0x251   : > { %6516 = vmatprep.mubr.msk.bf16.mxu1 %vm8419_vm0, %v9622_v25  ;;  %6557 = vmatpush3.bf16.msra.mxu1 %v7776_v48  ;;  %v7783_v48 = vld [vmem:[#allocation16 + $0x178] sm:$0xff]  }
 0x252   : > { %6558 = vmatprep.subr.bf16.mxu1 %v9622_v25 }
 0x255   : > { %6559 = vmatpush3.bf16.msra.mxu1 %v7778_v62  ;;  %v1615_v62 = vld [vmem:[#allocation2 + $0x51] sm:$0xff] }
 0x256   : > { %6560 = vmatprep.subr.bf16.mxu1 %v9622_v25  ;;  %v1651_v32 = vpack.c.bf16 %v1616_v28, %v1615_v62  ;;  %v3285_v62 = vld [vmem:[#allocation2 + $0x1c] sm:$0xff]  ;;  %v1658_v28 = vpack.c.bf16 %v1630_v23, %v1629_v21 }
 0x257   : > { %6081 = vmatmul.mubr.bf16.gmra.mrb[16].mxu0 %v1649_v1  ;;  %v1652_v1 = vpack.c.bf16 %v1618_v52, %v1617_v7  ;;  %v1631_v7 = vld [vmem:[#allocation2 + $0xd1] sm:$0xff]  ;;  %v1637_v23 = vld [vmem:[#allocation2 + $0x101] sm:$0xff] }
 0x258   : > { %6517 = vmatmul.mubr.bf16.gmra.mrb[8].mxu1 %v2969_v19  ;;  %6084 = vmatprep.mubr.msk.bf16.mxu0 %vm8419_vm0, %v9622_v25  ;;  %v2972_v19 = vpack.c.bf16 %v9560_v22, %v9555_v34  ;;  %v1621_v34 = vld [vmem:[#allocation2 + $0x81] sm:$0xff]  ;;  %v1622_v22 = vld [vmem:[#allocation2 + $0x89] sm:$0xff]  ;;  %v7797_v21 = vld [vmem:[#allocation16 + $0x1b0] sm:$0xff]  }
 0x259   : > { %6520 = vmatprep.mubr.msk.bf16.mxu1 %vm8419_vm0, %v9622_v25  ;;  %6561 = vmatpush3.bf16.msra.mxu1 %v7779_v8  ;;  %v1653_v8 = vpack.c.bf16 %v1620_v27, %v1619_v44  ;;  %v1654_v63 = vpack.c.bf16 %v1622_v22, %v1621_v34  ;;  %v7787_v52 = vld [vmem:[#allocation16 + $0x188] sm:$0xff]   ;;  %v1633_v34 = vld [vmem:[#allocation2 + $0xe1] sm:$0xff] }
 0x25a   : > { %6562 = vmatprep.subr.bf16.mxu1 %v9622_v25  ;;  %v3287_v44 = vld [vmem:[#allocation2 + $0x2c] sm:$0xff]  ;;  %v7791_v22 = vld [vmem:[#allocation16 + $0x198] sm:$0xff]  }
 0x25d   : > { %6563 = vmatpush3.bf16.msra.mxu1 %v7781_v26  ;;  %v2973_v26 = vpack.c.bf16 %v9590_v15, %v9563_v56  ;;  %v1623_v56 = vld [vmem:[#allocation2 + $0x91] sm:$0xff]  ;;  %v1624_v15 = vld [vmem:[#allocation2 + $0x99] sm:$0xff] }
 0x25e   : > { %6564 = vmatprep.subr.bf16.mxu1 %v9622_v25 }
 0x25f   : > { %6085 = vmatmul.mubr.bf16.gmra.mrb[20].mxu0 %v1650_v2  ;;  %v1655_v2 = vpack.c.bf16 %v1624_v15, %v1623_v56  ;;  %v3289_v56 = vld [vmem:[#allocation2 + $0x3c] sm:$0xff] }
 0x260   : > { %6521 = vmatmul.mubr.bf16.gmra.mrb[12].mxu1 %v2970_v35  ;;  %6088 = vmatprep.mubr.msk.bf16.mxu0 %vm8419_vm0, %v9622_v25  ;;  %v1656_v35 = vpack.c.bf16 %v1626_v14, %v1625_v0  ;;  %v7793_v0 = vld [vmem:[#allocation16 + $0x1a0] sm:$0xff]   ;;  %v1635_v14 = vld [vmem:[#allocation2 + $0xf1] sm:$0xff] }
 0x261   : > { %6524 = vmatprep.mubr.msk.bf16.mxu1 %vm8419_vm0, %v9622_v25  ;;  %6565 = vmatpush3.bf16.msra.mxu1 %v7782_v17  ;;  %v1657_v17 = vpack.c.bf16 %v1628_v47, %v1627_v57  ;;  %v1636_v57 = vld [vmem:[#allocation2 + $0xf9] sm:$0xff]  ;;  %v3290_v47 = vld [vmem:[#allocation2 + $0x44] sm:$0xff] }
 0x262   : > { %6566 = vmatprep.subr.bf16.mxu1 %v9622_v25 }
 0x265   : > { %6567 = vmatpush3.bf16.msra.mxu1 %v7783_v48 }
 0x266   : > { %6652 = vmatprep.subr.bf16.mxu1 %v9622_v25 }
 0x267   : > { %6089 = vmatmul.mubr.bf16.gmra.mrb[24].mxu0 %v1651_v32 }
 0x268   : > { %6525 = vmatmul.mubr.bf16.gmra.mrb[16].mxu1 %v2971_v31  ;;  %6092 = vmatprep.mubr.msk.bf16.mxu0 %vm8419_vm0, %v9622_v25  ;;  %v7785_v31 = vld [vmem:[#allocation16 + $0x180] sm:$0xff]  }
 0x269   : > { %6528 = vmatprep.mubr.msk.bf16.mxu1 %vm8419_vm0, %v9622_v25 }
 0x26f   : > { %6093 = vmatmul.mubr.bf16.gmra.mrb[28].mxu0 %v1652_v1  ;;  %v1632_v1 = vld [vmem:[#allocation2 + $0xd9] sm:$0xff] }
 0x270   : > { %6529 = vmatmul.mubr.bf16.gmra.mrb[20].mxu1 %v2972_v19  ;;  %6096 = vmatprep.mubr.msk.bf16.mxu0 %vm8419_vm0, %v9622_v25  ;;  %v3286_v19 = vld [vmem:[#allocation2 + $0x24] sm:$0xff]  ;;  %v1659_v27 = vpack.c.bf16 %v1632_v1, %v1631_v7  ;;  %v1640_v1 = vld [vmem:[#allocation2 + $0x119] sm:$0xff] }
 0x271   : > { %6532 = vmatprep.mubr.msk.bf16.mxu1 %vm8419_vm0, %v9622_v25  ;;  %v7799_v7 = vld [vmem:[#allocation16 + $0x1b8] sm:$0xff]  }
 0x277   : > { %6097 = vmatmul.mubr.bf16.gmra.mrb[32].mxu0 %v1653_v8  ;;  %v9707_v8 = vpack.c.bf16 %v3287_v44, %v3286_v19  ;;  %v3294_v19 = vld [vmem:[#allocation2 + $0x64] sm:$0xff]  ;;  %v3295_v44 = vld [vmem:[#allocation2 + $0x6c] sm:$0xff] }
 0x278   : > { %6533 = vmatmul.mubr.bf16.gmra.mrb[24].mxu1 %v2973_v26  ;;  %6100 = vmatprep.mubr.msk.bf16.mxu0 %vm8419_vm0, %v9622_v25  ;;  %v7789_v26 = vld [vmem:[#allocation16 + $0x190] sm:$0xff]  }
 0x279   : > { %6536 = vmatprep.mubr.msk.bf16.mxu1 %vm8419_vm0, %v9622_v25 }
 0x27f   : > { %6101 = vmatmul.mubr.bf16.gmra.mrb[36].mxu0 %v1654_v63  ;;  %v1634_v63 = vld [vmem:[#allocation2 + $0xe9] sm:$0xff] }
 0x280   : > { %6537 = vmatmul.mubr.bf16.gmra.mrb[28].mxu1 %v2974_v41  ;;  %6104 = vmatprep.mubr.msk.bf16.mxu0 %vm8419_vm0, %v9622_v25  ;;  %v3288_v41 = vld [vmem:[#allocation2 + $0x34] sm:$0xff]  ;;  %v1660_v15 = vpack.c.bf16 %v1634_v63, %v1633_v34  ;;  %v1641_v34 = vld [vmem:[#allocation2 + $0x121] sm:$0xff] }
 0x281   : > { %6540 = vmatprep.mubr.msk.bf16.mxu1 %vm8419_vm0, %v9622_v25  ;;  %v3296_v63 = vld [vmem:[#allocation2 + $0x74] sm:$0xff] }
 0x287   : > { %6105 = vmatmul.mubr.bf16.gmra.mrb[40].mxu0 %v1655_v2  ;;  %v9716_v2 = vpack.c.bf16 %v3289_v56, %v3288_v41  ;;  %v3297_v41 = vld [vmem:[#allocation2 + $0x7c] sm:$0xff] }
 0x288   : > { %6541 = vmatmul.mubr.bf16.gmra.mrb[32].mxu1 %v2975_v12  ;;  %6108 = vmatprep.mubr.msk.bf16.mxu0 %vm8419_vm0, %v9622_v25  ;;  %v2956_v12 = vld [vmem:[#allocation2 + $0x153] sm:$0xf] }
 0x289   : > { %6544 = vmatprep.mubr.msk.bf16.mxu1 %vm8419_vm0, %v9622_v25  ;;  %v2977_v48 = vpack.c.bf16 %v2956_v12, %v2956_v12  ;;  %v3291_v12 = vld [vmem:[#allocation2 + $0x4c] sm:$0xff] }
 0x28f   : > { %6109 = vmatmul.mubr.bf16.gmra.mrb[44].mxu0 %v1656_v35  ;;  %v7795_v35 = vld [vmem:[#allocation16 + $0x1a8] sm:$0xff]  }
 0x290   : > { %6545 = vmatmul.mubr.bf16.gmra.mrb[36].mxu1 %v2976_v29  ;;  %6112 = vmatprep.mubr.msk.bf16.mxu0 %vm8419_vm0, %v9622_v25  ;;  %v3284_v29 = vld [vmem:[#allocation2 + $0x14] sm:$0xff] }
 0x291   : > { %6548 = vmatprep.mubr.msk.bf16.mxu1 %vm8419_vm0, %v9622_v25  ;;  %v3325_v32 = vpack.c.bf16 %v3285_v62, %v3284_v29  ;;  %v1638_v29 = vld [vmem:[#allocation2 + $0x109] sm:$0xff]  ;;  %v3292_v62 = vld [vmem:[#allocation2 + $0x54] sm:$0xff] }
 0x297   : > { %6113 = vmatmul.mubr.bf16.gmra.mrb[48].mxu0 %v1657_v17  ;;  %v1661_v17 = vpack.c.bf16 %v1636_v57, %v1635_v14  ;;  %v1644_v14 = vld [vmem:[#allocation2 + $0x139] sm:$0xff]  ;;  %v3299_v57 = vld [vmem:[#allocation2 + $0x8c] sm:$0xff] }
 0x298   : > { %6549 = vmatmul.mubr.bf16.gmra.mrb[40].mxu1 %v2977_v48  ;;  %6116 = vmatprep.mubr.msk.bf16.mxu0 %vm8419_vm0, %v9622_v25  ;;  %v9725_v48 = vpack.c.bf16 %v3291_v12, %v3290_v47 }
 0x299   : > { %6568 = vmatprep.mubr.msk.bf16.mxu1 %vm8419_vm0, %v9622_v25 }
 0x29f   : > { %6117 = vmatmul.mubr.bf16.gmra.mrb[52].mxu0 %v1658_v28  ;;  %v3293_v28 = vld [vmem:[#allocation2 + $0x5c] sm:$0xff] }
 0x2a0   : > { %6569 = vmatmul.mubr.bf16.vlgmr.msra.gmra.mrb[44].mxu1 %v3325_v32  ;;  %6120 = vmatprep.mubr.msk.bf16.mxu0 %vm8419_vm0, %v9622_v25  ;;  %v1662_v32 = vpack.c.bf16 %v1638_v29, %v1637_v23  ;;  %v3301_v23 = vld [vmem:[#allocation2 + $0x9c] sm:$0xff] }
 0x2a1   : > { %6572 = vmatprep.mubr.msk.bf16.mxu1 %vm8419_vm0, %v9622_v25  ;;  %6653 = vmatpush3.bf16.msra.mxu1 %v7785_v31  ;;  %v9734_v31 = vpack.c.bf16 %v3293_v28, %v3292_v62  ;;  %v3302_v28 = vld [vmem:[#allocation2 + $0xa4] sm:$0xff] }
 0x2a2   : > { %6654 = vmatprep.subr.bf16.mxu1 %v9622_v25 }
 0x2a5   : > { %6655 = vmatpush3.bf16.msra.mxu1 %v7787_v52  ;;  %v1639_v52 = vld [vmem:[#allocation2 + $0x111] sm:$0xff] }
 0x2a6   : > { %6656 = vmatprep.subr.bf16.mxu1 %v9622_v25 }
 0x2a7   : > { %6121 = vmatmul.mubr.bf16.gmra.mrb[56].mxu0 %v1659_v27  ;;  %v1663_v27 = vpack.c.bf16 %v1640_v1, %v1639_v52  ;;  %v7790_v52 = vld [vmem:[#allocation16 + $0x80] sm:$0xff]  }
 0x2a8   : > { %6573 = vmatmul.mubr.bf16.gmra.mrb[48].mxu1 %v9707_v8  ;;  %6124 = vmatprep.mubr.msk.bf16.mxu0 %vm8419_vm0, %v9622_v25 }
 0x2a9   : > { %6576 = vmatprep.mubr.msk.bf16.mxu1 %vm8419_vm0, %v9622_v25  ;;  %6657 = vmatpush3.bf16.msra.mxu1 %v7789_v26  ;;  %v9742_v26 = vpack.c.bf16 %v3295_v44, %v3294_v19  ;;  %v7792_v19 = vld [vmem:[#allocation16 + $0x88] sm:$0xff]  }
 0x2aa   : > { %6658 = vmatprep.subr.bf16.mxu1 %v9622_v25  ;;  %v1529_v44 = vld [vmem:[#allocation2 + $0x10] sm:$0xff] }
 0x2ad   : > { %6659 = vmatpush3.bf16.msra.mxu1 %v7791_v22  ;;  %v1642_v22 = vld [vmem:[#allocation2 + $0x129] sm:$0xff] }
 0x2ae   : > { %6660 = vmatprep.subr.bf16.mxu1 %v9622_v25  ;;  %v1664_v56 = vpack.c.bf16 %v1642_v22, %v1641_v34  ;;  %v3304_v34 = vld [vmem:[#allocation2 + $0xb4] sm:$0xff]  ;;  %v3305_v22 = vld [vmem:[#allocation2 + $0xbc] sm:$0xff] }
 0x2af   : > { %6125 = vmatmul.mubr.bf16.gmra.mrb[60].mxu0 %v1660_v15  ;;  %v9749_v15 = vpack.c.bf16 %v3297_v41, %v3296_v63  ;;  %v9780_v41 = vpack.c.bf16 %v3305_v22, %v3304_v34  ;;  %v1535_v34 = vld [vmem:[#allocation2 + $0x40] sm:$0xff] }
 0x2b0   : > { %6577 = vmatmul.mubr.bf16.gmra.mrb[52].mxu1 %v9716_v2  ;;  %6128 = vmatprep.mubr.msk.bf16.mxu0 %vm8419_vm0, %v9622_v25  ;;  %v7804_v22 = vld [vmem:[#allocation16 + $0xb8] sm:$0xff]  }
 0x2b1   : > { %6580 = vmatprep.mubr.msk.bf16.mxu1 %vm8419_vm0, %v9622_v25  ;;  %6661 = vmatpush3.bf16.msra.mxu1 %v7793_v0  ;;  %v1643_v0 = vld [vmem:[#allocation2 + $0x131] sm:$0xff] }
 0x2b2   : > { %6662 = vmatprep.subr.bf16.mxu1 %v9622_v25  ;;  %v1665_v47 = vpack.c.bf16 %v1644_v14, %v1643_v0  ;;  %v1531_v0 = vld [vmem:[#allocation2 + $0x20] sm:$0xff] }
 0x2b3   : > { %v7796_v14 = vld [vmem:[#allocation16 + $0x98] sm:$0xff]  }
 0x2b5   : > { %6663 = vmatpush3.bf16.msra.mxu1 %v7795_v35  ;;  %v3298_v35 = vld [vmem:[#allocation2 + $0x84] sm:$0xff] }
 0x2b6   : > { %6664 = vmatprep.subr.bf16.mxu1 %v9622_v25  ;;  %v9756_v12 = vpack.c.bf16 %v3299_v57, %v3298_v35  ;;  %v1532_v35 = vld [vmem:[#allocation2 + $0x28] sm:$0xff] }
 0x2b7   : > { %6129 = vmatmul.mubr.bf16.gmra.mrb[64].mxu0 %v1661_v17  ;;  %v1645_v17 = vld [vmem:[#allocation2 + $0x141] sm:$0xf] }
 0x2b8   : > { %6581 = vmatmul.mubr.bf16.gmra.mrb[56].mxu1 %v9725_v48  ;;  %6132 = vmatprep.mubr.msk.bf16.mxu0 %vm8419_vm0, %v9622_v25  ;;  %v1666_v29 = vpack.c.bf16 %v1645_v17, %v1645_v17  ;;  %v3306_v57 = vld [vmem:[#allocation2 + $0xc4] sm:$0xff]  ;;  %v1570_v17 = vpack.c.bf16 %v1532_v35, %v1531_v0  ;;  %v3311_v0 = vld [vmem:[#allocation2 + $0xec] sm:$0xff] }
 0x2b9   : > { %6584 = vmatprep.mubr.msk.bf16.mxu1 %vm8419_vm0, %v9622_v25  ;;  %6665 = vmatpush3.bf16.msra.mxu1 %v7797_v21  ;;  %v3300_v21 = vld [vmem:[#allocation2 + $0x94] sm:$0xff] }
 0x2ba   : > { %6666 = vmatprep.subr.bf16.mxu1 %v9622_v25  ;;  %v9763_v62 = vpack.c.bf16 %v3301_v23, %v3300_v21  ;;  %v7798_v23 = vld [vmem:[#allocation16 + $0xa0] sm:$0xff]  }
 0x2bd   : > { %6667 = vmatpush3.bf16.msra.mxu1 %v7799_v7  ;;  %v1568_v7 = vpack.c.bf16 %v9622_v25, %v9622_v25 }
 0x2be   : > { %6752 = vmatprep.subr.bf16.mxu1 %v9622_v25 }
 0x2bf   : > { %6133 = vmatmul.mubr.bf16.gmra.mrb[68].mxu0 %v1662_v32  ;;  %v3303_v32 = vld [vmem:[#allocation2 + $0xac] sm:$0xff] }
 0x2c0   : > { %6585 = vmatmul.mubr.bf16.gmra.mrb[60].mxu1 %v9734_v31  ;;  %6136 = vmatprep.mubr.msk.bf16.mxu0 %vm8419_vm0, %v9622_v25  ;;  %v9772_v1 = vpack.c.bf16 %v3303_v32, %v3302_v28  ;;  %v7800_v28 = vld [vmem:[#allocation16 + $0xa8] sm:$0xff]   ;;  %v1534_v32 = vld [vmem:[#allocation2 + $0x38] sm:$0xff] }
 0x2c1   : > { %6588 = vmatprep.mubr.msk.bf16.mxu1 %vm8419_vm0, %v9622_v25 }
 0x2c7   : > { %6137 = vmatmul.mubr.bf16.gmra.mrb[72].mxu0 %v1663_v27  ;;  %v1530_v27 = vld [vmem:[#allocation2 + $0x18] sm:$0xff] }
 0x2c8   : > { %6589 = vmatmul.mubr.bf16.gmra.mrb[64].mxu1 %v9742_v26  ;;  %6140 = vmatprep.mubr.msk.bf16.mxu0 %vm8419_vm0, %v9622_v25  ;;  %v1569_v63 = vpack.c.bf16 %v1530_v27, %v1529_v44  ;;  %v7802_v27 = vld [vmem:[#allocation16 + $0xb0] sm:$0xff]  }
 0x2c9   : > { %6592 = vmatprep.mubr.msk.bf16.mxu1 %vm8419_vm0, %v9622_v25 }
 0x2cf   : > { %6141 = vmatmul.mubr.bf16.gmra.mrb[76].mxu0 %v1664_v56  ;;  %v7794_v56 = vld [vmem:[#allocation16 + $0x90] sm:$0xff]  }
 0x2d0   : > { %6593 = vmatmul.mubr.bf16.gmra.mrb[68].mxu1 %v9749_v15  ;;  %6144 = vmatprep.mubr.msk.bf16.mxu0 %vm8419_vm0, %v9622_v25 }
 0x2d1   : > { %6596 = vmatprep.mubr.msk.bf16.mxu1 %vm8419_vm0, %v9622_v25 }
 0x2d7   : > { %6145 = vmatmul.mubr.bf16.gmra.mrb[80].mxu0 %v1665_v47  ;;  %v3307_v47 = vld [vmem:[#allocation2 + $0xcc] sm:$0xff] }
 0x2d8   : > { %6597 = vmatmul.mubr.bf16.gmra.mrb[72].mxu1 %v9756_v12  ;;  %6148 = vmatprep.mubr.msk.bf16.mxu0 %vm8419_vm0, %v9622_v25  ;;  %v9789_v21 = vpack.c.bf16 %v3307_v47, %v3306_v57  ;;  %v1537_v57 = vld [vmem:[#allocation2 + $0x50] sm:$0xff]  ;;  %v1538_v47 = vld [vmem:[#allocation2 + $0x58] sm:$0xff] }
 0x2d9   : > { %6600 = vmatprep.mubr.msk.bf16.mxu1 %vm8419_vm0, %v9622_v25 }
 0x2df   : > { %6149 = vmatmul.mubr.bf16.gmra.mrb[84].mxu0 %v1666_v29  ;;  %v1533_v29 = vld [vmem:[#allocation2 + $0x30] sm:$0xff] }
 0x2e0   : > { %6601 = vmatmul.mubr.bf16.gmra.mrb[76].mxu1 %v9763_v62  ;;  %6168 = vmatprep.mubr.msk.bf16.mxu0 %vm8419_vm0, %v9622_v25 }
 0x2e1   : > { %6604 = vmatprep.mubr.msk.bf16.mxu1 %vm8419_vm0, %v9622_v25 }
 0x2e7   : > { %6169 = vmatmul.mubr.bf16.vlgmr.msra.gmra.mrb[4].mxu0 %v1568_v7  ;;  %v3308_v7 = vld [vmem:[#allocation2 + $0xd4] sm:$0xff] }
 0x2e8   : > { %6605 = vmatmul.mubr.bf16.gmra.mrb[80].mxu1 %v9772_v1  ;;  %6253 = vmatpush3.bf16.msra.mxu0 %v7790_v52  ;;  %v3309_v52 = vld [vmem:[#allocation2 + $0xdc] sm:$0xff] }
 0x2e9   : > { %6172 = vmatprep.mubr.msk.bf16.mxu0 %vm8419_vm0, %v9622_v25  ;;  %6608 = vmatprep.mubr.msk.bf16.mxu1 %vm8419_vm0, %v9622_v25  ;;  %v9798_v44 = vpack.c.bf16 %v3309_v52, %v3308_v7  ;;  %v1540_v7 = vld [vmem:[#allocation2 + $0x68] sm:$0xff] }
 0x2ea   : > { %6254 = vmatprep.subr.bf16.mxu0 %v9622_v25  ;;  %v3314_v52 = vld [vmem:[#allocation2 + $0x104] sm:$0xff] }
 0x2ec   : > { %6255 = vmatpush3.bf16.msra.mxu0 %v7792_v19  ;;  %v1571_v19 = vpack.c.bf16 %v1534_v32, %v1533_v29  ;;  %v1573_v29 = vpack.c.bf16 %v1538_v47, %v1537_v57  ;;  %v1539_v32 = vld [vmem:[#allocation2 + $0x60] sm:$0xff] }
 0x2ed   : > { %6256 = vmatprep.subr.bf16.mxu0 %v9622_v25  ;;  %v1543_v47 = vld [vmem:[#allocation2 + $0x80] sm:$0xff] }
 0x2ef   : > { %6173 = vmatmul.mubr.bf16.gmra.mrb[8].mxu0 %v1569_v63  ;;  %v1536_v63 = vld [vmem:[#allocation2 + $0x48] sm:$0xff] }
 0x2f0   : > { %6609 = vmatmul.mubr.bf16.gmra.mrb[0].mxu1 %v9780_v41  ;;  %6176 = vmatprep.mubr.msk.bf16.mxu0 %vm8419_vm0, %v9622_v25 }
 0x2f1   : > { %6612 = vmatprep.mubr.msk.bf16.mxu1 %vm8419_vm0, %v9622_v25  ;;  %6257 = vmatpush3.bf16.msra.mxu0 %v7794_v56  ;;  %v3310_v56 = vld [vmem:[#allocation2 + $0xe4] sm:$0xff] }
 0x2f2   : > { %6258 = vmatprep.subr.bf16.mxu0 %v9622_v25  ;;  %v9807_v35 = vpack.c.bf16 %v3311_v0, %v3310_v56  ;;  %v3316_v56 = vld [vmem:[#allocation2 + $0x114] sm:$0xff]  ;;  %v3317_v0 = vld [vmem:[#allocation2 + $0x11c] sm:$0xff] }
 0x2f3   : > { %v9829_v57 = vpack.c.bf16 %v3317_v0, %v3316_v56  ;;  %v1547_v0 = vld [vmem:[#allocation2 + $0xa0] sm:$0xff] }
 0x2f5   : > { %6259 = vmatpush3.bf16.msra.mxu0 %v7796_v14  ;;  %v1572_v14 = vpack.c.bf16 %v1536_v63, %v1535_v34  ;;  %v1542_v63 = vld [vmem:[#allocation2 + $0x78] sm:$0xff] }
 0x2f6   : > { %6260 = vmatprep.subr.bf16.mxu0 %v9622_v25 }
 0x2f7   : > { %6177 = vmatmul.mubr.bf16.gmra.mrb[12].mxu0 %v1570_v17  ;;  %v3312_v17 = vld [vmem:[#allocation2 + $0xf4] sm:$0xff] }
 0x2f8   : > { %6613 = vmatmul.mubr.bf16.gmra.mrb[4].mxu1 %v9789_v21  ;;  %6180 = vmatprep.mubr.msk.bf16.mxu0 %vm8419_vm0, %v9622_v25 }
 0x2f9   : > { %6616 = vmatprep.mubr.msk.bf16.mxu1 %vm8419_vm0, %v9622_v25  ;;  %6261 = vmatpush3.bf16.msra.mxu0 %v7798_v23  ;;  %v3313_v23 = vld [vmem:[#allocation2 + $0xfc] sm:$0xff] }
 0x2fa   : > { %6262 = vmatprep.subr.bf16.mxu0 %v9622_v25 }
 0x2fd   : > { %6263 = vmatpush3.bf16.msra.mxu0 %v7800_v28  ;;  %v9815_v28 = vpack.c.bf16 %v3313_v23, %v3312_v17  ;;  %v1544_v17 = vld [vmem:[#allocation2 + $0x88] sm:$0xff] }
 0x2fe   : > { %6264 = vmatprep.subr.bf16.mxu0 %v9622_v25  ;;  %v3318_v23 = vld [vmem:[#allocation2 + $0x124] sm:$0xff] }
 0x2ff   : > { %6181 = vmatmul.mubr.bf16.gmra.mrb[16].mxu0 %v1571_v19  ;;  %v3315_v19 = vld [vmem:[#allocation2 + $0x10c] sm:$0xff] }
 0x300   : > { %6617 = vmatmul.mubr.bf16.gmra.mrb[8].mxu1 %v9798_v44  ;;  %6184 = vmatprep.mubr.msk.bf16.mxu0 %vm8419_vm0, %v9622_v25  ;;  %v9822_v34 = vpack.c.bf16 %v3315_v19, %v3314_v52  ;;  %v1545_v52 = vld [vmem:[#allocation2 + $0x90] sm:$0xff]  ;;  %v1546_v19 = vld [vmem:[#allocation2 + $0x98] sm:$0xff] }
 0x301   : > { %6620 = vmatprep.mubr.msk.bf16.mxu1 %vm8419_vm0, %v9622_v25  ;;  %6265 = vmatpush3.bf16.msra.mxu0 %v7802_v27  ;;  %v1574_v27 = vpack.c.bf16 %v1540_v7, %v1539_v32  ;;  %v1576_v32 = vpack.c.bf16 %v1544_v17, %v1543_v47  ;;  %v3322_v47 = vld [vmem:[#allocation2 + $0x144] sm:$0xff]  ;;  %v3323_v17 = vld [vmem:[#allocation2 + $0x14c] sm:$0xff] }
 0x302   : > { %6266 = vmatprep.subr.bf16.mxu0 %v9622_v25 }
 0x305   : > { %6267 = vmatpush3.bf16.msra.mxu0 %v7804_v22  ;;  %v1541_v22 = vld [vmem:[#allocation2 + $0x70] sm:$0xff] }
 0x306   : > { %6352 = vmatprep.subr.bf16.mxu0 %v9622_v25 }
 0x307   : > { %6185 = vmatmul.mubr.bf16.gmra.mrb[20].mxu0 %v1572_v14  ;;  %v1575_v14 = vpack.c.bf16 %v1542_v63, %v1541_v22  ;;  %v3321_v22 = vld [vmem:[#allocation2 + $0x13c] sm:$0xff]  ;;  %v1577_v63 = vpack.c.bf16 %v1546_v19, %v1545_v52  ;;  %v3324_v19 = vld [vmem:[#allocation2 + $0x154] sm:$0xf] }
 0x308   : > { %6621 = vmatmul.mubr.bf16.gmra.mrb[12].mxu1 %v9807_v35  ;;  %6188 = vmatprep.mubr.msk.bf16.mxu0 %vm8419_vm0, %v9622_v25  ;;  %v1550_v52 = vld [vmem:[#allocation2 + $0xb8] sm:$0xff] }
 0x309   : > { %6624 = vmatprep.mubr.msk.bf16.mxu1 %vm8419_vm0, %v9622_v25 }
 0x30f   : > { %6189 = vmatmul.mubr.bf16.gmra.mrb[24].mxu0 %v1573_v29  ;;  %v3319_v29 = vld [vmem:[#allocation2 + $0x12c] sm:$0xff] }
 0x310   : > { %6625 = vmatmul.mubr.bf16.gmra.mrb[16].mxu1 %v9815_v28  ;;  %6192 = vmatprep.mubr.msk.bf16.mxu0 %vm8419_vm0, %v9622_v25  ;;  %v9836_v7 = vpack.c.bf16 %v3319_v29, %v3318_v23  ;;  %v9850_v29 = vpack.c.bf16 %v3323_v17, %v3322_v47  ;;  %v7801_v47 = vld [vmem:[#allocation16 + $0x1c0] sm:$0xff]   ;;  %v7803_v17 = vld [vmem:[#allocation16 + $0x1c8] sm:$0xff]  }
 0x311   : > { %6628 = vmatprep.mubr.msk.bf16.mxu1 %vm8419_vm0, %v9622_v25 }
 0x317   : > { %6193 = vmatmul.mubr.bf16.gmra.mrb[28].mxu0 %v1574_v27  ;;  %v3320_v27 = vld [vmem:[#allocation2 + $0x134] sm:$0xff] }
 0x318   : > { %6629 = vmatmul.mubr.bf16.gmra.mrb[20].mxu1 %v9822_v34  ;;  %6196 = vmatprep.mubr.msk.bf16.mxu0 %vm8419_vm0, %v9622_v25  ;;  %v9843_v56 = vpack.c.bf16 %v3321_v22, %v3320_v27  ;;  %v3345_v22 = vpack.c.bf16 %v3324_v19, %v3324_v19  ;;  %v7805_v19 = vld [vmem:[#allocation16 + $0x1d0] sm:$0xff]  }
 0x319   : > { %6632 = vmatprep.mubr.msk.bf16.mxu1 %vm8419_vm0, %v9622_v25 }
 0x31f   : > { %6197 = vmatmul.mubr.bf16.gmra.mrb[32].mxu0 %v1575_v14  ;;  %v1548_v14 = vld [vmem:[#allocation2 + $0xa8] sm:$0xff] }
 0x320   : > { %6633 = vmatmul.mubr.bf16.gmra.mrb[24].mxu1 %v9829_v57  ;;  %6200 = vmatprep.mubr.msk.bf16.mxu0 %vm8419_vm0, %v9622_v25  ;;  %v1578_v23 = vpack.c.bf16 %v1548_v14, %v1547_v0  ;;  %v1552_v0 = vld [vmem:[#allocation2 + $0xc8] sm:$0xff] }
 0x321   : > { %6636 = vmatprep.mubr.msk.bf16.mxu1 %vm8419_vm0, %v9622_v25 }
 0x327   : > { %6201 = vmatmul.mubr.bf16.gmra.mrb[36].mxu0 %v1576_v32  ;;  %v1549_v32 = vld [vmem:[#allocation2 + $0xb0] sm:$0xff] }
 0x328   : > { %6637 = vmatmul.mubr.bf16.gmra.mrb[28].mxu1 %v9836_v7  ;;  %6204 = vmatprep.mubr.msk.bf16.mxu0 %vm8419_vm0, %v9622_v25  ;;  %v1579_v27 = vpack.c.bf16 %v1550_v52, %v1549_v32  ;;  %v1554_v32 = vld [vmem:[#allocation2 + $0xd8] sm:$0xff] }
 0x329   : > { %6640 = vmatprep.mubr.msk.bf16.mxu1 %vm8419_vm0, %v9622_v25 }
 0x32f   : > { %6205 = vmatmul.mubr.bf16.gmra.mrb[40].mxu0 %v1577_v63  ;;  %v1551_v63 = vld [vmem:[#allocation2 + $0xc0] sm:$0xff] }
 0x330   : > { %6641 = vmatmul.mubr.bf16.gmra.mrb[32].mxu1 %v9843_v56  ;;  %6208 = vmatprep.mubr.msk.bf16.mxu0 %vm8419_vm0, %v9622_v25  ;;  %v1580_v14 = vpack.c.bf16 %v1552_v0, %v1551_v63  ;;  %v7809_v0 = vld [vmem:[#allocation16 + $0x1e0] sm:$0xff]  }
 0x331   : > { %6644 = vmatprep.mubr.msk.bf16.mxu1 %vm8419_vm0, %v9622_v25 }
 0x337   : > { %6209 = vmatmul.mubr.bf16.gmra.mrb[44].mxu0 %v1578_v23  ;;  %v1553_v23 = vld [vmem:[#allocation2 + $0xd0] sm:$0xff] }
 0x338   : > { %6645 = vmatmul.mubr.bf16.gmra.mrb[36].mxu1 %v9850_v29  ;;  %6212 = vmatprep.mubr.msk.bf16.mxu0 %vm8419_vm0, %v9622_v25  ;;  %v1581_v52 = vpack.c.bf16 %v1554_v32, %v1553_v23  ;;  %v1559_v23 = vld [vmem:[#allocation2 + $0x100] sm:$0xff]  ;;  %v1560_v32 = vld [vmem:[#allocation2 + $0x108] sm:$0xff] }
 0x339   : > { %6648 = vmatprep.mubr.msk.bf16.mxu1 %vm8419_vm0, %v9622_v25 }
 0x33f   : > { %6213 = vmatmul.mubr.bf16.gmra.mrb[48].mxu0 %v1579_v27  ;;  %v1555_v27 = vld [vmem:[#allocation2 + $0xe0] sm:$0xff] }
 0x340   : > { %6649 = vmatmul.mubr.bf16.gmra.mrb[40].mxu1 %v3345_v22  ;;  %6216 = vmatprep.mubr.msk.bf16.mxu0 %vm8419_vm0, %v9622_v25  ;;  %v1556_v22 = vld [vmem:[#allocation2 + $0xe8] sm:$0xff] }
 0x341   : > { %6668 = vmatprep.mubr.msk.bf16.mxu1 %vm8419_vm0, %v9622_v25  ;;  %v1582_v63 = vpack.c.bf16 %v1556_v22, %v1555_v27  ;;  %v1564_v22 = vld [vmem:[#allocation2 + $0x128] sm:$0xff] }
 0x347   : > { %6217 = vmatmul.mubr.bf16.gmra.mrb[52].mxu0 %v1580_v14  ;;  %v1557_v14 = vld [vmem:[#allocation2 + $0xf0] sm:$0xff] }
 0x348   : > { %6669 = vmatmul.mubr.bf16.vlgmr.msra.gmra.mrb[44].mxu1 %v9707_v8  ;;  %6220 = vmatprep.mubr.msk.bf16.mxu0 %vm8419_vm0, %v9622_v25  ;;  %v7807_v8 = vld [vmem:[#allocation16 + $0x1d8] sm:$0xff]  }
 0x349   : > { %6672 = vmatprep.mubr.msk.bf16.mxu1 %vm8419_vm0, %v9622_v25  ;;  %6753 = vmatpush3.bf16.msra.mxu1 %v7801_v47  ;;  %v1558_v47 = vld [vmem:[#allocation2 + $0xf8] sm:$0xff] }
 0x34a   : > { %6754 = vmatprep.subr.bf16.mxu1 %v9622_v25 }
 0x34d   : > { %6755 = vmatpush3.bf16.msra.mxu1 %v7803_v17  ;;  %v1583_v17 = vpack.c.bf16 %v1558_v47, %v1557_v14  ;;  %v1567_v14 = vld [vmem:[#allocation2 + $0x140] sm:$0xf] }
 0x34e   : > { %6756 = vmatprep.subr.bf16.mxu1 %v9622_v25  ;;  %v2180_v47 = vld [vmem:[#allocation2 + $0x2] sm:$0xff] }
 0x34f   : > { %6221 = vmatmul.mubr.bf16.gmra.mrb[56].mxu0 %v1581_v52  ;;  %v1584_v52 = vpack.c.bf16 %v1560_v32, %v1559_v23  ;;  %v7808_v23 = vld [vmem:[#allocation16 + $0xc8] sm:$0xff]   ;;  %v2183_v32 = vld [vmem:[#allocation2 + $0x1a] sm:$0xff] }
 0x350   : > { %6673 = vmatmul.mubr.bf16.gmra.mrb[48].mxu1 %v9716_v2  ;;  %6224 = vmatprep.mubr.msk.bf16.mxu0 %vm8419_vm0, %v9622_v25  ;;  %v7811_v2 = vld [vmem:[#allocation16 + $0x1e8] sm:$0xff]  }
 0x351   : > { %6676 = vmatprep.mubr.msk.bf16.mxu1 %vm8419_vm0, %v9622_v25  ;;  %6757 = vmatpush3.bf16.msra.mxu1 %v7805_v19  ;;  %v7815_v19 = vld [vmem:[#allocation16 + $0x1f8] sm:$0xff]  }
 0x352   : > { %6758 = vmatprep.subr.bf16.mxu1 %v9622_v25 }
 0x355   : > { %6759 = vmatpush3.bf16.msra.mxu1 %v7807_v8  ;;  %v1562_v8 = vld [vmem:[#allocation2 + $0x118] sm:$0xff] }
 0x356   : > { %6760 = vmatprep.subr.bf16.mxu1 %v9622_v25 }
 0x357   : > { %6225 = vmatmul.mubr.bf16.gmra.mrb[60].mxu0 %v1582_v63 }
 0x358   : > { %6677 = vmatmul.mubr.bf16.gmra.mrb[52].mxu1 %v9725_v48  ;;  %6228 = vmatprep.mubr.msk.bf16.mxu0 %vm8419_vm0, %v9622_v25  ;;  %v7813_v48 = vld [vmem:[#allocation16 + $0x1f0] sm:$0xff]  }
 0x359   : > { %6680 = vmatprep.mubr.msk.bf16.mxu1 %vm8419_vm0, %v9622_v25  ;;  %6761 = vmatpush3.bf16.msra.mxu1 %v7809_v0  ;;  %v1565_v0 = vld [vmem:[#allocation2 + $0x130] sm:$0xff] }
 0x35a   : > { %6762 = vmatprep.subr.bf16.mxu1 %v9622_v25 }
 0x35d   : > { %6763 = vmatpush3.bf16.msra.mxu1 %v7811_v2 }
 0x35e   : > { %6764 = vmatprep.subr.bf16.mxu1 %v9622_v25 }
 0x35f   : > { %6229 = vmatmul.mubr.bf16.gmra.mrb[64].mxu0 %v1583_v17  ;;  %v2181_v17 = vld [vmem:[#allocation2 + $0xa] sm:$0xff] }
 0x360   : > { %6681 = vmatmul.mubr.bf16.gmra.mrb[56].mxu1 %v9734_v31  ;;  %6232 = vmatprep.mubr.msk.bf16.mxu0 %vm8419_vm0, %v9622_v25  ;;  %v1561_v31 = vld [vmem:[#allocation2 + $0x110] sm:$0xff] }
 0x361   : > { %6684 = vmatprep.mubr.msk.bf16.mxu1 %vm8419_vm0, %v9622_v25  ;;  %6765 = vmatpush3.bf16.msra.mxu1 %v7813_v48  ;;  %v1585_v27 = vpack.c.bf16 %v1562_v8, %v1561_v31  ;;  %v7806_v48 = vld [vmem:[#allocation16 + $0xc0] sm:$0xff]  }
 0x362   : > { %6766 = vmatprep.subr.bf16.mxu1 %v9622_v25  ;;  %v2184_v31 = vld [vmem:[#allocation2 + $0x22] sm:$0xff]  ;;  %v2185_v8 = vld [vmem:[#allocation2 + $0x2a] sm:$0xff] }
 0x365   : > { %6767 = vmatpush3.bf16.msra.mxu1 %v7815_v19  ;;  %v7810_v19 = vld [vmem:[#allocation16 + $0xd0] sm:$0xff]  }
 0x366   : > { %6852 = vmatprep.subr.bf16.mxu1 %v9622_v25 }
 0x367   : > { %6233 = vmatmul.mubr.bf16.gmra.mrb[68].mxu0 %v1584_v52 }
 0x368   : > { %6685 = vmatmul.mubr.bf16.gmra.mrb[60].mxu1 %v9742_v26  ;;  %6236 = vmatprep.mubr.msk.bf16.mxu0 %vm8419_vm0, %v9622_v25  ;;  %v1563_v26 = vld [vmem:[#allocation2 + $0x120] sm:$0xff] }
 0x369   : > { %6688 = vmatprep.mubr.msk.bf16.mxu1 %vm8419_vm0, %v9622_v25  ;;  %v1586_v63 = vpack.c.bf16 %v1564_v22, %v1563_v26  ;;  %v7814_v26 = vld [vmem:[#allocation16 + $0xe0] sm:$0xff]   ;;  %v2186_v22 = vld [vmem:[#allocation2 + $0x32] sm:$0xff] }
 0x36f   : > { %6237 = vmatmul.mubr.bf16.gmra.mrb[72].mxu0 %v1585_v27  ;;  %v9930_v27 = vpack.c.bf16 %v2185_v8, %v2184_v31  ;;  %v2200_v8 = vld [vmem:[#allocation2 + $0xa2] sm:$0xff] }
 0x370   : > { %6689 = vmatmul.mubr.bf16.gmra.mrb[64].mxu1 %v9749_v15  ;;  %6240 = vmatprep.mubr.msk.bf16.mxu0 %vm8419_vm0, %v9622_v25  ;;  %v1566_v15 = vld [vmem:[#allocation2 + $0x138] sm:$0xff] }
 0x371   : > { %6692 = vmatprep.mubr.msk.bf16.mxu1 %vm8419_vm0, %v9622_v25  ;;  %v1587_v2 = vpack.c.bf16 %v1566_v15, %v1565_v0  ;;  %v7818_v15 = vld [vmem:[#allocation16 + $0xf0] sm:$0xff]  }
 0x377   : > { %6241 = vmatmul.mubr.bf16.gmra.mrb[76].mxu0 %v1586_v63  ;;  %v2187_v63 = vld [vmem:[#allocation2 + $0x3a] sm:$0xff] }
 0x378   : > { %6693 = vmatmul.mubr.bf16.gmra.mrb[68].mxu1 %v9756_v12  ;;  %6244 = vmatprep.mubr.msk.bf16.mxu0 %vm8419_vm0, %v9622_v25  ;;  %v1588_v12 = vpack.c.bf16 %v1567_v14, %v1567_v14  ;;  %v9940_v0 = vpack.c.bf16 %v2187_v63, %v2186_v22  ;;  %v2189_v14 = vld [vmem:[#allocation2 + $0x4a] sm:$0xff] }
 0x379   : > { %6696 = vmatprep.mubr.msk.bf16.mxu1 %vm8419_vm0, %v9622_v25 }
 0x37f   : > { %6245 = vmatmul.mubr.bf16.gmra.mrb[80].mxu0 %v1587_v2  ;;  %v2188_v2 = vld [vmem:[#allocation2 + $0x42] sm:$0xff] }
 0x380   : > { %6697 = vmatmul.mubr.bf16.gmra.mrb[72].mxu1 %v9763_v62  ;;  %6248 = vmatprep.mubr.msk.bf16.mxu0 %vm8419_vm0, %v9622_v25  ;;  %v2221_v62 = vpack.c.bf16 %v2181_v17, %v2180_v47  ;;  %v2191_v47 = vld [vmem:[#allocation2 + $0x5a] sm:$0xff] }
 0x381   : > { %6700 = vmatprep.mubr.msk.bf16.mxu1 %vm8419_vm0, %v9622_v25 }
 0x387   : > { %6249 = vmatmul.mubr.bf16.gmra.mrb[84].mxu0 %v1588_v12  ;;  %v9950_v12 = vpack.c.bf16 %v2189_v14, %v2188_v2 }
 0x388   : > { %6701 = vmatmul.mubr.bf16.gmra.mrb[76].mxu1 %v9772_v1  ;;  %6268 = vmatprep.mubr.msk.bf16.mxu0 %vm8419_vm0, %v9622_v25  ;;  %v2182_v1 = vld [vmem:[#allocation2 + $0x12] sm:$0xff] }
 0x389   : > { %6704 = vmatprep.mubr.msk.bf16.mxu1 %vm8419_vm0, %v9622_v25  ;;  %v9920_v52 = vpack.c.bf16 %v2183_v32, %v2182_v1  ;;  %v2197_v32 = vld [vmem:[#allocation2 + $0x8a] sm:$0xff] }
 0x38f   : > { %6269 = vmatmul.mubr.bf16.vlgmr.msra.gmra.mrb[4].mxu0 %v2221_v62  ;;  %v9963_v62 = vld [vmem:[#allocation2] sm:$0xff] }
 0x390   : > { %6705 = vmatmul.mubr.bf16.gmra.mrb[80].mxu1 %v9780_v41  ;;  %6353 = vmatpush3.bf16.msra.mxu0 %v7806_v48  ;;  %v7812_v41 = vld [vmem:[#allocation16 + $0xd8] sm:$0xff]   ;;  %v2193_v48 = vld [vmem:[#allocation2 + $0x6a] sm:$0xff] }
 0x391   : > { %6272 = vmatprep.mubr.msk.bf16.mxu0 %vm8419_vm0, %v9622_v25  ;;  %6708 = vmatprep.mubr.msk.bf16.mxu1 %vm8419_vm0, %v9622_v25 }
 0x392   : > { %6354 = vmatprep.subr.bf16.mxu0 %v9622_v25 }
 0x394   : > { %6355 = vmatpush3.bf16.msra.mxu0 %v7808_v23 }
 0x395   : > { %6356 = vmatprep.subr.bf16.mxu0 %v9622_v25 }
 0x397   : > { %6273 = vmatmul.mubr.bf16.gmra.mrb[8].mxu0 %v9920_v52 }
 0x398   : > { %6709 = vmatmul.mubr.bf16.gmra.mrb[0].mxu1 %v9789_v21  ;;  %6276 = vmatprep.mubr.msk.bf16.mxu0 %vm8419_vm0, %v9622_v25  ;;  %v7816_v21 = vld [vmem:[#allocation16 + $0xe8] sm:$0xff]  }
 0x399   : > { %6712 = vmatprep.mubr.msk.bf16.mxu1 %vm8419_vm0, %v9622_v25  ;;  %6357 = vmatpush3.bf16.msra.mxu0 %v7810_v19 }
 0x39a   : > { %6358 = vmatprep.subr.bf16.mxu0 %v9622_v25 }
 0x39d   : > { %6359 = vmatpush3.bf16.msra.mxu0 %v7812_v41  ;;  %v2199_v41 = vld [vmem:[#allocation2 + $0x9a] sm:$0xff] }
 0x39e   : > { %6360 = vmatprep.subr.bf16.mxu0 %v9622_v25 }
 0x39f   : > { %6277 = vmatmul.mubr.bf16.gmra.mrb[12].mxu0 %v9930_v27 }
 0x3a0   : > { %6713 = vmatmul.mubr.bf16.gmra.mrb[4].mxu1 %v9798_v44  ;;  %6280 = vmatprep.mubr.msk.bf16.mxu0 %vm8419_vm0, %v9622_v25  ;;  %v7820_v44 = vld [vmem:[#allocation16 + $0xf8] sm:$0xff]  }
 0x3a1   : > { %6716 = vmatprep.mubr.msk.bf16.mxu1 %vm8419_vm0, %v9622_v25  ;;  %6361 = vmatpush3.bf16.msra.mxu0 %v7814_v26  ;;  %v2201_v26 = vld [vmem:[#allocation2 + $0xaa] sm:$0xff] }
 0x3a2   : > { %6362 = vmatprep.subr.bf16.mxu0 %v9622_v25  ;;  %v10001_v22 = vpack.c.bf16 %v2201_v26, %v2200_v8  ;;  %v4023_v8 = vld [vmem:[#allocation2 + $0x3d] sm:$0xff] }
 0x3a5   : > { %6363 = vmatpush3.bf16.msra.mxu0 %v7816_v21  ;;  %v3690_v21 = vld [vmem:[#allocation2 + $0x154] sm:$0xff] }
 0x3a6   : > { %6364 = vmatprep.subr.bf16.mxu0 %v9622_v25 }
 0x3a7   : > { %6281 = vmatmul.mubr.bf16.gmra.mrb[16].mxu0 %v9940_v0 }
 0x3a8   : > { %6717 = vmatmul.mubr.bf16.gmra.mrb[8].mxu1 %v9807_v35  ;;  %6284 = vmatprep.mubr.msk.bf16.mxu0 %vm8419_vm0, %v9622_v25  ;;  %v2190_v35 = vld [vmem:[#allocation2 + $0x52] sm:$0xff] }
 0x3a9   : > { %6720 = vmatprep.mubr.msk.bf16.mxu1 %vm8419_vm0, %v9622_v25  ;;  %6365 = vmatpush3.bf16.msra.mxu0 %v7818_v15  ;;  %v9959_v17 = vpack.c.bf16 %v2191_v47, %v2190_v35  ;;  %v2202_v15 = vld [vmem:[#allocation2 + $0xb2] sm:$0xff]  ;;  %v2204_v35 = vld [vmem:[#allocation2 + $0xc2] sm:$0xff]  ;;  %v2205_v47 = vld [vmem:[#allocation2 + $0xca] sm:$0xff] }
 0x3aa   : > { %6366 = vmatprep.subr.bf16.mxu0 %v9622_v25 }
 0x3ad   : > { %6367 = vmatpush3.bf16.msra.mxu0 %v7820_v44  ;;  %v2203_v44 = vld [vmem:[#allocation2 + $0xba] sm:$0xff] }
 0x3ae   : > { %6452 = vmatprep.subr.bf16.mxu0 %v9622_v25  ;;  %v10008_v14 = vpack.c.bf16 %v2203_v44, %v2202_v15  ;;  %v7822_v15 = vld [vmem:[#allocation16 + $0x218] sm:$0xff]   ;;  %v2209_v44 = vld [vmem:[#allocation2 + $0xea] sm:$0xff] }
 0x3af   : > { %6285 = vmatmul.mubr.bf16.gmra.mrb[20].mxu0 %v9950_v12 }
 0x3b0   : > { %6721 = vmatmul.mubr.bf16.gmra.mrb[12].mxu1 %v9815_v28  ;;  %6288 = vmatprep.mubr.msk.bf16.mxu0 %vm8419_vm0, %v9622_v25  ;;  %v2192_v28 = vld [vmem:[#allocation2 + $0x62] sm:$0xff] }
 0x3b1   : > { %6724 = vmatprep.mubr.msk.bf16.mxu1 %vm8419_vm0, %v9622_v25  ;;  %v9969_v23 = vpack.c.bf16 %v2193_v48, %v2192_v28  ;;  %v2194_v25 = vld [vmem:[#allocation2 + $0x72] sm:$0xff]  ;;  %v4020_v28 = vld [vmem:[#allocation2 + $0x25] sm:$0xff] }
 0x3b2   : > { %v4021_v48 = vld [vmem:[#allocation2 + $0x2d] sm:$0xff] }
 0x3b7   : > { %6289 = vmatmul.mubr.bf16.gmra.mrb[24].mxu0 %v9959_v17 }
 0x3b8   : > { %6725 = vmatmul.mubr.bf16.gmra.mrb[16].mxu1 %v9822_v34  ;;  %6292 = vmatprep.mubr.msk.bf16.mxu0 %vm8419_vm0, %v9963_v62  ;;  %v2195_v34 = vld [vmem:[#allocation2 + $0x7a] sm:$0xff] }
 0x3b9   : > { %6728 = vmatprep.mubr.msk.bf16.mxu1 %vm8419_vm0, %v9963_v62  ;;  %v9977_v1 = vpack.c.bf16 %v2195_v34, %v2194_v25  ;;  %v10015_v25 = vpack.c.bf16 %v2205_v47, %v2204_v35  ;;  %v4061_v34 = vpack.c.bf16 %v4021_v48, %v4020_v28  ;;  %v4025_v35 = vld [vmem:[#allocation2 + $0x4d] sm:$0xff] }
 0x3ba   : > { %v7823_v48 = vld [vmem:[#allocation16 + $0x220] sm:$0xff]  }
 0x3bf   : > { %6293 = vmatmul.mubr.bf16.gmra.mrb[28].mxu0 %v9969_v23 }
 0x3c0   : > { %6729 = vmatmul.mubr.bf16.gmra.mrb[20].mxu1 %v9829_v57  ;;  %6296 = vmatprep.mubr.msk.bf16.mxu0 %vm8419_vm0, %v9963_v62  ;;  %v2196_v57 = vld [vmem:[#allocation2 + $0x82] sm:$0xff] }
 0x3c1   : > { %6732 = vmatprep.mubr.msk.bf16.mxu1 %vm8419_vm0, %v9963_v62  ;;  %v9985_v19 = vpack.c.bf16 %v2197_v32, %v2196_v57  ;;  %v7817_v57 = vld [vmem:[#allocation16 + $0x200] sm:$0xff]   ;;  %v2206_v32 = vld [vmem:[#allocation2 + $0xd2] sm:$0xff] }
 0x3c7   : > { %6297 = vmatmul.mubr.bf16.gmra.mrb[32].mxu0 %v9977_v1 }
 0x3c8   : > { %6733 = vmatmul.mubr.bf16.gmra.mrb[24].mxu1 %v9836_v7  ;;  %6300 = vmatprep.mubr.msk.bf16.mxu0 %vm8419_vm0, %v9963_v62  ;;  %v2198_v7 = vld [vmem:[#allocation2 + $0x92] sm:$0xff] }
 0x3c9   : > { %6736 = vmatprep.mubr.msk.bf16.mxu1 %vm8419_vm0, %v9963_v62  ;;  %v9993_v31 = vpack.c.bf16 %v2199_v41, %v2198_v7  ;;  %v7819_v7 = vld [vmem:[#allocation16 + $0x208] sm:$0xff]   ;;  %v2207_v41 = vld [vmem:[#allocation2 + $0xda] sm:$0xff] }
 0x3ca   : > { %v10023_v26 = vpack.c.bf16 %v2207_v41, %v2206_v32  ;;  %v2211_v32 = vld [vmem:[#allocation2 + $0xfa] sm:$0xff] }
 0x3cb   : > { %v4027_v41 = vld [vmem:[#allocation2 + $0x5d] sm:$0xff] }
 0x3cf   : > { %6301 = vmatmul.mubr.bf16.gmra.mrb[36].mxu0 %v9985_v19 }
 0x3d0   : > { %6737 = vmatmul.mubr.bf16.gmra.mrb[28].mxu1 %v9843_v56  ;;  %6304 = vmatprep.mubr.msk.bf16.mxu0 %vm8419_vm0, %v9963_v62  ;;  %v3691_v56 = vld [vmem:[#allocation2 + $0x15c] sm:$0xff] }
 0x3d1   : > { %6740 = vmatprep.mubr.msk.bf16.mxu1 %vm8419_vm0, %v9963_v62  ;;  %v3712_v63 = vpack.c.bf16 %v3691_v56, %v3690_v21  ;;  %v4022_v56 = vld [vmem:[#allocation2 + $0x35] sm:$0xff] }
 0x3d2   : > { %v4062_v21 = vpack.c.bf16 %v4023_v8, %v4022_v56 }
 0x3d7   : > { %6305 = vmatmul.mubr.bf16.gmra.mrb[40].mxu0 %v9993_v31 }
 0x3d8   : > { %6741 = vmatmul.mubr.bf16.gmra.mrb[32].mxu1 %v9850_v29  ;;  %6308 = vmatprep.mubr.msk.bf16.mxu0 %vm8419_vm0, %v9963_v62  ;;  %v3692_v29 = vld [vmem:[#allocation2 + $0x164] sm:$0xf] }
 0x3d9   : > { %6744 = vmatprep.mubr.msk.bf16.mxu1 %vm8419_vm0, %v9963_v62  ;;  %v3713_v2 = vpack.c.bf16 %v3692_v29, %v3692_v29  ;;  %v2208_v29 = vld [vmem:[#allocation2 + $0xe2] sm:$0xff] }
 0x3da   : > { %v10032_v47 = vpack.c.bf16 %v2209_v44, %v2208_v29  ;;  %v2213_v29 = vld [vmem:[#allocation2 + $0x10a] sm:$0xff] }
 0x3db   : > { %v4029_v44 = vld [vmem:[#allocation2 + $0x6d] sm:$0xff] }
 0x3df   : > { %6309 = vmatmul.mubr.bf16.gmra.mrb[44].mxu0 %v10001_v22 }
 0x3e0   : > { %6745 = vmatmul.mubr.bf16.gmra.mrb[36].mxu1 %v3712_v63  ;;  %6312 = vmatprep.mubr.msk.bf16.mxu0 %vm8419_vm0, %v9963_v62  ;;  %v7821_v63 = vld [vmem:[#allocation16 + $0x210] sm:$0xff]  }
 0x3e1   : > { %6748 = vmatprep.mubr.msk.bf16.mxu1 %vm8419_vm0, %v9963_v62 }
 0x3e7   : > { %6313 = vmatmul.mubr.bf16.gmra.mrb[48].mxu0 %v10008_v14 }
 0x3e8   : > { %6749 = vmatmul.mubr.bf16.gmra.mrb[40].mxu1 %v3713_v2  ;;  %6316 = vmatprep.mubr.msk.bf16.mxu0 %vm8419_vm0, %v9963_v62  ;;  %v4024_v2 = vld [vmem:[#allocation2 + $0x45] sm:$0xff] }
 0x3e9   : > { %6768 = vmatprep.mubr.msk.bf16.mxu1 %vm8419_vm0, %v9963_v62  ;;  %v4063_v28 = vpack.c.bf16 %v4025_v35, %v4024_v2 }
 0x3ef   : > { %6317 = vmatmul.mubr.bf16.gmra.mrb[52].mxu0 %v10015_v25 }
 0x3f0   : > { %6769 = vmatmul.mubr.bf16.vlgmr.msra.gmra.mrb[44].mxu1 %v4061_v34  ;;  %6320 = vmatprep.mubr.msk.bf16.mxu0 %vm8419_vm0, %v9963_v62  ;;  %v2210_v34 = vld [vmem:[#allocation2 + $0xf2] sm:$0xff] }
 0x3f1   : > { %6772 = vmatprep.mubr.msk.bf16.mxu1 %vm8419_vm0, %v9963_v62  ;;  %6853 = vmatpush3.bf16.msra.mxu1 %v7817_v57  ;;  %v7824_v57 = vld [vmem:[#allocation16 + $0x228] sm:$0xff]   ;;  %v10041_v56 = vpack.c.bf16 %v2211_v32, %v2210_v34  ;;  %v2215_v34 = vld [vmem:[#allocation2 + $0x11a] sm:$0xff] }
 0x3f2   : > { %6854 = vmatprep.subr.bf16.mxu1 %v9963_v62  ;;  %v4031_v32 = vld [vmem:[#allocation2 + $0x7d] sm:$0xff] }
 0x3f5   : > { %6855 = vmatpush3.bf16.msra.mxu1 %v7819_v7  ;;  %v4026_v7 = vld [vmem:[#allocation2 + $0x55] sm:$0xff] }
 0x3f6   : > { %6856 = vmatprep.subr.bf16.mxu1 %v9963_v62  ;;  %v4064_v8 = vpack.c.bf16 %v4027_v41, %v4026_v7 }
 0x3f7   : > { %6321 = vmatmul.mubr.bf16.gmra.mrb[56].mxu0 %v10023_v26 }
 0x3f8   : > { %6773 = vmatmul.mubr.bf16.gmra.mrb[48].mxu1 %v4062_v21  ;;  %6324 = vmatprep.mubr.msk.bf16.mxu0 %vm8419_vm0, %v9963_v62  ;;  %v7825_v21 = vld [vmem:[#allocation16 + $0x230] sm:$0xff]  }
 0x3f9   : > { %6776 = vmatprep.mubr.msk.bf16.mxu1 %vm8419_vm0, %v9963_v62  ;;  %6857 = vmatpush3.bf16.msra.mxu1 %v7821_v63  ;;  %v2212_v63 = vld [vmem:[#allocation2 + $0x102] sm:$0xff] }
 0x3fa   : > { %6858 = vmatprep.subr.bf16.mxu1 %v9963_v62  ;;  %v10050_v2 = vpack.c.bf16 %v2213_v29, %v2212_v63  ;;  %v4032_v63 = vld [vmem:[#allocation2 + $0x85] sm:$0xff]  ;;  %v4033_v29 = vld [vmem:[#allocation2 + $0x8d] sm:$0xff] }
 0x3fd   : > { %6859 = vmatpush3.bf16.msra.mxu1 %v7822_v15  ;;  %v4028_v15 = vld [vmem:[#allocation2 + $0x65] sm:$0xff] }
 0x3fe   : > { %6860 = vmatprep.subr.bf16.mxu1 %v9963_v62  ;;  %v4065_v35 = vpack.c.bf16 %v4029_v44, %v4028_v15  ;;  %v4067_v44 = vpack.c.bf16 %v4033_v29, %v4032_v63 }
 0x3ff   : > { %6325 = vmatmul.mubr.bf16.gmra.mrb[60].mxu0 %v10032_v47 }
 0x400   : > { %6777 = vmatmul.mubr.bf16.gmra.mrb[52].mxu1 %v4063_v28  ;;  %6328 = vmatprep.mubr.msk.bf16.mxu0 %vm8419_vm0, %v9963_v62  ;;  %v7826_v28 = vld [vmem:[#allocation16 + $0x238] sm:$0xff]  }
 0x401   : > { %6780 = vmatprep.mubr.msk.bf16.mxu1 %vm8419_vm0, %v9963_v62  ;;  %6861 = vmatpush3.bf16.msra.mxu1 %v7823_v48  ;;  %v2214_v48 = vld [vmem:[#allocation2 + $0x112] sm:$0xff] }
 0x402   : > { %6862 = vmatprep.subr.bf16.mxu1 %v9963_v62  ;;  %v10057_v7 = vpack.c.bf16 %v2215_v34, %v2214_v48  ;;  %v4034_v48 = vld [vmem:[#allocation2 + $0x95] sm:$0xff]  ;;  %v4035_v34 = vld [vmem:[#allocation2 + $0x9d] sm:$0xff] }
 0x405   : > { %6863 = vmatpush3.bf16.msra.mxu1 %v7824_v57  ;;  %v4030_v57 = vld [vmem:[#allocation2 + $0x75] sm:$0xff] }
 0x406   : > { %6864 = vmatprep.subr.bf16.mxu1 %v9963_v62  ;;  %v4066_v41 = vpack.c.bf16 %v4031_v32, %v4030_v57  ;;  %v4068_v32 = vpack.c.bf16 %v4035_v34, %v4034_v48  ;;  %v8000_v48 = vld [vmem:[#allocation16 + $0x100] sm:$0xff]  }
 0x407   : > { %6329 = vmatmul.mubr.bf16.gmra.mrb[64].mxu0 %v10041_v56  ;;  %v4040_v34 = vld [vmem:[#allocation2 + $0xc5] sm:$0xff] }
 0x408   : > { %6781 = vmatmul.mubr.bf16.gmra.mrb[56].mxu1 %v4064_v8  ;;  %6332 = vmatprep.mubr.msk.bf16.mxu0 %vm8419_vm0, %v9963_v62  ;;  %v2216_v8 = vld [vmem:[#allocation2 + $0x122] sm:$0xff] }
 0x409   : > { %6784 = vmatprep.mubr.msk.bf16.mxu1 %vm8419_vm0, %v9963_v62  ;;  %6865 = vmatpush3.bf16.msra.mxu1 %v7825_v21  ;;  %v2217_v21 = vld [vmem:[#allocation2 + $0x12a] sm:$0xff] }
 0x40a   : > { %6866 = vmatprep.subr.bf16.mxu1 %v9963_v62  ;;  %v10064_v15 = vpack.c.bf16 %v2217_v21, %v2216_v8  ;;  %v4036_v8 = vld [vmem:[#allocation2 + $0xa5] sm:$0xff]  ;;  %v4037_v21 = vld [vmem:[#allocation2 + $0xad] sm:$0xff] }
 0x40b   : > { %v4069_v29 = vpack.c.bf16 %v4037_v21, %v4036_v8  ;;  %v4042_v21 = vld [vmem:[#allocation2 + $0xd5] sm:$0xff] }
 0x40d   : > { %6867 = vmatpush3.bf16.msra.mxu1 %v7826_v28  ;;  %v2219_v28 = vld [vmem:[#allocation2 + $0x13a] sm:$0xff] }
 0x40f   : > { %6333 = vmatmul.mubr.bf16.gmra.mrb[68].mxu0 %v10050_v2 }
 0x410   : > { %6785 = vmatmul.mubr.bf16.gmra.mrb[60].mxu1 %v4065_v35  ;;  %6336 = vmatprep.mubr.msk.bf16.mxu0 %vm8419_vm0, %v9963_v62  ;;  %v2218_v35 = vld [vmem:[#allocation2 + $0x132] sm:$0xff] }
 0x411   : > { %6788 = vmatprep.mubr.msk.bf16.mxu1 %vm8419_vm0, %v9963_v62  ;;  %v10071_v57 = vpack.c.bf16 %v2219_v28, %v2218_v35  ;;  %v4039_v35 = vld [vmem:[#allocation2 + $0xbd] sm:$0xff] }
 0x417   : > { %6337 = vmatmul.mubr.bf16.gmra.mrb[72].mxu0 %v10057_v7 }
 0x418   : > { %6789 = vmatmul.mubr.bf16.gmra.mrb[64].mxu1 %v4066_v41  ;;  %6340 = vmatprep.mubr.msk.bf16.mxu0 %vm8419_vm0, %v9963_v62  ;;  %v2220_v41 = vld [vmem:[#allocation2 + $0x142] sm:$0xf] }
 0x419   : > { %6792 = vmatprep.mubr.msk.bf16.mxu1 %vm8419_vm0, %v9963_v62  ;;  %v2241_v63 = vpack.c.bf16 %v2220_v41, %v2220_v41  ;;  %v8001_v41 = vld [vmem:[#allocation16 + $0x108] sm:$0xff]  }
 0x41f   : > { %6341 = vmatmul.mubr.bf16.gmra.mrb[76].mxu0 %v10064_v15 }
 0x420   : > { %6793 = vmatmul.mubr.bf16.gmra.mrb[68].mxu1 %v4067_v44  ;;  %6344 = vmatprep.mubr.msk.bf16.mxu0 %vm8419_vm0, %v9963_v62  ;;  %v4038_v44 = vld [vmem:[#allocation2 + $0xb5] sm:$0xff] }
 0x421   : > { %6796 = vmatprep.mubr.msk.bf16.mxu1 %vm8419_vm0, %v9963_v62  ;;  %v4070_v28 = vpack.c.bf16 %v4039_v35, %v4038_v44  ;;  %v8003_v44 = vld [vmem:[#allocation16 + $0x118] sm:$0xff]  }
 0x422   : > { %v4044_v35 = vld [vmem:[#allocation2 + $0xe5] sm:$0xff] }
 0x427   : > { %6345 = vmatmul.mubr.bf16.gmra.mrb[80].mxu0 %v10071_v57 }
 0x428   : > { %6797 = vmatmul.mubr.bf16.gmra.mrb[72].mxu1 %v4068_v32  ;;  %6348 = vmatprep.mubr.msk.bf16.mxu0 %vm8419_vm0, %v9963_v62  ;;  %v4041_v32 = vld [vmem:[#allocation2 + $0xcd] sm:$0xff] }
 0x429   : > { %6800 = vmatprep.mubr.msk.bf16.mxu1 %vm8419_vm0, %v9963_v62  ;;  %v4071_v8 = vpack.c.bf16 %v4041_v32, %v4040_v34  ;;  %v8005_v34 = vld [vmem:[#allocation16 + $0x128] sm:$0xff]  }
 0x42a   : > { %v4046_v32 = vld [vmem:[#allocation2 + $0xf5] sm:$0xff] }
 0x42f   : > { %6349 = vmatmul.mubr.bf16.gmra.mrb[84].mxu0 %v2241_v63  ;;  %v4043_v63 = vld [vmem:[#allocation2 + $0xdd] sm:$0xff] }
 0x430   : > { %6801 = vmatmul.mubr.bf16.gmra.mrb[76].mxu1 %v4069_v29  ;;  %6368 = vmatprep.mubr.msk.bf16.mxu0 %vm8419_vm0, %v9963_v62  ;;  %v4072_v29 = vpack.c.bf16 %v4043_v63, %v4042_v21  ;;  %v4049_v21 = vld [vmem:[#allocation2 + $0x10d] sm:$0xff] }
 0x431   : > { %6804 = vmatprep.mubr.msk.bf16.mxu1 %vm8419_vm0, %v9963_v62 }
 0x437   : > { %6369 = vmatmul.mubr.bf16.vlgmr.msra.gmra.mrb[4].mxu0 %v9920_v52  ;;  %v8002_v52 = vld [vmem:[#allocation16 + $0x110] sm:$0xff]  }
 0x438   : > { %6805 = vmatmul.mubr.bf16.gmra.mrb[80].mxu1 %v4070_v28  ;;  %6453 = vmatpush3.bf16.msra.mxu0 %v8000_v48  ;;  %v4045_v28 = vld [vmem:[#allocation2 + $0xed] sm:$0xff] }
 0x439   : > { %6372 = vmatprep.mubr.msk.bf16.mxu0 %vm8419_vm0, %v9963_v62  ;;  %6808 = vmatprep.mubr.msk.bf16.mxu1 %vm8419_vm0, %v9963_v62  ;;  %v4073_v48 = vpack.c.bf16 %v4045_v28, %v4044_v35  ;;  %v4055_v28 = vld [vmem:[#allocation2 + $0x13d] sm:$0xff] }
 0x43a   : > { %6454 = vmatprep.subr.bf16.mxu0 %v9963_v62 }
 0x43c   : > { %6455 = vmatpush3.bf16.msra.mxu0 %v8001_v41  ;;  %v4047_v41 = vld [vmem:[#allocation2 + $0xfd] sm:$0xff] }
 0x43d   : > { %6456 = vmatprep.subr.bf16.mxu0 %v9963_v62 }
 0x43f   : > { %6373 = vmatmul.mubr.bf16.gmra.mrb[8].mxu0 %v9930_v27  ;;  %v8004_v27 = vld [vmem:[#allocation16 + $0x120] sm:$0xff]  }
 0x440   : > { %6809 = vmatmul.mubr.bf16.gmra.mrb[0].mxu1 %v4071_v8  ;;  %6376 = vmatprep.mubr.msk.bf16.mxu0 %vm8419_vm0, %v9963_v62  ;;  %v4074_v8 = vpack.c.bf16 %v4047_v41, %v4046_v32  ;;  %v4059_v32 = vld [vmem:[#allocation2 + $0x15d] sm:$0xff] }
 0x441   : > { %6812 = vmatprep.mubr.msk.bf16.mxu1 %vm8419_vm0, %v9963_v62  ;;  %6457 = vmatpush3.bf16.msra.mxu0 %v8002_v52  ;;  %v8007_v52 = vld [vmem:[#allocation16 + $0x138] sm:$0xff]  }
 0x442   : > { %6458 = vmatprep.subr.bf16.mxu0 %v9963_v62 }
 0x445   : > { %6459 = vmatpush3.bf16.msra.mxu0 %v8003_v44 }
 0x446   : > { %6460 = vmatprep.subr.bf16.mxu0 %v9963_v62 }
 0x447   : > { %6377 = vmatmul.mubr.bf16.gmra.mrb[12].mxu0 %v9940_v0  ;;  %v8006_v0 = vld [vmem:[#allocation16 + $0x130] sm:$0xff]  }
 0x448   : > { %6813 = vmatmul.mubr.bf16.gmra.mrb[4].mxu1 %v4072_v29  ;;  %6380 = vmatprep.mubr.msk.bf16.mxu0 %vm8419_vm0, %v9963_v62  ;;  %v4051_v29 = vld [vmem:[#allocation2 + $0x11d] sm:$0xff] }
 0x449   : > { %6816 = vmatprep.mubr.msk.bf16.mxu1 %vm8419_vm0, %v9963_v62  ;;  %6461 = vmatpush3.bf16.msra.mxu0 %v8004_v27  ;;  %v4053_v27 = vld [vmem:[#allocation2 + $0x12d] sm:$0xff] }
 0x44a   : > { %6462 = vmatprep.subr.bf16.mxu0 %v9963_v62 }
 0x44d   : > { %6463 = vmatpush3.bf16.msra.mxu0 %v8005_v34  ;;  %v4057_v34 = vld [vmem:[#allocation2 + $0x14d] sm:$0xff] }
 0x44e   : > { %6464 = vmatprep.subr.bf16.mxu0 %v9963_v62 }
 0x44f   : > { %6381 = vmatmul.mubr.bf16.gmra.mrb[16].mxu0 %v9950_v12  ;;  %v4048_v12 = vld [vmem:[#allocation2 + $0x105] sm:$0xff] }
 0x450   : > { %6817 = vmatmul.mubr.bf16.gmra.mrb[8].mxu1 %v4073_v48  ;;  %6384 = vmatprep.mubr.msk.bf16.mxu0 %vm8419_vm0, %v9963_v62  ;;  %v4075_v63 = vpack.c.bf16 %v4049_v21, %v4048_v12  ;;  %v4391_v21 = vld [vmem:[#allocation2 + $0x3e] sm:$0xff] }
 0x451   : > { %6820 = vmatprep.mubr.msk.bf16.mxu1 %vm8419_vm0, %v9963_v62  ;;  %6465 = vmatpush3.bf16.msra.mxu0 %v8006_v0 }
 0x452   : > { %6466 = vmatprep.subr.bf16.mxu0 %v9963_v62 }
 0x455   : > { %6467 = vmatpush3.bf16.msra.mxu0 %v8007_v52  ;;  %v4388_v52 = vld [vmem:[#allocation2 + $0x26] sm:$0xff] }
 0x457   : > { %6385 = vmatmul.mubr.bf16.gmra.mrb[20].mxu0 %v9959_v17  ;;  %v4050_v17 = vld [vmem:[#allocation2 + $0x115] sm:$0xff] }
 0x458   : > { %6821 = vmatmul.mubr.bf16.gmra.mrb[12].mxu1 %v4074_v8  ;;  %6388 = vmatprep.mubr.msk.bf16.mxu0 %vm8419_vm0, %v9963_v62  ;;  %v4076_v44 = vpack.c.bf16 %v4051_v29, %v4050_v17  ;;  %v4393_v17 = vld [vmem:[#allocation2 + $0x4e] sm:$0xff] }
 0x459   : > { %6824 = vmatprep.mubr.msk.bf16.mxu1 %vm8419_vm0, %v9963_v62 }
 0x45f   : > { %6389 = vmatmul.mubr.bf16.gmra.mrb[24].mxu0 %v9969_v23  ;;  %v4052_v23 = vld [vmem:[#allocation2 + $0x125] sm:$0xff] }
 0x460   : > { %6825 = vmatmul.mubr.bf16.gmra.mrb[16].mxu1 %v4075_v63  ;;  %6392 = vmatprep.mubr.msk.bf16.mxu0 %vm8419_vm0, %v9963_v62  ;;  %v4077_v35 = vpack.c.bf16 %v4053_v27, %v4052_v23  ;;  %v4397_v27 = vld [vmem:[#allocation2 + $0x6e] sm:$0xff] }
 0x461   : > { %6828 = vmatprep.mubr.msk.bf16.mxu1 %vm8419_vm0, %v9963_v62 }
 0x467   : > { %6393 = vmatmul.mubr.bf16.gmra.mrb[28].mxu0 %v9977_v1  ;;  %v4054_v1 = vld [vmem:[#allocation2 + $0x135] sm:$0xff] }
 0x468   : > { %6829 = vmatmul.mubr.bf16.gmra.mrb[20].mxu1 %v4076_v44  ;;  %6396 = vmatprep.mubr.msk.bf16.mxu0 %vm8419_vm0, %v9963_v62  ;;  %v4078_v48 = vpack.c.bf16 %v4055_v28, %v4054_v1  ;;  %v4395_v44 = vld [vmem:[#allocation2 + $0x5e] sm:$0xff] }
 0x469   : > { %6832 = vmatprep.mubr.msk.bf16.mxu1 %vm8419_vm0, %v9963_v62  ;;  %v4399_v1 = vld [vmem:[#allocation2 + $0x7e] sm:$0xff] }
 0x46f   : > { %6397 = vmatmul.mubr.bf16.gmra.mrb[32].mxu0 %v9985_v19  ;;  %v4056_v19 = vld [vmem:[#allocation2 + $0x145] sm:$0xff] }
 0x470   : > { %6833 = vmatmul.mubr.bf16.gmra.mrb[24].mxu1 %v4077_v35  ;;  %6400 = vmatprep.mubr.msk.bf16.mxu0 %vm8419_vm0, %v9963_v62  ;;  %v4079_v0 = vpack.c.bf16 %v4057_v34, %v4056_v19  ;;  %v2587_v34 = vld [vmem:[#allocation2 + $0x14a] sm:$0xff] }
 0x471   : > { %6836 = vmatprep.mubr.msk.bf16.mxu1 %vm8419_vm0, %v9963_v62 }
 0x477   : > { %6401 = vmatmul.mubr.bf16.gmra.mrb[36].mxu0 %v9993_v31  ;;  %v4058_v31 = vld [vmem:[#allocation2 + $0x155] sm:$0xff] }
 0x478   : > { %6837 = vmatmul.mubr.bf16.gmra.mrb[28].mxu1 %v4078_v48  ;;  %6404 = vmatprep.mubr.msk.bf16.mxu0 %vm8419_vm0, %v9963_v62  ;;  %v4080_v41 = vpack.c.bf16 %v4059_v32, %v4058_v31  ;;  %v4401_v48 = vld [vmem:[#allocation2 + $0x8e] sm:$0xff]  ;;  %v4403_v31 = vld [vmem:[#allocation2 + $0x9e] sm:$0xff] }
 0x479   : > { %6840 = vmatprep.mubr.msk.bf16.mxu1 %vm8419_vm0, %v9963_v62 }
 0x47f   : > { %6405 = vmatmul.mubr.bf16.gmra.mrb[40].mxu0 %v10001_v22  ;;  %v4060_v22 = vld [vmem:[#allocation2 + $0x165] sm:$0xf] }
 0x480   : > { %6841 = vmatmul.mubr.bf16.gmra.mrb[32].mxu1 %v4079_v0  ;;  %6408 = vmatprep.mubr.msk.bf16.mxu0 %vm8419_vm0, %v9963_v62  ;;  %v4081_v8 = vpack.c.bf16 %v4060_v22, %v4060_v22  ;;  %v4402_v0 = vld [vmem:[#allocation2 + $0x96] sm:$0xff]  ;;  %v4404_v22 = vld [vmem:[#allocation2 + $0xa6] sm:$0xff] }
 0x481   : > { %6844 = vmatprep.mubr.msk.bf16.mxu1 %vm8419_vm0, %v9963_v62 }
 0x487   : > { %6409 = vmatmul.mubr.bf16.gmra.mrb[44].mxu0 %v10008_v14  ;;  %v4389_v14 = vld [vmem:[#allocation2 + $0x2e] sm:$0xff] }
 0x488   : > { %6845 = vmatmul.mubr.bf16.gmra.mrb[36].mxu1 %v4080_v41  ;;  %6412 = vmatprep.mubr.msk.bf16.mxu0 %vm8419_vm0, %v9963_v62  ;;  %v4429_v12 = vpack.c.bf16 %v4389_v14, %v4388_v52  ;;  %v4436_v41 = vpack.c.bf16 %v4403_v31, %v4402_v0  ;;  %v4413_v0 = vld [vmem:[#allocation2 + $0xee] sm:$0xff] }
 0x489   : > { %6848 = vmatprep.mubr.msk.bf16.mxu1 %vm8419_vm0, %v9963_v62 }
 0x48f   : > { %6413 = vmatmul.mubr.bf16.gmra.mrb[48].mxu0 %v10015_v25  ;;  %v4390_v25 = vld [vmem:[#allocation2 + $0x36] sm:$0xff] }
 0x490   : > { %6849 = vmatmul.mubr.bf16.gmra.mrb[40].mxu1 %v4081_v8  ;;  %6416 = vmatprep.mubr.msk.bf16.mxu0 %vm8419_vm0, %v9963_v62  ;;  %v4430_v63 = vpack.c.bf16 %v4391_v21, %v4390_v25  ;;  %v4405_v8 = vld [vmem:[#allocation2 + $0xae] sm:$0xff]  ;;  %v2917_v25 = vld [vmem:[#allocation2 + $0x1b] sm:$0xff] }
 0x491   : > { %6868 = vmatprep.mubr.msk.bf16.mxu1 %vm8419_vm0, %v9963_v62  ;;  %v4437_v14 = vpack.c.bf16 %v4405_v8, %v4404_v22  ;;  %v4406_v21 = vld [vmem:[#allocation2 + $0xb6] sm:$0xff]  ;;  %v4415_v8 = vld [vmem:[#allocation2 + $0xfe] sm:$0xff] }
 0x492   : > { %v4414_v22 = vld [vmem:[#allocation2 + $0xf6] sm:$0xff] }
 0x497   : > { %6417 = vmatmul.mubr.bf16.gmra.mrb[52].mxu0 %v10023_v26  ;;  %v4392_v26 = vld [vmem:[#allocation2 + $0x46] sm:$0xff] }
 0x498   : > { %6869 = vmatmul.mubr.bf16.vlgmr.msra.gmra.mrb[44].mxu1 %v4429_v12  ;;  %6420 = vmatprep.mubr.msk.bf16.mxu0 %vm8419_vm0, %v9963_v62  ;;  %v4431_v29 = vpack.c.bf16 %v4393_v17, %v4392_v26  ;;  %v2916_v12 = vld [vmem:[#allocation2 + $0x13] sm:$0xff] }
 0x499   : > { %6872 = vmatprep.mubr.msk.bf16.mxu1 %vm8419_vm0, %v9963_v62  ;;  %v2957_v26 = vpack.c.bf16 %v2917_v25, %v2916_v12  ;;  %v2926_v12 = vld [vmem:[#allocation2 + $0x63] sm:$0xff]  ;;  %v2927_v25 = vld [vmem:[#allocation2 + $0x6b] sm:$0xff] }
 0x49f   : > { %6421 = vmatmul.mubr.bf16.gmra.mrb[56].mxu0 %v10032_v47  ;;  %v4394_v47 = vld [vmem:[#allocation2 + $0x56] sm:$0xff] }
 0x4a0   : > { %6873 = vmatmul.mubr.bf16.gmra.mrb[48].mxu1 %v4430_v63  ;;  %6424 = vmatprep.mubr.msk.bf16.mxu0 %vm8419_vm0, %v9963_v62  ;;  %v4432_v23 = vpack.c.bf16 %v4395_v44, %v4394_v47  ;;  %v4407_v63 = vld [vmem:[#allocation2 + $0xbe] sm:$0xff]  ;;  %v2919_v47 = vld [vmem:[#allocation2 + $0x2b] sm:$0xff] }
 0x4a1   : > { %6876 = vmatprep.mubr.msk.bf16.mxu1 %vm8419_vm0, %v9963_v62  ;;  %v4438_v17 = vpack.c.bf16 %v4407_v63, %v4406_v21  ;;  %v4408_v44 = vld [vmem:[#allocation2 + $0xc6] sm:$0xff]  ;;  %v4417_v63 = vld [vmem:[#allocation2 + $0x10e] sm:$0xff] }
 0x4a2   : > { %v4416_v21 = vld [vmem:[#allocation2 + $0x106] sm:$0xff] }
 0x4a7   : > { %6425 = vmatmul.mubr.bf16.gmra.mrb[60].mxu0 %v10041_v56  ;;  %v4396_v56 = vld [vmem:[#allocation2 + $0x66] sm:$0xff] }
 0x4a8   : > { %6877 = vmatmul.mubr.bf16.gmra.mrb[52].mxu1 %v4431_v29  ;;  %6428 = vmatprep.mubr.msk.bf16.mxu0 %vm8419_vm0, %v9963_v62  ;;  %v4433_v35 = vpack.c.bf16 %v4397_v27, %v4396_v56  ;;  %v2918_v29 = vld [vmem:[#allocation2 + $0x23] sm:$0xff] }
 0x4a9   : > { %6880 = vmatprep.mubr.msk.bf16.mxu1 %vm8419_vm0, %v9963_v62  ;;  %v2958_v56 = vpack.c.bf16 %v2919_v47, %v2918_v29  ;;  %v2928_v29 = vld [vmem:[#allocation2 + $0x73] sm:$0xff]  ;;  %v2929_v47 = vld [vmem:[#allocation2 + $0x7b] sm:$0xff] }
 0x4af   : > { %6429 = vmatmul.mubr.bf16.gmra.mrb[64].mxu0 %v10050_v2  ;;  %v4398_v2 = vld [vmem:[#allocation2 + $0x76] sm:$0xff] }
 0x4b0   : > { %6881 = vmatmul.mubr.bf16.gmra.mrb[56].mxu1 %v4432_v23  ;;  %6432 = vmatprep.mubr.msk.bf16.mxu0 %vm8419_vm0, %v9963_v62  ;;  %v4434_v28 = vpack.c.bf16 %v4399_v1, %v4398_v2  ;;  %v4409_v23 = vld [vmem:[#allocation2 + $0xce] sm:$0xff]  ;;  %v2921_v2 = vld [vmem:[#allocation2 + $0x3b] sm:$0xff] }
 0x4b1   : > { %6884 = vmatprep.mubr.msk.bf16.mxu1 %vm8419_vm0, %v9963_v62  ;;  %v4439_v27 = vpack.c.bf16 %v4409_v23, %v4408_v44  ;;  %v4410_v1 = vld [vmem:[#allocation2 + $0xd6] sm:$0xff]  ;;  %v4419_v23 = vld [vmem:[#allocation2 + $0x11e] sm:$0xff] }
 0x4b2   : > { %v4418_v44 = vld [vmem:[#allocation2 + $0x116] sm:$0xff] }
 0x4b7   : > { %6433 = vmatmul.mubr.bf16.gmra.mrb[68].mxu0 %v10057_v7  ;;  %v4400_v7 = vld [vmem:[#allocation2 + $0x86] sm:$0xff] }
 0x4b8   : > { %6885 = vmatmul.mubr.bf16.gmra.mrb[60].mxu1 %v4433_v35  ;;  %6436 = vmatprep.mubr.msk.bf16.mxu0 %vm8419_vm0, %v9963_v62  ;;  %v4435_v19 = vpack.c.bf16 %v4401_v48, %v4400_v7  ;;  %v2920_v35 = vld [vmem:[#allocation2 + $0x33] sm:$0xff] }
 0x4b9   : > { %6888 = vmatprep.mubr.msk.bf16.mxu1 %vm8419_vm0, %v9963_v62  ;;  %v2959_v7 = vpack.c.bf16 %v2921_v2, %v2920_v35  ;;  %v2930_v35 = vld [vmem:[#allocation2 + $0x83] sm:$0xff]  ;;  %v2931_v2 = vld [vmem:[#allocation2 + $0x8b] sm:$0xff] }
 0x4bf   : > { %6437 = vmatmul.mubr.bf16.gmra.mrb[72].mxu0 %v10064_v15  ;;  %v2586_v15 = vld [vmem:[#allocation2 + $0x142] sm:$0xff] }
 0x4c0   : > { %6889 = vmatmul.mubr.bf16.gmra.mrb[64].mxu1 %v4434_v28  ;;  %6440 = vmatprep.mubr.msk.bf16.mxu0 %vm8419_vm0, %v9963_v62  ;;  %v2608_v32 = vpack.c.bf16 %v2587_v34, %v2586_v15  ;;  %v4411_v28 = vld [vmem:[#allocation2 + $0xde] sm:$0xff]  ;;  %v2923_v15 = vld [vmem:[#allocation2 + $0x4b] sm:$0xff] }
 0x4c1   : > { %6892 = vmatprep.mubr.msk.bf16.mxu1 %vm8419_vm0, %v9963_v62  ;;  %v4440_v48 = vpack.c.bf16 %v4411_v28, %v4410_v1  ;;  %v4412_v34 = vld [vmem:[#allocation2 + $0xe6] sm:$0xff]  ;;  %v4421_v28 = vld [vmem:[#allocation2 + $0x12e] sm:$0xff] }
 0x4c2   : > { %v4420_v1 = vld [vmem:[#allocation2 + $0x126] sm:$0xff] }
 0x4c7   : > { %6441 = vmatmul.mubr.bf16.gmra.mrb[76].mxu0 %v10071_v57  ;;  %v2588_v57 = vld [vmem:[#allocation2 + $0x152] sm:$0xf] }
 0x4c8   : > { %6893 = vmatmul.mubr.bf16.gmra.mrb[68].mxu1 %v4435_v19  ;;  %6444 = vmatprep.mubr.msk.bf16.mxu0 %vm8419_vm0, %v9963_v62  ;;  %v2609_v52 = vpack.c.bf16 %v2588_v57, %v2588_v57  ;;  %v2922_v19 = vld [vmem:[#allocation2 + $0x43] sm:$0xff]  ;;  %v2925_v57 = vld [vmem:[#allocation2 + $0x5b] sm:$0xff] }
 0x4c9   : > { %6896 = vmatprep.mubr.msk.bf16.mxu1 %vm8419_vm0, %v9963_v62  ;;  %v2960_v31 = vpack.c.bf16 %v2923_v15, %v2922_v19  ;;  %v2932_v19 = vld [vmem:[#allocation2 + $0x93] sm:$0xff]  ;;  %v2933_v15 = vld [vmem:[#allocation2 + $0x9b] sm:$0xff] }
 0x4cf   : > { %6445 = vmatmul.mubr.bf16.gmra.mrb[80].mxu0 %v2608_v32  ;;  %v4441_v32 = vpack.c.bf16 %v4413_v0, %v4412_v34  ;;  %v4422_v34 = vld [vmem:[#allocation2 + $0x136] sm:$0xff]  ;;  %v4423_v0 = vld [vmem:[#allocation2 + $0x13e] sm:$0xff] }
 0x4d0   : > { %6897 = vmatmul.mubr.bf16.gmra.mrb[72].mxu1 %v4436_v41  ;;  %6448 = vmatprep.mubr.msk.bf16.mxu0 %vm8419_vm0, %v9963_v62  ;;  %v2924_v41 = vld [vmem:[#allocation2 + $0x53] sm:$0xff] }
 0x4d1   : > { %6900 = vmatprep.mubr.msk.bf16.mxu1 %vm8419_vm0, %v9963_v62 }
 0x4d7   : > { %6449 = vmatmul.mubr.bf16.gmra.mrb[84].mxu0 %v2609_v52  ;;  %v2961_v52 = vpack.c.bf16 %v2925_v57, %v2924_v41  ;;  %v2934_v41 = vld [vmem:[#allocation2 + $0xa3] sm:$0xff]  ;;  %v2935_v57 = vld [vmem:[#allocation2 + $0xab] sm:$0xff] }
 0x4d8   : > { %6901 = vmatmul.mubr.bf16.gmra.mrb[76].mxu1 %v4437_v14  ;;  %6468 = vmatprep.mubr.msk.bf16.mxu0 %vm8419_vm0, %v9963_v62  ;;  %v4442_v14 = vpack.c.bf16 %v4415_v8, %v4414_v22  ;;  %v4424_v22 = vld [vmem:[#allocation2 + $0x146] sm:$0xff]  ;;  %v4425_v8 = vld [vmem:[#allocation2 + $0x14e] sm:$0xff] }
 0x4d9   : > { %6904 = vmatprep.mubr.msk.bf16.mxu1 %vm8419_vm0, %v9963_v62 }
 0x4df   : > { %6469 = vmatmul.mubr.bf16.vlgmr.msra.gmra.mrb[4].mxu0 %v2957_v26  ;;  %v2962_v26 = vpack.c.bf16 %v2927_v25, %v2926_v12  ;;  %v4426_v12 = vld [vmem:[#allocation2 + $0x156] sm:$0xff]  ;;  %v4427_v25 = vld [vmem:[#allocation2 + $0x15e] sm:$0xff] }
 0x4e0   : > { %6905 = vmatmul.mubr.bf16.gmra.mrb[80].mxu1 %v4438_v17  ;;  %6472 = vmatprep.mubr.msk.bf16.mxu0 %vm8419_vm0, %v9963_v62  ;;  %v4443_v17 = vpack.c.bf16 %v4417_v63, %v4416_v21  ;;  %v4448_v21 = vpack.c.bf16 %v4427_v25, %v4426_v12  ;;  %v4428_v63 = vld [vmem:[#allocation2 + $0x166] sm:$0xf] }
 0x4e1   : > { %6908 = vmatprep.mubr.msk.bf16.mxu1 %vm8419_vm0, %v9963_v62 }
 0x4e7   : > { %6473 = vmatmul.mubr.bf16.gmra.mrb[8].mxu0 %v2958_v56  ;;  %v2963_v56 = vpack.c.bf16 %v2929_v47, %v2928_v29 }
 0x4e8   : > { %6909 = vmatmul.mubr.bf16.gmra.mrb[0].mxu1 %v4439_v27  ;;  %6476 = vmatprep.mubr.msk.bf16.mxu0 %vm8419_vm0, %v9963_v62  ;;  %v4444_v27 = vpack.c.bf16 %v4419_v23, %v4418_v44 }
 0x4e9   : > { %6912 = vmatprep.mubr.msk.bf16.mxu1 %vm8419_vm0, %v9963_v62 }
 0x4ef   : > { %6477 = vmatmul.mubr.bf16.gmra.mrb[12].mxu0 %v2959_v7  ;;  %v2964_v7 = vpack.c.bf16 %v2931_v2, %v2930_v35 }
 0x4f0   : > { %6913 = vmatmul.mubr.bf16.gmra.mrb[4].mxu1 %v4440_v48  ;;  %6480 = vmatprep.mubr.msk.bf16.mxu0 %vm8419_vm0, %v9963_v62  ;;  %v4445_v48 = vpack.c.bf16 %v4421_v28, %v4420_v1 }
 0x4f1   : > { %6916 = vmatprep.mubr.msk.bf16.mxu1 %vm8419_vm0, %v9963_v62 }
 0x4f7   : > { %6481 = vmatmul.mubr.bf16.gmra.mrb[16].mxu0 %v2960_v31  ;;  %v2965_v31 = vpack.c.bf16 %v2933_v15, %v2932_v19 }
 0x4f8   : > { %6917 = vmatmul.mubr.bf16.gmra.mrb[8].mxu1 %v4441_v32  ;;  %6484 = vmatprep.mubr.msk.bf16.mxu0 %vm8419_vm0, %v9963_v62  ;;  %v4446_v32 = vpack.c.bf16 %v4423_v0, %v4422_v34 }
 0x4f9   : > { %6920 = vmatprep.mubr.msk.bf16.mxu1 %vm8419_vm0, %v9963_v62 }
 0x4ff   : > { %6485 = vmatmul.mubr.bf16.gmra.mrb[20].mxu0 %v2961_v52  ;;  %v2966_v52 = vpack.c.bf16 %v2935_v57, %v2934_v41 }
 0x500   : > { %6921 = vmatmul.mubr.bf16.gmra.mrb[12].mxu1 %v4442_v14  ;;  %6488 = vmatprep.mubr.msk.bf16.mxu0 %vm8419_vm0, %v9963_v62  ;;  %v4447_v14 = vpack.c.bf16 %v4425_v8, %v4424_v22 }
 0x501   : > { %6924 = vmatprep.mubr.msk.bf16.mxu1 %vm8419_vm0, %v9963_v62 }
 0x507   : > { %6489 = vmatmul.mubr.bf16.gmra.mrb[24].mxu0 %v2962_v26  ;;  %v4449_v26 = vpack.c.bf16 %v4428_v63, %v4428_v63 }
 0x508   : > { %6925 = vmatmul.mubr.bf16.gmra.mrb[16].mxu1 %v4443_v17  ;;  %6492 = vmatprep.mubr.msk.bf16.mxu0 %vm8419_vm0, %v9963_v62 }
 0x509   : > { %6928 = vmatprep.mubr.msk.bf16.mxu1 %vm8419_vm0, %v9963_v62 }
 0x50f   : > { %6493 = vmatmul.mubr.bf16.gmra.mrb[28].mxu0 %v2963_v56 }
 0x510   : > { %6929 = vmatmul.mubr.bf16.gmra.mrb[20].mxu1 %v4444_v27  ;;  %6496 = vmatprep.mubr.msk.bf16.mxu0 %vm8419_vm0, %v9963_v62 }
 0x511   : > { %6932 = vmatprep.mubr.msk.bf16.mxu1 %vm8419_vm0, %v9963_v62 }
 0x517   : > { %6497 = vmatmul.mubr.bf16.gmra.mrb[32].mxu0 %v2964_v7 }
 0x518   : > { %6933 = vmatmul.mubr.bf16.gmra.mrb[24].mxu1 %v4445_v48  ;;  %6500 = vmatprep.mubr.msk.bf16.mxu0 %vm8419_vm0, %v9963_v62 }
 0x519   : > { %6936 = vmatprep.mubr.msk.bf16.mxu1 %vm8419_vm0, %v9963_v62 }
 0x51f   : > { %6501 = vmatmul.mubr.bf16.gmra.mrb[36].mxu0 %v2965_v31 }
 0x520   : > { %6937 = vmatmul.mubr.bf16.gmra.mrb[28].mxu1 %v4446_v32  ;;  %6504 = vmatprep.mubr.msk.bf16.mxu0 %vm8419_vm0, %v9963_v62 }
 0x521   : > { %6940 = vmatprep.mubr.msk.bf16.mxu1 %vm8419_vm0, %v9963_v62 }
 0x527   : > { %6505 = vmatmul.mubr.bf16.gmra.mrb[40].mxu0 %v2966_v52 }
 0x528   : > { %6941 = vmatmul.mubr.bf16.gmra.mrb[32].mxu1 %v4447_v14 }
 0x529   : > { %6944 = vmatprep.mubr.msk.bf16.mxu1 %vm8419_vm0, %v9963_v62 }
 0x530   : > { %6945 = vmatmul.mubr.bf16.gmra.mrb[36].mxu1 %v4448_v21 }
 0x531   : > { %6948 = vmatprep.mubr.msk.bf16.mxu1 %vm8419_vm0, %v9963_v62 }
 0x538   : > { %6949 = vmatmul.mubr.bf16.gmra.mrb[40].mxu1 %v4449_v26 }
 0x55a   : > { %v10232_v17 = vpop.f32.mrb[44].mxu0 }
 0x55b   : > { %v6410_v29 = vpop.f32.mrb[45].mxu0 }
 0x55c   : > { %v10234_v47 = vpop.f32.mrb[46].mxu0 }
 0x55d   : > { %v6411_v44 = vpop.f32.mrb[47].mxu0 }
 0x562   : > { %v10236_v23 = vpop.f32.mrb[48].mxu0 }
 0x563   : > { %v6414_v56 = vpop.f32.mrb[49].mxu0 }
 0x564   : > { %v10238_v27 = vpop.f32.mrb[50].mxu0 }
 0x565   : > { %v6415_v35 = vpop.f32.mrb[51].mxu0 }
 0x56a   : > { %v10240_v2 = vpop.f32.mrb[52].mxu0 }
 0x56b   : > { %v10242_v1 = vpop.f32.mrb[44].mxu1  ;;  %v6418_v62 = vpop.f32.mrb[53].mxu0 }
 0x56c   : > { %v6870_v28 = vpop.f32.mrb[45].mxu1  ;;  %v10244_v7 = vpop.f32.mrb[54].mxu0 }
 0x56d   : > { %v10246_v48 = vpop.f32.mrb[46].mxu1  ;;  %v6419_v19 = vpop.f32.mrb[55].mxu0 }
 0x56e   : > { %v6871_v15 = vpop.f32.mrb[47].mxu1 }
 0x572   : > { %v10248_v34 = vpop.f32.mrb[56].mxu0 }
 0x573   : > { %v10250_v0 = vpop.f32.mrb[48].mxu1  ;;  %v6422_v31 = vpop.f32.mrb[57].mxu0 }
 0x574   : > { %v6874_v32 = vpop.f32.mrb[49].mxu1  ;;  %v10252_v41 = vpop.f32.mrb[58].mxu0 }
 0x575   : > { %v10254_v57 = vpop.f32.mrb[50].mxu1  ;;  %v6423_v22 = vpop.f32.mrb[59].mxu0 }
 0x576   : > { %v6875_v8 = vpop.f32.mrb[51].mxu1 }
 0x57a   : > { %v10256_v52 = vpop.f32.mrb[60].mxu0 }
 0x57b   : > { %v10258_v14 = vpop.f32.mrb[52].mxu1  ;;  %v6426_v12 = vpop.f32.mrb[61].mxu0 }
 0x57c   : > { %v6878_v25 = vpop.f32.mrb[53].mxu1  ;;  %v10260_v21 = vpop.f32.mrb[62].mxu0 }
 0x57d   : > { %v10262_v63 = vpop.f32.mrb[54].mxu1  ;;  %v6427_v26 = vpop.f32.mrb[63].mxu0 }
 0x57e   : > { %v6879_v29 = vpop.f32.mrb[55].mxu1 }
 0x582   : > { %v10264_v44 = vpop.f32.mrb[64].mxu0 }
 0x583   : > { %v10266_v56 = vpop.f32.mrb[56].mxu1  ;;  %v6430_v35 = vpop.f32.mrb[65].mxu0 }
 0x584   : > { %v6882_v62 = vpop.f32.mrb[57].mxu1  ;;  %v10268_v28 = vpop.f32.mrb[66].mxu0 }
 0x585   : > { %v10270_v19 = vpop.f32.mrb[58].mxu1  ;;  %v6431_v15 = vpop.f32.mrb[67].mxu0 }
 0x586   : > { %v6883_v31 = vpop.f32.mrb[59].mxu1 }
 0x58a   : > { %v10272_v32 = vpop.f32.mrb[68].mxu0 }
 0x58b   : > { %v10274_v22 = vpop.f32.mrb[60].mxu1  ;;  %v6434_v8 = vpop.f32.mrb[69].mxu0 }
 0x58c   : > { %v6886_v12 = vpop.f32.mrb[61].mxu1  ;;  %v10276_v25 = vpop.f32.mrb[70].mxu0 }
 0x58d   : > { %v10278_v26 = vpop.f32.mrb[62].mxu1  ;;  %v6435_v29 = vpop.f32.mrb[71].mxu0 }
 0x58e   : > { %v6887_v16 = vpop.f32.mrb[63].mxu1 }
 0x592   : > { %v10280_v35 = vpop.f32.mrb[72].mxu0 }
 0x593   : > { %v10282_v62 = vpop.f32.mrb[64].mxu1  ;;  %v6438_v24 = vpop.f32.mrb[73].mxu0 }
 0x594   : > { %v6890_v33 = vpop.f32.mrb[65].mxu1  ;;  %v10284_v15 = vpop.f32.mrb[74].mxu0 }
 0x595   : > { %v10286_v31 = vpop.f32.mrb[66].mxu1  ;;  %v6439_v45 = vpop.f32.mrb[75].mxu0 }
 0x596   : > { %v6891_v49 = vpop.f32.mrb[67].mxu1 }
 0x59a   : > { %v10288_v8 = vpop.f32.mrb[76].mxu0 }
 0x59b   : > { %v10290_v12 = vpop.f32.mrb[68].mxu1  ;;  %v6442_v40 = vpop.f32.mrb[77].mxu0 }
 0x59c   : > { %v6894_v42 = vpop.f32.mrb[69].mxu1  ;;  %v10292_v29 = vpop.f32.mrb[78].mxu0 }
 0x59d   : > { %10880 = vst [vmem:[#allocation44_spill] sm:$0xff] %v10292_v29  ;;  %v10294_v16 = vpop.f32.mrb[70].mxu1  ;;  %v6443_v9 = vpop.f32.mrb[79].mxu0 }
 0x59e   : > { %v6895_v20 = vpop.f32.mrb[71].mxu1 }
 0x5a2   : > { %v10296_v24 = vpop.f32.mrb[80].mxu0 }
 0x5a3   : > { %10881 = vst [vmem:[#allocation72_spill] sm:$0xff] %v10296_v24  ;;  %v10298_v33 = vpop.f32.mrb[72].mxu1  ;;  %v6446_v46 = vpop.f32.mrb[81].mxu0 }
 0x5a4   : > { %v6898_v18 = vpop.f32.mrb[73].mxu1  ;;  %v10300_v45 = vpop.f32.mrb[82].mxu0 }
 0x5a5   : > { %10882 = vst [vmem:[#allocation47_spill] sm:$0xff] %v10300_v45  ;;  %v10302_v49 = vpop.f32.mrb[74].mxu1  ;;  %v6447_v53 = vpop.f32.mrb[83].mxu0 }
 0x5a6   : > { %v6899_v58 = vpop.f32.mrb[75].mxu1 }
 0x5aa   : > { %v10304_v40 = vpop.f32.mrb[84].mxu0 }
 0x5ab   : > { %10883 = vst [vmem:[#allocation53_spill] sm:$0xff] %v10304_v40  ;;  %v10306_v42 = vpop.f32.mrb[76].mxu1  ;;  %v6450_v10 = vpop.f32.mrb[85].mxu0  ;;  %v10884_v40 = vld [vmem:[#allocation35_spill] sm:$0xff] }
 0x5ac   : > { %v6902_v11 = vpop.f32.mrb[77].mxu1  ;;  %v2872_v9 = vpop.f32.mrb[86].mxu0 }
 0x5ad   : > { %v10308_v20 = vpop.f32.mrb[78].mxu1  ;;  %v6451_v60 = vpop.f32.mrb[87].mxu0 }
 0x5ae   : > { %v6903_v61 = vpop.f32.mrb[79].mxu1  ;;  %v10885_v60 = vld [vmem:[#allocation37_spill] sm:$0xff] }
 0x5b2   : > { %v3077_v46 = vpop.f32.mrb[4].mxu0 }
 0x5b3   : > { %v10310_v18 = vpop.f32.mrb[80].mxu1  ;;  %v6968_v36 = vadd.f32 %v10242_v1, %v3077_v46  ;;  %v6470_v45 = vpop.f32.mrb[5].mxu0 }
 0x5b4   : > { %v6906_v53 = vpop.f32.mrb[81].mxu1  ;;  %v3080_v58 = vpop.f32.mrb[6].mxu0 }
 0x5b5   : > { %v10313_v50 = vpop.f32.mrb[82].mxu1  ;;  %v4962_v24 = vmul.f32 %v6968_v36, %v10884_v40  ;;  %v6969_v11 = vadd.f32 %v10246_v48, %v3080_v58  ;;  %v6471_v10 = vpop.f32.mrb[7].mxu0 }
 0x5b6   : > { %v6907_v9 = vpop.f32.mrb[83].mxu1 }
 0x5b7   : > { %v5649_v3 = vpack.c.bf16 %v6969_v11, %v6968_v36  ;;  %v4963_v51 = vmul.f32 %v6969_v11, %v10885_v60  ;;  %v5055_v61 = vmul.f32 %v6968_v36, %v4962_v24  ;;  %v10886_v60 = vld [vmem:[#allocation39_spill] sm:$0xff] }
 0x5b9   : > { %5650 = vst [vmem:[%s10320_s19] sm:$0xff] %v5649_v3   ;;  %v5004_v1 = vadd.f32 %v4963_v51, %v4962_v24  ;;  %v5056_v45 = vmul.f32 %v6969_v11, %v4963_v51 }
 0x5ba   : > { %v3085_v46 = vpop.f32.mrb[8].mxu0 }
 0x5bb   : > { %v4629_v53 = vpop.f32.mrb[0].mxu1  ;;  %v5096_v38 = vadd.f32 %v5056_v45, %v5055_v61  ;;  %v6970_v40 = vadd.f32 %v10250_v0, %v3085_v46  ;;  %v6474_v58 = vpop.f32.mrb[9].mxu0  ;;  %v10887_v46 = vld [vmem:[#allocation46_spill] sm:$0xff] }
 0x5bc   : > { %v10325_v48 = vadd.f32 %v4629_v53, %v10232_v17  ;;  %v6910_v10 = vpop.f32.mrb[1].mxu1  ;;  %v3088_v9 = vpop.f32.mrb[10].mxu0  ;;  %v8008_v17 = vld [vmem:[#allocation2] sm:$0xff] }
 0x5bd   : > { %v4632_v36 = vpop.f32.mrb[2].mxu1  ;;  %v4964_v29 = vmul.f32 %v6970_v40, %v10886_v60  ;;  %v6971_v3 = vadd.f32 %v10254_v57, %v3088_v9  ;;  %v6475_v24 = vpop.f32.mrb[11].mxu0  ;;  %542 = vst [vmem:[%s10334_s24] sm:$0xff] %v8008_v17 }
 0x5be   : > { %v10330_v51 = vadd.f32 %v4632_v36, %v10234_v47  ;;  %v6911_v11 = vpop.f32.mrb[3].mxu1 }
 0x5bf   : > { %v5005_v0 = vadd.f32 %v5004_v1, %v4964_v29  ;;  %v5057_v61 = vmul.f32 %v6970_v40, %v4964_v29  ;;  %v5654_v45 = vpack.c.bf16 %v6971_v3, %v6970_v40  ;;  %v4965_v53 = vmul.f32 %v6971_v3, %v10887_v46  ;;  %v10888_v46 = vld [vmem:[#allocation45_spill] sm:$0xff] }
 0x5c0   : > { %v5699_v57 = vpack.c.bf16 %v10330_v51, %v10325_v48 }
 0x5c1   : > { %v5097_v58 = vadd.f32 %v5096_v38, %v5057_v61  ;;  %5765 = vst [vmem:[%s10320_s19 + $0x8] sm:$0xff] %v5654_v45   ;;  %v5006_v47 = vadd.f32 %v5005_v0, %v4965_v53  ;;  %v5058_v10 = vmul.f32 %v6971_v3, %v4965_v53 }
 0x5c2   : > { %5774 = vst [vmem:[%s10320_s19 + $0x50] sm:$0xff] %v5699_v57   ;;  %v3093_v9 = vpop.f32.mrb[12].mxu0  ;;  %v10889_v57 = vld [vmem:[#allocation49_spill] sm:$0xff] }
 0x5c3   : > { %v4637_v36 = vpop.f32.mrb[4].mxu1  ;;  %v6972_v60 = vadd.f32 %v10258_v14, %v3093_v9  ;;  %v6478_v1 = vpop.f32.mrb[13].mxu0  ;;  %v5098_v40 = vadd.f32 %v5097_v58, %v5058_v10 }
 0x5c4   : > { %v10344_v24 = vadd.f32 %v4637_v36, %v10236_v23  ;;  %v6914_v29 = vpop.f32.mrb[5].mxu1  ;;  %v3096_v11 = vpop.f32.mrb[14].mxu0 }
 0x5c5   : > { %v4640_v17 = vpop.f32.mrb[6].mxu1  ;;  %v4966_v38 = vmul.f32 %v6972_v60, %v10888_v46  ;;  %v6973_v0 = vadd.f32 %v10262_v63, %v3096_v11  ;;  %v6479_v61 = vpop.f32.mrb[15].mxu0 }
 0x5c6   : > { %v10349_v3 = vadd.f32 %v4640_v17, %v10238_v27  ;;  %v6915_v45 = vpop.f32.mrb[7].mxu1  ;;  %v10890_v61 = vld [vmem:[#allocation48_spill] sm:$0xff] }
 0x5c7   : > { %v5007_v14 = vadd.f32 %v5006_v47, %v4966_v38  ;;  %v5059_v53 = vmul.f32 %v6972_v60, %v4966_v38  ;;  %v5659_v23 = vpack.c.bf16 %v6973_v0, %v6972_v60  ;;  %v4967_v9 = vmul.f32 %v6973_v0, %v10889_v57  ;;  %v10891_v57 = vld [vmem:[#allocation51_spill] sm:$0xff] }
 0x5c8   : > { %v5704_v58 = vpack.c.bf16 %v10349_v3, %v10344_v24 }
 0x5c9   : > { %v5099_v10 = vadd.f32 %v5098_v40, %v5059_v53  ;;  %5766 = vst [vmem:[%s10320_s19 + $0x10] sm:$0xff] %v5659_v23   ;;  %v5008_v36 = vadd.f32 %v5007_v14, %v4967_v9  ;;  %v5060_v1 = vmul.f32 %v6973_v0, %v4967_v9 }
 0x5ca   : > { %5775 = vst [vmem:[%s10320_s19 + $0x58] sm:$0xff] %v5704_v58   ;;  %v3101_v29 = vpop.f32.mrb[16].mxu0 }
 0x5cb   : > { %v4645_v63 = vpop.f32.mrb[8].mxu1  ;;  %v6974_v27 = vadd.f32 %v10266_v56, %v3101_v29  ;;  %v6482_v47 = vpop.f32.mrb[17].mxu0  ;;  %v5100_v17 = vadd.f32 %v5099_v10, %v5060_v1 }
 0x5cc   : > { %v10358_v11 = vadd.f32 %v4645_v63, %v10240_v2  ;;  %v6918_v60 = vpop.f32.mrb[9].mxu1  ;;  %v3104_v46 = vpop.f32.mrb[18].mxu0 }
 0x5cd   : > { %v4648_v38 = vpop.f32.mrb[10].mxu1  ;;  %v4968_v40 = vmul.f32 %v6974_v27, %v10890_v61  ;;  %v6975_v45 = vadd.f32 %v10270_v19, %v3104_v46  ;;  %v6483_v14 = vpop.f32.mrb[19].mxu0 }
 0x5ce   : > { %v10363_v0 = vadd.f32 %v4648_v38, %v10244_v7  ;;  %v6919_v53 = vpop.f32.mrb[11].mxu1 }
 0x5cf   : > { %v5009_v56 = vadd.f32 %v5008_v36, %v4968_v40  ;;  %v5061_v23 = vmul.f32 %v6974_v27, %v4968_v40  ;;  %v5664_v2 = vpack.c.bf16 %v6975_v45, %v6974_v27  ;;  %v4969_v9 = vmul.f32 %v6975_v45, %v10891_v57 }
 0x5d0   : > { %v5709_v58 = vpack.c.bf16 %v10363_v0, %v10358_v11 }
 0x5d1   : > { %v5101_v10 = vadd.f32 %v5100_v17, %v5061_v23  ;;  %5767 = vst [vmem:[%s10320_s19 + $0x18] sm:$0xff] %v5664_v2   ;;  %v5010_v1 = vadd.f32 %v5009_v56, %v4969_v9  ;;  %v5062_v29 = vmul.f32 %v6975_v45, %v4969_v9 }
 0x5d2   : > { %5776 = vst [vmem:[%s10320_s19 + $0x60] sm:$0xff] %v5709_v58   ;;  %v3109_v63 = vpop.f32.mrb[20].mxu0 }
 0x5d3   : > { %v4653_v19 = vpop.f32.mrb[12].mxu1  ;;  %v6976_v7 = vadd.f32 %v10274_v22, %v3109_v63  ;;  %v6486_v36 = vpop.f32.mrb[21].mxu0  ;;  %v5102_v60 = vadd.f32 %v5101_v10, %v5062_v29 }
 0x5d4   : > { %v10372_v47 = vadd.f32 %v4653_v19, %v10248_v34  ;;  %v6922_v27 = vpop.f32.mrb[13].mxu1  ;;  %v3112_v46 = vpop.f32.mrb[22].mxu0 }
 0x5d5   : > { %v4656_v38 = vpop.f32.mrb[14].mxu1  ;;  %v4970_v17 = vmul.f32 %v6976_v7, %v10851_v37  ;;  %v6977_v61 = vadd.f32 %v10278_v26, %v3112_v46  ;;  %v6487_v45 = vpop.f32.mrb[23].mxu0 }
 0x5d6   : > { %v10377_v40 = vadd.f32 %v4656_v38, %v10252_v41  ;;  %v6923_v14 = vpop.f32.mrb[15].mxu1 }
 0x5d7   : > { %v5011_v22 = vadd.f32 %v5010_v1, %v4970_v17  ;;  %v5063_v53 = vmul.f32 %v6976_v7, %v4970_v17  ;;  %v5669_v34 = vpack.c.bf16 %v6977_v61, %v6976_v7  ;;  %v4971_v56 = vmul.f32 %v6977_v61, %v10852_v30 }
 0x5d8   : > { %v5714_v23 = vpack.c.bf16 %v10377_v40, %v10372_v47 }
 0x5d9   : > { %v5103_v2 = vadd.f32 %v5102_v60, %v5063_v53  ;;  %5768 = vst [vmem:[%s10320_s19 + $0x20] sm:$0xff] %v5669_v34   ;;  %v5012_v57 = vadd.f32 %v5011_v22, %v4971_v56  ;;  %v5064_v9 = vmul.f32 %v6977_v61, %v4971_v56 }
 0x5da   : > { %5777 = vst [vmem:[%s10320_s19 + $0x68] sm:$0xff] %v5714_v23   ;;  %v3117_v37 = vpop.f32.mrb[24].mxu0 }
 0x5db   : > { %v4661_v26 = vpop.f32.mrb[16].mxu1  ;;  %v6978_v41 = vadd.f32 %v10282_v62, %v3117_v37  ;;  %v6490_v10 = vpop.f32.mrb[25].mxu0  ;;  %v5104_v29 = vadd.f32 %v5103_v2, %v5064_v9 }
 0x5dc   : > { %v10386_v58 = vadd.f32 %v4661_v26, %v10256_v52  ;;  %v6926_v1 = vpop.f32.mrb[17].mxu1  ;;  %v3120_v30 = vpop.f32.mrb[26].mxu0 }
 0x5dd   : > { %v4664_v63 = vpop.f32.mrb[18].mxu1  ;;  %v4972_v19 = vmul.f32 %v6978_v41, %v10853_v55  ;;  %v6979_v7 = vadd.f32 %v10286_v31, %v3120_v30  ;;  %v6491_v27 = vpop.f32.mrb[27].mxu0 }
 0x5de   : > { %v10391_v36 = vadd.f32 %v4664_v63, %v10260_v21  ;;  %v6927_v60 = vpop.f32.mrb[19].mxu1 }
 0x5df   : > { %v5013_v62 = vadd.f32 %v5012_v57, %v4972_v19  ;;  %v5065_v46 = vmul.f32 %v6978_v41, %v4972_v19  ;;  %v5674_v52 = vpack.c.bf16 %v6979_v7, %v6978_v41  ;;  %v4973_v38 = vmul.f32 %v6979_v7, %v10854_v6 }
 0x5e0   : > { %v5719_v17 = vpack.c.bf16 %v10391_v36, %v10386_v58 }
 0x5e1   : > { %v5105_v61 = vadd.f32 %v5104_v29, %v5065_v46  ;;  %5769 = vst [vmem:[%s10320_s19 + $0x28] sm:$0xff] %v5674_v52   ;;  %v5014_v45 = vadd.f32 %v5013_v62, %v4973_v38  ;;  %v5066_v14 = vmul.f32 %v6979_v7, %v4973_v38 }
 0x5e2   : > { %5778 = vst [vmem:[%s10320_s19 + $0x70] sm:$0xff] %v5719_v17   ;;  %v3125_v55 = vpop.f32.mrb[28].mxu0 }
 0x5e3   : > { %v4669_v31 = vpop.f32.mrb[20].mxu1  ;;  %v6980_v21 = vadd.f32 %v10290_v12, %v3125_v55  ;;  %v6494_v53 = vpop.f32.mrb[29].mxu0  ;;  %v5106_v56 = vadd.f32 %v5105_v61, %v5066_v14 }
 0x5e4   : > { %v10400_v22 = vadd.f32 %v4669_v31, %v10264_v44  ;;  %v6930_v34 = vpop.f32.mrb[21].mxu1  ;;  %v3128_v6 = vpop.f32.mrb[30].mxu0 }
 0x5e5   : > { %v4672_v23 = vpop.f32.mrb[22].mxu1  ;;  %v4974_v2 = vmul.f32 %v6980_v21, %v10855_v39  ;;  %v6981_v57 = vadd.f32 %v10294_v16, %v3128_v6  ;;  %v6495_v37 = vpop.f32.mrb[31].mxu0 }
 0x5e6   : > { %v10405_v9 = vadd.f32 %v4672_v23, %v10268_v28  ;;  %v6931_v26 = vpop.f32.mrb[23].mxu1 }
 0x5e7   : > { %v5015_v12 = vadd.f32 %v5014_v45, %v4974_v2  ;;  %v5067_v41 = vmul.f32 %v6980_v21, %v4974_v2  ;;  %v5679_v44 = vpack.c.bf16 %v6981_v57, %v6980_v21  ;;  %v4975_v10 = vmul.f32 %v6981_v57, %v10856_v13 }
 0x5e8   : > { %v5724_v1 = vpack.c.bf16 %v10405_v9, %v10400_v22 }
 0x5e9   : > { %v5107_v29 = vadd.f32 %v5106_v56, %v5067_v41  ;;  %5770 = vst [vmem:[%s10320_s19 + $0x30] sm:$0xff] %v5679_v44   ;;  %v5016_v30 = vadd.f32 %v5015_v12, %v4975_v10  ;;  %v5068_v63 = vmul.f32 %v6981_v57, %v4975_v10 }
 0x5ea   : > { %5779 = vst [vmem:[%s10320_s19 + $0x78] sm:$0xff] %v5724_v1   ;;  %v3133_v39 = vpop.f32.mrb[32].mxu0 }
 0x5eb   : > { %v4677_v16 = vpop.f32.mrb[24].mxu1  ;;  %v6982_v28 = vadd.f32 %v10298_v33, %v3133_v39  ;;  %v6498_v7 = vpop.f32.mrb[33].mxu0  ;;  %v5108_v60 = vadd.f32 %v5107_v29, %v5068_v63 }
 0x5ec   : > { %v10414_v19 = vadd.f32 %v4677_v16, %v10272_v32  ;;  %v6934_v27 = vpop.f32.mrb[25].mxu1  ;;  %v3136_v13 = vpop.f32.mrb[34].mxu0 }
 0x5ed   : > { %v4680_v62 = vpop.f32.mrb[26].mxu1  ;;  %v4976_v46 = vmul.f32 %v6982_v28, %v10857_v43  ;;  %v6983_v52 = vadd.f32 %v10302_v49, %v3136_v13  ;;  %v6499_v17 = vpop.f32.mrb[35].mxu0 }
 0x5ee   : > { %v10419_v38 = vadd.f32 %v4680_v62, %v10276_v25  ;;  %v6935_v61 = vpop.f32.mrb[27].mxu1  ;;  %v10892_v62 = vld [vmem:[#allocation44_spill] sm:$0xff] }
 0x5ef   : > { %v5017_v33 = vadd.f32 %v5016_v30, %v4976_v46  ;;  %v5069_v45 = vmul.f32 %v6982_v28, %v4976_v46  ;;  %v5684_v32 = vpack.c.bf16 %v6983_v52, %v6982_v28  ;;  %v4977_v14 = vmul.f32 %v6983_v52, %v10869_v5 }
 0x5f0   : > { %v5729_v55 = vpack.c.bf16 %v10419_v38, %v10414_v19 }
 0x5f1   : > { %v5109_v31 = vadd.f32 %v5108_v60, %v5069_v45  ;;  %5771 = vst [vmem:[%s10320_s19 + $0x38] sm:$0xff] %v5684_v32   ;;  %v5018_v21 = vadd.f32 %v5017_v33, %v4977_v14  ;;  %v5070_v53 = vmul.f32 %v6983_v52, %v4977_v14  ;;  %v10893_v33 = vld [vmem:[#allocation50_spill] sm:$0xff] }
 0x5f2   : > { %5780 = vst [vmem:[%s10320_s19 + $0x80] sm:$0xff] %v5729_v55   ;;  %v3141_v43 = vpop.f32.mrb[36].mxu0  ;;  %v4982_v45 = vmul.f32 %v10325_v48, %v10893_v33  ;;  %v10894_v32 = vld [vmem:[#allocation62_spill] sm:$0xff] }
 0x5f3   : > { %v4685_v49 = vpop.f32.mrb[28].mxu1  ;;  %v6984_v25 = vadd.f32 %v10306_v42, %v3141_v43  ;;  %v6502_v56 = vpop.f32.mrb[37].mxu0  ;;  %v5110_v23 = vadd.f32 %v5109_v31, %v5070_v53  ;;  %v10895_v31 = vld [vmem:[#allocation54_spill] sm:$0xff] }
 0x5f4   : > { %v10428_v34 = vadd.f32 %v4685_v49, %v10280_v35  ;;  %v6938_v6 = vpop.f32.mrb[29].mxu1  ;;  %v3144_v5 = vpop.f32.mrb[38].mxu0  ;;  %v10896_v49 = vld [vmem:[#allocation72_spill] sm:$0xff] }
 0x5f5   : > { %v4688_v2 = vpop.f32.mrb[30].mxu1  ;;  %v4978_v57 = vmul.f32 %v6984_v25, %v9321_v59  ;;  %v6985_v37 = vadd.f32 %v10308_v20, %v3144_v5  ;;  %v6503_v12 = vpop.f32.mrb[39].mxu0  ;;  %v5075_v6 = vmul.f32 %v10325_v48, %v4982_v45 }
 0x5f6   : > { %v10433_v26 = vadd.f32 %v4688_v2, %v10284_v15  ;;  %v6939_v41 = vpop.f32.mrb[31].mxu1  ;;  %v10898_v12 = vld [vmem:[#allocation47_spill] sm:$0xff] }
 0x5f7   : > { %v5019_v42 = vadd.f32 %v5018_v21, %v4978_v57  ;;  %v5071_v44 = vmul.f32 %v6984_v25, %v4978_v57  ;;  %v5689_v35 = vpack.c.bf16 %v6985_v37, %v6984_v25  ;;  %v4979_v10 = vmul.f32 %v6985_v37, %v10871_v54 }
 0x5f8   : > { %v5734_v1 = vpack.c.bf16 %v10433_v26, %v10428_v34 }
 0x5f9   : > { %v5111_v29 = vadd.f32 %v5110_v23, %v5071_v44  ;;  %5772 = vst [vmem:[%s10320_s19 + $0x40] sm:$0xff] %v5689_v35   ;;  %v5020_v30 = vadd.f32 %v5019_v42, %v4979_v10  ;;  %v5072_v63 = vmul.f32 %v6985_v37, %v4979_v10  ;;  %v10897_v23 = vld [vmem:[#allocation55_spill] sm:$0xff]  ;;  %v10899_v35 = vld [vmem:[#allocation60_spill] sm:$0xff] }
 0x5fa   : > { %5781 = vst [vmem:[%s10320_s19 + $0x88] sm:$0xff] %v5734_v1   ;;  %v3149_v59 = vpop.f32.mrb[40].mxu0  ;;  %v4984_v5 = vmul.f32 %v10344_v24, %v10897_v23  ;;  %v4985_v10 = vmul.f32 %v10349_v3, %v10899_v35 }
 0x5fb   : > { %v4693_v20 = vpop.f32.mrb[32].mxu1  ;;  %v6986_v15 = vadd.f32 %v10310_v18, %v3149_v59  ;;  %v6506_v16 = vpop.f32.mrb[41].mxu0  ;;  %v5112_v7 = vadd.f32 %v5111_v29, %v5072_v63  ;;  %v10900_v63 = vld [vmem:[#allocation68_spill] sm:$0xff] }
 0x5fc   : > { %v10442_v39 = vadd.f32 %v4693_v20, %v10288_v8  ;;  %v6942_v28 = vpop.f32.mrb[33].mxu1  ;;  %v3152_v54 = vpop.f32.mrb[42].mxu0  ;;  %v4986_v59 = vmul.f32 %v10358_v11, %v10900_v63  ;;  %v10901_v16 = vld [vmem:[#allocation74_spill] sm:$0xff] }
 0x5fd   : > { %v4696_v27 = vpop.f32.mrb[34].mxu1  ;;  %v4980_v60 = vmul.f32 %v6986_v15, %v10872_v4  ;;  %v6987_v13 = vadd.f32 %v10313_v50, %v3152_v54  ;;  %v6507_v52 = vpop.f32.mrb[43].mxu0  ;;  %v4983_v50 = vmul.f32 %v10330_v51, %v10895_v31  ;;  %v4987_v28 = vmul.f32 %v10363_v0, %v10901_v16  ;;  %v10906_v31 = vld [vmem:[#allocation83_spill] sm:$0xff] }
 0x5fe   : > { %v10447_v46 = vadd.f32 %v4696_v27, %v10892_v62  ;;  %v6943_v17 = vpop.f32.mrb[35].mxu1  ;;  %v5079_v62 = vmul.f32 %v10358_v11, %v4986_v59  ;;  %v10903_v52 = vld [vmem:[#allocation79_spill] sm:$0xff] }
 0x5ff   : > { %v5021_v18 = vadd.f32 %v5020_v30, %v4980_v60  ;;  %v5073_v61 = vmul.f32 %v6986_v15, %v4980_v60  ;;  %v5694_v8 = vpack.c.bf16 %v6987_v13, %v6986_v15  ;;  %v4981_v14 = vmul.f32 %v6987_v13, %v10894_v32  ;;  %v10902_v60 = vld [vmem:[#allocation53_spill] sm:$0xff] }
 0x600   : > { %v5739_v55 = vpack.c.bf16 %v10447_v46, %v10442_v39  ;;  %v5076_v44 = vmul.f32 %v10330_v51, %v4983_v50  ;;  %v5077_v30 = vmul.f32 %v10344_v24, %v4984_v5  ;;  %v5078_v51 = vmul.f32 %v10349_v3, %v4985_v10 }
 0x601   : > { %v5113_v4 = vadd.f32 %v5112_v7, %v5073_v61  ;;  %5773 = vst [vmem:[%s10320_s19 + $0x48] sm:$0xff] %v5694_v8   ;;  %v5022_v21 = vadd.f32 %v5021_v18, %v4981_v14  ;;  %v5074_v53 = vmul.f32 %v6987_v13, %v4981_v14  ;;  %v4988_v17 = vmul.f32 %v10372_v47, %v10903_v52 }
 0x602   : > { %5782 = vst [vmem:[%s10320_s19 + $0x90] sm:$0xff] %v5739_v55   ;;  %v5080_v11 = vmul.f32 %v10363_v0, %v4987_v28 }
 0x603   : > { %v4701_v43 = vpop.f32.mrb[36].mxu1  ;;  %v5023_v2 = vadd.f32 %v5022_v21, %v4982_v45  ;;  %v5114_v57 = vadd.f32 %v5113_v4, %v5074_v53  ;;  %v10905_v45 = vld [vmem:[#allocation82_spill] sm:$0xff]  ;;  %v5081_v4 = vmul.f32 %v10372_v47, %v4988_v17 }
 0x604   : > { %v10459_v25 = vadd.f32 %v4701_v43, %v10896_v49  ;;  %v6946_v56 = vpop.f32.mrb[37].mxu1  ;;  %v4989_v32 = vmul.f32 %v10377_v40, %v10905_v45 }
 0x605   : > { %v4704_v37 = vpop.f32.mrb[38].mxu1  ;;  %v5024_v1 = vadd.f32 %v5023_v2, %v4983_v50  ;;  %v5115_v48 = vadd.f32 %v5114_v57, %v5075_v6  ;;  %v4990_v50 = vmul.f32 %v10386_v58, %v10906_v31 }
 0x606   : > { %v10465_v41 = vadd.f32 %v4704_v37, %v10898_v12  ;;  %v6947_v42 = vpop.f32.mrb[39].mxu1 }
 0x607   : > { %v5025_v20 = vadd.f32 %v5024_v1, %v4984_v5  ;;  %v5116_v15 = vadd.f32 %v5115_v48, %v5076_v44 }
 0x608   : > { %v5744_v29 = vpack.c.bf16 %v10465_v41, %v10459_v25 }
 0x609   : > { %v5026_v7 = vadd.f32 %v5025_v20, %v4985_v10  ;;  %v5117_v54 = vadd.f32 %v5116_v15, %v5077_v30 }
 0x60a   : > { %5783 = vst [vmem:[%s10320_s19 + $0x98] sm:$0xff] %v5744_v29  }
 0x60b   : > { %v4709_v27 = vpop.f32.mrb[40].mxu1  ;;  %v5027_v18 = vadd.f32 %v5026_v7, %v4986_v59  ;;  %v5118_v3 = vadd.f32 %v5117_v54, %v5078_v51 }
 0x60c   : > { %v10482_v13 = vadd.f32 %v4709_v27, %v10902_v60  ;;  %v6950_v24 = vpop.f32.mrb[41].mxu1 }
 0x60d   : > { %v4712_v61 = vpop.f32.mrb[42].mxu1  ;;  %v5028_v14 = vadd.f32 %v5027_v18, %v4987_v28  ;;  %v5119_v55 = vadd.f32 %v5118_v3, %v5079_v62 }
 0x60e   : > { %v5565_v8 = vpack.c.bf16 %v10482_v13, %v10482_v13  ;;  %v6951_v33 = vpop.f32.mrb[43].mxu1 }
 0x60f   : > { %v5029_v21 = vadd.f32 %v5028_v14, %v4988_v17  ;;  %v5120_v53 = vadd.f32 %v5119_v55, %v5080_v11 }
 0x610   : > { %4961 = vst [vmem:[%s10320_s19 + $0xa0] sm:$0x3] %v5565_v8 }
 0x611   : > { %8278 = shalt.err (!%p8275_p3)
}
 0x612   : > { %s8279_s23 = scalar_lea.hbm %s10490_s3, 2624  ;;  %s8283_s21 = scalar_lea.hbm %s10904_s25, 5248 }
 0x613   : > { %p8280_p11 = scmp.ne.s32.totalorder %s10490_s3, %s8279_s23  ;;  %p8284_p8 = scmp.lt.u32.totalorder %s10490_s3, %s10904_s25 }
 0x614   : > { %p8285_p13 = scmp.lt.u32.totalorder %s8283_s21, %s8279_s23  ;;  %p8287_p1 = scmp.lt.u32.totalorder %s8279_s23, %s10490_s3 }
 0x615   : > { %p8281_p12 = pnand %p8280_p11, %p10907_p6 }
 0x616   : > { %p8286_p0 = por %p8285_p13, %p8284_p8 }
 0x617   : > { %p8282_p2 = pneg %p8281_p12 }
 0x618   : > { %p8288_p5 = por %p8287_p1, %p8286_p0 }
 0x61a   : > { %p8289_p10 = pnand %p8288_p5, %p8282_p2 }
 0x61c   : > { %8292 = shalt.err (!%p8289_p10)
}
 0x61d   : > { %s8422_s1 = smov 64   ;;  %s8423_s20 = smov 4   ;;  %v5082_v0 = vmul.f32 %v10377_v40, %v4989_v32  ;;  %v10908_v47 = vld [vmem:[#allocation85_spill] sm:$0xff]  ;;  %v5030_v49 = vadd.f32 %v5029_v21, %v4989_v32  ;;  %v5121_v56 = vadd.f32 %v5120_v53, %v5081_v4  ;;  %v5083_v6 = vmul.f32 %v10386_v58, %v4990_v50  ;;  %v10909_v23 = vld [vmem:[#allocation86_spill] sm:$0xff]  ;;  %v10911_v10 = vld [vmem:[#allocation36_spill] sm:$0xff] }
 0x61e   : > { %7633 = dma.vmem_to_hbm [thread:$0]  (%p10907_p6), %s10494_s2, 2624, %s10490_s3, %s5146_s7, %s8422_s1, %s8422_s1, %s8423_s20   ;;  %v4991_v43 = vmul.f32 %v10391_v36, %v10908_v47  ;;  %v4992_v5 = vmul.f32 %v10400_v22, %v10909_v23  ;;  %v10910_v12 = vld [vmem:[#allocation89_spill] sm:$0xff]  ;;  %v4994_v1 = vmul.f32 %v10414_v19, %v10911_v10  ;;  %v10912_v30 = vld [vmem:[#allocation64_spill] sm:$0xff]  ;;  %v10914_v7 = vld [vmem:[#allocation66_spill] sm:$0xff]  ;;  %vm5043_vm2 = vcmask 1043456  }
 0x61f   : > { %v5122_v2 = vadd.f32 %v5121_v56, %v5082_v0  ;;  %v5031_v57 = vadd.f32 %v5030_v49, %v4990_v50  ;;  %v4993_v42 = vmul.f32 %v10405_v9, %v10910_v12  ;;  %v4995_v63 = vmul.f32 %v10419_v38, %v10912_v30  ;;  %v10913_v15 = vld [vmem:[#allocation40_spill] sm:$0xff]  ;;  %v10915_v24 = vld [vmem:[#allocation41_spill] sm:$0xff]  ;;  %v10916_v18 = vld [vmem:[#allocation67_spill] sm:$0xff]  ;;  %s5522_s19 = sshll.u32 %s8395_s16, 7  ;;  %s5181_s22 = sshll.u32 %s10334_s24, 4  ;;  %s10575_s22 = int_to_ptr.vmem [resolvable:$true] %s5181_s22 }
 0x620   : > { %v5084_v37 = vmul.f32 %v10391_v36, %v4991_v43  ;;  %v5085_v40 = vmul.f32 %v10400_v22, %v4992_v5  ;;  %v5087_v36 = vmul.f32 %v10414_v19, %v4994_v1  ;;  %v4996_v51 = vmul.f32 %v10428_v34, %v10913_v15  ;;  %v10917_v45 = vld [vmem:[#allocation42_spill] sm:$0xff]  ;;  %s10920_s26 = sld [smem:[#allocation96_spill]]  ;;  %s5151_s7 = scalar_lea.sflag [#allocation19], %s8789_s9 }
 0x621   : > { %v5032_v44 = vadd.f32 %v5031_v57, %v4991_v43  ;;  %v5123_v35 = vadd.f32 %v5122_v2, %v5083_v6  ;;  %v5086_v58 = vmul.f32 %v10405_v9, %v4993_v42  ;;  %v5088_v22 = vmul.f32 %v10419_v38, %v4995_v63  ;;  %s8293_s29 = scalar_lea.vmem %s10575_s22, 128  ;;  %s8424_s16 = smov [#allocation18]  }
 0x622   : > { %v4997_v54 = vmul.f32 %v10433_v26, %v10914_v7  ;;  %v5089_v9 = vmul.f32 %v10428_v34, %v4996_v51  ;;  %v4998_v62 = vmul.f32 %v10442_v39, %v10915_v24  ;;  %v4999_v3 = vmul.f32 %v10447_v46, %v10916_v18  ;;  %v10918_v34 = vld [vmem:[#allocation43_spill] sm:$0xff]  ;;  %p8294_p4 = scmp.ne.s32.totalorder %s10575_s22, %s8293_s29  ;;  %s8297_s27 = sshll.u32 %s8424_s16, 4  ;;  %s8298_s27 = int_to_ptr.vmem [resolvable:$false] %s8297_s27 }
 0x623   : > { %v5033_v48 = vadd.f32 %v5032_v44, %v4992_v5  ;;  %v5124_v29 = vadd.f32 %v5123_v35, %v5084_v37  ;;  %v5000_v32 = vmul.f32 %v10459_v25, %v10917_v45  ;;  %v5002_v14 = vmul.f32 %v10482_v13, %v10918_v34  ;;  %v5003_v35 = vld [vmem:[%s10334_s24] sm:$0x1]  ;;  %s8299_s11 = scalar_lea.vmem %s8298_s27, 256  ;;  %p8300_p3 = scmp.lt.s32.totalorder %s10575_s22, %s8298_s27 }
 0x624   : > { %v5090_v19 = vmul.f32 %v10433_v26, %v4997_v54  ;;  %v5091_v38 = vmul.f32 %v10442_v39, %v4998_v62  ;;  %v5092_v4 = vmul.f32 %v10447_v46, %v4999_v3  ;;  %v10919_v26 = vld [vmem:[#allocation69_spill] sm:$0xff]  ;;  %p8295_p7 = pnand %p8294_p4, %p10907_p6  ;;  %p8301_p11 = scmp.lt.s32.totalorder %s8299_s11, %s8293_s29 }
 0x625   : > { %v5034_v59 = vadd.f32 %v5033_v48, %v4993_v42  ;;  %v5125_v20 = vadd.f32 %v5124_v29, %v5085_v40  ;;  %v5001_v50 = vmul.f32 %v10465_v41, %v10919_v26  ;;  %v5093_v0 = vmul.f32 %v10459_v25, %v5000_v32 }
 0x626   : > { %v5095_v39 = vmul.f32 %v10482_v13, %v5002_v14  ;;  %v5044_v56 = vsel %vm5043_vm2, %v5002_v14, 0.0  ;;  %s10573_s3 = scalar_lea.hbm %s10920_s26, %s5522_s19  ;;  %p8296_p9 = pneg %p8295_p7 }
 0x627   : > { %v5035_v16 = vadd.f32 %v5034_v59, %v4994_v1  ;;  %v5126_v28 = vadd.f32 %v5125_v20, %v5086_v58  ;;  %v5094_v49 = vmul.f32 %v10465_v41, %v5001_v50  ;;  %v5054_v1 = vld [vmem:[%s10334_s24 + $0x1] sm:$0x1]  ;;  %p8302_p12 = por %p8301_p11, %p8300_p3 }
 0x628   : > { %v5135_v23 = vsel %vm5043_vm2, %v5095_v39, 0.0 }
 0x629   : > { %v5036_v27 = vadd.f32 %v5035_v16, %v4995_v63  ;;  %v5127_v60 = vadd.f32 %v5126_v28, %v5087_v36  ;;  %p8303_p2 = pnand %p8302_p12, %p8296_p9 }
 0x62b   : > { %v5037_v52 = vadd.f32 %v5036_v27, %v4996_v51  ;;  %v5128_v17 = vadd.f32 %v5127_v60, %v5088_v22 }
 0x62d   : > { %v5038_v61 = vadd.f32 %v5037_v52, %v4997_v54  ;;  %v5129_v8 = vadd.f32 %v5128_v17, %v5089_v9 }
 0x62f   : > { %v5039_v33 = vadd.f32 %v5038_v61, %v4998_v62  ;;  %v5130_v11 = vadd.f32 %v5129_v8, %v5090_v19 }
 0x631   : > { %v5040_v55 = vadd.f32 %v5039_v33, %v4999_v3  ;;  %v5131_v31 = vadd.f32 %v5130_v11, %v5091_v38 }
 0x633   : > { %v5132_v21 = vadd.f32 %v5131_v31, %v5092_v4  ;;  %v5041_v53 = vadd.f32 %v5040_v55, %v5000_v32 }
 0x635   : > { %v5133_v47 = vadd.f32 %v5132_v21, %v5093_v0  ;;  %v5042_v43 = vadd.f32 %v5041_v53, %v5001_v50 }
 0x637   : > { %v5134_v6 = vadd.f32 %v5133_v47, %v5094_v49  ;;  %v5045_v46 = vadd.f32 %v5044_v56, %v5042_v43 }
 0x639   : > { %v5046_v5 = vrot.slane %v5045_v46, 4  ;;  %v5136_v2 = vadd.f32 %v5135_v23, %v5134_v6 }
 0x63b   : > { %v5047_v57 = vadd.f32 %v5046_v5, %v5045_v46  ;;  %v5137_v25 = vrot.slane %v5136_v2, 4 }
 0x63d   : > { %v5048_v37 = vrot.slane %v5047_v57, 2  ;;  %v5138_v12 = vadd.f32 %v5137_v25, %v5136_v2 }
 0x63f   : > { %v5049_v13 = vadd.f32 %v5048_v37, %v5047_v57  ;;  %v5139_v42 = vrot.slane %v5138_v12, 2 }
 0x641   : > { %v5050_v44 = vrot.slane %v5049_v13, 1  ;;  %v5140_v41 = vadd.f32 %v5139_v42, %v5138_v12 }
 0x643   : > { %v5051_v40 = vadd.f32 %v5050_v44, %v5049_v13  ;;  %v5141_v10 = vrot.slane %v5140_v41, 1 }
 0x645   : > { %v5142_v48 = vadd.f32 %v5141_v10, %v5140_v41  ;;  %v5052_v29 = vadd.f32 %v5051_v40, %v5003_v35 }
 0x647   : > { %5053 = vst [vmem:[%s10334_s24] sm:$0x1] %v5052_v29  ;;  %v5143_v58 = vadd.f32 %v5142_v48, %v5054_v1 }
 0x649   : > { %5144 = vst [vmem:[%s10334_s24 + $0x1] sm:$0x1] %v5143_v58 }
 0x64a   : > { %8306 = shalt.err (!%p8303_p2)
}
 0x64b   : > { %s8307_s9 = scalar_lea.hbm %s10573_s3, 128  ;;  %s8311_s23 = scalar_lea.hbm %s10920_s26, 256 }
 0x64c   : > { %p8308_p8 = scmp.ne.s32.totalorder %s10573_s3, %s8307_s9  ;;  %p8312_p1 = scmp.lt.u32.totalorder %s10573_s3, %s10920_s26 }
 0x64d   : > { %p8313_p5 = scmp.lt.u32.totalorder %s8311_s23, %s8307_s9  ;;  %p8315_p4 = scmp.lt.u32.totalorder %s8307_s9, %s10573_s3 }
 0x64e   : > { %p8309_p13 = pnand %p8308_p8, %p10907_p6 }
 0x64f   : > { %p8314_p10 = por %p8313_p5, %p8312_p1 }
 0x650   : > { %p8310_p0 = pneg %p8309_p13 }
 0x651   : > { %p8316_p7 = por %p8315_p4, %p8314_p10 }
 0x653   : > { %p8317_p9 = pnand %p8316_p7, %p8310_p0 }
 0x655   : > { %8320 = shalt.err (!%p8317_p9)
}
 0x656   : > { %7634 = dma.vmem_to_hbm [thread:$0]  (%p10907_p6), %s10575_s22, 128, %s10573_s3, %s5151_s7  }
 0x657 PF: > { %s10921_s21 = sld [smem:[#allocation29_spill]]  ;;  %s10922_s30 = sld [smem:[#allocation33_spill]] }
 0x658   : > { %s10923_s12 = sld [smem:[#allocation30_spill]] }
 0x65d   : > { %s5193_s1 = sand.u32 1, %s10921_s21   ;;  %p10924_p3 = scmp.ne.s32.totalorder %s10922_s30, 0 }
 0x65e   : > { %p10925_p11 = scmp.ge.s32.totalorder %s10923_s12, 2  ;;  %s5194_s20 = scalar_lea.sflag [#allocation5], %s5193_s1 }
 0x660   : > { %p7667_p12 = pnand %p10925_p11, %p10924_p3 }
 0x662   : > { %8374 = dma.done.wait (!%p7667_p12), %s5194_s20, 2624  }
 0x663   : > { %8376 = vsyncadd (!%p7667_p12), %s5194_s20, 4294964672  ;;  %s5203_s19 = scalar_lea.sflag [#allocation19], %s5193_s1 }
 0x664   : > { %8378 = dma.done.wait (!%p7667_p12), %s5203_s19, 128  }
 0x665   : > { %8380 = vsyncadd (!%p7667_p12), %s5203_s19, 4294967168  ;;  %s33_s18 = sadd.s32 1, %s10923_s12   ;;  %s10926_s10 = sld [smem:[#allocation32_spill]] }
 0x666   : > { %p30_p2 = scmp.ge.s32.totalorder %s33_s18, 4   ;;  %s10927_s22 = sld [smem:[#allocation31_spill]] }
 0x667   : > { %s10928_s13 = smov %s8387_s14  ;;  %s10929_s14 = smov %s8391_s15 }
 0x668   : > { %s10931_s16 = smov %s8399_s17  ;;  %32 = sbr.rel (!%p30_p2) target bundleno = 19 (0x13), region = 169 }
 0x66b   : > { %s10930_s15 = smov %s10926_s10 }
 0x66c   : > { %s10932_s17 = smov %s10927_s22 }
 0x66f   :  { %5208 = vsyncpa [#allocation4], 1 }
 0x670   :  { %5210 = vsyncpa [#allocation4 + $0x1], 1 }
 0x671   :  { %5211 = vsyncpa [#allocation7], 1 }
 0x672   :  { %5212 = vsyncpa [#allocation10], 1 }
 0x673   :  { %5213 = vsyncpa [#allocation15], 1 }
 0x674   :  { %5214 = vsyncpa [#allocation5], 1 }
 0x675   :  { %5216 = vsyncpa [#allocation5 + $0x1], 1 }
 0x676   :  { %5217 = vsyncpa [#allocation19], 1 }
 0x677   :  { %5219 = vsyncpa [#allocation19 + $0x1], 1 }

</bundles_post_ra>
